<compile_context>
chip_gen: v6e
topology: v6e:2x2x1
jax: 0.10.0
libtpu: 0.0.40
codegen_flags: <defaults>
</compile_context>

<pallas_src>
import functools
import math

import jax
import jax.numpy as jnp
from jax import lax
from jax.experimental import pallas as pl
from jax.experimental.pallas import tpu as pltpu

CONTEXT_LENGTH = 128
D_MODEL = 512
NUM_HEADS = 8
D_HEAD = D_MODEL // NUM_HEADS  # 64

# TODO(synk): nn.Dropout(p=0.1) on attention weights and on the projection output is
# stochastic; implemented as identity (inference / eval semantics).


def mha_kernel(x_ref, wqkv_ref, wp_ref, bias_ref, o_ref, *, num_heads, d_head, scale):
    """Grid = (B,). One batch per step: fused QKV projection, unrolled per-head
    causal attention, fused output projection."""
    T = x_ref.shape[1]
    hdh = num_heads * d_head

    x = x_ref[0].astype(jnp.bfloat16)                        # (T, C) bf16
    wqkv = wqkv_ref[...]                                     # (C, 3*H*Dh) bf16

    # One big MXU matmul for all heads' q/k/v, f32 accumulation.
    qkv = jnp.dot(x, wqkv, preferred_element_type=jnp.float32)   # (T, 3*H*Dh) f32

    # Fold 1/sqrt(Dh) into q (T*HDh elements) instead of scaling (T,T) scores per head.
    q = (qkv[:, :hdh] * scale).astype(jnp.bfloat16)          # (T, H*Dh)
    k = qkv[:, hdh:2 * hdh].astype(jnp.bfloat16)
    v = qkv[:, 2 * hdh:].astype(jnp.bfloat16)

    # Causal mask, hoisted: built once per batch, reused by every head.
    row = lax.broadcasted_iota(jnp.int32, (T, T), 0)
    col = lax.broadcasted_iota(jnp.int32, (T, T), 1)
    causal = row >= col

    head_outs = []
    for h in range(num_heads):                               # unrolled (H = 8)
        lo, hi = h * d_head, (h + 1) * d_head
        qh = q[:, lo:hi]                                     # (T, Dh) bf16
        kh = k[:, lo:hi]
        vh = v[:, lo:hi]

        # q @ k^T without materializing the transpose (MXU-native RHS-T form).
        s = lax.dot_general(
            qh, kh, dimension_numbers=(((1,), (1,)), ((), ())),
            preferred_element_type=jnp.float32)              # (T, T) f32
        s = jnp.where(causal, s, -1e30)                      # finite mask: no NaN risk

        # Softmax in f32; denominator reciprocal on the EUP slot.
        s = s - jnp.max(s, axis=-1, keepdims=True)
        p = jnp.exp(s)
        p = p * pl.reciprocal(jnp.sum(p, axis=-1, keepdims=True), approx=True)

        head_outs.append(jnp.dot(p.astype(jnp.bfloat16), vh,
                                 preferred_element_type=jnp.float32))   # (T, Dh) f32

    cat = jnp.concatenate(head_outs, axis=-1).astype(jnp.bfloat16)      # (T, C) bf16

    # Single fused output projection over all heads.
    out = jnp.dot(cat, wp_ref[...], preferred_element_type=jnp.float32)  # (T, C) f32
    o_ref[0] = (out + bias_ref[...]).astype(o_ref.dtype)


def multi_head_attention(x, wq, wk, wv, wp, bias):
    """x: (B, T, C); wq/wk/wv: (H, C, Dh); wp: (H, Dh, C); bias: (C,)."""
    B, T, C = x.shape
    H, _, Dh = wq.shape
    scale = 1.0 / math.sqrt(Dh)

    # Pack per-head weights into fused MXU operands (bf16: native MXU dtype,
    # halves weight HBM traffic).  Column order matches the per-head concat.
    wq2 = jnp.transpose(wq, (1, 0, 2)).reshape(C, H * Dh)
    wk2 = jnp.transpose(wk, (1, 0, 2)).reshape(C, H * Dh)
    wv2 = jnp.transpose(wv, (1, 0, 2)).reshape(C, H * Dh)
    wqkv = jnp.concatenate([wq2, wk2, wv2], axis=1).astype(jnp.bfloat16)  # (C, 3*H*Dh)
    wp2 = wp.reshape(H * Dh, C).astype(jnp.bfloat16)                      # (C, C)
    bias2d = bias.reshape(1, C).astype(jnp.float32)

    kernel = functools.partial(mha_kernel, num_heads=H, d_head=Dh, scale=scale)

    return pl.pallas_call(
        kernel,
        out_shape=jax.ShapeDtypeStruct((B, T, C), x.dtype),
        grid_spec=pltpu.PrefetchScalarGridSpec(
            num_scalar_prefetch=0,
            grid=(B,),
            in_specs=[
                pl.BlockSpec((1, T, C), lambda b: (b, 0, 0)),        # x[b]
                pl.BlockSpec((C, 3 * H * Dh), lambda b: (0, 0)),     # Wqkv (VMEM-resident)
                pl.BlockSpec((H * Dh, C), lambda b: (0, 0)),         # Wproj (VMEM-resident)
                pl.BlockSpec((1, C), lambda b: (0, 0)),              # bias  (VMEM-resident)
            ],
            out_specs=pl.BlockSpec((1, T, C), lambda b: (b, 0, 0)),
        ),
        compiler_params=pltpu.CompilerParams(
            # Batch axis is independent: shards across the 2 TensorCores on v7x,
            # no-op elsewhere.
            dimension_semantics=("parallel",),
        ),
    )(x, wqkv, wp2, bias2d)


def reference_mha(x, wq, wk, wv, wp, bias):
    """Plain-JAX reference mirroring the PyTorch module (dropout = identity)."""
    B, T, C = x.shape
    H, _, Dh = wq.shape
    mask = jnp.tril(jnp.ones((T, T)))
    outs = []
    for h in range(H):
        q = x @ wq[h]
        k = x @ wk[h]
        v = x @ wv[h]
        w = (q @ jnp.swapaxes(k, -2, -1)) / math.sqrt(Dh)
        w = jnp.where(mask == 0, -jnp.inf, w)
        w = jax.nn.softmax(w, axis=-1)
        outs.append(w @ v)
    cat = jnp.concatenate(outs, axis=-1)                     # (B, T, C)
    wp_full = wp.reshape(H * Dh, C)                          # (C, C)
    return cat @ wp_full + bias


if __name__ == "__main__":
    key = jax.random.PRNGKey(0)
    k_x, k_q, k_k, k_v, k_p, k_b = jax.random.split(key, 6)

    B, T, C, H, Dh = 2, CONTEXT_LENGTH, D_MODEL, NUM_HEADS, D_HEAD

    # Deterministic synthetic parameters (PyTorch-Linear-like uniform init scale).
    bound = 1.0 / math.sqrt(C)
    x = jax.random.normal(k_x, (B, T, C), dtype=jnp.float32)
    wq = jax.random.uniform(k_q, (H, C, Dh), jnp.float32, -bound, bound)
    wk = jax.random.uniform(k_k, (H, C, Dh), jnp.float32, -bound, bound)
    wv = jax.random.uniform(k_v, (H, C, Dh), jnp.float32, -bound, bound)
    wp = jax.random.uniform(k_p, (H, Dh, C), jnp.float32, -bound, bound)
    bias = jax.random.uniform(k_b, (C,), jnp.float32, -bound, bound)

    out = multi_head_attention(x, wq, wk, wv, wp, bias)
    out = jax.block_until_ready(out)

    with jax.default_matmul_precision("float32"):
        ref = reference_mha(x, wq, wk, wv, wp, bias)

    assert out.shape == (B, T, C)
    max_err = float(jnp.max(jnp.abs(out - ref)))
    # bf16 MXU operands (f32 accumulation, f32 softmax) => ~1e-2-scale worst-case
    # deviation from the pure-f32 reference.
    assert jnp.allclose(out, ref, atol=2e-2, rtol=2e-2), max_err

    print("KERNEL_OK")
</pallas_src>

<mosaic_0001>
module attributes {stable_mosaic.version = 11 : i64} {
  func.func @mha_kernel(%arg0: i32, %arg1: memref<1x128x512xf32, #tpu.memory_space<vmem>>, %arg2: memref<512x1536xbf16, #tpu.memory_space<vmem>>, %arg3: memref<512x512xbf16, #tpu.memory_space<vmem>>, %arg4: memref<1x512xf32, #tpu.memory_space<vmem>>, %arg5: memref<1x128x512xf32, #tpu.memory_space<vmem>>) attributes {dimension_semantics = [#tpu.dimension_semantics<parallel>], iteration_bounds = array<i64: 2>, scalar_prefetch = 0 : i64, scratch_operands = 0 : i64, tpu.core_type = #tpu.core_type<tc>, window_params = [{transform_indices = @transform_0, window_bounds = array<i64: 1, 128, 512>}, {pipeline_mode = #tpu.pipeline_mode<synchronous>, transform_indices = @transform_1, window_bounds = array<i64: 512, 1536>}, {pipeline_mode = #tpu.pipeline_mode<synchronous>, transform_indices = @transform_2, window_bounds = array<i64: 512, 512>}, {pipeline_mode = #tpu.pipeline_mode<synchronous>, transform_indices = @transform_3, window_bounds = array<i64: 1, 512>}, {transform_indices = @transform_4, window_bounds = array<i64: 1, 128, 512>}]} {
    %c0 = arith.constant 0 : index
    %c0_0 = arith.constant 0 : index
    %c0_1 = arith.constant 0 : index
    %0 = vector.load %arg1[%c0, %c0_0, %c0_1] : memref<1x128x512xf32, #tpu.memory_space<vmem>>, vector<1x128x512xf32>
    %1 = vector.shape_cast %0 : vector<1x128x512xf32> to vector<128x512xf32>
    %2 = arith.truncf %1 : vector<128x512xf32> to vector<128x512xbf16>
    %c0_2 = arith.constant 0 : index
    %c0_3 = arith.constant 0 : index
    %3 = vector.load %arg2[%c0_2, %c0_3] : memref<512x1536xbf16, #tpu.memory_space<vmem>>, vector<512x1536xbf16>
    %cst = arith.constant dense<0.000000e+00> : vector<128x1536xf32>
    %4 = tpu.matmul %2, %3, %cst {dimension_numbers = #tpu.dot_dimension_numbers<[1], [0], [0], [1], [0, 0, 1, 1], [], []>} : vector<128x512xbf16>, vector<512x1536xbf16>, vector<128x1536xf32> -> vector<128x1536xf32>
    %5 = vector.extract_strided_slice %4 {offsets = [0, 0], sizes = [128, 512], strides = [1, 1]} : vector<128x1536xf32> to vector<128x512xf32>
    %cst_4 = arith.constant 1.250000e-01 : f32
    %6 = vector.broadcast %cst_4 : f32 to vector<128x512xf32>
    %7 = arith.mulf %5, %6 : vector<128x512xf32>
    %8 = arith.truncf %7 : vector<128x512xf32> to vector<128x512xbf16>
    %9 = vector.extract_strided_slice %4 {offsets = [0, 512], sizes = [128, 512], strides = [1, 1]} : vector<128x1536xf32> to vector<128x512xf32>
    %10 = arith.truncf %9 : vector<128x512xf32> to vector<128x512xbf16>
    %11 = vector.extract_strided_slice %4 {offsets = [0, 1024], sizes = [128, 512], strides = [1, 1]} : vector<128x1536xf32> to vector<128x512xf32>
    %12 = arith.truncf %11 : vector<128x512xf32> to vector<128x512xbf16>
    %13 = tpu.iota {dimensions = array<i32: 0>} : vector<128x128xi32>
    %14 = tpu.iota {dimensions = array<i32: 1>} : vector<128x128xi32>
    %15 = arith.cmpi sge, %13, %14 : vector<128x128xi32>
    %16 = vector.extract_strided_slice %8 {offsets = [0, 0], sizes = [128, 64], strides = [1, 1]} : vector<128x512xbf16> to vector<128x64xbf16>
    %17 = vector.extract_strided_slice %10 {offsets = [0, 0], sizes = [128, 64], strides = [1, 1]} : vector<128x512xbf16> to vector<128x64xbf16>
    %18 = vector.extract_strided_slice %12 {offsets = [0, 0], sizes = [128, 64], strides = [1, 1]} : vector<128x512xbf16> to vector<128x64xbf16>
    %cst_5 = arith.constant dense<0.000000e+00> : vector<128x128xf32>
    %19 = tpu.matmul %16, %17, %cst_5 {dimension_numbers = #tpu.dot_dimension_numbers<[1], [1], [0], [0], [0, 0, 1, 0], [], []>} : vector<128x64xbf16>, vector<128x64xbf16>, vector<128x128xf32> -> vector<128x128xf32>
    %cst_6 = arith.constant -1.000000e+30 : f32
    %20 = vector.broadcast %cst_6 : f32 to vector<128x128xf32>
    %21 = arith.select %15, %19, %20 : vector<128x128xi1>, vector<128x128xf32>
    %cst_7 = arith.constant dense<0xFF800000> : vector<128xf32>
    %22 = vector.multi_reduction <maximumf>, %21, %cst_7 [1] : vector<128x128xf32> to vector<128xf32>
    %23 = vector.shape_cast %22 : vector<128xf32> to vector<128x1xf32>
    %24 = vector.broadcast %23 : vector<128x1xf32> to vector<128x128xf32>
    %25 = arith.subf %21, %24 : vector<128x128xf32>
    %26 = math.exp %25 : vector<128x128xf32>
    %cst_8 = arith.constant dense<0.000000e+00> : vector<128xf32>
    %27 = vector.multi_reduction <add>, %26, %cst_8 [1] : vector<128x128xf32> to vector<128xf32>
    %28 = vector.shape_cast %27 : vector<128xf32> to vector<128x1xf32>
    %29 = tpu.reciprocal %28 {approx = true} : vector<128x1xf32> -> vector<128x1xf32>
    %30 = vector.broadcast %29 : vector<128x1xf32> to vector<128x128xf32>
    %31 = arith.mulf %26, %30 : vector<128x128xf32>
    %32 = arith.truncf %31 : vector<128x128xf32> to vector<128x128xbf16>
    %cst_9 = arith.constant dense<0.000000e+00> : vector<128x64xf32>
    %33 = tpu.matmul %32, %18, %cst_9 {dimension_numbers = #tpu.dot_dimension_numbers<[1], [0], [0], [1], [0, 0, 1, 1], [], []>} : vector<128x128xbf16>, vector<128x64xbf16>, vector<128x64xf32> -> vector<128x64xf32>
    %34 = vector.extract_strided_slice %8 {offsets = [0, 64], sizes = [128, 64], strides = [1, 1]} : vector<128x512xbf16> to vector<128x64xbf16>
    %35 = vector.extract_strided_slice %10 {offsets = [0, 64], sizes = [128, 64], strides = [1, 1]} : vector<128x512xbf16> to vector<128x64xbf16>
    %36 = vector.extract_strided_slice %12 {offsets = [0, 64], sizes = [128, 64], strides = [1, 1]} : vector<128x512xbf16> to vector<128x64xbf16>
    %cst_10 = arith.constant dense<0.000000e+00> : vector<128x128xf32>
    %37 = tpu.matmul %34, %35, %cst_10 {dimension_numbers = #tpu.dot_dimension_numbers<[1], [1], [0], [0], [0, 0, 1, 0], [], []>} : vector<128x64xbf16>, vector<128x64xbf16>, vector<128x128xf32> -> vector<128x128xf32>
    %cst_11 = arith.constant -1.000000e+30 : f32
    %38 = vector.broadcast %cst_11 : f32 to vector<128x128xf32>
    %39 = arith.select %15, %37, %38 : vector<128x128xi1>, vector<128x128xf32>
    %cst_12 = arith.constant dense<0xFF800000> : vector<128xf32>
    %40 = vector.multi_reduction <maximumf>, %39, %cst_12 [1] : vector<128x128xf32> to vector<128xf32>
    %41 = vector.shape_cast %40 : vector<128xf32> to vector<128x1xf32>
    %42 = vector.broadcast %41 : vector<128x1xf32> to vector<128x128xf32>
    %43 = arith.subf %39, %42 : vector<128x128xf32>
    %44 = math.exp %43 : vector<128x128xf32>
    %cst_13 = arith.constant dense<0.000000e+00> : vector<128xf32>
    %45 = vector.multi_reduction <add>, %44, %cst_13 [1] : vector<128x128xf32> to vector<128xf32>
    %46 = vector.shape_cast %45 : vector<128xf32> to vector<128x1xf32>
    %47 = tpu.reciprocal %46 {approx = true} : vector<128x1xf32> -> vector<128x1xf32>
    %48 = vector.broadcast %47 : vector<128x1xf32> to vector<128x128xf32>
    %49 = arith.mulf %44, %48 : vector<128x128xf32>
    %50 = arith.truncf %49 : vector<128x128xf32> to vector<128x128xbf16>
    %cst_14 = arith.constant dense<0.000000e+00> : vector<128x64xf32>
    %51 = tpu.matmul %50, %36, %cst_14 {dimension_numbers = #tpu.dot_dimension_numbers<[1], [0], [0], [1], [0, 0, 1, 1], [], []>} : vector<128x128xbf16>, vector<128x64xbf16>, vector<128x64xf32> -> vector<128x64xf32>
    %52 = vector.extract_strided_slice %8 {offsets = [0, 128], sizes = [128, 64], strides = [1, 1]} : vector<128x512xbf16> to vector<128x64xbf16>
    %53 = vector.extract_strided_slice %10 {offsets = [0, 128], sizes = [128, 64], strides = [1, 1]} : vector<128x512xbf16> to vector<128x64xbf16>
    %54 = vector.extract_strided_slice %12 {offsets = [0, 128], sizes = [128, 64], strides = [1, 1]} : vector<128x512xbf16> to vector<128x64xbf16>
    %cst_15 = arith.constant dense<0.000000e+00> : vector<128x128xf32>
    %55 = tpu.matmul %52, %53, %cst_15 {dimension_numbers = #tpu.dot_dimension_numbers<[1], [1], [0], [0], [0, 0, 1, 0], [], []>} : vector<128x64xbf16>, vector<128x64xbf16>, vector<128x128xf32> -> vector<128x128xf32>
    %cst_16 = arith.constant -1.000000e+30 : f32
    %56 = vector.broadcast %cst_16 : f32 to vector<128x128xf32>
    %57 = arith.select %15, %55, %56 : vector<128x128xi1>, vector<128x128xf32>
    %cst_17 = arith.constant dense<0xFF800000> : vector<128xf32>
    %58 = vector.multi_reduction <maximumf>, %57, %cst_17 [1] : vector<128x128xf32> to vector<128xf32>
    %59 = vector.shape_cast %58 : vector<128xf32> to vector<128x1xf32>
    %60 = vector.broadcast %59 : vector<128x1xf32> to vector<128x128xf32>
    %61 = arith.subf %57, %60 : vector<128x128xf32>
    %62 = math.exp %61 : vector<128x128xf32>
    %cst_18 = arith.constant dense<0.000000e+00> : vector<128xf32>
    %63 = vector.multi_reduction <add>, %62, %cst_18 [1] : vector<128x128xf32> to vector<128xf32>
    %64 = vector.shape_cast %63 : vector<128xf32> to vector<128x1xf32>
    %65 = tpu.reciprocal %64 {approx = true} : vector<128x1xf32> -> vector<128x1xf32>
    %66 = vector.broadcast %65 : vector<128x1xf32> to vector<128x128xf32>
    %67 = arith.mulf %62, %66 : vector<128x128xf32>
    %68 = arith.truncf %67 : vector<128x128xf32> to vector<128x128xbf16>
    %cst_19 = arith.constant dense<0.000000e+00> : vector<128x64xf32>
    %69 = tpu.matmul %68, %54, %cst_19 {dimension_numbers = #tpu.dot_dimension_numbers<[1], [0], [0], [1], [0, 0, 1, 1], [], []>} : vector<128x128xbf16>, vector<128x64xbf16>, vector<128x64xf32> -> vector<128x64xf32>
    %70 = vector.extract_strided_slice %8 {offsets = [0, 192], sizes = [128, 64], strides = [1, 1]} : vector<128x512xbf16> to vector<128x64xbf16>
    %71 = vector.extract_strided_slice %10 {offsets = [0, 192], sizes = [128, 64], strides = [1, 1]} : vector<128x512xbf16> to vector<128x64xbf16>
    %72 = vector.extract_strided_slice %12 {offsets = [0, 192], sizes = [128, 64], strides = [1, 1]} : vector<128x512xbf16> to vector<128x64xbf16>
    %cst_20 = arith.constant dense<0.000000e+00> : vector<128x128xf32>
    %73 = tpu.matmul %70, %71, %cst_20 {dimension_numbers = #tpu.dot_dimension_numbers<[1], [1], [0], [0], [0, 0, 1, 0], [], []>} : vector<128x64xbf16>, vector<128x64xbf16>, vector<128x128xf32> -> vector<128x128xf32>
    %cst_21 = arith.constant -1.000000e+30 : f32
    %74 = vector.broadcast %cst_21 : f32 to vector<128x128xf32>
    %75 = arith.select %15, %73, %74 : vector<128x128xi1>, vector<128x128xf32>
    %cst_22 = arith.constant dense<0xFF800000> : vector<128xf32>
    %76 = vector.multi_reduction <maximumf>, %75, %cst_22 [1] : vector<128x128xf32> to vector<128xf32>
    %77 = vector.shape_cast %76 : vector<128xf32> to vector<128x1xf32>
    %78 = vector.broadcast %77 : vector<128x1xf32> to vector<128x128xf32>
    %79 = arith.subf %75, %78 : vector<128x128xf32>
    %80 = math.exp %79 : vector<128x128xf32>
    %cst_23 = arith.constant dense<0.000000e+00> : vector<128xf32>
    %81 = vector.multi_reduction <add>, %80, %cst_23 [1] : vector<128x128xf32> to vector<128xf32>
    %82 = vector.shape_cast %81 : vector<128xf32> to vector<128x1xf32>
    %83 = tpu.reciprocal %82 {approx = true} : vector<128x1xf32> -> vector<128x1xf32>
    %84 = vector.broadcast %83 : vector<128x1xf32> to vector<128x128xf32>
    %85 = arith.mulf %80, %84 : vector<128x128xf32>
    %86 = arith.truncf %85 : vector<128x128xf32> to vector<128x128xbf16>
    %cst_24 = arith.constant dense<0.000000e+00> : vector<128x64xf32>
    %87 = tpu.matmul %86, %72, %cst_24 {dimension_numbers = #tpu.dot_dimension_numbers<[1], [0], [0], [1], [0, 0, 1, 1], [], []>} : vector<128x128xbf16>, vector<128x64xbf16>, vector<128x64xf32> -> vector<128x64xf32>
    %88 = vector.extract_strided_slice %8 {offsets = [0, 256], sizes = [128, 64], strides = [1, 1]} : vector<128x512xbf16> to vector<128x64xbf16>
    %89 = vector.extract_strided_slice %10 {offsets = [0, 256], sizes = [128, 64], strides = [1, 1]} : vector<128x512xbf16> to vector<128x64xbf16>
    %90 = vector.extract_strided_slice %12 {offsets = [0, 256], sizes = [128, 64], strides = [1, 1]} : vector<128x512xbf16> to vector<128x64xbf16>
    %cst_25 = arith.constant dense<0.000000e+00> : vector<128x128xf32>
    %91 = tpu.matmul %88, %89, %cst_25 {dimension_numbers = #tpu.dot_dimension_numbers<[1], [1], [0], [0], [0, 0, 1, 0], [], []>} : vector<128x64xbf16>, vector<128x64xbf16>, vector<128x128xf32> -> vector<128x128xf32>
    %cst_26 = arith.constant -1.000000e+30 : f32
    %92 = vector.broadcast %cst_26 : f32 to vector<128x128xf32>
    %93 = arith.select %15, %91, %92 : vector<128x128xi1>, vector<128x128xf32>
    %cst_27 = arith.constant dense<0xFF800000> : vector<128xf32>
    %94 = vector.multi_reduction <maximumf>, %93, %cst_27 [1] : vector<128x128xf32> to vector<128xf32>
    %95 = vector.shape_cast %94 : vector<128xf32> to vector<128x1xf32>
    %96 = vector.broadcast %95 : vector<128x1xf32> to vector<128x128xf32>
    %97 = arith.subf %93, %96 : vector<128x128xf32>
    %98 = math.exp %97 : vector<128x128xf32>
    %cst_28 = arith.constant dense<0.000000e+00> : vector<128xf32>
    %99 = vector.multi_reduction <add>, %98, %cst_28 [1] : vector<128x128xf32> to vector<128xf32>
    %100 = vector.shape_cast %99 : vector<128xf32> to vector<128x1xf32>
    %101 = tpu.reciprocal %100 {approx = true} : vector<128x1xf32> -> vector<128x1xf32>
    %102 = vector.broadcast %101 : vector<128x1xf32> to vector<128x128xf32>
    %103 = arith.mulf %98, %102 : vector<128x128xf32>
    %104 = arith.truncf %103 : vector<128x128xf32> to vector<128x128xbf16>
    %cst_29 = arith.constant dense<0.000000e+00> : vector<128x64xf32>
    %105 = tpu.matmul %104, %90, %cst_29 {dimension_numbers = #tpu.dot_dimension_numbers<[1], [0], [0], [1], [0, 0, 1, 1], [], []>} : vector<128x128xbf16>, vector<128x64xbf16>, vector<128x64xf32> -> vector<128x64xf32>
    %106 = vector.extract_strided_slice %8 {offsets = [0, 320], sizes = [128, 64], strides = [1, 1]} : vector<128x512xbf16> to vector<128x64xbf16>
    %107 = vector.extract_strided_slice %10 {offsets = [0, 320], sizes = [128, 64], strides = [1, 1]} : vector<128x512xbf16> to vector<128x64xbf16>
    %108 = vector.extract_strided_slice %12 {offsets = [0, 320], sizes = [128, 64], strides = [1, 1]} : vector<128x512xbf16> to vector<128x64xbf16>
    %cst_30 = arith.constant dense<0.000000e+00> : vector<128x128xf32>
    %109 = tpu.matmul %106, %107, %cst_30 {dimension_numbers = #tpu.dot_dimension_numbers<[1], [1], [0], [0], [0, 0, 1, 0], [], []>} : vector<128x64xbf16>, vector<128x64xbf16>, vector<128x128xf32> -> vector<128x128xf32>
    %cst_31 = arith.constant -1.000000e+30 : f32
    %110 = vector.broadcast %cst_31 : f32 to vector<128x128xf32>
    %111 = arith.select %15, %109, %110 : vector<128x128xi1>, vector<128x128xf32>
    %cst_32 = arith.constant dense<0xFF800000> : vector<128xf32>
    %112 = vector.multi_reduction <maximumf>, %111, %cst_32 [1] : vector<128x128xf32> to vector<128xf32>
    %113 = vector.shape_cast %112 : vector<128xf32> to vector<128x1xf32>
    %114 = vector.broadcast %113 : vector<128x1xf32> to vector<128x128xf32>
    %115 = arith.subf %111, %114 : vector<128x128xf32>
    %116 = math.exp %115 : vector<128x128xf32>
    %cst_33 = arith.constant dense<0.000000e+00> : vector<128xf32>
    %117 = vector.multi_reduction <add>, %116, %cst_33 [1] : vector<128x128xf32> to vector<128xf32>
    %118 = vector.shape_cast %117 : vector<128xf32> to vector<128x1xf32>
    %119 = tpu.reciprocal %118 {approx = true} : vector<128x1xf32> -> vector<128x1xf32>
    %120 = vector.broadcast %119 : vector<128x1xf32> to vector<128x128xf32>
    %121 = arith.mulf %116, %120 : vector<128x128xf32>
    %122 = arith.truncf %121 : vector<128x128xf32> to vector<128x128xbf16>
    %cst_34 = arith.constant dense<0.000000e+00> : vector<128x64xf32>
    %123 = tpu.matmul %122, %108, %cst_34 {dimension_numbers = #tpu.dot_dimension_numbers<[1], [0], [0], [1], [0, 0, 1, 1], [], []>} : vector<128x128xbf16>, vector<128x64xbf16>, vector<128x64xf32> -> vector<128x64xf32>
    %124 = vector.extract_strided_slice %8 {offsets = [0, 384], sizes = [128, 64], strides = [1, 1]} : vector<128x512xbf16> to vector<128x64xbf16>
    %125 = vector.extract_strided_slice %10 {offsets = [0, 384], sizes = [128, 64], strides = [1, 1]} : vector<128x512xbf16> to vector<128x64xbf16>
    %126 = vector.extract_strided_slice %12 {offsets = [0, 384], sizes = [128, 64], strides = [1, 1]} : vector<128x512xbf16> to vector<128x64xbf16>
    %cst_35 = arith.constant dense<0.000000e+00> : vector<128x128xf32>
    %127 = tpu.matmul %124, %125, %cst_35 {dimension_numbers = #tpu.dot_dimension_numbers<[1], [1], [0], [0], [0, 0, 1, 0], [], []>} : vector<128x64xbf16>, vector<128x64xbf16>, vector<128x128xf32> -> vector<128x128xf32>
    %cst_36 = arith.constant -1.000000e+30 : f32
    %128 = vector.broadcast %cst_36 : f32 to vector<128x128xf32>
    %129 = arith.select %15, %127, %128 : vector<128x128xi1>, vector<128x128xf32>
    %cst_37 = arith.constant dense<0xFF800000> : vector<128xf32>
    %130 = vector.multi_reduction <maximumf>, %129, %cst_37 [1] : vector<128x128xf32> to vector<128xf32>
    %131 = vector.shape_cast %130 : vector<128xf32> to vector<128x1xf32>
    %132 = vector.broadcast %131 : vector<128x1xf32> to vector<128x128xf32>
    %133 = arith.subf %129, %132 : vector<128x128xf32>
    %134 = math.exp %133 : vector<128x128xf32>
    %cst_38 = arith.constant dense<0.000000e+00> : vector<128xf32>
    %135 = vector.multi_reduction <add>, %134, %cst_38 [1] : vector<128x128xf32> to vector<128xf32>
    %136 = vector.shape_cast %135 : vector<128xf32> to vector<128x1xf32>
    %137 = tpu.reciprocal %136 {approx = true} : vector<128x1xf32> -> vector<128x1xf32>
    %138 = vector.broadcast %137 : vector<128x1xf32> to vector<128x128xf32>
    %139 = arith.mulf %134, %138 : vector<128x128xf32>
    %140 = arith.truncf %139 : vector<128x128xf32> to vector<128x128xbf16>
    %cst_39 = arith.constant dense<0.000000e+00> : vector<128x64xf32>
    %141 = tpu.matmul %140, %126, %cst_39 {dimension_numbers = #tpu.dot_dimension_numbers<[1], [0], [0], [1], [0, 0, 1, 1], [], []>} : vector<128x128xbf16>, vector<128x64xbf16>, vector<128x64xf32> -> vector<128x64xf32>
    %142 = vector.extract_strided_slice %8 {offsets = [0, 448], sizes = [128, 64], strides = [1, 1]} : vector<128x512xbf16> to vector<128x64xbf16>
    %143 = vector.extract_strided_slice %10 {offsets = [0, 448], sizes = [128, 64], strides = [1, 1]} : vector<128x512xbf16> to vector<128x64xbf16>
    %144 = vector.extract_strided_slice %12 {offsets = [0, 448], sizes = [128, 64], strides = [1, 1]} : vector<128x512xbf16> to vector<128x64xbf16>
    %cst_40 = arith.constant dense<0.000000e+00> : vector<128x128xf32>
    %145 = tpu.matmul %142, %143, %cst_40 {dimension_numbers = #tpu.dot_dimension_numbers<[1], [1], [0], [0], [0, 0, 1, 0], [], []>} : vector<128x64xbf16>, vector<128x64xbf16>, vector<128x128xf32> -> vector<128x128xf32>
    %cst_41 = arith.constant -1.000000e+30 : f32
    %146 = vector.broadcast %cst_41 : f32 to vector<128x128xf32>
    %147 = arith.select %15, %145, %146 : vector<128x128xi1>, vector<128x128xf32>
    %cst_42 = arith.constant dense<0xFF800000> : vector<128xf32>
    %148 = vector.multi_reduction <maximumf>, %147, %cst_42 [1] : vector<128x128xf32> to vector<128xf32>
    %149 = vector.shape_cast %148 : vector<128xf32> to vector<128x1xf32>
    %150 = vector.broadcast %149 : vector<128x1xf32> to vector<128x128xf32>
    %151 = arith.subf %147, %150 : vector<128x128xf32>
    %152 = math.exp %151 : vector<128x128xf32>
    %cst_43 = arith.constant dense<0.000000e+00> : vector<128xf32>
    %153 = vector.multi_reduction <add>, %152, %cst_43 [1] : vector<128x128xf32> to vector<128xf32>
    %154 = vector.shape_cast %153 : vector<128xf32> to vector<128x1xf32>
    %155 = tpu.reciprocal %154 {approx = true} : vector<128x1xf32> -> vector<128x1xf32>
    %156 = vector.broadcast %155 : vector<128x1xf32> to vector<128x128xf32>
    %157 = arith.mulf %152, %156 : vector<128x128xf32>
    %158 = arith.truncf %157 : vector<128x128xf32> to vector<128x128xbf16>
    %cst_44 = arith.constant dense<0.000000e+00> : vector<128x64xf32>
    %159 = tpu.matmul %158, %144, %cst_44 {dimension_numbers = #tpu.dot_dimension_numbers<[1], [0], [0], [1], [0, 0, 1, 1], [], []>} : vector<128x128xbf16>, vector<128x64xbf16>, vector<128x64xf32> -> vector<128x64xf32>
    %160 = tpu.concatenate %33, %51, %69, %87, %105, %123, %141, %159 in 1 : vector<128x64xf32>, vector<128x64xf32>, vector<128x64xf32>, vector<128x64xf32>, vector<128x64xf32>, vector<128x64xf32>, vector<128x64xf32>, vector<128x64xf32> -> vector<128x512xf32>
    %161 = arith.truncf %160 : vector<128x512xf32> to vector<128x512xbf16>
    %c0_45 = arith.constant 0 : index
    %c0_46 = arith.constant 0 : index
    %162 = vector.load %arg3[%c0_45, %c0_46] : memref<512x512xbf16, #tpu.memory_space<vmem>>, vector<512x512xbf16>
    %cst_47 = arith.constant dense<0.000000e+00> : vector<128x512xf32>
    %163 = tpu.matmul %161, %162, %cst_47 {dimension_numbers = #tpu.dot_dimension_numbers<[1], [0], [0], [1], [0, 0, 1, 1], [], []>} : vector<128x512xbf16>, vector<512x512xbf16>, vector<128x512xf32> -> vector<128x512xf32>
    %c0_48 = arith.constant 0 : index
    %c0_49 = arith.constant 0 : index
    %164 = vector.load %arg4[%c0_48, %c0_49] : memref<1x512xf32, #tpu.memory_space<vmem>>, vector<1x512xf32>
    %165 = vector.broadcast %164 : vector<1x512xf32> to vector<128x512xf32>
    %166 = arith.addf %163, %165 : vector<128x512xf32>
    %c0_50 = arith.constant 0 : index
    %c0_51 = arith.constant 0 : index
    %c0_52 = arith.constant 0 : index
    %167 = vector.load %arg5[%c0_50, %c0_51, %c0_52] : memref<1x128x512xf32, #tpu.memory_space<vmem>>, vector<1x128x512xf32>
    %168 = vector.shape_cast %167 : vector<1x128x512xf32> to vector<128x512xf32>
    %169 = vector.shape_cast %166 : vector<128x512xf32> to vector<1x128x512xf32>
    tpu.vector_store %arg5[%c0_50, %c0_51, %c0_52], %169 {strides = array<i32>} : memref<1x128x512xf32, #tpu.memory_space<vmem>>, vector<1x128x512xf32>,
    return
  }
  func.func @transform_0(%arg0: i32) -> (i32, i32, i32) {
    %c0_i32 = arith.constant 0 : i32
    %c0_i32_0 = arith.constant 0 : i32
    %c0_i32_1 = arith.constant 0 : i32
    return %arg0, %c0_i32, %c0_i32_0 : i32, i32, i32
  }
  func.func @transform_1(%arg0: i32) -> (i32, i32) {
    %c0_i32 = arith.constant 0 : i32
    %c0_i32_0 = arith.constant 0 : i32
    %c0_i32_1 = arith.constant 0 : i32
    return %c0_i32, %c0_i32_0 : i32, i32
  }
  func.func @transform_2(%arg0: i32) -> (i32, i32) {
    %c0_i32 = arith.constant 0 : i32
    %c0_i32_0 = arith.constant 0 : i32
    %c0_i32_1 = arith.constant 0 : i32
    return %c0_i32, %c0_i32_0 : i32, i32
  }
  func.func @transform_3(%arg0: i32) -> (i32, i32) {
    %c0_i32 = arith.constant 0 : i32
    %c0_i32_0 = arith.constant 0 : i32
    %c0_i32_1 = arith.constant 0 : i32
    return %c0_i32, %c0_i32_0 : i32, i32
  }
  func.func @transform_4(%arg0: i32) -> (i32, i32, i32) {
    %c0_i32 = arith.constant 0 : i32
    %c0_i32_0 = arith.constant 0 : i32
    %c0_i32_1 = arith.constant 0 : i32
    return %arg0, %c0_i32, %c0_i32_0 : i32, i32, i32
  }
}

</mosaic_0001>

<bundles_post_ra>
// kernel: tpu_custom_call.1
= control target key start
LH: loop header
LB: loop body
LE: loop exit
PB: predicated region body
PF: predicated region fallthrough
CT: control target
= control target key end

     0   :  { %9 = vsyncpa [#allocation3], 0  ;;  %s16674_s0 = inlined_call_operand.hbm [shape: f32[2,128,512], index: 0, kind: input, shape index: {}]   ;;  %s16675_s1 = inlined_call_operand.hbm [shape: bf16[512,1536], index: 1, kind: input, shape index: {}]   ;;  %s16676_s2 = inlined_call_operand.hbm [shape: bf16[512,512], index: 2, kind: input, shape index: {}]   ;;  %s16677_s3 = inlined_call_operand.hbm [shape: f32[1,512], index: 3, kind: input, shape index: {}]   ;;  %s16678_s4 = inlined_call_operand.hbm [shape: f32[2,128,512], index: 4, kind: output, shape index: {}]  }
   0x1   :  { %11 = vsyncpa [#allocation3 + $0x1], 0 }
   0x2   :  { %12 = vsyncpa [#allocation6], 0 }
   0x3   :  { %13 = vsyncpa [#allocation9], 0 }
   0x4   :  { %14 = vsyncpa [#allocation4], 0 }
   0x5   :  { %16 = vsyncpa [#allocation4 + $0x1], 0  ;;  %s12792_s15 = smov 0   ;;  %s12794_s16 = smov 0  }
   0x6   :  { %s12796_s17 = smov 0   ;;  %s12798_s18 = smov 0  }
   0x7 LB: > { %s12813_s19 = sadd.s32 4294967295, %s12751_s18   ;;  %s9585_s20 = sadd.s32 4294967294, %s12751_s18   ;;  %s12751_s18 = sphi %s12798_s18, %s17645_s18   ;;  %s12747_s17 = sphi %s12796_s17, %s17644_s17   ;;  %s12743_s16 = sphi %s12794_s16, %s17643_s16   ;;  %s12739_s15 = sphi %s12792_s15, %s17642_s15  }
   0x8   : > { %p42_p0 = scmp.ne.s32.totalorder %s12743_s16, %s12739_s15  ;;  %p16679_p1 = scmp.eq.s32.totalorder %s12813_s19, 0 }
   0x9   : > { %p135_p3 = scmp.eq.s32.totalorder %s9585_s20, 1  ;;  %p9586_p5 = scmp.ge.s32.totalorder %s12751_s18, 1 }
   0xa   : > { %p12822_p4 = por %p16679_p1, %p42_p0  ;;  %p142_p7 = scmp.lt.s32.totalorder %s12751_s18, 3 }
   0xb   : > { %p12827_p6 = por %p135_p3, %p42_p0  ;;  %s12753_s24 = smov [#allocation5]  }
   0xc   : > { %s16823_s21 = scalar_select %p12822_p4, 1, 0 }
   0xd   : > { %s16824_s22 = scalar_select %p12827_p6, 1, 0 }
   0xe   : > { %p12832_p8 = pnand %p9586_p5, %p142_p7  ;;  %s154_s25 = sshll.u32 %s12753_s24, 4  ;;  %s155_s25 = int_to_ptr.vmem [resolvable:$true] %s154_s25 }
   0xf   : > { %s12754_s27 = smov [#allocation7]   ;;  %s12584_s29 = scalar_lea.vmem %s155_s25, 49152 }
  0x10   : > { %s16825_s23 = scalar_select %p12832_p8, 1, 0 }
  0x11   : > { %p11063_p9 = pneg %p12832_p8  ;;  %s167_s28 = sshll.u32 %s12754_s27, 4  ;;  %s168_s28 = int_to_ptr.vmem [resolvable:$true] %s167_s28 }
  0x12   : > { %p12585_p13 = scmp.ne.s32.totalorder %s155_s25, %s12584_s29  ;;  %p12592_p5 = scmp.lt.s32.totalorder %s155_s25, %s155_s25 }
  0x13   : > { %p12841_p11 = pnand %p11063_p9, %p16679_p1  ;;  %p12593_p7 = scmp.lt.s32.totalorder %s12584_s29, %s12584_s29 }
  0x15   : > { %p12575_p12 = pneg %p12841_p11  ;;  %p12594_p10 = por %p12593_p7, %p12592_p5 }
  0x17   : > { %p12587_p0 = pnand %p12585_p13, %p12575_p12 }
  0x19   : > { %p12588_p3 = pneg %p12587_p0 }
  0x1b   : > { %p12595_p9 = pnand %p12594_p10, %p12588_p3 }
  0x1d   : > { %12598 = shalt.err (!%p12595_p9)
}
  0x1e   : > { %s12755_s30 = smov 768   ;;  %s12756_s5 = smov 48  }
  0x1f   : > { %11066 = dma.hbm_to_vmem [thread:$0]  (!%p12841_p11), %s16675_s1, 49152, %s155_s25, [#allocation6], %s12755_s30, %s12755_s30, %s12756_s5  }
  0x20   : > { %s12610_s8 = scalar_lea.vmem %s168_s28, 16384  ;;  %p12618_p2 = scmp.lt.s32.totalorder %s168_s28, %s168_s28 }
  0x21   : > { %p12611_p1 = scmp.ne.s32.totalorder %s168_s28, %s12610_s8  ;;  %p12619_p6 = scmp.lt.s32.totalorder %s12610_s8, %s12610_s8 }
  0x23   : > { %p12613_p13 = pnand %p12611_p1, %p12575_p12  ;;  %p12620_p5 = por %p12619_p6, %p12618_p2 }
  0x25   : > { %p12614_p0 = pneg %p12613_p13 }
  0x27   : > { %p12621_p10 = pnand %p12620_p5, %p12614_p0 }
  0x29   : > { %12624 = shalt.err (!%p12621_p10)
}
  0x2a   : > { %s12757_s9 = smov 256   ;;  %s12758_s10 = smov 16  }
  0x2b   : > { %11069 = dma.hbm_to_vmem [thread:$0]  (!%p12841_p11), %s16676_s2, 16384, %s168_s28, [#allocation6], %s12757_s9, %s12757_s9, %s12758_s10  }
  0x2c   : > { %s12759_s13 = smov [#allocation8]   ;;  %s12864_s20 = sadd.s32 1, %s12751_s18  }
  0x2d   : > { %s181_s14 = sshll.u32 %s12759_s13, 4  ;;  %s182_s14 = int_to_ptr.vmem [resolvable:$true] %s181_s14 }
  0x2e   : > { %s12636_s24 = scalar_lea.vmem %s182_s14, 64  ;;  %p12644_p3 = scmp.lt.s32.totalorder %s182_s14, %s182_s14 }
  0x2f   : > { %p12637_p1 = scmp.ne.s32.totalorder %s182_s14, %s12636_s24  ;;  %p12645_p7 = scmp.lt.s32.totalorder %s12636_s24, %s12636_s24 }
  0x31   : > { %p12639_p2 = pnand %p12637_p1, %p12575_p12  ;;  %p12646_p9 = por %p12645_p7, %p12644_p3 }
  0x33   : > { %p12640_p6 = pneg %p12639_p2 }
  0x35   : > { %p12647_p13 = pnand %p12646_p9, %p12640_p6 }
  0x37   : > { %12650 = shalt.err (!%p12647_p13)
}
  0x38   : > { %11072 = dma.hbm_to_vmem [thread:$0]  (!%p12841_p11), %s16677_s3, 64, %s182_s14, [#allocation9]  }
  0x39   : > { %s26_s28 = ssub.s32 %s12751_s18, %s12864_s20  ;;  %s29_s29 = sadd.s32 1, %s12747_s17 }
  0x3a   : > { %p27_p12 = scmp.eq.s32.totalorder %s26_s28, 0  ;;  %p36_p0 = scmp.ne.s32.totalorder %s12747_s17, %s12743_s16 }
  0x3b   : > { %p37_p5 = scmp.eq.s32.totalorder %s12751_s18, 0  ;;  %p11084_p10 = scmp.lt.s32.totalorder %s12751_s18, 2 }
  0x3c   : > { %s12882_s26 = scalar_select %p27_p12, %s12747_s17, %s29_s29  }
  0x3d   : > { %p38_p1 = por %p37_p5, %p36_p0  ;;  %p16827_p2 = scmp.eq.s32.totalorder %s12813_s19, 1 }
  0x3e   : > { %s192_s5 = sand.u32 1, %s12747_s17   ;;  %s10181_s6 = sshll.u32 %s12751_s18, 13 }
  0x3f   : > { %p12886_p6 = por %p16827_p2, %p36_p0  ;;  %s9591_s7 = sshll.u32 %s192_s5, 9 }
  0x40   : > { %s12895_s10 = scalar_lea.hbm %s16674_s0, %s10181_s6  ;;  %s196_s11 = scalar_lea.vmem [#allocation2], %s9591_s7 }
  0x41   : > { %s16828_s30 = scalar_select %p12886_p6, 1, 0 }
  0x42   : > { %s203_s12 = sshll.u32 %s196_s11, 4  ;;  %p12897_p11 = pnand %p11084_p10, %p38_p1  ;;  %s12901_s12 = int_to_ptr.vmem [resolvable:$true] %s203_s12 }
  0x43   : > { %s12903_s14 = scalar_lea.sflag [#allocation3], %s192_s5  ;;  %s12651_s24 = scalar_lea.hbm %s12895_s10, 8192 }
  0x44   : > { %p12652_p3 = scmp.ne.s32.totalorder %s12895_s10, %s12651_s24  ;;  %p12653_p7 = pneg %p12897_p11 }
  0x45   : > { %s12656_s28 = scalar_lea.hbm %s16674_s0, 16384  ;;  %p12657_p12 = scmp.lt.s32.totalorder %s12895_s10, %s16674_s0 }
  0x46   : > { %p12654_p9 = pnand %p12653_p7, %p12652_p3  ;;  %p12658_p0 = scmp.lt.s32.totalorder %s12656_s28, %s12651_s24 }
  0x48   : > { %p12655_p13 = pneg %p12654_p9  ;;  %p12659_p5 = por %p12658_p0, %p12657_p12 }
  0x4a   : > { %p12660_p10 = pnand %p12659_p5, %p12655_p13 }
  0x4c   : > { %12663 = shalt.err (!%p12660_p10)
}
  0x4d   : > { %s12664_s5 = scalar_lea.vmem %s12901_s12, 8192  ;;  %s12760_s7 = smov [#allocation2]  }
  0x4e   : > { %p12665_p1 = scmp.ne.s32.totalorder %s12901_s12, %s12664_s5  ;;  %s12669_s8 = sshll.u32 %s12760_s7, 4  ;;  %s12670_s8 = int_to_ptr.vmem [resolvable:$false] %s12669_s8 }
  0x4f   : > { %s12671_s9 = scalar_lea.vmem %s12670_s8, 16384  ;;  %p12672_p9 = scmp.lt.s32.totalorder %s12901_s12, %s12670_s8 }
  0x50   : > { %p12667_p2 = pnand %p12665_p1, %p12653_p7  ;;  %p12673_p6 = scmp.lt.s32.totalorder %s12671_s9, %s12664_s5 }
  0x52   : > { %p12668_p3 = pneg %p12667_p2  ;;  %p12674_p4 = por %p12673_p6, %p12672_p9 }
  0x54   : > { %p12675_p8 = pnand %p12674_p4, %p12668_p3 }
  0x56   : > { %12678 = shalt.err (!%p12675_p8)
}
  0x57   : > { %s12761_s11 = smov 512   ;;  %s12762_s24 = smov 32  }
  0x58   : > { %11076 = dma.hbm_to_vmem [thread:$0]  (!%p12897_p11), %s12895_s10, 8192, %s12901_s12, %s12903_s14, %s12761_s11, %s12761_s11, %s12762_s24  }
  0x59   : > { %p16830_p7 = scmp.ne.s32.totalorder %s16825_s23, 0 }
  0x5b   : > { %215 = sbr.rel (%p16830_p7) target bundleno = 5548 (0x15ac), region = 36 }
  0x60   : > { %s12927_s25 = sand.u32 1, %s12743_s16   ;;  %p16831_p4 = scmp.ne.s32.totalorder %s16823_s21, 0 }
  0x61   : > { %s9595_s27 = sshll.u32 %s12927_s25, 9  ;;  %s218_s28 = scalar_lea.sflag [#allocation3], %s12927_s25 }
  0x62   : > { %s12933_s29 = scalar_lea.vmem [#allocation2], %s9595_s27 }
  0x63   : > { %12722 = dma.done.wait (%p16831_p4), %s218_s28, 8192  }
  0x64   : > { %12724 = vsyncadd (%p16831_p4), %s218_s28, 4294959104  ;;  %p16832_p8 = scmp.eq.s32.totalorder %s12813_s19, 0 }
  0x66   : > { %12726 = dma.done.wait (%p16832_p8), [#allocation6], 65536   ;;  %p16833_p6 = pmov %p16832_p8 }
  0x68   : > { %12728 = vsyncadd (%p16833_p6), [#allocation6], 4294901760  ;;  %p16834_p11 = pmov %p16833_p6 }
  0x69   : > { %p16835_p13 = pmov %p16833_p6 }
  0x6a   : > { %12730 = dma.done.wait (%p16834_p11), [#allocation9], 64  }
  0x6b   : > { %12732 = vsyncadd (%p16835_p13), [#allocation9], 4294967232  ;;  %v11293_v0 = vld [vmem:[#allocation5 + $0x2a4] ss:$48 sps:$4 sm:$0xff]   ;;  %v11297_v2 = vld [vmem:[#allocation5 + $0x2a0] ss:$48 sps:$4 sm:$0xff]  }
  0x6c   : > { %v11295_v1 = vld [vmem:[#allocation5 + $0x8a4] ss:$48 sps:$4 sm:$0xff]   ;;  %2659 = vmatprep.subr.bf16.mxu0 %v11293_v0  ;;  %v11298_v3 = vld [vmem:[#allocation5 + $0x8a0] ss:$48 sps:$4 sm:$0xff]   ;;  %v260_v46 = vld [vmem:[%s12933_s29 + $0x8] sm:$0xff]  ;;  %s12763_s21 = smov 64  }
  0x6d   : > { %2772 = vmatprep.subr.bf16.mxu1 %v11295_v1  ;;  %v11299_v4 = vld [vmem:[#allocation5 + $0x244] ss:$48 sps:$4 sm:$0xff]   ;;  %2660 = vmatpush1.bf16.msra.mxu0 %v11297_v2  ;;  %v11303_v6 = vld [vmem:[#allocation5 + $0x240] ss:$48 sps:$4 sm:$0xff]   ;;  %v264_v47 = vld [vmem:[%s12933_s29 + $0x28] sm:$0xff]  ;;  %vm16719_vm0 = vcmask 523264  }
  0x6e   : > { %2773 = vmatpush1.bf16.msra.mxu1 %v11298_v3  ;;  %v11301_v5 = vld [vmem:[#allocation5 + $0x844] ss:$48 sps:$4 sm:$0xff]   ;;  %2661 = vmatprep.subr.bf16.mxu0 %v11299_v4  ;;  %v11304_v7 = vld [vmem:[#allocation5 + $0x840] ss:$48 sps:$4 sm:$0xff]   ;;  %v262_v48 = vld [vmem:[%s12933_s29 + $0x18] sm:$0xff]  ;;  %v12951_v53 = vpack.c.bf16 %v264_v47, %v260_v46  ;;  %s16460_s23 = scalar_lea.vmem [#allocation10], %s9595_s27 }
  0x6f   : > { %2774 = vmatprep.subr.bf16.mxu1 %v11301_v5  ;;  %v11305_v8 = vld [vmem:[#allocation5 + $0x1e4] ss:$48 sps:$4 sm:$0xff]   ;;  %v11309_v10 = vld [vmem:[#allocation5 + $0x1e0] ss:$48 sps:$4 sm:$0xff]   ;;  %v266_v49 = vld [vmem:[%s12933_s29 + $0x38] sm:$0xff]  ;;  %s10182_s10 = sshll.u32 %s12813_s19, 13 }
  0x70   : > { %v11307_v9 = vld [vmem:[#allocation5 + $0x7e4] ss:$48 sps:$4 sm:$0xff]   ;;  %v11310_v11 = vld [vmem:[#allocation5 + $0x7e0] ss:$48 sps:$4 sm:$0xff]   ;;  %v12953_v54 = vpack.c.bf16 %v266_v49, %v262_v48  ;;  %2691 = vmatprep.mubr.bf16.mxu0 %v12951_v53  ;;  %s9483_s12 = sshll.u32 %s16460_s23, 4  ;;  %s16626_s6 = scalar_lea.hbm %s16678_s4, %s10182_s10  ;;  %s16628_s12 = int_to_ptr.vmem [resolvable:$true] %s9483_s12 }
  0x71   : > { %2662 = vmatpush1.bf16.msra.mxu0 %v11303_v6  ;;  %v11311_v12 = vld [vmem:[#allocation5 + $0x184] ss:$48 sps:$4 sm:$0xff]   ;;  %v11315_v14 = vld [vmem:[#allocation5 + $0x180] ss:$48 sps:$4 sm:$0xff]   ;;  %s9470_s19 = scalar_lea.sflag [#allocation4], %s12927_s25  ;;  %s12679_s5 = scalar_lea.vmem %s16628_s12, 8192 }
  0x72   : > { %2775 = vmatpush1.bf16.msra.mxu1 %v11304_v7  ;;  %2663 = vmatprep.subr.bf16.mxu0 %v11305_v8  ;;  %v11313_v13 = vld [vmem:[#allocation5 + $0x784] ss:$48 sps:$4 sm:$0xff]   ;;  %v11316_v15 = vld [vmem:[#allocation5 + $0x780] ss:$48 sps:$4 sm:$0xff]   ;;  %p12680_p12 = scmp.ne.s32.totalorder %s16628_s12, %s12679_s5  ;;  %p17639_p0 = scmp.ne.s32.totalorder %s16828_s30, 0 }
  0x73   : > { %2776 = vmatprep.subr.bf16.mxu1 %v11307_v9  ;;  %v11317_v16 = vld [vmem:[#allocation5 + $0x124] ss:$48 sps:$4 sm:$0xff]   ;;  %v11321_v18 = vld [vmem:[#allocation5 + $0x120] ss:$48 sps:$4 sm:$0xff]   ;;  %2804 = vmatprep.mubr.bf16.mxu1 %v12953_v54  ;;  %s12764_s7 = smov [#allocation10]  }
  0x74   : > { %v11319_v17 = vld [vmem:[#allocation5 + $0x724] ss:$48 sps:$4 sm:$0xff]   ;;  %v11322_v19 = vld [vmem:[#allocation5 + $0x720] ss:$48 sps:$4 sm:$0xff]   ;;  %p12681_p5 = pnand %p12680_p12, %p17639_p0  ;;  %s12683_s8 = sshll.u32 %s12764_s7, 4  ;;  %s12684_s8 = int_to_ptr.vmem [resolvable:$false] %s12683_s8 }
  0x75   : > { %2664 = vmatpush1.bf16.msra.mxu0 %v11309_v10  ;;  %v11323_v20 = vld [vmem:[#allocation5 + $0xc4] ss:$48 sps:$4 sm:$0xff]   ;;  %v11327_v22 = vld [vmem:[#allocation5 + $0xc0] ss:$48 sps:$4 sm:$0xff]   ;;  %v11391_v10 = vld [vmem:[#allocation5 + $0x2ac] ss:$48 sps:$4 sm:$0xff]   ;;  %p12686_p1 = scmp.lt.s32.totalorder %s16628_s12, %s12684_s8 }
  0x76   : > { %2777 = vmatpush1.bf16.msra.mxu1 %v11310_v11  ;;  %2665 = vmatprep.subr.bf16.mxu0 %v11311_v12  ;;  %v11325_v21 = vld [vmem:[#allocation5 + $0x6c4] ss:$48 sps:$4 sm:$0xff]   ;;  %v11328_v23 = vld [vmem:[#allocation5 + $0x6c0] ss:$48 sps:$4 sm:$0xff]   ;;  %v11394_v11 = vld [vmem:[#allocation5 + $0x8ac] ss:$48 sps:$4 sm:$0xff]   ;;  %p12682_p10 = pneg %p12681_p5 }
  0x77   : > { %2778 = vmatprep.subr.bf16.mxu1 %v11313_v13  ;;  %v11329_v24 = vld [vmem:[#allocation5 + $0x64] ss:$48 sps:$4 sm:$0xff]   ;;  %v11333_v26 = vld [vmem:[#allocation5 + $0x60] ss:$48 sps:$4 sm:$0xff]   ;;  %v11389_v12 = vld [vmem:[#allocation5 + $0x2a8] ss:$48 sps:$4 sm:$0xff]  }
  0x78   : > { %v11331_v25 = vld [vmem:[#allocation5 + $0x664] ss:$48 sps:$4 sm:$0xff]   ;;  %v11334_v27 = vld [vmem:[#allocation5 + $0x660] ss:$48 sps:$4 sm:$0xff]   ;;  %v11392_v13 = vld [vmem:[#allocation5 + $0x8a8] ss:$48 sps:$4 sm:$0xff]  }
  0x79   : > { %2666 = vmatpush1.bf16.msra.mxu0 %v11315_v14  ;;  %v11335_v28 = vld [vmem:[#allocation5 + $0x4] ss:$48 sps:$4 sm:$0xff]   ;;  %v11339_v30 = vld [vmem:[#allocation5] ss:$48 sps:$4 sm:$0xff]   ;;  %v268_v14 = vld [vmem:[%s12933_s29 + $0x48] sm:$0xff]  ;;  %s12685_s9 = scalar_lea.vmem %s12684_s8, 16384 }
  0x7a   : > { %2779 = vmatpush1.bf16.msra.mxu1 %v11316_v15  ;;  %2667 = vmatprep.subr.bf16.mxu0 %v11317_v16  ;;  %v11337_v29 = vld [vmem:[#allocation5 + $0x604] ss:$48 sps:$4 sm:$0xff]   ;;  %v11340_v31 = vld [vmem:[#allocation5 + $0x600] ss:$48 sps:$4 sm:$0xff]   ;;  %v272_v15 = vld [vmem:[%s12933_s29 + $0x68] sm:$0xff]  ;;  %p12687_p2 = scmp.lt.s32.totalorder %s12685_s9, %s12679_s5 }
  0x7b   : > { %2780 = vmatprep.subr.bf16.mxu1 %v11319_v17  ;;  %v11341_v32 = vld [vmem:[#allocation5 + $0x5a4] ss:$48 sps:$4 sm:$0xff]   ;;  %v11345_v34 = vld [vmem:[#allocation5 + $0x5a0] ss:$48 sps:$4 sm:$0xff]  }
  0x7c   : > { %v11343_v33 = vld [vmem:[#allocation5 + $0xba4] ss:$48 sps:$4 sm:$0xff]   ;;  %v11346_v35 = vld [vmem:[#allocation5 + $0xba0] ss:$48 sps:$4 sm:$0xff]   ;;  %p12688_p3 = por %p12687_p2, %p12686_p1 }
  0x7d   : > { %2668 = vmatpush1.bf16.msra.mxu0 %v11321_v18  ;;  %v11347_v36 = vld [vmem:[#allocation5 + $0x544] ss:$48 sps:$4 sm:$0xff]   ;;  %v11351_v38 = vld [vmem:[#allocation5 + $0x540] ss:$48 sps:$4 sm:$0xff]   ;;  %v270_v18 = vld [vmem:[%s12933_s29 + $0x58] sm:$0xff] }
  0x7e   : > { %2781 = vmatpush1.bf16.msra.mxu1 %v11322_v19  ;;  %2669 = vmatprep.subr.bf16.mxu0 %v11323_v20  ;;  %v11349_v37 = vld [vmem:[#allocation5 + $0xb44] ss:$48 sps:$4 sm:$0xff]   ;;  %v11352_v39 = vld [vmem:[#allocation5 + $0xb40] ss:$48 sps:$4 sm:$0xff]   ;;  %v274_v19 = vld [vmem:[%s12933_s29 + $0x78] sm:$0xff]  ;;  %p12689_p9 = pnand %p12688_p3, %p12682_p10 }
  0x7f   : > { %2782 = vmatprep.subr.bf16.mxu1 %v11325_v21  ;;  %v11353_v40 = vld [vmem:[#allocation5 + $0x4e4] ss:$48 sps:$4 sm:$0xff]   ;;  %v11357_v42 = vld [vmem:[#allocation5 + $0x4e0] ss:$48 sps:$4 sm:$0xff]   ;;  %v11397_v20 = vld [vmem:[#allocation5 + $0x24c] ss:$48 sps:$4 sm:$0xff]  }
  0x80   : > { %v11355_v41 = vld [vmem:[#allocation5 + $0xae4] ss:$48 sps:$4 sm:$0xff]   ;;  %v11358_v43 = vld [vmem:[#allocation5 + $0xae0] ss:$48 sps:$4 sm:$0xff]   ;;  %v11400_v21 = vld [vmem:[#allocation5 + $0x84c] ss:$48 sps:$4 sm:$0xff]  }
  0x81   : > { %2670 = vmatpush1.bf16.msra.mxu0 %v11327_v22  ;;  %v11359_v44 = vld [vmem:[#allocation5 + $0x484] ss:$48 sps:$4 sm:$0xff]   ;;  %v11363_v50 = vld [vmem:[#allocation5 + $0x480] ss:$48 sps:$4 sm:$0xff]   ;;  %v11395_v22 = vld [vmem:[#allocation5 + $0x248] ss:$48 sps:$4 sm:$0xff]  }
  0x82   : > { %2783 = vmatpush1.bf16.msra.mxu1 %v11328_v23  ;;  %2671 = vmatprep.subr.bf16.mxu0 %v11329_v24  ;;  %v11361_v45 = vld [vmem:[#allocation5 + $0xa84] ss:$48 sps:$4 sm:$0xff]   ;;  %v11364_v51 = vld [vmem:[#allocation5 + $0xa80] ss:$48 sps:$4 sm:$0xff]   ;;  %v12969_v23 = vpack.c.bf16 %v272_v15, %v268_v14  ;;  %v12971_v24 = vpack.c.bf16 %v274_v19, %v270_v18  ;;  %v294_v18 = vld [vmem:[%s12933_s29 + $0x118] sm:$0xff] }
  0x83   : > { %2784 = vmatprep.subr.bf16.mxu1 %v11331_v25  ;;  %v11365_v52 = vld [vmem:[#allocation5 + $0x424] ss:$48 sps:$4 sm:$0xff]   ;;  %v11369_v56 = vld [vmem:[#allocation5 + $0x420] ss:$48 sps:$4 sm:$0xff]   ;;  %v11398_v25 = vld [vmem:[#allocation5 + $0x848] ss:$48 sps:$4 sm:$0xff]  }
  0x84   : > { %v11367_v55 = vld [vmem:[#allocation5 + $0xa24] ss:$48 sps:$4 sm:$0xff]   ;;  %v11370_v57 = vld [vmem:[#allocation5 + $0xa20] ss:$48 sps:$4 sm:$0xff]   ;;  %v298_v19 = vld [vmem:[%s12933_s29 + $0x138] sm:$0xff] }
  0x85   : > { %2672 = vmatpush1.bf16.msra.mxu0 %v11333_v26  ;;  %v11371_v58 = vld [vmem:[#allocation5 + $0x3c4] ss:$48 sps:$4 sm:$0xff]   ;;  %v11375_v60 = vld [vmem:[#allocation5 + $0x3c0] ss:$48 sps:$4 sm:$0xff]  }
  0x86   : > { %2785 = vmatpush1.bf16.msra.mxu1 %v11334_v27  ;;  %2673 = vmatprep.subr.bf16.mxu0 %v11335_v28  ;;  %v11373_v59 = vld [vmem:[#allocation5 + $0x9c4] ss:$48 sps:$4 sm:$0xff]   ;;  %v11376_v61 = vld [vmem:[#allocation5 + $0x9c0] ss:$48 sps:$4 sm:$0xff]  }
  0x87   : > { %2786 = vmatprep.subr.bf16.mxu1 %v11337_v29  ;;  %v11377_v62 = vld [vmem:[#allocation5 + $0x364] ss:$48 sps:$4 sm:$0xff]   ;;  %v11381_v0 = vld [vmem:[#allocation5 + $0x360] ss:$48 sps:$4 sm:$0xff]  }
  0x88   : > { %v11379_v63 = vld [vmem:[#allocation5 + $0x964] ss:$48 sps:$4 sm:$0xff]   ;;  %v11382_v1 = vld [vmem:[#allocation5 + $0x960] ss:$48 sps:$4 sm:$0xff]  }
  0x89   : > { %2674 = vmatpush1.bf16.msra.mxu0 %v11339_v30  ;;  %v11383_v2 = vld [vmem:[#allocation5 + $0x304] ss:$48 sps:$4 sm:$0xff]   ;;  %v11387_v4 = vld [vmem:[#allocation5 + $0x300] ss:$48 sps:$4 sm:$0xff]   ;;  %v11403_v30 = vld [vmem:[#allocation5 + $0x1ec] ss:$48 sps:$4 sm:$0xff]  }
  0x8a   : > { %2787 = vmatpush1.bf16.msra.mxu1 %v11340_v31  ;;  %2675 = vmatprep.subr.bf16.mxu0 %v11341_v32  ;;  %v11385_v3 = vld [vmem:[#allocation5 + $0x904] ss:$48 sps:$4 sm:$0xff]   ;;  %v11388_v5 = vld [vmem:[#allocation5 + $0x900] ss:$48 sps:$4 sm:$0xff]   ;;  %v11406_v31 = vld [vmem:[#allocation5 + $0x7ec] ss:$48 sps:$4 sm:$0xff]  }
  0x8b   : > { %2788 = vmatprep.subr.bf16.mxu1 %v11343_v33  ;;  %v259_v6 = vld [vmem:[%s12933_s29] sm:$0xff]  ;;  %v261_v8 = vld [vmem:[%s12933_s29 + $0x10] sm:$0xff]  ;;  %v11401_v32 = vld [vmem:[#allocation5 + $0x1e8] ss:$48 sps:$4 sm:$0xff]  }
  0x8c   : > { %v263_v7 = vld [vmem:[%s12933_s29 + $0x20] sm:$0xff]  ;;  %v265_v9 = vld [vmem:[%s12933_s29 + $0x30] sm:$0xff]  ;;  %v11404_v33 = vld [vmem:[#allocation5 + $0x7e8] ss:$48 sps:$4 sm:$0xff]  }
  0x8d   : > { %2676 = vmatpush2.bf16.msra.mxu0 %v11345_v34  ;;  %v12963_v16 = vpack.c.bf16 %v263_v7, %v259_v6  ;;  %v12965_v17 = vpack.c.bf16 %v265_v9, %v261_v8  ;;  %v267_v26 = vld [vmem:[%s12933_s29 + $0x40] sm:$0xff]  ;;  %v269_v28 = vld [vmem:[%s12933_s29 + $0x50] sm:$0xff]  ;;  %v276_v34 = vld [vmem:[%s12933_s29 + $0x88] sm:$0xff] }
  0x8e   : > { %2789 = vmatpush2.bf16.msra.mxu1 %v11346_v35  ;;  %2677 = vmatprep.subr.bf16.mxu0 %v11347_v36  ;;  %v271_v27 = vld [vmem:[%s12933_s29 + $0x60] sm:$0xff]  ;;  %v273_v29 = vld [vmem:[%s12933_s29 + $0x70] sm:$0xff]  ;;  %v280_v35 = vld [vmem:[%s12933_s29 + $0xa8] sm:$0xff] }
  0x8f   : > { %2790 = vmatprep.subr.bf16.mxu1 %v11349_v37  ;;  %v12983_v36 = vpack.c.bf16 %v271_v27, %v267_v26  ;;  %v12985_v37 = vpack.c.bf16 %v273_v29, %v269_v28  ;;  %v275_v46 = vld [vmem:[%s12933_s29 + $0x80] sm:$0xff]  ;;  %v277_v48 = vld [vmem:[%s12933_s29 + $0x90] sm:$0xff]  ;;  %v11427_v8 = vld [vmem:[#allocation5 + $0x6c] ss:$48 sps:$4 sm:$0xff]   ;;  %v13031_v26 = vpack.c.bf16 %v298_v19, %v294_v18 }
  0x90   : > { %v279_v47 = vld [vmem:[%s12933_s29 + $0xa0] sm:$0xff]  ;;  %v281_v49 = vld [vmem:[%s12933_s29 + $0xb0] sm:$0xff]  ;;  %v11430_v9 = vld [vmem:[#allocation5 + $0x66c] ss:$48 sps:$4 sm:$0xff]  }
  0x91   : > { %2678 = vmatpush2.bf16.msra.mxu0 %v11351_v38  ;;  %v278_v38 = vld [vmem:[%s12933_s29 + $0x98] sm:$0xff]  ;;  %v285_v6 = vld [vmem:[%s12933_s29 + $0xd0] sm:$0xff]  ;;  %v291_v28 = vld [vmem:[%s12933_s29 + $0x100] sm:$0xff] }
  0x92   : > { %2791 = vmatpush2.bf16.msra.mxu1 %v11352_v39  ;;  %2679 = vmatprep.subr.bf16.mxu0 %v11353_v40  ;;  %v282_v39 = vld [vmem:[%s12933_s29 + $0xb8] sm:$0xff]  ;;  %v289_v7 = vld [vmem:[%s12933_s29 + $0xf0] sm:$0xff]  ;;  %v295_v29 = vld [vmem:[%s12933_s29 + $0x120] sm:$0xff] }
  0x93   : > { %2792 = vmatprep.subr.bf16.mxu1 %v11355_v41  ;;  %v11409_v40 = vld [vmem:[#allocation5 + $0x18c] ss:$48 sps:$4 sm:$0xff]   ;;  %v13025_v15 = vpack.c.bf16 %v289_v7, %v285_v6  ;;  %v11434_v27 = vld [vmem:[#allocation5 + $0x608] ss:$48 sps:$4 sm:$0xff]   ;;  %v307_v18 = vld [vmem:[%s12933_s29 + $0x180] sm:$0xff] }
  0x94   : > { %v11412_v41 = vld [vmem:[#allocation5 + $0x78c] ss:$48 sps:$4 sm:$0xff]   ;;  %v311_v19 = vld [vmem:[%s12933_s29 + $0x1a0] sm:$0xff] }
  0x95   : > { %2680 = vmatpush2.bf16.msra.mxu0 %v11357_v42  ;;  %v11407_v42 = vld [vmem:[#allocation5 + $0x188] ss:$48 sps:$4 sm:$0xff]  }
  0x96   : > { %2793 = vmatpush2.bf16.msra.mxu1 %v11358_v43  ;;  %2681 = vmatprep.subr.bf16.mxu0 %v11359_v44  ;;  %v12989_v43 = vpack.c.bf16 %v280_v35, %v276_v34  ;;  %v12991_v44 = vpack.c.bf16 %v282_v39, %v278_v38  ;;  %v11437_v34 = vld [vmem:[#allocation5 + $0x5a8] ss:$48 sps:$4 sm:$0xff]  }
  0x97   : > { %2794 = vmatprep.subr.bf16.mxu1 %v11361_v45  ;;  %v11410_v45 = vld [vmem:[#allocation5 + $0x788] ss:$48 sps:$4 sm:$0xff]  }
  0x98   : > { %v11440_v35 = vld [vmem:[#allocation5 + $0xba8] ss:$48 sps:$4 sm:$0xff]  }
  0x99   : > { %2682 = vmatpush2.bf16.msra.mxu0 %v11363_v50  ;;  %v11415_v50 = vld [vmem:[#allocation5 + $0x12c] ss:$48 sps:$4 sm:$0xff]  }
  0x9a   : > { %2795 = vmatpush2.bf16.msra.mxu1 %v11364_v51  ;;  %2683 = vmatprep.subr.bf16.mxu0 %v11365_v52  ;;  %v11418_v51 = vld [vmem:[#allocation5 + $0x72c] ss:$48 sps:$4 sm:$0xff]   ;;  %v11413_v52 = vld [vmem:[#allocation5 + $0x128] ss:$48 sps:$4 sm:$0xff]  }
  0x9b   : > { %2796 = vmatprep.subr.bf16.mxu1 %v11367_v55  ;;  %v11416_v55 = vld [vmem:[#allocation5 + $0x728] ss:$48 sps:$4 sm:$0xff]  }
  0x9c   : > { %v300_v38 = vld [vmem:[%s12933_s29 + $0x148] sm:$0xff]  ;;  %v310_v6 = vld [vmem:[%s12933_s29 + $0x198] sm:$0xff] }
  0x9d   : > { %2684 = vmatpush2.bf16.msra.mxu0 %v11369_v56  ;;  %v284_v56 = vld [vmem:[%s12933_s29 + $0xc8] sm:$0xff]  ;;  %v314_v7 = vld [vmem:[%s12933_s29 + $0x1b8] sm:$0xff] }
  0x9e   : > { %2797 = vmatpush2.bf16.msra.mxu1 %v11370_v57  ;;  %2685 = vmatprep.subr.bf16.mxu0 %v11371_v58  ;;  %v288_v57 = vld [vmem:[%s12933_s29 + $0xe8] sm:$0xff]  ;;  %v13003_v58 = vpack.c.bf16 %v279_v47, %v275_v46 }
  0x9f   : > { %2798 = vmatprep.subr.bf16.mxu1 %v11373_v59  ;;  %v13005_v59 = vpack.c.bf16 %v281_v49, %v277_v48  ;;  %v304_v39 = vld [vmem:[%s12933_s29 + $0x168] sm:$0xff] }
  0xa0   : > { %v11445_v46 = vld [vmem:[#allocation5 + $0x54c] ss:$48 sps:$4 sm:$0xff]   ;;  %v11443_v48 = vld [vmem:[#allocation5 + $0x548] ss:$48 sps:$4 sm:$0xff]   ;;  %v13049_v49 = vpack.c.bf16 %v304_v39, %v300_v38 }
  0xa1   : > { %2686 = vmatpush2.bf16.msra.mxu0 %v11375_v60  ;;  %v286_v60 = vld [vmem:[%s12933_s29 + $0xd8] sm:$0xff] }
  0xa2   : > { %2799 = vmatpush2.bf16.msra.mxu1 %v11376_v61  ;;  %2687 = vmatprep.subr.bf16.mxu0 %v11377_v62  ;;  %v290_v61 = vld [vmem:[%s12933_s29 + $0xf8] sm:$0xff] }
  0xa3   : > { %2800 = vmatprep.subr.bf16.mxu1 %v11379_v63  ;;  %v11421_v62 = vld [vmem:[#allocation5 + $0xcc] ss:$48 sps:$4 sm:$0xff]  }
  0xa4   : > { %v11424_v63 = vld [vmem:[#allocation5 + $0x6cc] ss:$48 sps:$4 sm:$0xff]  }
  0xa5   : > { %2688 = vmatpush2.bf16.msra.mxu0 %v11381_v0  ;;  %v11419_v0 = vld [vmem:[#allocation5 + $0xc8] ss:$48 sps:$4 sm:$0xff]   ;;  %v11448_v47 = vld [vmem:[#allocation5 + $0xb4c] ss:$48 sps:$4 sm:$0xff]  }
  0xa6   : > { %2801 = vmatpush2.bf16.msra.mxu1 %v11382_v1  ;;  %2689 = vmatprep.subr.bf16.mxu0 %v11383_v2  ;;  %v13009_v1 = vpack.c.bf16 %v288_v57, %v284_v56  ;;  %v13011_v2 = vpack.c.bf16 %v290_v61, %v286_v60  ;;  %v301_v56 = vld [vmem:[%s12933_s29 + $0x150] sm:$0xff]  ;;  %v11451_v60 = vld [vmem:[#allocation5 + $0x4ec] ss:$48 sps:$4 sm:$0xff]  }
  0xa7   : > { %2802 = vmatprep.subr.bf16.mxu1 %v11385_v3  ;;  %v11422_v3 = vld [vmem:[#allocation5 + $0x6c8] ss:$48 sps:$4 sm:$0xff]   ;;  %v305_v57 = vld [vmem:[%s12933_s29 + $0x170] sm:$0xff]  ;;  %v11454_v61 = vld [vmem:[#allocation5 + $0xaec] ss:$48 sps:$4 sm:$0xff]  }
  0xa8   : > { %v11469_v38 = vld [vmem:[#allocation5 + $0x3cc] ss:$48 sps:$4 sm:$0xff]  }
  0xa9   : > { %2690 = vmatpush2.bf16.msra.mxu0 %v11387_v4  ;;  %v283_v4 = vld [vmem:[%s12933_s29 + $0xc0] sm:$0xff]  ;;  %v11472_v39 = vld [vmem:[#allocation5 + $0x9cc] ss:$48 sps:$4 sm:$0xff]  }
  0xaa   : > { %2803 = vmatpush2.bf16.msra.mxu1 %v11388_v5  ;;  %2885 = vmatprep.subr.bf16.mxu0 %v11391_v10  ;;  %v287_v5 = vld [vmem:[%s12933_s29 + $0xe0] sm:$0xff]  ;;  %v11425_v10 = vld [vmem:[#allocation5 + $0x68] ss:$48 sps:$4 sm:$0xff]  }
  0xab   : > { %2998 = vmatprep.subr.bf16.mxu1 %v11394_v11  ;;  %v11428_v11 = vld [vmem:[#allocation5 + $0x668] ss:$48 sps:$4 sm:$0xff]   ;;  %v13023_v14 = vpack.c.bf16 %v287_v5, %v283_v4  ;;  %v13065_v5 = vpack.c.bf16 %v305_v57, %v301_v56  ;;  %v11475_v56 = vld [vmem:[#allocation5 + $0x36c] ss:$48 sps:$4 sm:$0xff]  }
  0xac   : > { %2692 = vmatmul.mubr.bf16.vlgmr.msra.gmra.mxu0 %v12963_v16  ;;  %v11478_v57 = vld [vmem:[#allocation5 + $0x96c] ss:$48 sps:$4 sm:$0xff]  }
  0xad   : > { %2805 = vmatmul.mubr.bf16.vlgmr.msra.gmra.mxu1 %v12965_v17  ;;  %2886 = vmatpush1.bf16.msra.mxu0 %v11389_v12  ;;  %v292_v12 = vld [vmem:[%s12933_s29 + $0x108] sm:$0xff] }
  0xae   : > { %2999 = vmatpush1.bf16.msra.mxu1 %v11392_v13  ;;  %2887 = vmatprep.subr.bf16.mxu0 %v11397_v20  ;;  %v296_v13 = vld [vmem:[%s12933_s29 + $0x128] sm:$0xff] }
  0xaf   : > { %3000 = vmatprep.subr.bf16.mxu1 %v11400_v21  ;;  %2701 = vmatprep.mubr.bf16.mxu0 %v12969_v23  ;;  %v11433_v20 = vld [vmem:[#allocation5 + $0xc] ss:$48 sps:$4 sm:$0xff]  }
  0xb0   : > { %2814 = vmatprep.mubr.bf16.mxu1 %v12971_v24  ;;  %v11436_v21 = vld [vmem:[#allocation5 + $0x60c] ss:$48 sps:$4 sm:$0xff]  }
  0xb1   : > { %2888 = vmatpush1.bf16.msra.mxu0 %v11395_v22  ;;  %v11431_v22 = vld [vmem:[#allocation5 + $0x8] ss:$48 sps:$4 sm:$0xff]  }
  0xb2   : > { %3001 = vmatpush1.bf16.msra.mxu1 %v11398_v25  ;;  %2889 = vmatprep.subr.bf16.mxu0 %v11403_v30  ;;  %v13029_v25 = vpack.c.bf16 %v296_v13, %v292_v12  ;;  %v293_v30 = vld [vmem:[%s12933_s29 + $0x110] sm:$0xff]  ;;  %v13071_v13 = vpack.c.bf16 %v314_v7, %v310_v6  ;;  %v11479_v6 = vld [vmem:[#allocation5 + $0x308] ss:$48 sps:$4 sm:$0xff]  }
  0xb3   : > { %3002 = vmatprep.subr.bf16.mxu1 %v11406_v31  ;;  %v297_v31 = vld [vmem:[%s12933_s29 + $0x130] sm:$0xff]  ;;  %v11482_v7 = vld [vmem:[#allocation5 + $0x908] ss:$48 sps:$4 sm:$0xff]  }
  0xb4   : > { %2702 = vmatmul.mubr.bf16.gmra.mxu0 %v12983_v36 }
  0xb5   : > { %2815 = vmatmul.mubr.bf16.gmra.mxu1 %v12985_v37  ;;  %2890 = vmatpush1.bf16.msra.mxu0 %v11401_v32  ;;  %v11439_v32 = vld [vmem:[#allocation5 + $0x5ac] ss:$48 sps:$4 sm:$0xff]  }
  0xb6   : > { %3003 = vmatpush1.bf16.msra.mxu1 %v11404_v33  ;;  %2891 = vmatprep.subr.bf16.mxu0 %v11409_v40  ;;  %v11442_v33 = vld [vmem:[#allocation5 + $0xbac] ss:$48 sps:$4 sm:$0xff]   ;;  %v13043_v40 = vpack.c.bf16 %v295_v29, %v291_v28  ;;  %v11461_v28 = vld [vmem:[#allocation5 + $0x428] ss:$48 sps:$4 sm:$0xff]  }
  0xb7   : > { %3004 = vmatprep.subr.bf16.mxu1 %v11412_v41  ;;  %2711 = vmatprep.mubr.bf16.mxu0 %v12989_v43  ;;  %v13045_v41 = vpack.c.bf16 %v297_v31, %v293_v30  ;;  %v11464_v29 = vld [vmem:[#allocation5 + $0xa28] ss:$48 sps:$4 sm:$0xff]  }
  0xb8   : > { %2824 = vmatprep.mubr.bf16.mxu1 %v12991_v44  ;;  %v316_v30 = vld [vmem:[%s12933_s29 + $0x1c8] sm:$0xff] }
  0xb9   : > { %2892 = vmatpush1.bf16.msra.mxu0 %v11407_v42  ;;  %v302_v42 = vld [vmem:[%s12933_s29 + $0x158] sm:$0xff]  ;;  %v320_v31 = vld [vmem:[%s12933_s29 + $0x1e8] sm:$0xff] }
  0xba   : > { %3005 = vmatpush1.bf16.msra.mxu1 %v11410_v45  ;;  %2893 = vmatprep.subr.bf16.mxu0 %v11415_v50  ;;  %v306_v45 = vld [vmem:[%s12933_s29 + $0x178] sm:$0xff] }
  0xbb   : > { %3006 = vmatprep.subr.bf16.mxu1 %v11418_v51  ;;  %v13051_v50 = vpack.c.bf16 %v306_v45, %v302_v42  ;;  %v11446_v51 = vld [vmem:[#allocation5 + $0xb48] ss:$48 sps:$4 sm:$0xff]  }
  0xbc   : > { %2712 = vmatmul.mubr.bf16.gmra.mxu0 %v13003_v58  ;;  %v11467_v42 = vld [vmem:[#allocation5 + $0x3c8] ss:$48 sps:$4 sm:$0xff]  }
  0xbd   : > { %2825 = vmatmul.mubr.bf16.gmra.mxu1 %v13005_v59  ;;  %2894 = vmatpush1.bf16.msra.mxu0 %v11413_v52  ;;  %v299_v52 = vld [vmem:[%s12933_s29 + $0x140] sm:$0xff]  ;;  %v11470_v45 = vld [vmem:[#allocation5 + $0x9c8] ss:$48 sps:$4 sm:$0xff]  }
  0xbe   : > { %3007 = vmatpush1.bf16.msra.mxu1 %v11416_v55  ;;  %2895 = vmatprep.subr.bf16.mxu0 %v11421_v62  ;;  %v303_v55 = vld [vmem:[%s12933_s29 + $0x160] sm:$0xff]  ;;  %v11449_v62 = vld [vmem:[#allocation5 + $0x4e8] ss:$48 sps:$4 sm:$0xff]  }
  0xbf   : > { %3008 = vmatprep.subr.bf16.mxu1 %v11424_v63  ;;  %2721 = vmatprep.mubr.bf16.mxu0 %v13009_v1  ;;  %v11452_v63 = vld [vmem:[#allocation5 + $0xae8] ss:$48 sps:$4 sm:$0xff]   ;;  %v13063_v4 = vpack.c.bf16 %v303_v55, %v299_v52  ;;  %v317_v52 = vld [vmem:[%s12933_s29 + $0x1d0] sm:$0xff] }
  0xc0   : > { %2834 = vmatprep.mubr.bf16.mxu1 %v13011_v2  ;;  %v321_v55 = vld [vmem:[%s12933_s29 + $0x1f0] sm:$0xff] }
  0xc1   : > { %2896 = vmatpush1.bf16.msra.mxu0 %v11419_v0  ;;  %v308_v0 = vld [vmem:[%s12933_s29 + $0x188] sm:$0xff] }
  0xc2   : > { %3009 = vmatpush1.bf16.msra.mxu1 %v11422_v3  ;;  %2897 = vmatprep.subr.bf16.mxu0 %v11427_v8  ;;  %v312_v3 = vld [vmem:[%s12933_s29 + $0x1a8] sm:$0xff] }
  0xc3   : > { %3010 = vmatprep.subr.bf16.mxu1 %v11430_v9  ;;  %v11457_v8 = vld [vmem:[#allocation5 + $0x48c] ss:$48 sps:$4 sm:$0xff]   ;;  %v13069_v12 = vpack.c.bf16 %v312_v3, %v308_v0 }
  0xc4   : > { %2722 = vmatmul.mubr.bf16.gmra.mxu0 %v13023_v14  ;;  %v11460_v9 = vld [vmem:[#allocation5 + $0xa8c] ss:$48 sps:$4 sm:$0xff]  }
  0xc5   : > { %2835 = vmatmul.mubr.bf16.gmra.mxu1 %v13025_v15  ;;  %2898 = vmatpush1.bf16.msra.mxu0 %v11425_v10  ;;  %v11455_v10 = vld [vmem:[#allocation5 + $0x488] ss:$48 sps:$4 sm:$0xff]   ;;  %v11481_v0 = vld [vmem:[#allocation5 + $0x30c] ss:$48 sps:$4 sm:$0xff]  }
  0xc6   : > { %3011 = vmatpush1.bf16.msra.mxu1 %v11428_v11  ;;  %2899 = vmatprep.subr.bf16.mxu0 %v11433_v20  ;;  %v11458_v11 = vld [vmem:[#allocation5 + $0xa88] ss:$48 sps:$4 sm:$0xff]   ;;  %v309_v20 = vld [vmem:[%s12933_s29 + $0x190] sm:$0xff]  ;;  %v11484_v3 = vld [vmem:[#allocation5 + $0x90c] ss:$48 sps:$4 sm:$0xff]  }
  0xc7   : > { %3012 = vmatprep.subr.bf16.mxu1 %v11436_v21  ;;  %2731 = vmatprep.mubr.bf16.mxu0 %v13029_v25  ;;  %v313_v21 = vld [vmem:[%s12933_s29 + $0x1b0] sm:$0xff] }
  0xc8   : > { %2844 = vmatprep.mubr.bf16.mxu1 %v13031_v26 }
  0xc9   : > { %2900 = vmatpush1.bf16.msra.mxu0 %v11431_v22  ;;  %v11463_v22 = vld [vmem:[#allocation5 + $0x42c] ss:$48 sps:$4 sm:$0xff]  }
  0xca   : > { %3013 = vmatpush1.bf16.msra.mxu1 %v11434_v27  ;;  %2901 = vmatprep.subr.bf16.mxu0 %v11439_v32  ;;  %v11466_v27 = vld [vmem:[#allocation5 + $0xa2c] ss:$48 sps:$4 sm:$0xff]   ;;  %v13083_v32 = vpack.c.bf16 %v311_v19, %v307_v18  ;;  %v11493_v18 = vld [vmem:[#allocation5 + $0x254] ss:$48 sps:$4 sm:$0xff]  }
  0xcb   : > { %3014 = vmatprep.subr.bf16.mxu1 %v11442_v33  ;;  %v13085_v33 = vpack.c.bf16 %v313_v21, %v309_v20  ;;  %v11496_v19 = vld [vmem:[#allocation5 + $0x854] ss:$48 sps:$4 sm:$0xff]   ;;  %v11491_v20 = vld [vmem:[#allocation5 + $0x250] ss:$48 sps:$4 sm:$0xff]  }
  0xcc   : > { %2732 = vmatmul.mubr.bf16.gmra.mxu0 %v13043_v40  ;;  %v11494_v21 = vld [vmem:[#allocation5 + $0x850] ss:$48 sps:$4 sm:$0xff]  }
  0xcd   : > { %2845 = vmatmul.mubr.bf16.gmra.mxu1 %v13045_v41  ;;  %2902 = vmatpush2.bf16.msra.mxu0 %v11437_v34  ;;  %v318_v34 = vld [vmem:[%s12933_s29 + $0x1d8] sm:$0xff] }
  0xce   : > { %3015 = vmatpush2.bf16.msra.mxu1 %v11440_v35  ;;  %2903 = vmatprep.subr.bf16.mxu0 %v11445_v46  ;;  %v322_v35 = vld [vmem:[%s12933_s29 + $0x1f8] sm:$0xff]  ;;  %v13089_v46 = vpack.c.bf16 %v320_v31, %v316_v30  ;;  %v11505_v30 = vld [vmem:[#allocation5 + $0x194] ss:$48 sps:$4 sm:$0xff]  }
  0xcf   : > { %3016 = vmatprep.subr.bf16.mxu1 %v11448_v47  ;;  %2741 = vmatprep.mubr.bf16.mxu0 %v13049_v49  ;;  %v13091_v47 = vpack.c.bf16 %v322_v35, %v318_v34  ;;  %v11508_v31 = vld [vmem:[#allocation5 + $0x794] ss:$48 sps:$4 sm:$0xff]   ;;  %v11503_v34 = vld [vmem:[#allocation5 + $0x190] ss:$48 sps:$4 sm:$0xff]  }
  0xd0   : > { %2854 = vmatprep.mubr.bf16.mxu1 %v13051_v50  ;;  %v11506_v35 = vld [vmem:[#allocation5 + $0x790] ss:$48 sps:$4 sm:$0xff]  }
  0xd1   : > { %2904 = vmatpush2.bf16.msra.mxu0 %v11443_v48  ;;  %v315_v48 = vld [vmem:[%s12933_s29 + $0x1c0] sm:$0xff] }
  0xd2   : > { %3017 = vmatpush2.bf16.msra.mxu1 %v11446_v51  ;;  %2905 = vmatprep.subr.bf16.mxu0 %v11451_v60  ;;  %v319_v51 = vld [vmem:[%s12933_s29 + $0x1e0] sm:$0xff] }
  0xd3   : > { %3018 = vmatprep.subr.bf16.mxu1 %v11454_v61  ;;  %v13101_v60 = vpack.c.bf16 %v319_v51, %v315_v48  ;;  %v13103_v61 = vpack.c.bf16 %v321_v55, %v317_v52  ;;  %v11517_v48 = vld [vmem:[#allocation5 + $0xd4] ss:$48 sps:$4 sm:$0xff]   ;;  %v11515_v52 = vld [vmem:[#allocation5 + $0xd0] ss:$48 sps:$4 sm:$0xff]  }
  0xd4   : > { %2742 = vmatmul.mubr.bf16.gmra.mxu0 %v13063_v4  ;;  %v11520_v51 = vld [vmem:[#allocation5 + $0x6d4] ss:$48 sps:$4 sm:$0xff]   ;;  %v11518_v55 = vld [vmem:[#allocation5 + $0x6d0] ss:$48 sps:$4 sm:$0xff]  }
  0xd5   : > { %2855 = vmatmul.mubr.bf16.gmra.mxu1 %v13065_v5  ;;  %2906 = vmatpush2.bf16.msra.mxu0 %v11449_v62  ;;  %v11473_v62 = vld [vmem:[#allocation5 + $0x368] ss:$48 sps:$4 sm:$0xff]  }
  0xd6   : > { %3019 = vmatpush2.bf16.msra.mxu1 %v11452_v63  ;;  %2907 = vmatprep.subr.bf16.mxu0 %v11457_v8  ;;  %v11476_v63 = vld [vmem:[#allocation5 + $0x968] ss:$48 sps:$4 sm:$0xff]   ;;  %v11487_v8 = vld [vmem:[#allocation5 + $0x2b4] ss:$48 sps:$4 sm:$0xff]  }
  0xd7   : > { %3020 = vmatprep.subr.bf16.mxu1 %v11460_v9  ;;  %2751 = vmatprep.mubr.bf16.mxu0 %v13069_v12  ;;  %v11490_v9 = vld [vmem:[#allocation5 + $0x8b4] ss:$48 sps:$4 sm:$0xff]  }
  0xd8   : > { %2864 = vmatprep.mubr.bf16.mxu1 %v13071_v13 }
  0xd9   : > { %2908 = vmatpush2.bf16.msra.mxu0 %v11455_v10  ;;  %v11485_v10 = vld [vmem:[#allocation5 + $0x2b0] ss:$48 sps:$4 sm:$0xff]  }
  0xda   : > { %3021 = vmatpush2.bf16.msra.mxu1 %v11458_v11  ;;  %2909 = vmatprep.subr.bf16.mxu0 %v11463_v22  ;;  %v11488_v11 = vld [vmem:[#allocation5 + $0x8b0] ss:$48 sps:$4 sm:$0xff]   ;;  %v11499_v22 = vld [vmem:[#allocation5 + $0x1f4] ss:$48 sps:$4 sm:$0xff]  }
  0xdb   : > { %3022 = vmatprep.subr.bf16.mxu1 %v11466_v27  ;;  %v11502_v27 = vld [vmem:[#allocation5 + $0x7f4] ss:$48 sps:$4 sm:$0xff]  }
  0xdc   : > { %2752 = vmatmul.mubr.bf16.gmra.mxu0 %v13083_v32 }
  0xdd   : > { %2865 = vmatmul.mubr.bf16.gmra.mxu1 %v13085_v33  ;;  %2910 = vmatpush2.bf16.msra.mxu0 %v11461_v28  ;;  %v11497_v28 = vld [vmem:[#allocation5 + $0x1f0] ss:$48 sps:$4 sm:$0xff]  }
  0xde   : > { %3023 = vmatpush2.bf16.msra.mxu1 %v11464_v29  ;;  %2911 = vmatprep.subr.bf16.mxu0 %v11469_v38  ;;  %v11500_v29 = vld [vmem:[#allocation5 + $0x7f0] ss:$48 sps:$4 sm:$0xff]   ;;  %v11511_v38 = vld [vmem:[#allocation5 + $0x134] ss:$48 sps:$4 sm:$0xff]  }
  0xdf   : > { %3024 = vmatprep.subr.bf16.mxu1 %v11472_v39  ;;  %2761 = vmatprep.mubr.bf16.mxu0 %v13089_v46  ;;  %v11514_v39 = vld [vmem:[#allocation5 + $0x734] ss:$48 sps:$4 sm:$0xff]  }
  0xe0   : > { %2874 = vmatprep.mubr.bf16.mxu1 %v13091_v47 }
  0xe1   : > { %2912 = vmatpush2.bf16.msra.mxu0 %v11467_v42  ;;  %v11509_v42 = vld [vmem:[#allocation5 + $0x130] ss:$48 sps:$4 sm:$0xff]  }
  0xe2   : > { %3025 = vmatpush2.bf16.msra.mxu1 %v11470_v45  ;;  %2913 = vmatprep.subr.bf16.mxu0 %v11475_v56  ;;  %v11512_v45 = vld [vmem:[#allocation5 + $0x730] ss:$48 sps:$4 sm:$0xff]   ;;  %v11523_v56 = vld [vmem:[#allocation5 + $0x74] ss:$48 sps:$4 sm:$0xff]  }
  0xe3   : > { %3026 = vmatprep.subr.bf16.mxu1 %v11478_v57  ;;  %v11526_v57 = vld [vmem:[#allocation5 + $0x674] ss:$48 sps:$4 sm:$0xff]  }
  0xe4   : > { %2762 = vmatmul.mubr.bf16.gmra.mxu0 %v13101_v60 }
  0xe5   : > { %2875 = vmatmul.mubr.bf16.gmra.mxu1 %v13103_v61  ;;  %2914 = vmatpush2.bf16.msra.mxu0 %v11473_v62  ;;  %v11521_v62 = vld [vmem:[#allocation5 + $0x70] ss:$48 sps:$4 sm:$0xff]  }
  0xe6   : > { %3027 = vmatpush2.bf16.msra.mxu1 %v11476_v63  ;;  %2915 = vmatprep.subr.bf16.mxu0 %v11481_v0  ;;  %v11524_v63 = vld [vmem:[#allocation5 + $0x670] ss:$48 sps:$4 sm:$0xff]   ;;  %v11529_v0 = vld [vmem:[#allocation5 + $0x14] ss:$48 sps:$4 sm:$0xff]  }
  0xe7   : > { %3028 = vmatprep.subr.bf16.mxu1 %v11484_v3  ;;  %2917 = vmatprep.mubr.bf16.mxu0 %v12951_v53  ;;  %v11532_v3 = vld [vmem:[#allocation5 + $0x614] ss:$48 sps:$4 sm:$0xff]  }
  0xe8   : > { %3030 = vmatprep.mubr.bf16.mxu1 %v12953_v54 }
  0xe9   : > { %2916 = vmatpush2.bf16.msra.mxu0 %v11479_v6  ;;  %v11527_v6 = vld [vmem:[#allocation5 + $0x10] ss:$48 sps:$4 sm:$0xff]  }
  0xea   : > { %3029 = vmatpush2.bf16.msra.mxu1 %v11482_v7  ;;  %3111 = vmatprep.subr.bf16.mxu0 %v11487_v8  ;;  %v11530_v7 = vld [vmem:[#allocation5 + $0x610] ss:$48 sps:$4 sm:$0xff]   ;;  %v11535_v8 = vld [vmem:[#allocation5 + $0x5b4] ss:$48 sps:$4 sm:$0xff]  }
  0xeb   : > { %3224 = vmatprep.subr.bf16.mxu1 %v11490_v9  ;;  %v11538_v9 = vld [vmem:[#allocation5 + $0xbb4] ss:$48 sps:$4 sm:$0xff]  }
  0xec   : > { %2918 = vmatmul.mubr.bf16.vlgmr.msra.gmra.mxu0 %v12963_v16 }
  0xed   : > { %3031 = vmatmul.mubr.bf16.vlgmr.msra.gmra.mxu1 %v12965_v17  ;;  %3112 = vmatpush1.bf16.msra.mxu0 %v11485_v10  ;;  %v11533_v10 = vld [vmem:[#allocation5 + $0x5b0] ss:$48 sps:$4 sm:$0xff]  }
  0xee   : > { %3225 = vmatpush1.bf16.msra.mxu1 %v11488_v11  ;;  %3113 = vmatprep.subr.bf16.mxu0 %v11493_v18  ;;  %v11536_v11 = vld [vmem:[#allocation5 + $0xbb0] ss:$48 sps:$4 sm:$0xff]   ;;  %v11541_v18 = vld [vmem:[#allocation5 + $0x554] ss:$48 sps:$4 sm:$0xff]  }
  0xef   : > { %3226 = vmatprep.subr.bf16.mxu1 %v11496_v19  ;;  %2927 = vmatprep.mubr.bf16.mxu0 %v12969_v23  ;;  %v11544_v19 = vld [vmem:[#allocation5 + $0xb54] ss:$48 sps:$4 sm:$0xff]  }
  0xf0   : > { %3040 = vmatprep.mubr.bf16.mxu1 %v12971_v24 }
  0xf1   : > { %3114 = vmatpush1.bf16.msra.mxu0 %v11491_v20  ;;  %v11539_v20 = vld [vmem:[#allocation5 + $0x550] ss:$48 sps:$4 sm:$0xff]  }
  0xf2   : > { %3227 = vmatpush1.bf16.msra.mxu1 %v11494_v21  ;;  %3115 = vmatprep.subr.bf16.mxu0 %v11499_v22  ;;  %v11542_v21 = vld [vmem:[#allocation5 + $0xb50] ss:$48 sps:$4 sm:$0xff]   ;;  %v11547_v22 = vld [vmem:[#allocation5 + $0x4f4] ss:$48 sps:$4 sm:$0xff]  }
  0xf3   : > { %3228 = vmatprep.subr.bf16.mxu1 %v11502_v27  ;;  %v11550_v27 = vld [vmem:[#allocation5 + $0xaf4] ss:$48 sps:$4 sm:$0xff]  }
  0xf4   : > { %2928 = vmatmul.mubr.bf16.gmra.mxu0 %v12983_v36 }
  0xf5   : > { %3041 = vmatmul.mubr.bf16.gmra.mxu1 %v12985_v37  ;;  %3116 = vmatpush1.bf16.msra.mxu0 %v11497_v28  ;;  %v11545_v28 = vld [vmem:[#allocation5 + $0x4f0] ss:$48 sps:$4 sm:$0xff]  }
  0xf6   : > { %3229 = vmatpush1.bf16.msra.mxu1 %v11500_v29  ;;  %3117 = vmatprep.subr.bf16.mxu0 %v11505_v30  ;;  %v11548_v29 = vld [vmem:[#allocation5 + $0xaf0] ss:$48 sps:$4 sm:$0xff]   ;;  %v11553_v30 = vld [vmem:[#allocation5 + $0x494] ss:$48 sps:$4 sm:$0xff]  }
  0xf7   : > { %3230 = vmatprep.subr.bf16.mxu1 %v11508_v31  ;;  %2937 = vmatprep.mubr.bf16.mxu0 %v12989_v43  ;;  %v11556_v31 = vld [vmem:[#allocation5 + $0xa94] ss:$48 sps:$4 sm:$0xff]  }
  0xf8   : > { %3050 = vmatprep.mubr.bf16.mxu1 %v12991_v44 }
  0xf9   : > { %3118 = vmatpush1.bf16.msra.mxu0 %v11503_v34  ;;  %v11551_v34 = vld [vmem:[#allocation5 + $0x490] ss:$48 sps:$4 sm:$0xff]  }
  0xfa   : > { %3231 = vmatpush1.bf16.msra.mxu1 %v11506_v35  ;;  %3119 = vmatprep.subr.bf16.mxu0 %v11511_v38  ;;  %v11554_v35 = vld [vmem:[#allocation5 + $0xa90] ss:$48 sps:$4 sm:$0xff]   ;;  %v11559_v38 = vld [vmem:[#allocation5 + $0x434] ss:$48 sps:$4 sm:$0xff]  }
  0xfb   : > { %3232 = vmatprep.subr.bf16.mxu1 %v11514_v39  ;;  %v11562_v39 = vld [vmem:[#allocation5 + $0xa34] ss:$48 sps:$4 sm:$0xff]  }
  0xfc   : > { %2938 = vmatmul.mubr.bf16.gmra.mxu0 %v13003_v58 }
  0xfd   : > { %3051 = vmatmul.mubr.bf16.gmra.mxu1 %v13005_v59  ;;  %3120 = vmatpush1.bf16.msra.mxu0 %v11509_v42  ;;  %v11557_v42 = vld [vmem:[#allocation5 + $0x430] ss:$48 sps:$4 sm:$0xff]  }
  0xfe   : > { %3233 = vmatpush1.bf16.msra.mxu1 %v11512_v45  ;;  %3121 = vmatprep.subr.bf16.mxu0 %v11517_v48  ;;  %v11560_v45 = vld [vmem:[#allocation5 + $0xa30] ss:$48 sps:$4 sm:$0xff]   ;;  %v11565_v48 = vld [vmem:[#allocation5 + $0x3d4] ss:$48 sps:$4 sm:$0xff]  }
  0xff   : > { %3234 = vmatprep.subr.bf16.mxu1 %v11520_v51  ;;  %2947 = vmatprep.mubr.bf16.mxu0 %v13009_v1  ;;  %v11568_v51 = vld [vmem:[#allocation5 + $0x9d4] ss:$48 sps:$4 sm:$0xff]  }
 0x100   : > { %3060 = vmatprep.mubr.bf16.mxu1 %v13011_v2 }
 0x101   : > { %3122 = vmatpush1.bf16.msra.mxu0 %v11515_v52  ;;  %v11563_v52 = vld [vmem:[#allocation5 + $0x3d0] ss:$48 sps:$4 sm:$0xff]  }
 0x102   : > { %3235 = vmatpush1.bf16.msra.mxu1 %v11518_v55  ;;  %3123 = vmatprep.subr.bf16.mxu0 %v11523_v56  ;;  %v11566_v55 = vld [vmem:[#allocation5 + $0x9d0] ss:$48 sps:$4 sm:$0xff]   ;;  %v11571_v56 = vld [vmem:[#allocation5 + $0x374] ss:$48 sps:$4 sm:$0xff]  }
 0x103   : > { %3236 = vmatprep.subr.bf16.mxu1 %v11526_v57  ;;  %v11574_v57 = vld [vmem:[#allocation5 + $0x974] ss:$48 sps:$4 sm:$0xff]  }
 0x104   : > { %2948 = vmatmul.mubr.bf16.gmra.mxu0 %v13023_v14 }
 0x105   : > { %3061 = vmatmul.mubr.bf16.gmra.mxu1 %v13025_v15  ;;  %3124 = vmatpush1.bf16.msra.mxu0 %v11521_v62  ;;  %v11569_v62 = vld [vmem:[#allocation5 + $0x370] ss:$48 sps:$4 sm:$0xff]  }
 0x106   : > { %3237 = vmatpush1.bf16.msra.mxu1 %v11524_v63  ;;  %3125 = vmatprep.subr.bf16.mxu0 %v11529_v0  ;;  %v11572_v63 = vld [vmem:[#allocation5 + $0x970] ss:$48 sps:$4 sm:$0xff]   ;;  %v11577_v0 = vld [vmem:[#allocation5 + $0x314] ss:$48 sps:$4 sm:$0xff]  }
 0x107   : > { %3238 = vmatprep.subr.bf16.mxu1 %v11532_v3  ;;  %2957 = vmatprep.mubr.bf16.mxu0 %v13029_v25  ;;  %v11580_v3 = vld [vmem:[#allocation5 + $0x914] ss:$48 sps:$4 sm:$0xff]  }
 0x108   : > { %3070 = vmatprep.mubr.bf16.mxu1 %v13031_v26 }
 0x109   : > { %3126 = vmatpush1.bf16.msra.mxu0 %v11527_v6  ;;  %v11575_v6 = vld [vmem:[#allocation5 + $0x310] ss:$48 sps:$4 sm:$0xff]  }
 0x10a   : > { %3239 = vmatpush1.bf16.msra.mxu1 %v11530_v7  ;;  %3127 = vmatprep.subr.bf16.mxu0 %v11535_v8  ;;  %v11578_v7 = vld [vmem:[#allocation5 + $0x910] ss:$48 sps:$4 sm:$0xff]   ;;  %v11583_v8 = vld [vmem:[#allocation5 + $0x2bc] ss:$48 sps:$4 sm:$0xff]  }
 0x10b   : > { %3240 = vmatprep.subr.bf16.mxu1 %v11538_v9  ;;  %v11607_v9 = vld [vmem:[#allocation5 + $0x8bc] ss:$48 sps:$4 sm:$0xff]  }
 0x10c   : > { %2958 = vmatmul.mubr.bf16.gmra.mxu0 %v13043_v40 }
 0x10d   : > { %3071 = vmatmul.mubr.bf16.gmra.mxu1 %v13045_v41  ;;  %3128 = vmatpush2.bf16.msra.mxu0 %v11533_v10  ;;  %v11581_v10 = vld [vmem:[#allocation5 + $0x2b8] ss:$48 sps:$4 sm:$0xff]  }
 0x10e   : > { %3241 = vmatpush2.bf16.msra.mxu1 %v11536_v11  ;;  %3129 = vmatprep.subr.bf16.mxu0 %v11541_v18  ;;  %v11586_v11 = vld [vmem:[#allocation5 + $0x25c] ss:$48 sps:$4 sm:$0xff]   ;;  %v11605_v18 = vld [vmem:[#allocation5 + $0x8b8] ss:$48 sps:$4 sm:$0xff]  }
 0x10f   : > { %3242 = vmatprep.subr.bf16.mxu1 %v11544_v19  ;;  %2967 = vmatprep.mubr.bf16.mxu0 %v13049_v49  ;;  %v11613_v19 = vld [vmem:[#allocation5 + $0x85c] ss:$48 sps:$4 sm:$0xff]  }
 0x110   : > { %3080 = vmatprep.mubr.bf16.mxu1 %v13051_v50 }
 0x111   : > { %3130 = vmatpush2.bf16.msra.mxu0 %v11539_v20  ;;  %v11584_v20 = vld [vmem:[#allocation5 + $0x258] ss:$48 sps:$4 sm:$0xff]  }
 0x112   : > { %3243 = vmatpush2.bf16.msra.mxu1 %v11542_v21  ;;  %3131 = vmatprep.subr.bf16.mxu0 %v11547_v22  ;;  %v11589_v21 = vld [vmem:[#allocation5 + $0x1fc] ss:$48 sps:$4 sm:$0xff]   ;;  %v11611_v22 = vld [vmem:[#allocation5 + $0x858] ss:$48 sps:$4 sm:$0xff]  }
 0x113   : > { %3244 = vmatprep.subr.bf16.mxu1 %v11550_v27  ;;  %v11587_v27 = vld [vmem:[#allocation5 + $0x1f8] ss:$48 sps:$4 sm:$0xff]  }
 0x114   : > { %2968 = vmatmul.mubr.bf16.gmra.mxu0 %v13063_v4 }
 0x115   : > { %3081 = vmatmul.mubr.bf16.gmra.mxu1 %v13065_v5  ;;  %3132 = vmatpush2.bf16.msra.mxu0 %v11545_v28  ;;  %v11592_v28 = vld [vmem:[#allocation5 + $0x19c] ss:$48 sps:$4 sm:$0xff]  }
 0x116   : > { %3245 = vmatpush2.bf16.msra.mxu1 %v11548_v29  ;;  %3133 = vmatprep.subr.bf16.mxu0 %v11553_v30  ;;  %v11619_v29 = vld [vmem:[#allocation5 + $0x7fc] ss:$48 sps:$4 sm:$0xff]   ;;  %v11590_v30 = vld [vmem:[#allocation5 + $0x198] ss:$48 sps:$4 sm:$0xff]  }
 0x117   : > { %3246 = vmatprep.subr.bf16.mxu1 %v11556_v31  ;;  %2977 = vmatprep.mubr.bf16.mxu0 %v13069_v12  ;;  %v11617_v31 = vld [vmem:[#allocation5 + $0x7f8] ss:$48 sps:$4 sm:$0xff]  }
 0x118   : > { %3090 = vmatprep.mubr.bf16.mxu1 %v13071_v13 }
 0x119   : > { %3134 = vmatpush2.bf16.msra.mxu0 %v11551_v34  ;;  %v11625_v34 = vld [vmem:[#allocation5 + $0x79c] ss:$48 sps:$4 sm:$0xff]  }
 0x11a   : > { %3247 = vmatpush2.bf16.msra.mxu1 %v11554_v35  ;;  %3135 = vmatprep.subr.bf16.mxu0 %v11559_v38  ;;  %v11595_v35 = vld [vmem:[#allocation5 + $0x13c] ss:$48 sps:$4 sm:$0xff]   ;;  %v11593_v38 = vld [vmem:[#allocation5 + $0x138] ss:$48 sps:$4 sm:$0xff]  }
 0x11b   : > { %3248 = vmatprep.subr.bf16.mxu1 %v11562_v39  ;;  %v11598_v39 = vld [vmem:[#allocation5 + $0xdc] ss:$48 sps:$4 sm:$0xff]  }
 0x11c   : > { %2978 = vmatmul.mubr.bf16.gmra.mxu0 %v13083_v32 }
 0x11d   : > { %3091 = vmatmul.mubr.bf16.gmra.mxu1 %v13085_v33  ;;  %3136 = vmatpush2.bf16.msra.mxu0 %v11557_v42  ;;  %v11623_v42 = vld [vmem:[#allocation5 + $0x798] ss:$48 sps:$4 sm:$0xff]  }
 0x11e   : > { %3249 = vmatpush2.bf16.msra.mxu1 %v11560_v45  ;;  %3137 = vmatprep.subr.bf16.mxu0 %v11565_v48  ;;  %v11631_v45 = vld [vmem:[#allocation5 + $0x73c] ss:$48 sps:$4 sm:$0xff]   ;;  %v11596_v48 = vld [vmem:[#allocation5 + $0xd8] ss:$48 sps:$4 sm:$0xff]  }
 0x11f   : > { %3250 = vmatprep.subr.bf16.mxu1 %v11568_v51  ;;  %2987 = vmatprep.mubr.bf16.mxu0 %v13089_v46  ;;  %v11601_v51 = vld [vmem:[#allocation5 + $0x7c] ss:$48 sps:$4 sm:$0xff]  }
 0x120   : > { %3100 = vmatprep.mubr.bf16.mxu1 %v13091_v47 }
 0x121   : > { %3138 = vmatpush2.bf16.msra.mxu0 %v11563_v52  ;;  %v11629_v52 = vld [vmem:[#allocation5 + $0x738] ss:$48 sps:$4 sm:$0xff]  }
 0x122   : > { %3251 = vmatpush2.bf16.msra.mxu1 %v11566_v55  ;;  %3139 = vmatprep.subr.bf16.mxu0 %v11571_v56  ;;  %v11599_v55 = vld [vmem:[#allocation5 + $0x78] ss:$48 sps:$4 sm:$0xff]   ;;  %v11604_v56 = vld [vmem:[#allocation5 + $0x1c] ss:$48 sps:$4 sm:$0xff]  }
 0x123   : > { %3252 = vmatprep.subr.bf16.mxu1 %v11574_v57  ;;  %v11637_v57 = vld [vmem:[#allocation5 + $0x6dc] ss:$48 sps:$4 sm:$0xff]  }
 0x124   : > { %2988 = vmatmul.mubr.bf16.gmra.mxu0 %v13101_v60 }
 0x125   : > { %3101 = vmatmul.mubr.bf16.gmra.mxu1 %v13103_v61  ;;  %3140 = vmatpush2.bf16.msra.mxu0 %v11569_v62  ;;  %v11602_v62 = vld [vmem:[#allocation5 + $0x18] ss:$48 sps:$4 sm:$0xff]  }
 0x126   : > { %3253 = vmatpush2.bf16.msra.mxu1 %v11572_v63  ;;  %3141 = vmatprep.subr.bf16.mxu0 %v11577_v0  ;;  %v11635_v63 = vld [vmem:[#allocation5 + $0x6d8] ss:$48 sps:$4 sm:$0xff]   ;;  %v11643_v0 = vld [vmem:[#allocation5 + $0x67c] ss:$48 sps:$4 sm:$0xff]  }
 0x127   : > { %3254 = vmatprep.subr.bf16.mxu1 %v11580_v3  ;;  %3143 = vmatprep.mubr.bf16.mxu0 %v12951_v53  ;;  %v11610_v3 = vld [vmem:[#allocation5 + $0x5bc] ss:$48 sps:$4 sm:$0xff]  }
 0x128   : > { %3256 = vmatprep.mubr.bf16.mxu1 %v12953_v54 }
 0x129   : > { %3142 = vmatpush2.bf16.msra.mxu0 %v11575_v6  ;;  %v11608_v6 = vld [vmem:[#allocation5 + $0x5b8] ss:$48 sps:$4 sm:$0xff]  }
 0x12a   : > { %3255 = vmatpush2.bf16.msra.mxu1 %v11578_v7  ;;  %3337 = vmatprep.subr.bf16.mxu0 %v11583_v8  ;;  %v11616_v7 = vld [vmem:[#allocation5 + $0x55c] ss:$48 sps:$4 sm:$0xff]   ;;  %v11641_v8 = vld [vmem:[#allocation5 + $0x678] ss:$48 sps:$4 sm:$0xff]  }
 0x12b   : > { %3450 = vmatprep.subr.bf16.mxu1 %v11607_v9  ;;  %v11649_v9 = vld [vmem:[#allocation5 + $0x61c] ss:$48 sps:$4 sm:$0xff]  }
 0x12c   : > { %3144 = vmatmul.mubr.bf16.vlgmr.msra.gmra.mxu0 %v12963_v16 }
 0x12d   : > { %3257 = vmatmul.mubr.bf16.vlgmr.msra.gmra.mxu1 %v12965_v17  ;;  %3338 = vmatpush1.bf16.msra.mxu0 %v11581_v10  ;;  %v11614_v10 = vld [vmem:[#allocation5 + $0x558] ss:$48 sps:$4 sm:$0xff]  }
 0x12e   : > { %3153 = vmatprep.mubr.bf16.mxu0 %v12969_v23  ;;  %3339 = vmatprep.subr.bf16.mxu0 %v11586_v11  ;;  %v11622_v11 = vld [vmem:[#allocation5 + $0x4fc] ss:$48 sps:$4 sm:$0xff]  }
 0x12f   : > { %3266 = vmatprep.mubr.bf16.mxu1 %v12971_v24  ;;  %3451 = vmatpush1.bf16.msra.mxu1 %v11605_v18  ;;  %v11647_v18 = vld [vmem:[#allocation5 + $0x618] ss:$48 sps:$4 sm:$0xff]  }
 0x130   : > { %3452 = vmatprep.subr.bf16.mxu1 %v11613_v19  ;;  %v11620_v19 = vld [vmem:[#allocation5 + $0x4f8] ss:$48 sps:$4 sm:$0xff]  }
 0x131   : > { %3340 = vmatpush1.bf16.msra.mxu0 %v11584_v20  ;;  %v11628_v20 = vld [vmem:[#allocation5 + $0x49c] ss:$48 sps:$4 sm:$0xff]  }
 0x132   : > { %3341 = vmatprep.subr.bf16.mxu0 %v11589_v21  ;;  %v11655_v21 = vld [vmem:[#allocation5 + $0xbbc] ss:$48 sps:$4 sm:$0xff]  }
 0x133   : > { %3453 = vmatpush1.bf16.msra.mxu1 %v11611_v22  ;;  %v11626_v22 = vld [vmem:[#allocation5 + $0x498] ss:$48 sps:$4 sm:$0xff]  }
 0x134   : > { %3154 = vmatmul.mubr.bf16.gmra.mxu0 %v12983_v36  ;;  %3454 = vmatprep.subr.bf16.mxu1 %v11619_v29  ;;  %v11634_v29 = vld [vmem:[#allocation5 + $0x43c] ss:$48 sps:$4 sm:$0xff]  }
 0x135   : > { %3267 = vmatmul.mubr.bf16.gmra.mxu1 %v12985_v37  ;;  %3342 = vmatpush1.bf16.msra.mxu0 %v11587_v27  ;;  %v11653_v27 = vld [vmem:[#allocation5 + $0xbb8] ss:$48 sps:$4 sm:$0xff]  }
 0x136   : > { %3163 = vmatprep.mubr.bf16.mxu0 %v12989_v43  ;;  %3343 = vmatprep.subr.bf16.mxu0 %v11592_v28  ;;  %v11661_v28 = vld [vmem:[#allocation5 + $0xb5c] ss:$48 sps:$4 sm:$0xff]  }
 0x137   : > { %3276 = vmatprep.mubr.bf16.mxu1 %v12991_v44  ;;  %3455 = vmatpush1.bf16.msra.mxu1 %v11617_v31  ;;  %v11640_v31 = vld [vmem:[#allocation5 + $0x3dc] ss:$48 sps:$4 sm:$0xff]  }
 0x138   : > { %3456 = vmatprep.subr.bf16.mxu1 %v11625_v34  ;;  %v11659_v34 = vld [vmem:[#allocation5 + $0xb58] ss:$48 sps:$4 sm:$0xff]  }
 0x139   : > { %3344 = vmatpush1.bf16.msra.mxu0 %v11590_v30  ;;  %v11632_v30 = vld [vmem:[#allocation5 + $0x438] ss:$48 sps:$4 sm:$0xff]  }
 0x13a   : > { %3345 = vmatprep.subr.bf16.mxu0 %v11595_v35  ;;  %v11667_v35 = vld [vmem:[#allocation5 + $0xafc] ss:$48 sps:$4 sm:$0xff]  }
 0x13b   : > { %3457 = vmatpush1.bf16.msra.mxu1 %v11623_v42  ;;  %v11665_v42 = vld [vmem:[#allocation5 + $0xaf8] ss:$48 sps:$4 sm:$0xff]  }
 0x13c   : > { %3164 = vmatmul.mubr.bf16.gmra.mxu0 %v13003_v58  ;;  %3458 = vmatprep.subr.bf16.mxu1 %v11631_v45  ;;  %v11644_v45 = vld [vmem:[#allocation5 + $0x378] ss:$48 sps:$4 sm:$0xff]  }
 0x13d   : > { %3277 = vmatmul.mubr.bf16.gmra.mxu1 %v13005_v59  ;;  %3346 = vmatpush1.bf16.msra.mxu0 %v11593_v38  ;;  %v11638_v38 = vld [vmem:[#allocation5 + $0x3d8] ss:$48 sps:$4 sm:$0xff]  }
 0x13e   : > { %3173 = vmatprep.mubr.bf16.mxu0 %v13009_v1  ;;  %3347 = vmatprep.subr.bf16.mxu0 %v11598_v39  ;;  %v11646_v39 = vld [vmem:[#allocation5 + $0x37c] ss:$48 sps:$4 sm:$0xff]  }
 0x13f   : > { %3286 = vmatprep.mubr.bf16.mxu1 %v13011_v2  ;;  %3459 = vmatpush1.bf16.msra.mxu1 %v11629_v52  ;;  %v11671_v52 = vld [vmem:[#allocation5 + $0xa98] ss:$48 sps:$4 sm:$0xff]  }
 0x140   : > { %3460 = vmatprep.subr.bf16.mxu1 %v11637_v57  ;;  %v11658_v57 = vld [vmem:[#allocation5 + $0x2c4] ss:$48 sps:$4 sm:$0xff]  }
 0x141   : > { %3348 = vmatpush1.bf16.msra.mxu0 %v11596_v48  ;;  %v11652_v48 = vld [vmem:[#allocation5 + $0x31c] ss:$48 sps:$4 sm:$0xff]  }
 0x142   : > { %3349 = vmatprep.subr.bf16.mxu0 %v11601_v51  ;;  %v11673_v51 = vld [vmem:[#allocation5 + $0xa9c] ss:$48 sps:$4 sm:$0xff]  }
 0x143   : > { %3461 = vmatpush1.bf16.msra.mxu1 %v11635_v63  ;;  %v11677_v63 = vld [vmem:[#allocation5 + $0xa38] ss:$48 sps:$4 sm:$0xff]  }
 0x144   : > { %3174 = vmatmul.mubr.bf16.gmra.mxu0 %v13023_v14  ;;  %3462 = vmatprep.subr.bf16.mxu1 %v11643_v0  ;;  %v11664_v0 = vld [vmem:[#allocation5 + $0x264] ss:$48 sps:$4 sm:$0xff]  }
 0x145   : > { %3287 = vmatmul.mubr.bf16.gmra.mxu1 %v13025_v15  ;;  %3350 = vmatpush1.bf16.msra.mxu0 %v11599_v55  ;;  %v11679_v55 = vld [vmem:[#allocation5 + $0xa3c] ss:$48 sps:$4 sm:$0xff]  }
 0x146   : > { %3183 = vmatprep.mubr.bf16.mxu0 %v13029_v25  ;;  %3351 = vmatprep.subr.bf16.mxu0 %v11604_v56  ;;  %v11650_v56 = vld [vmem:[#allocation5 + $0x318] ss:$48 sps:$4 sm:$0xff]  }
 0x147   : > { %3296 = vmatprep.mubr.bf16.mxu1 %v13031_v26  ;;  %3463 = vmatpush1.bf16.msra.mxu1 %v11641_v8  ;;  %v11662_v8 = vld [vmem:[#allocation5 + $0x260] ss:$48 sps:$4 sm:$0xff]  }
 0x148   : > { %3464 = vmatprep.subr.bf16.mxu1 %v11649_v9 }
 0x149   : > { %3352 = vmatpush1.bf16.msra.mxu0 %v11602_v62  ;;  %v11656_v62 = vld [vmem:[#allocation5 + $0x2c0] ss:$48 sps:$4 sm:$0xff]  }
 0x14a   : > { %3353 = vmatprep.subr.bf16.mxu0 %v11610_v3  ;;  %v11685_v3 = vld [vmem:[#allocation5 + $0x9dc] ss:$48 sps:$4 sm:$0xff]  }
 0x14b   : > { %3465 = vmatpush1.bf16.msra.mxu1 %v11647_v18 }
 0x14c   : > { %3184 = vmatmul.mubr.bf16.gmra.mxu0 %v13043_v40  ;;  %3466 = vmatprep.subr.bf16.mxu1 %v11655_v21 }
 0x14d   : > { %3297 = vmatmul.mubr.bf16.gmra.mxu1 %v13045_v41  ;;  %3354 = vmatpush2.bf16.msra.mxu0 %v11608_v6  ;;  %v11683_v6 = vld [vmem:[#allocation5 + $0x9d8] ss:$48 sps:$4 sm:$0xff]  }
 0x14e   : > { %3193 = vmatprep.mubr.bf16.mxu0 %v13049_v49  ;;  %3355 = vmatprep.subr.bf16.mxu0 %v11616_v7  ;;  %v11691_v7 = vld [vmem:[#allocation5 + $0x97c] ss:$48 sps:$4 sm:$0xff]  }
 0x14f   : > { %3306 = vmatprep.mubr.bf16.mxu1 %v13051_v50  ;;  %3467 = vmatpush2.bf16.msra.mxu1 %v11653_v27 }
 0x150   : > { %3468 = vmatprep.subr.bf16.mxu1 %v11661_v28  ;;  %v11668_v28 = vld [vmem:[#allocation5 + $0x200] ss:$48 sps:$4 sm:$0xff]  }
 0x151   : > { %3356 = vmatpush2.bf16.msra.mxu0 %v11614_v10 }
 0x152   : > { %3357 = vmatprep.subr.bf16.mxu0 %v11622_v11  ;;  %v11670_v11 = vld [vmem:[#allocation5 + $0x204] ss:$48 sps:$4 sm:$0xff]  }
 0x153   : > { %3469 = vmatpush2.bf16.msra.mxu1 %v11659_v34 }
 0x154   : > { %3194 = vmatmul.mubr.bf16.gmra.mxu0 %v13063_v4  ;;  %3470 = vmatprep.subr.bf16.mxu1 %v11667_v35  ;;  %v11695_v35 = vld [vmem:[#allocation5 + $0x918] ss:$48 sps:$4 sm:$0xff]  }
 0x155   : > { %3307 = vmatmul.mubr.bf16.gmra.mxu1 %v13065_v5  ;;  %3358 = vmatpush2.bf16.msra.mxu0 %v11620_v19  ;;  %v11689_v19 = vld [vmem:[#allocation5 + $0x978] ss:$48 sps:$4 sm:$0xff]  }
 0x156   : > { %3203 = vmatprep.mubr.bf16.mxu0 %v13069_v12  ;;  %3359 = vmatprep.subr.bf16.mxu0 %v11628_v20 }
 0x157   : > { %3316 = vmatprep.mubr.bf16.mxu1 %v13071_v13  ;;  %3471 = vmatpush2.bf16.msra.mxu1 %v11665_v42  ;;  %v11703_v42 = vld [vmem:[#allocation5 + $0x8c4] ss:$48 sps:$4 sm:$0xff]  }
 0x158   : > { %3472 = vmatprep.subr.bf16.mxu1 %v11673_v51 }
 0x159   : > { %3360 = vmatpush2.bf16.msra.mxu0 %v11626_v22  ;;  %v11697_v22 = vld [vmem:[#allocation5 + $0x91c] ss:$48 sps:$4 sm:$0xff]  }
 0x15a   : > { %3361 = vmatprep.subr.bf16.mxu0 %v11634_v29 }
 0x15b   : > { %3473 = vmatpush2.bf16.msra.mxu1 %v11671_v52  ;;  %v11674_v52 = vld [vmem:[#allocation5 + $0x1a0] ss:$48 sps:$4 sm:$0xff]  }
 0x15c   : > { %3204 = vmatmul.mubr.bf16.gmra.mxu0 %v13083_v32  ;;  %3474 = vmatprep.subr.bf16.mxu1 %v11679_v55 }
 0x15d   : > { %3317 = vmatmul.mubr.bf16.gmra.mxu1 %v13085_v33  ;;  %3362 = vmatpush2.bf16.msra.mxu0 %v11632_v30 }
 0x15e   : > { %3213 = vmatprep.mubr.bf16.mxu0 %v13089_v46  ;;  %3363 = vmatprep.subr.bf16.mxu0 %v11640_v31  ;;  %v11676_v31 = vld [vmem:[#allocation5 + $0x1a4] ss:$48 sps:$4 sm:$0xff]  }
 0x15f   : > { %3326 = vmatprep.mubr.bf16.mxu1 %v13091_v47  ;;  %3475 = vmatpush2.bf16.msra.mxu1 %v11677_v63 }
 0x160   : > { %3476 = vmatprep.subr.bf16.mxu1 %v11685_v3 }
 0x161   : > { %3364 = vmatpush2.bf16.msra.mxu0 %v11638_v38 }
 0x162   : > { %3365 = vmatprep.subr.bf16.mxu0 %v11646_v39 }
 0x163   : > { %3477 = vmatpush2.bf16.msra.mxu1 %v11683_v6  ;;  %v11701_v6 = vld [vmem:[#allocation5 + $0x8c0] ss:$48 sps:$4 sm:$0xff]  }
 0x164   : > { %3214 = vmatmul.mubr.bf16.gmra.mxu0 %v13101_v60  ;;  %3478 = vmatprep.subr.bf16.mxu1 %v11691_v7 }
 0x165   : > { %3327 = vmatmul.mubr.bf16.gmra.mxu1 %v13103_v61  ;;  %3366 = vmatpush2.bf16.msra.mxu0 %v11644_v45 }
 0x166   : > { %3369 = vmatprep.mubr.bf16.mxu0 %v12951_v53  ;;  %3367 = vmatprep.subr.bf16.mxu0 %v11652_v48 }
 0x167   : > { %3482 = vmatprep.mubr.bf16.mxu1 %v12953_v54  ;;  %3479 = vmatpush2.bf16.msra.mxu1 %v11689_v19 }
 0x168   : > { %3480 = vmatprep.subr.bf16.mxu1 %v11697_v22 }
 0x169   : > { %3368 = vmatpush2.bf16.msra.mxu0 %v11650_v56 }
 0x16a   : > { %3563 = vmatprep.subr.bf16.mxu0 %v11658_v57  ;;  %v11682_v57 = vld [vmem:[#allocation5 + $0x144] ss:$48 sps:$4 sm:$0xff]  }
 0x16b   : > { %3481 = vmatpush2.bf16.msra.mxu1 %v11695_v35 }
 0x16c   : > { %v2693_v9 = vpop.f32.mrf.mxu0  ;;  %3370 = vmatmul.mubr.bf16.vlgmr.msra.gmra.mxu0 %v12963_v16  ;;  %3676 = vmatprep.subr.bf16.mxu1 %v11703_v42  ;;  %v11694_v42 = vld [vmem:[#allocation5 + $0x84] ss:$48 sps:$4 sm:$0xff]  }
 0x16d   : > { %v2806_v10 = vpop.f32.mrf.mxu1  ;;  %3564 = vmatpush1.bf16.msra.mxu0 %v11656_v62  ;;  %3379 = vmatprep.mubr.bf16.mxu0 %v12969_v23 }
 0x16e   : > { %v2807_v18 = vadd.f32 %v2806_v10, %v2693_v9  ;;  %v2695_v20 = vpop.f32.mrf.mxu0  ;;  %3565 = vmatprep.subr.bf16.mxu0 %v11664_v0  ;;  %v11709_v9 = vld [vmem:[#allocation5 + $0x864] ss:$48 sps:$4 sm:$0xff]   ;;  %3483 = vmatmul.mubr.bf16.vlgmr.msra.gmra.mxu1 %v12965_v17 }
 0x16f   : > { %v2808_v21 = vpop.f32.mrf.mxu1  ;;  %3677 = vmatpush1.bf16.msra.mxu1 %v11701_v6  ;;  %3492 = vmatprep.mubr.bf16.mxu1 %v12971_v24 }
 0x170   : > { %v2809_v27 = vadd.f32 %v2808_v21, %v2695_v20  ;;  %v2697_v29 = vpop.f32.mrf.mxu0  ;;  %v4015_v45 = vmul.f32 0.125, %v2807_v18  ;;  %v11680_v18 = vld [vmem:[#allocation5 + $0x140] ss:$48 sps:$4 sm:$0xff]   ;;  %v11688_v21 = vld [vmem:[#allocation5 + $0xe4] ss:$48 sps:$4 sm:$0xff]   ;;  %3678 = vmatprep.subr.bf16.mxu1 %v11709_v9 }
 0x171   : > { %v2810_v30 = vpop.f32.mrf.mxu1  ;;  %3566 = vmatpush1.bf16.msra.mxu0 %v11662_v8 }
 0x172   : > { %v2811_v34 = vadd.f32 %v2810_v30, %v2697_v29  ;;  %v2699_v38 = vpop.f32.mrf.mxu0  ;;  %3567 = vmatprep.subr.bf16.mxu0 %v11670_v11  ;;  %v4016_v62 = vmul.f32 0.125, %v2809_v27  ;;  %v11707_v27 = vld [vmem:[#allocation5 + $0x860] ss:$48 sps:$4 sm:$0xff]   ;;  %v11715_v30 = vld [vmem:[#allocation5 + $0x804] ss:$48 sps:$4 sm:$0xff]  }
 0x173   : > { %v2812_v39 = vpop.f32.mrf.mxu1  ;;  %3679 = vmatpush1.bf16.msra.mxu1 %v11707_v27 }
 0x174   : > { %v4019_v48 = vmul.f32 0.125, %v2811_v34  ;;  %v2813_v51 = vadd.f32 %v2812_v39, %v2699_v38  ;;  %v2703_v55 = vpop.f32.mrf.mxu0  ;;  %3380 = vmatmul.mubr.bf16.gmra.mxu0 %v12983_v36  ;;  %v11686_v39 = vld [vmem:[#allocation5 + $0xe0] ss:$48 sps:$4 sm:$0xff]   ;;  %3680 = vmatprep.subr.bf16.mxu1 %v11715_v30  ;;  %v11706_v30 = vld [vmem:[#allocation5 + $0x5c4] ss:$48 sps:$4 sm:$0xff]  }
 0x175   : > { %v2816_v56 = vpop.f32.mrf.mxu1  ;;  %3568 = vmatpush1.bf16.msra.mxu0 %v11668_v28  ;;  %3389 = vmatprep.mubr.bf16.mxu0 %v12989_v43 }
 0x176   : > { %v13176_v63 = vpack.c.bf16 %v4019_v48, %v4015_v45  ;;  %v4020_v0 = vmul.f32 0.125, %v2813_v51  ;;  %v2817_v3 = vadd.f32 %v2816_v56, %v2703_v55  ;;  %v2705_v7 = vpop.f32.mrf.mxu0  ;;  %3569 = vmatprep.subr.bf16.mxu0 %v11676_v31  ;;  %v11713_v56 = vld [vmem:[#allocation5 + $0x800] ss:$48 sps:$4 sm:$0xff]   ;;  %3493 = vmatmul.mubr.bf16.gmra.mxu1 %v12985_v37 }
 0x177   : > { %v2818_v8 = vpop.f32.mrf.mxu1  ;;  %3681 = vmatpush1.bf16.msra.mxu1 %v11713_v56  ;;  %3502 = vmatprep.mubr.bf16.mxu1 %v12991_v44  ;;  %v11733_v56 = vld [vmem:[#allocation5 + $0x6e4] ss:$48 sps:$4 sm:$0xff]  }
 0x178   : > { %v13179_v10 = vpack.c.bf16 %v4020_v0, %v4016_v62  ;;  %v2819_v11 = vadd.f32 %v2818_v8, %v2705_v7  ;;  %v2707_v19 = vpop.f32.mrf.mxu0  ;;  %v4023_v31 = vmul.f32 0.125, %v2817_v3  ;;  %v11721_v0 = vld [vmem:[#allocation5 + $0x7a4] ss:$48 sps:$4 sm:$0xff]   ;;  %v11692_v7 = vld [vmem:[#allocation5 + $0x80] ss:$48 sps:$4 sm:$0xff]  }
 0x179   : > { %v2820_v20 = vpop.f32.mrf.mxu1  ;;  %3570 = vmatpush1.bf16.msra.mxu0 %v11674_v52  ;;  %3682 = vmatprep.subr.bf16.mxu1 %v11721_v0 }
 0x17a   : > { %16836 = vst [vmem:[#allocation15_spill] sm:$0xff] %v13179_v10  ;;  %v2821_v22 = vadd.f32 %v2820_v20, %v2707_v19  ;;  %v2709_v28 = vpop.f32.mrf.mxu0  ;;  %3571 = vmatprep.subr.bf16.mxu0 %v11682_v57  ;;  %v4024_v48 = vmul.f32 0.125, %v2819_v11  ;;  %v11700_v11 = vld [vmem:[#allocation5 + $0x24] ss:$48 sps:$4 sm:$0xff]   ;;  %v11719_v20 = vld [vmem:[#allocation5 + $0x7a0] ss:$48 sps:$4 sm:$0xff]  }
 0x17b   : > { %v2822_v29 = vpop.f32.mrf.mxu1  ;;  %3683 = vmatpush1.bf16.msra.mxu1 %v11719_v20 }
 0x17c   : > { %v4027_v34 = vmul.f32 0.125, %v2821_v22  ;;  %v2823_v38 = vadd.f32 %v2822_v29, %v2709_v28  ;;  %v2713_v35 = vpop.f32.mrf.mxu0  ;;  %3390 = vmatmul.mubr.bf16.gmra.mxu0 %v13003_v58  ;;  %v11727_v28 = vld [vmem:[#allocation5 + $0x744] ss:$48 sps:$4 sm:$0xff]  }
 0x17d   : > { %v2826_v45 = vpop.f32.mrf.mxu1  ;;  %3572 = vmatpush1.bf16.msra.mxu0 %v11680_v18  ;;  %3399 = vmatprep.mubr.bf16.mxu0 %v13009_v1 }
 0x17e   : > { %v13184_v51 = vpack.c.bf16 %v4027_v34, %v4023_v31  ;;  %v4028_v52 = vmul.f32 0.125, %v2823_v38  ;;  %v2827_v55 = vadd.f32 %v2826_v45, %v2713_v35  ;;  %v2715_v57 = vpop.f32.mrf.mxu0  ;;  %3573 = vmatprep.subr.bf16.mxu0 %v11688_v21  ;;  %v11698_v34 = vld [vmem:[#allocation5 + $0x20] ss:$48 sps:$4 sm:$0xff]   ;;  %3684 = vmatprep.subr.bf16.mxu1 %v11727_v28  ;;  %v11718_v28 = vld [vmem:[#allocation5 + $0x504] ss:$48 sps:$4 sm:$0xff]  }
 0x17f   : > { %v2828_v62 = vpop.f32.mrf.mxu1  ;;  %3503 = vmatmul.mubr.bf16.gmra.mxu1 %v13005_v59 }
 0x180   : > { %v13187_v3 = vpack.c.bf16 %v4028_v52, %v4024_v48  ;;  %v2829_v6 = vadd.f32 %v2828_v62, %v2715_v57  ;;  %v2717_v8 = vpop.f32.mrf.mxu0  ;;  %v4031_v21 = vmul.f32 0.125, %v2827_v55  ;;  %v11725_v48 = vld [vmem:[#allocation5 + $0x740] ss:$48 sps:$4 sm:$0xff]   ;;  %3512 = vmatprep.mubr.bf16.mxu1 %v13011_v2 }
 0x181   : > { %v2830_v9 = vpop.f32.mrf.mxu1  ;;  %3574 = vmatpush1.bf16.msra.mxu0 %v11686_v39  ;;  %3685 = vmatpush1.bf16.msra.mxu1 %v11725_v48  ;;  %v11745_v48 = vld [vmem:[#allocation5 + $0x624] ss:$48 sps:$4 sm:$0xff]  }
 0x182   : > { %16837 = vst [vmem:[#allocation16_spill] sm:$0xff] %v13187_v3  ;;  %v2831_v19 = vadd.f32 %v2830_v9, %v2717_v8  ;;  %v2719_v18 = vpop.f32.mrf.mxu0  ;;  %3575 = vmatprep.subr.bf16.mxu0 %v11694_v42  ;;  %v4032_v39 = vmul.f32 0.125, %v2829_v6  ;;  %v11704_v8 = vld [vmem:[#allocation5 + $0x5c0] ss:$48 sps:$4 sm:$0xff]   ;;  %v11712_v6 = vld [vmem:[#allocation5 + $0x564] ss:$48 sps:$4 sm:$0xff]   ;;  %3686 = vmatprep.subr.bf16.mxu1 %v11733_v56 }
 0x183   : > { %v2832_v22 = vpop.f32.mrf.mxu1 }
 0x184   : > { %v4035_v29 = vmul.f32 0.125, %v2831_v19  ;;  %v2833_v31 = vadd.f32 %v2832_v22, %v2719_v18  ;;  %v2723_v27 = vpop.f32.mrf.mxu0  ;;  %3400 = vmatmul.mubr.bf16.gmra.mxu0 %v13023_v14  ;;  %v11731_v18 = vld [vmem:[#allocation5 + $0x6e0] ss:$48 sps:$4 sm:$0xff]  }
 0x185   : > { %v2836_v38 = vpop.f32.mrf.mxu1  ;;  %3576 = vmatpush1.bf16.msra.mxu0 %v11692_v7  ;;  %3409 = vmatprep.mubr.bf16.mxu0 %v13029_v25 }
 0x186   : > { %v13192_v35 = vpack.c.bf16 %v4035_v29, %v4031_v21  ;;  %v4036_v45 = vmul.f32 0.125, %v2833_v31  ;;  %v2837_v42 = vadd.f32 %v2836_v38, %v2723_v27  ;;  %v2725_v52 = vpop.f32.mrf.mxu0  ;;  %3577 = vmatprep.subr.bf16.mxu0 %v11700_v11  ;;  %v11739_v21 = vld [vmem:[#allocation5 + $0x684] ss:$48 sps:$4 sm:$0xff]   ;;  %v11710_v27 = vld [vmem:[#allocation5 + $0x560] ss:$48 sps:$4 sm:$0xff]   ;;  %3687 = vmatpush1.bf16.msra.mxu1 %v11731_v18 }
 0x187   : > { %v2838_v55 = vpop.f32.mrf.mxu1  ;;  %3688 = vmatprep.subr.bf16.mxu1 %v11739_v21  ;;  %3513 = vmatmul.mubr.bf16.gmra.mxu1 %v13025_v15  ;;  %v11730_v21 = vld [vmem:[#allocation5 + $0x444] ss:$48 sps:$4 sm:$0xff]  }
 0x188   : > { %v13195_v57 = vpack.c.bf16 %v4036_v45, %v4032_v39  ;;  %v2839_v62 = vadd.f32 %v2838_v55, %v2725_v52  ;;  %v2727_v9 = vpop.f32.mrf.mxu0  ;;  %v4039_v11 = vmul.f32 0.125, %v2837_v42  ;;  %v11737_v42 = vld [vmem:[#allocation5 + $0x680] ss:$48 sps:$4 sm:$0xff]   ;;  %3522 = vmatprep.mubr.bf16.mxu1 %v13031_v26 }
 0x189   : > { %v2840_v0 = vpop.f32.mrf.mxu1  ;;  %3578 = vmatpush1.bf16.msra.mxu0 %v11698_v34 }
 0x18a   : > { %16838 = vst [vmem:[#allocation17_spill] sm:$0xff] %v13195_v57  ;;  %v2841_v19 = vadd.f32 %v2840_v0, %v2727_v9  ;;  %v2729_v7 = vpop.f32.mrf.mxu0  ;;  %3579 = vmatprep.subr.bf16.mxu0 %v11706_v30  ;;  %v4040_v34 = vmul.f32 0.125, %v2839_v62  ;;  %v11724_v62 = vld [vmem:[#allocation5 + $0x4a4] ss:$48 sps:$4 sm:$0xff]   ;;  %3689 = vmatpush1.bf16.msra.mxu1 %v11737_v42 }
 0x18b   : > { %v2842_v22 = vpop.f32.mrf.mxu1  ;;  %3690 = vmatprep.subr.bf16.mxu1 %v11745_v48  ;;  %v11757_v42 = vld [vmem:[#allocation5 + $0xb64] ss:$48 sps:$4 sm:$0xff]  }
 0x18c   : > { %v4043_v29 = vmul.f32 0.125, %v2841_v19  ;;  %v2843_v31 = vadd.f32 %v2842_v22, %v2729_v7  ;;  %v2733_v20 = vpop.f32.mrf.mxu0  ;;  %3410 = vmatmul.mubr.bf16.gmra.mxu0 %v13043_v40  ;;  %v11716_v19 = vld [vmem:[#allocation5 + $0x500] ss:$48 sps:$4 sm:$0xff]  }
 0x18d   : > { %v2846_v38 = vpop.f32.mrf.mxu1  ;;  %3580 = vmatpush2.bf16.msra.mxu0 %v11704_v8  ;;  %3419 = vmatprep.mubr.bf16.mxu0 %v13049_v49 }
 0x18e   : > { %v13200_v39 = vpack.c.bf16 %v4043_v29, %v4039_v11  ;;  %v4044_v30 = vmul.f32 0.125, %v2843_v31  ;;  %v2847_v45 = vadd.f32 %v2846_v38, %v2733_v20  ;;  %v2735_v52 = vpop.f32.mrf.mxu0  ;;  %3581 = vmatprep.subr.bf16.mxu0 %v11712_v6  ;;  %v11743_v11 = vld [vmem:[#allocation5 + $0x620] ss:$48 sps:$4 sm:$0xff]   ;;  %v11751_v31 = vld [vmem:[#allocation5 + $0xbc4] ss:$48 sps:$4 sm:$0xff]  }
 0x18f   : > { %v2848_v55 = vpop.f32.mrf.mxu1  ;;  %3691 = vmatpush1.bf16.msra.mxu1 %v11743_v11 }
 0x190   : > { %v13203_v9 = vpack.c.bf16 %v4044_v30, %v4040_v34  ;;  %v2849_v0 = vadd.f32 %v2848_v55, %v2735_v52  ;;  %v2737_v7 = vpop.f32.mrf.mxu0  ;;  %v4047_v6 = vmul.f32 0.125, %v2847_v45  ;;  %v11722_v34 = vld [vmem:[#allocation5 + $0x4a0] ss:$48 sps:$4 sm:$0xff]   ;;  %3692 = vmatprep.subr.bf16.mxu1 %v11751_v31  ;;  %3523 = vmatmul.mubr.bf16.gmra.mxu1 %v13045_v41 }
 0x191   : > { %v2850_v56 = vpop.f32.mrf.mxu1  ;;  %3582 = vmatpush2.bf16.msra.mxu0 %v11710_v27  ;;  %v11749_v45 = vld [vmem:[#allocation5 + $0xbc0] ss:$48 sps:$4 sm:$0xff]   ;;  %3532 = vmatprep.mubr.bf16.mxu1 %v13051_v50 }
 0x192   : > { %16839 = vst [vmem:[#allocation18_spill] sm:$0xff] %v13203_v9  ;;  %v2851_v22 = vadd.f32 %v2850_v56, %v2737_v7  ;;  %v2739_v8 = vpop.f32.mrf.mxu0  ;;  %3583 = vmatprep.subr.bf16.mxu0 %v11718_v28  ;;  %v4048_v27 = vmul.f32 0.125, %v2849_v0  ;;  %v11736_v0 = vld [vmem:[#allocation5 + $0x3e4] ss:$48 sps:$4 sm:$0xff]  }
 0x193   : > { %v2852_v29 = vpop.f32.mrf.mxu1  ;;  %3693 = vmatpush2.bf16.msra.mxu1 %v11749_v45  ;;  %v11742_v45 = vld [vmem:[#allocation5 + $0x384] ss:$48 sps:$4 sm:$0xff]  }
 0x194   : > { %v4051_v20 = vmul.f32 0.125, %v2851_v22  ;;  %v2853_v38 = vadd.f32 %v2852_v29, %v2739_v8  ;;  %v2743_v18 = vpop.f32.mrf.mxu0  ;;  %3420 = vmatmul.mubr.bf16.gmra.mxu0 %v13063_v4  ;;  %v11728_v29 = vld [vmem:[#allocation5 + $0x440] ss:$48 sps:$4 sm:$0xff]   ;;  %3694 = vmatprep.subr.bf16.mxu1 %v11757_v42 }
 0x195   : > { %v2856_v30 = vpop.f32.mrf.mxu1  ;;  %3584 = vmatpush2.bf16.msra.mxu0 %v11716_v19  ;;  %3429 = vmatprep.mubr.bf16.mxu0 %v13069_v12 }
 0x196   : > { %v13208_v52 = vpack.c.bf16 %v4051_v20, %v4047_v6  ;;  %v4052_v28 = vmul.f32 0.125, %v2853_v38  ;;  %v2857_v55 = vadd.f32 %v2856_v30, %v2743_v18  ;;  %v2745_v7 = vpop.f32.mrf.mxu0  ;;  %3585 = vmatprep.subr.bf16.mxu0 %v11724_v62  ;;  %v11755_v20 = vld [vmem:[#allocation5 + $0xb60] ss:$48 sps:$4 sm:$0xff]   ;;  %v11763_v18 = vld [vmem:[#allocation5 + $0xb04] ss:$48 sps:$4 sm:$0xff]  }
 0x197   : > { %v2858_v56 = vpop.f32.mrf.mxu1  ;;  %3695 = vmatpush2.bf16.msra.mxu1 %v11755_v20 }
 0x198   : > { %v13211_v22 = vpack.c.bf16 %v4052_v28, %v4048_v27  ;;  %v2859_v8 = vadd.f32 %v2858_v56, %v2745_v7  ;;  %v2747_v9 = vpop.f32.mrf.mxu0  ;;  %v4055_v62 = vmul.f32 0.125, %v2857_v55  ;;  %3696 = vmatprep.subr.bf16.mxu1 %v11763_v18  ;;  %3533 = vmatmul.mubr.bf16.gmra.mxu1 %v13065_v5  ;;  %v11775_v18 = vld [vmem:[#allocation5 + $0xa44] ss:$48 sps:$4 sm:$0xff]  }
 0x199   : > { %v2860_v48 = vpop.f32.mrf.mxu1  ;;  %3586 = vmatpush2.bf16.msra.mxu0 %v11722_v34  ;;  %3542 = vmatprep.mubr.bf16.mxu1 %v13071_v13 }
 0x19a   : > { %16840 = vst [vmem:[#allocation19_spill] sm:$0xff] %v13211_v22  ;;  %v2861_v6 = vadd.f32 %v2860_v48, %v2747_v9  ;;  %v2749_v19 = vpop.f32.mrf.mxu0  ;;  %3587 = vmatprep.subr.bf16.mxu0 %v11730_v21  ;;  %v4056_v9 = vmul.f32 0.125, %v2859_v8  ;;  %v11734_v21 = vld [vmem:[#allocation5 + $0x3e0] ss:$48 sps:$4 sm:$0xff]   ;;  %v11769_v8 = vld [vmem:[#allocation5 + $0xaa4] ss:$48 sps:$4 sm:$0xff]  }
 0x19b   : > { %v2862_v38 = vpop.f32.mrf.mxu1 }
 0x19c   : > { %v4059_v30 = vmul.f32 0.125, %v2861_v6  ;;  %v2863_v27 = vadd.f32 %v2862_v38, %v2749_v19  ;;  %v2753_v11 = vpop.f32.mrf.mxu0  ;;  %3430 = vmatmul.mubr.bf16.gmra.mxu0 %v13083_v32  ;;  %v11761_v19 = vld [vmem:[#allocation5 + $0xb00] ss:$48 sps:$4 sm:$0xff]  }
 0x19d   : > { %v2866_v28 = vpop.f32.mrf.mxu1  ;;  %3588 = vmatpush2.bf16.msra.mxu0 %v11728_v29  ;;  %3439 = vmatprep.mubr.bf16.mxu0 %v13089_v46 }
 0x19e   : > { %v13216_v31 = vpack.c.bf16 %v4059_v30, %v4055_v62  ;;  %v4060_v34 = vmul.f32 0.125, %v2863_v27  ;;  %v2867_v7 = vadd.f32 %v2866_v28, %v2753_v11  ;;  %v2755_v55 = vpop.f32.mrf.mxu0  ;;  %3589 = vmatprep.subr.bf16.mxu0 %v11736_v0  ;;  %v11740_v30 = vld [vmem:[#allocation5 + $0x380] ss:$48 sps:$4 sm:$0xff]   ;;  %v11748_v11 = vld [vmem:[#allocation5 + $0x324] ss:$48 sps:$4 sm:$0xff]   ;;  %3697 = vmatpush2.bf16.msra.mxu1 %v11761_v19 }
 0x19f   : > { %v2868_v56 = vpop.f32.mrf.mxu1  ;;  %3698 = vmatprep.subr.bf16.mxu1 %v11769_v8 }
 0x1a0   : > { %v13219_v48 = vpack.c.bf16 %v4060_v34, %v4056_v9  ;;  %v2869_v6 = vadd.f32 %v2868_v56, %v2755_v55  ;;  %v2757_v38 = vpop.f32.mrf.mxu0  ;;  %v4063_v0 = vmul.f32 0.125, %v2867_v7  ;;  %v11767_v34 = vld [vmem:[#allocation5 + $0xaa0] ss:$48 sps:$4 sm:$0xff]   ;;  %3543 = vmatmul.mubr.bf16.gmra.mxu1 %v13085_v33 }
 0x1a1   : > { %v2870_v42 = vpop.f32.mrf.mxu1  ;;  %3590 = vmatpush2.bf16.msra.mxu0 %v11734_v21  ;;  %3552 = vmatprep.mubr.bf16.mxu1 %v13091_v47 }
 0x1a2   : > { %16841 = vst [vmem:[#allocation20_spill] sm:$0xff] %v13219_v48  ;;  %v2871_v62 = vadd.f32 %v2870_v42, %v2757_v38  ;;  %v2759_v29 = vpop.f32.mrf.mxu0  ;;  %3591 = vmatprep.subr.bf16.mxu0 %v11742_v45  ;;  %v4064_v21 = vmul.f32 0.125, %v2869_v6  ;;  %v11746_v42 = vld [vmem:[#allocation5 + $0x320] ss:$48 sps:$4 sm:$0xff]   ;;  %3699 = vmatpush2.bf16.msra.mxu1 %v11767_v34  ;;  %v11781_v6 = vld [vmem:[#allocation5 + $0x9e4] ss:$48 sps:$4 sm:$0xff]  }
 0x1a3   : > { %v2872_v27 = vpop.f32.mrf.mxu1  ;;  %v11773_v48 = vld [vmem:[#allocation5 + $0xa40] ss:$48 sps:$4 sm:$0xff]   ;;  %3700 = vmatprep.subr.bf16.mxu1 %v11775_v18 }
 0x1a4   : > { %v4067_v28 = vmul.f32 0.125, %v2871_v62  ;;  %v2873_v9 = vadd.f32 %v2872_v27, %v2759_v29  ;;  %v2763_v20 = vpop.f32.mrf.mxu0  ;;  %3440 = vmatmul.mubr.bf16.gmra.mxu0 %v13101_v60  ;;  %v11754_v62 = vld [vmem:[#allocation5 + $0x2cc] ss:$48 sps:$4 sm:$0xff]  }
 0x1a5   : > { %v2876_v55 = vpop.f32.mrf.mxu1  ;;  %3592 = vmatpush2.bf16.msra.mxu0 %v11740_v30  ;;  %3595 = vmatprep.mubr.bf16.mxu0 %v12951_v53 }
 0x1a6   : > { %v13224_v56 = vpack.c.bf16 %v4067_v28, %v4063_v0  ;;  %v4068_v45 = vmul.f32 0.125, %v2873_v9  ;;  %v2877_v38 = vadd.f32 %v2876_v55, %v2763_v20  ;;  %v2765_v7 = vpop.f32.mrf.mxu0  ;;  %3593 = vmatprep.subr.bf16.mxu0 %v11748_v11  ;;  %v11752_v28 = vld [vmem:[#allocation5 + $0x2c8] ss:$48 sps:$4 sm:$0xff]   ;;  %v11760_v20 = vld [vmem:[#allocation5 + $0x26c] ss:$48 sps:$4 sm:$0xff]   ;;  %3701 = vmatpush2.bf16.msra.mxu1 %v11773_v48 }
 0x1a7   : > { %v2878_v19 = vpop.f32.mrf.mxu1  ;;  %3702 = vmatprep.subr.bf16.mxu1 %v11781_v6 }
 0x1a8   : > { %v13227_v29 = vpack.c.bf16 %v4068_v45, %v4064_v21  ;;  %v2879_v27 = vadd.f32 %v2878_v19, %v2765_v7  ;;  %v2767_v8 = vpop.f32.mrf.mxu0  ;;  %v4071_v11 = vmul.f32 0.125, %v2877_v38  ;;  %v11779_v45 = vld [vmem:[#allocation5 + $0x9e0] ss:$48 sps:$4 sm:$0xff]   ;;  %3553 = vmatmul.mubr.bf16.gmra.mxu1 %v13103_v61 }
 0x1a9   : > { %v2880_v22 = vpop.f32.mrf.mxu1  ;;  %3594 = vmatpush2.bf16.msra.mxu0 %v11746_v42  ;;  %3708 = vmatprep.mubr.bf16.mxu1 %v12953_v54 }
 0x1aa   : > { %16842 = vst [vmem:[#allocation21_spill] sm:$0xff] %v13227_v29  ;;  %v2881_v0 = vadd.f32 %v2880_v22, %v2767_v8  ;;  %v2769_v30 = vpop.f32.mrf.mxu0  ;;  %3789 = vmatprep.subr.bf16.mxu0 %v11754_v62  ;;  %v11787_v22 = vld [vmem:[#allocation5 + $0x984] ss:$48 sps:$4 sm:$0xff]   ;;  %v4072_v18 = vmul.f32 0.125, %v2879_v27  ;;  %v11758_v8 = vld [vmem:[#allocation5 + $0x268] ss:$48 sps:$4 sm:$0xff]   ;;  %3703 = vmatpush2.bf16.msra.mxu1 %v11779_v45 }
 0x1ab   : > { %v2882_v9 = vpop.f32.mrf.mxu1  ;;  %v11785_v29 = vld [vmem:[#allocation5 + $0x980] ss:$48 sps:$4 sm:$0xff]   ;;  %3704 = vmatprep.subr.bf16.mxu1 %v11787_v22  ;;  %v11793_v27 = vld [vmem:[#allocation5 + $0x924] ss:$48 sps:$4 sm:$0xff]  }
 0x1ac   : > { %v4075_v55 = vmul.f32 0.125, %v2881_v0  ;;  %v2883_v21 = vadd.f32 %v2882_v9, %v2769_v30  ;;  %v2919_v34 = vpop.f32.mrf.mxu0  ;;  %3596 = vmatmul.mubr.bf16.vlgmr.msra.gmra.mxu0 %v12963_v16  ;;  %v11766_v0 = vld [vmem:[#allocation5 + $0x20c] ss:$48 sps:$4 sm:$0xff]  }
 0x1ad   : > { %v3032_v7 = vpop.f32.mrf.mxu1  ;;  %3790 = vmatpush1.bf16.msra.mxu0 %v11752_v28  ;;  %3605 = vmatprep.mubr.bf16.mxu0 %v12969_v23 }
 0x1ae   : > { %v13232_v42 = vpack.c.bf16 %v4075_v55, %v4071_v11  ;;  %v4076_v19 = vmul.f32 0.125, %v2883_v21  ;;  %v3033_v62 = vadd.f32 %v3032_v7, %v2919_v34  ;;  %v2921_v38 = vpop.f32.mrf.mxu0  ;;  %3791 = vmatprep.subr.bf16.mxu0 %v11760_v20  ;;  %v11764_v55 = vld [vmem:[#allocation5 + $0x208] ss:$48 sps:$4 sm:$0xff]   ;;  %v11772_v34 = vld [vmem:[#allocation5 + $0x1ac] ss:$48 sps:$4 sm:$0xff]   ;;  %3705 = vmatpush2.bf16.msra.mxu1 %v11785_v29 }
 0x1af   : > { %v3034_v48 = vpop.f32.mrf.mxu1  ;;  %3706 = vmatprep.subr.bf16.mxu1 %v11793_v27 }
 0x1b0   : > { %v13235_v30 = vpack.c.bf16 %v4076_v19, %v4072_v18  ;;  %v3035_v9 = vadd.f32 %v3034_v48, %v2921_v38  ;;  %v2923_v6 = vpop.f32.mrf.mxu0  ;;  %v4017_v20 = vmul.f32 0.125, %v3033_v62  ;;  %v11791_v19 = vld [vmem:[#allocation5 + $0x920] ss:$48 sps:$4 sm:$0xff]  }
 0x1b1   : > { %v3036_v57 = vpop.f32.mrf.mxu1  ;;  %3792 = vmatpush1.bf16.msra.mxu0 %v11758_v8 }
 0x1b2   : > { %16843 = vst [vmem:[#allocation22_spill] sm:$0xff] %v13235_v30  ;;  %v3037_v11 = vadd.f32 %v3036_v57, %v2923_v6  ;;  %v2925_v28 = vpop.f32.mrf.mxu0  ;;  %3793 = vmatprep.subr.bf16.mxu0 %v11766_v0  ;;  %v11823_v57 = vld [vmem:[#allocation5 + $0x8cc] ss:$48 sps:$4 sm:$0xff]   ;;  %v4018_v22 = vmul.f32 0.125, %v3035_v9  ;;  %v11770_v6 = vld [vmem:[#allocation5 + $0x1a8] ss:$48 sps:$4 sm:$0xff]   ;;  %3707 = vmatpush2.bf16.msra.mxu1 %v11791_v19 }
 0x1b3   : > { %v3038_v21 = vpop.f32.mrf.mxu1  ;;  %v11821_v30 = vld [vmem:[#allocation5 + $0x8c8] ss:$48 sps:$4 sm:$0xff]   ;;  %3902 = vmatprep.subr.bf16.mxu1 %v11823_v57  ;;  %v11826_v9 = vld [vmem:[#allocation5 + $0x86c] ss:$48 sps:$4 sm:$0xff]  }
 0x1b4   : > { %v4021_v7 = vmul.f32 0.125, %v3037_v11  ;;  %v3039_v18 = vadd.f32 %v3038_v21, %v2925_v28  ;;  %v2929_v45 = vpop.f32.mrf.mxu0  ;;  %3606 = vmatmul.mubr.bf16.gmra.mxu0 %v12983_v36  ;;  %v11778_v11 = vld [vmem:[#allocation5 + $0x14c] ss:$48 sps:$4 sm:$0xff]   ;;  %v11824_v19 = vld [vmem:[#allocation5 + $0x868] ss:$48 sps:$4 sm:$0xff]  }
 0x1b5   : > { %v3042_v38 = vpop.f32.mrf.mxu1  ;;  %3794 = vmatpush1.bf16.msra.mxu0 %v11764_v55  ;;  %3615 = vmatprep.mubr.bf16.mxu0 %v12989_v43 }
 0x1b6   : > { %v13240_v8 = vpack.c.bf16 %v4021_v7, %v4017_v20  ;;  %v4022_v48 = vmul.f32 0.125, %v3039_v18  ;;  %v3043_v0 = vadd.f32 %v3042_v38, %v2929_v45  ;;  %v2931_v62 = vpop.f32.mrf.mxu0  ;;  %3795 = vmatprep.subr.bf16.mxu0 %v11772_v34  ;;  %v11776_v7 = vld [vmem:[#allocation5 + $0x148] ss:$48 sps:$4 sm:$0xff]   ;;  %v11784_v45 = vld [vmem:[#allocation5 + $0xec] ss:$48 sps:$4 sm:$0xff]   ;;  %3709 = vmatmul.mubr.bf16.vlgmr.msra.gmra.mxu1 %v12965_v17 }
 0x1b7   : > { %v3044_v29 = vpop.f32.mrf.mxu1  ;;  %3718 = vmatprep.mubr.bf16.mxu1 %v12971_v24  ;;  %3903 = vmatpush1.bf16.msra.mxu1 %v11821_v30  ;;  %v11790_v30 = vld [vmem:[#allocation5 + $0x8c] ss:$48 sps:$4 sm:$0xff]  }
 0x1b8   : > { %16844 = vst [vmem:[#allocation23_spill] sm:$0xff] %v13240_v8  ;;  %v13243_v28 = vpack.c.bf16 %v4022_v48, %v4018_v22  ;;  %v3045_v21 = vadd.f32 %v3044_v29, %v2931_v62  ;;  %v2933_v27 = vpop.f32.mrf.mxu0  ;;  %v4025_v34 = vmul.f32 0.125, %v3043_v0  ;;  %3904 = vmatprep.subr.bf16.mxu1 %v11826_v9 }
 0x1b9   : > { %v3046_v3 = vpop.f32.mrf.mxu1  ;;  %3796 = vmatpush1.bf16.msra.mxu0 %v11770_v6 }
 0x1ba   : > { %16845 = vst [vmem:[#allocation24_spill] sm:$0xff] %v13243_v28  ;;  %v3047_v20 = vadd.f32 %v3046_v3, %v2933_v27  ;;  %v2935_v55 = vpop.f32.mrf.mxu0  ;;  %3797 = vmatprep.subr.bf16.mxu0 %v11778_v11  ;;  %v11829_v3 = vld [vmem:[#allocation5 + $0x80c] ss:$48 sps:$4 sm:$0xff]   ;;  %v4026_v57 = vmul.f32 0.125, %v3045_v21  ;;  %v11782_v27 = vld [vmem:[#allocation5 + $0xe8] ss:$48 sps:$4 sm:$0xff]  }
 0x1bb   : > { %v3048_v18 = vpop.f32.mrf.mxu1  ;;  %3905 = vmatpush1.bf16.msra.mxu1 %v11824_v19  ;;  %v11827_v28 = vld [vmem:[#allocation5 + $0x808] ss:$48 sps:$4 sm:$0xff]   ;;  %v11832_v21 = vld [vmem:[#allocation5 + $0x7ac] ss:$48 sps:$4 sm:$0xff]  }
 0x1bc   : > { %v4029_v38 = vmul.f32 0.125, %v3047_v20  ;;  %v3049_v22 = vadd.f32 %v3048_v18, %v2935_v55  ;;  %v2939_v48 = vpop.f32.mrf.mxu0  ;;  %3616 = vmatmul.mubr.bf16.gmra.mxu0 %v13003_v58  ;;  %3906 = vmatprep.subr.bf16.mxu1 %v11829_v3  ;;  %v11830_v19 = vld [vmem:[#allocation5 + $0x7a8] ss:$48 sps:$4 sm:$0xff]  }
 0x1bd   : > { %v3052_v62 = vpop.f32.mrf.mxu1  ;;  %3798 = vmatpush1.bf16.msra.mxu0 %v11776_v7  ;;  %3625 = vmatprep.mubr.bf16.mxu0 %v13009_v1 }
 0x1be   : > { %v13248_v6 = vpack.c.bf16 %v4029_v38, %v4025_v34  ;;  %v4030_v29 = vmul.f32 0.125, %v3049_v22  ;;  %v3053_v11 = vadd.f32 %v3052_v62, %v2939_v48  ;;  %v2941_v0 = vpop.f32.mrf.mxu0  ;;  %3799 = vmatprep.subr.bf16.mxu0 %v11784_v45  ;;  %v11788_v38 = vld [vmem:[#allocation5 + $0x88] ss:$48 sps:$4 sm:$0xff]   ;;  %v11796_v48 = vld [vmem:[#allocation5 + $0x2c] ss:$48 sps:$4 sm:$0xff]   ;;  %3719 = vmatmul.mubr.bf16.gmra.mxu1 %v12985_v37 }
 0x1bf   : > { %v3054_v20 = vpop.f32.mrf.mxu1  ;;  %3728 = vmatprep.mubr.bf16.mxu1 %v12991_v44  ;;  %3907 = vmatpush1.bf16.msra.mxu1 %v11827_v28  ;;  %v11799_v28 = vld [vmem:[#allocation5 + $0x5cc] ss:$48 sps:$4 sm:$0xff]  }
 0x1c0   : > { %16846 = vst [vmem:[#allocation25_spill] sm:$0xff] %v13248_v6  ;;  %v13251_v55 = vpack.c.bf16 %v4030_v29, %v4026_v57  ;;  %v3055_v18 = vadd.f32 %v3054_v20, %v2941_v0  ;;  %v2943_v9 = vpop.f32.mrf.mxu0  ;;  %v4033_v45 = vmul.f32 0.125, %v3053_v11  ;;  %3908 = vmatprep.subr.bf16.mxu1 %v11832_v21 }
 0x1c1   : > { %v3056_v8 = vpop.f32.mrf.mxu1  ;;  %3800 = vmatpush1.bf16.msra.mxu0 %v11782_v27 }
 0x1c2   : > { %16847 = vst [vmem:[#allocation26_spill] sm:$0xff] %v13251_v55  ;;  %v3057_v34 = vadd.f32 %v3056_v8, %v2943_v9  ;;  %v2945_v7 = vpop.f32.mrf.mxu0  ;;  %3801 = vmatprep.subr.bf16.mxu0 %v11790_v30  ;;  %v11835_v8 = vld [vmem:[#allocation5 + $0x74c] ss:$48 sps:$4 sm:$0xff]   ;;  %v4034_v3 = vmul.f32 0.125, %v3055_v18  ;;  %v11794_v9 = vld [vmem:[#allocation5 + $0x28] ss:$48 sps:$4 sm:$0xff]  }
 0x1c3   : > { %v3058_v22 = vpop.f32.mrf.mxu1  ;;  %3909 = vmatpush1.bf16.msra.mxu1 %v11830_v19  ;;  %v11833_v55 = vld [vmem:[#allocation5 + $0x748] ss:$48 sps:$4 sm:$0xff]   ;;  %v11838_v18 = vld [vmem:[#allocation5 + $0x6ec] ss:$48 sps:$4 sm:$0xff]  }
 0x1c4   : > { %v4037_v62 = vmul.f32 0.125, %v3057_v34  ;;  %v3059_v57 = vadd.f32 %v3058_v22, %v2945_v7  ;;  %v2949_v29 = vpop.f32.mrf.mxu0  ;;  %3626 = vmatmul.mubr.bf16.gmra.mxu0 %v13023_v14  ;;  %3910 = vmatprep.subr.bf16.mxu1 %v11835_v8  ;;  %v11836_v19 = vld [vmem:[#allocation5 + $0x6e8] ss:$48 sps:$4 sm:$0xff]  }
 0x1c5   : > { %v3062_v0 = vpop.f32.mrf.mxu1  ;;  %3802 = vmatpush1.bf16.msra.mxu0 %v11788_v38  ;;  %3635 = vmatprep.mubr.bf16.mxu0 %v13029_v25 }
 0x1c6   : > { %v13256_v27 = vpack.c.bf16 %v4037_v62, %v4033_v45  ;;  %v4038_v20 = vmul.f32 0.125, %v3059_v57  ;;  %v3063_v30 = vadd.f32 %v3062_v0, %v2949_v29  ;;  %v2951_v11 = vpop.f32.mrf.mxu0  ;;  %3803 = vmatprep.subr.bf16.mxu0 %v11796_v48  ;;  %v11797_v62 = vld [vmem:[#allocation5 + $0x5c8] ss:$48 sps:$4 sm:$0xff]   ;;  %v11802_v29 = vld [vmem:[#allocation5 + $0x56c] ss:$48 sps:$4 sm:$0xff]   ;;  %3729 = vmatmul.mubr.bf16.gmra.mxu1 %v13005_v59 }
 0x1c7   : > { %v3064_v34 = vpop.f32.mrf.mxu1  ;;  %3738 = vmatprep.mubr.bf16.mxu1 %v13011_v2  ;;  %3911 = vmatpush1.bf16.msra.mxu1 %v11833_v55  ;;  %v11805_v55 = vld [vmem:[#allocation5 + $0x50c] ss:$48 sps:$4 sm:$0xff]  }
 0x1c8   : > { %16848 = vst [vmem:[#allocation27_spill] sm:$0xff] %v13256_v27  ;;  %v13259_v7 = vpack.c.bf16 %v4038_v20, %v4034_v3  ;;  %v3065_v22 = vadd.f32 %v3064_v34, %v2951_v11  ;;  %v2953_v21 = vpop.f32.mrf.mxu0  ;;  %v4041_v48 = vmul.f32 0.125, %v3063_v30  ;;  %3912 = vmatprep.subr.bf16.mxu1 %v11838_v18 }
 0x1c9   : > { %v3066_v6 = vpop.f32.mrf.mxu1  ;;  %3804 = vmatpush1.bf16.msra.mxu0 %v11794_v9 }
 0x1ca   : > { %16849 = vst [vmem:[#allocation28_spill] sm:$0xff] %v13259_v7  ;;  %v3067_v45 = vadd.f32 %v3066_v6, %v2953_v21  ;;  %v2955_v38 = vpop.f32.mrf.mxu0  ;;  %3805 = vmatprep.subr.bf16.mxu0 %v11799_v28  ;;  %v11841_v6 = vld [vmem:[#allocation5 + $0x68c] ss:$48 sps:$4 sm:$0xff]   ;;  %v4042_v8 = vmul.f32 0.125, %v3065_v22  ;;  %v11800_v21 = vld [vmem:[#allocation5 + $0x568] ss:$48 sps:$4 sm:$0xff]  }
 0x1cb   : > { %v3068_v57 = vpop.f32.mrf.mxu1  ;;  %3913 = vmatpush1.bf16.msra.mxu1 %v11836_v19  ;;  %v11839_v7 = vld [vmem:[#allocation5 + $0x688] ss:$48 sps:$4 sm:$0xff]   ;;  %v11844_v22 = vld [vmem:[#allocation5 + $0x62c] ss:$48 sps:$4 sm:$0xff]  }
 0x1cc   : > { %v4045_v0 = vmul.f32 0.125, %v3067_v45  ;;  %v3069_v3 = vadd.f32 %v3068_v57, %v2955_v38  ;;  %v2959_v20 = vpop.f32.mrf.mxu0  ;;  %3636 = vmatmul.mubr.bf16.gmra.mxu0 %v13043_v40  ;;  %3914 = vmatprep.subr.bf16.mxu1 %v11841_v6  ;;  %v11842_v19 = vld [vmem:[#allocation5 + $0x628] ss:$48 sps:$4 sm:$0xff]  }
 0x1cd   : > { %v3072_v11 = vpop.f32.mrf.mxu1  ;;  %3806 = vmatpush2.bf16.msra.mxu0 %v11797_v62  ;;  %3645 = vmatprep.mubr.bf16.mxu0 %v13049_v49 }
 0x1ce   : > { %v13264_v9 = vpack.c.bf16 %v4045_v0, %v4041_v48  ;;  %v4046_v34 = vmul.f32 0.125, %v3069_v3  ;;  %v3073_v28 = vadd.f32 %v3072_v11, %v2959_v20  ;;  %v2961_v30 = vpop.f32.mrf.mxu0  ;;  %3807 = vmatprep.subr.bf16.mxu0 %v11802_v29  ;;  %v11803_v0 = vld [vmem:[#allocation5 + $0x508] ss:$48 sps:$4 sm:$0xff]   ;;  %v11808_v20 = vld [vmem:[#allocation5 + $0x4ac] ss:$48 sps:$4 sm:$0xff]   ;;  %3739 = vmatmul.mubr.bf16.gmra.mxu1 %v13025_v15 }
 0x1cf   : > { %v3074_v45 = vpop.f32.mrf.mxu1  ;;  %3748 = vmatprep.mubr.bf16.mxu1 %v13031_v26  ;;  %3915 = vmatpush1.bf16.msra.mxu1 %v11839_v7  ;;  %v11811_v7 = vld [vmem:[#allocation5 + $0x44c] ss:$48 sps:$4 sm:$0xff]  }
 0x1d0   : > { %16850 = vst [vmem:[#allocation29_spill] sm:$0xff] %v13264_v9  ;;  %v13267_v38 = vpack.c.bf16 %v4046_v34, %v4042_v8  ;;  %v3075_v57 = vadd.f32 %v3074_v45, %v2961_v30  ;;  %v2963_v18 = vpop.f32.mrf.mxu0  ;;  %v4049_v29 = vmul.f32 0.125, %v3073_v28  ;;  %3916 = vmatprep.subr.bf16.mxu1 %v11844_v22 }
 0x1d1   : > { %v3076_v27 = vpop.f32.mrf.mxu1  ;;  %3808 = vmatpush2.bf16.msra.mxu0 %v11800_v21 }
 0x1d2   : > { %16851 = vst [vmem:[#allocation30_spill] sm:$0xff] %v13267_v38  ;;  %v3077_v48 = vadd.f32 %v3076_v27, %v2963_v18  ;;  %v2965_v62 = vpop.f32.mrf.mxu0  ;;  %3809 = vmatprep.subr.bf16.mxu0 %v11805_v55  ;;  %v11847_v27 = vld [vmem:[#allocation5 + $0xbcc] ss:$48 sps:$4 sm:$0xff]   ;;  %v4050_v6 = vmul.f32 0.125, %v3075_v57  ;;  %v11806_v18 = vld [vmem:[#allocation5 + $0x4a8] ss:$48 sps:$4 sm:$0xff]  }
 0x1d3   : > { %v3078_v3 = vpop.f32.mrf.mxu1  ;;  %3917 = vmatpush1.bf16.msra.mxu1 %v11842_v19  ;;  %v11845_v38 = vld [vmem:[#allocation5 + $0xbc8] ss:$48 sps:$4 sm:$0xff]   ;;  %v11850_v57 = vld [vmem:[#allocation5 + $0xb6c] ss:$48 sps:$4 sm:$0xff]  }
 0x1d4   : > { %v4053_v11 = vmul.f32 0.125, %v3077_v48  ;;  %v3079_v8 = vadd.f32 %v3078_v3, %v2965_v62  ;;  %v2969_v34 = vpop.f32.mrf.mxu0  ;;  %3646 = vmatmul.mubr.bf16.gmra.mxu0 %v13063_v4  ;;  %3918 = vmatprep.subr.bf16.mxu1 %v11847_v27  ;;  %v11848_v19 = vld [vmem:[#allocation5 + $0xb68] ss:$48 sps:$4 sm:$0xff]  }
 0x1d5   : > { %v3082_v30 = vpop.f32.mrf.mxu1  ;;  %3810 = vmatpush2.bf16.msra.mxu0 %v11803_v0  ;;  %3655 = vmatprep.mubr.bf16.mxu0 %v13069_v12 }
 0x1d6   : > { %v13272_v21 = vpack.c.bf16 %v4053_v11, %v4049_v29  ;;  %v4054_v45 = vmul.f32 0.125, %v3079_v8  ;;  %v3083_v55 = vadd.f32 %v3082_v30, %v2969_v34  ;;  %v2971_v28 = vpop.f32.mrf.mxu0  ;;  %3811 = vmatprep.subr.bf16.mxu0 %v11808_v20  ;;  %v11809_v11 = vld [vmem:[#allocation5 + $0x448] ss:$48 sps:$4 sm:$0xff]   ;;  %v11814_v34 = vld [vmem:[#allocation5 + $0x3ec] ss:$48 sps:$4 sm:$0xff]   ;;  %3749 = vmatmul.mubr.bf16.gmra.mxu1 %v13045_v41 }
 0x1d7   : > { %v3084_v48 = vpop.f32.mrf.mxu1  ;;  %3758 = vmatprep.mubr.bf16.mxu1 %v13051_v50  ;;  %3919 = vmatpush2.bf16.msra.mxu1 %v11845_v38  ;;  %v11817_v38 = vld [vmem:[#allocation5 + $0x38c] ss:$48 sps:$4 sm:$0xff]  }
 0x1d8   : > { %16852 = vst [vmem:[#allocation31_spill] sm:$0xff] %v13272_v21  ;;  %v13275_v62 = vpack.c.bf16 %v4054_v45, %v4050_v6  ;;  %v3085_v3 = vadd.f32 %v3084_v48, %v2971_v28  ;;  %v2973_v22 = vpop.f32.mrf.mxu0  ;;  %v4057_v20 = vmul.f32 0.125, %v3083_v55  ;;  %3920 = vmatprep.subr.bf16.mxu1 %v11850_v57 }
 0x1d9   : > { %v3086_v9 = vpop.f32.mrf.mxu1  ;;  %3812 = vmatpush2.bf16.msra.mxu0 %v11806_v18 }
 0x1da   : > { %16853 = vst [vmem:[#allocation32_spill] sm:$0xff] %v13275_v62  ;;  %v3087_v29 = vadd.f32 %v3086_v9, %v2973_v22  ;;  %v2975_v0 = vpop.f32.mrf.mxu0  ;;  %3813 = vmatprep.subr.bf16.mxu0 %v11811_v7  ;;  %v11853_v9 = vld [vmem:[#allocation5 + $0xb0c] ss:$48 sps:$4 sm:$0xff]   ;;  %v4058_v27 = vmul.f32 0.125, %v3085_v3  ;;  %v11812_v22 = vld [vmem:[#allocation5 + $0x3e8] ss:$48 sps:$4 sm:$0xff]  }
 0x1db   : > { %v3088_v8 = vpop.f32.mrf.mxu1  ;;  %3921 = vmatpush2.bf16.msra.mxu1 %v11848_v19  ;;  %v11851_v62 = vld [vmem:[#allocation5 + $0xb08] ss:$48 sps:$4 sm:$0xff]   ;;  %v11856_v3 = vld [vmem:[#allocation5 + $0xaac] ss:$48 sps:$4 sm:$0xff]  }
 0x1dc   : > { %v4061_v30 = vmul.f32 0.125, %v3087_v29  ;;  %v3089_v6 = vadd.f32 %v3088_v8, %v2975_v0  ;;  %v2979_v45 = vpop.f32.mrf.mxu0  ;;  %3656 = vmatmul.mubr.bf16.gmra.mxu0 %v13083_v32  ;;  %3922 = vmatprep.subr.bf16.mxu1 %v11853_v9  ;;  %v11854_v19 = vld [vmem:[#allocation5 + $0xaa8] ss:$48 sps:$4 sm:$0xff]  }
 0x1dd   : > { %v3092_v28 = vpop.f32.mrf.mxu1  ;;  %3814 = vmatpush2.bf16.msra.mxu0 %v11809_v11  ;;  %3665 = vmatprep.mubr.bf16.mxu0 %v13089_v46 }
 0x1de   : > { %v13280_v18 = vpack.c.bf16 %v4061_v30, %v4057_v20  ;;  %v4062_v48 = vmul.f32 0.125, %v3089_v6  ;;  %v3093_v7 = vadd.f32 %v3092_v28, %v2979_v45  ;;  %v2981_v55 = vpop.f32.mrf.mxu0  ;;  %3815 = vmatprep.subr.bf16.mxu0 %v11814_v34  ;;  %v11815_v30 = vld [vmem:[#allocation5 + $0x388] ss:$48 sps:$4 sm:$0xff]   ;;  %v11820_v45 = vld [vmem:[#allocation5 + $0x32c] ss:$48 sps:$4 sm:$0xff]   ;;  %3759 = vmatmul.mubr.bf16.gmra.mxu1 %v13065_v5 }
 0x1df   : > { %v3094_v29 = vpop.f32.mrf.mxu1  ;;  %3768 = vmatprep.mubr.bf16.mxu1 %v13071_v13  ;;  %3923 = vmatpush2.bf16.msra.mxu1 %v11851_v62 }
 0x1e0   : > { %16854 = vst [vmem:[#allocation33_spill] sm:$0xff] %v13280_v18  ;;  %v13283_v0 = vpack.c.bf16 %v4062_v48, %v4058_v27  ;;  %v3095_v8 = vadd.f32 %v3094_v29, %v2981_v55  ;;  %v2983_v57 = vpop.f32.mrf.mxu0  ;;  %v4065_v34 = vmul.f32 0.125, %v3093_v7  ;;  %3924 = vmatprep.subr.bf16.mxu1 %v11856_v3 }
 0x1e1   : > { %v3096_v21 = vpop.f32.mrf.mxu1  ;;  %3816 = vmatpush2.bf16.msra.mxu0 %v11812_v22 }
 0x1e2   : > { %16855 = vst [vmem:[#allocation34_spill] sm:$0xff] %v13283_v0  ;;  %v3097_v20 = vadd.f32 %v3096_v21, %v2983_v57  ;;  %v2985_v11 = vpop.f32.mrf.mxu0  ;;  %3817 = vmatprep.subr.bf16.mxu0 %v11817_v38  ;;  %v11859_v21 = vld [vmem:[#allocation5 + $0xa4c] ss:$48 sps:$4 sm:$0xff]   ;;  %v4066_v9 = vmul.f32 0.125, %v3095_v8  ;;  %v11818_v57 = vld [vmem:[#allocation5 + $0x328] ss:$48 sps:$4 sm:$0xff]  }
 0x1e3   : > { %v3098_v6 = vpop.f32.mrf.mxu1  ;;  %3925 = vmatpush2.bf16.msra.mxu1 %v11854_v19  ;;  %v11862_v8 = vld [vmem:[#allocation5 + $0x9ec] ss:$48 sps:$4 sm:$0xff]  }
 0x1e4   : > { %v4069_v28 = vmul.f32 0.125, %v3097_v20  ;;  %v3099_v27 = vadd.f32 %v3098_v6, %v2985_v11  ;;  %v2989_v48 = vpop.f32.mrf.mxu0  ;;  %3666 = vmatmul.mubr.bf16.gmra.mxu0 %v13101_v60  ;;  %v11857_v6 = vld [vmem:[#allocation5 + $0xa48] ss:$48 sps:$4 sm:$0xff]   ;;  %3926 = vmatprep.subr.bf16.mxu1 %v11859_v21 }
 0x1e5   : > { %v3102_v55 = vpop.f32.mrf.mxu1  ;;  %3818 = vmatpush2.bf16.msra.mxu0 %v11815_v30  ;;  %3821 = vmatprep.mubr.bf16.mxu0 %v12951_v53 }
 0x1e6   : > { %v13288_v22 = vpack.c.bf16 %v4069_v28, %v4065_v34  ;;  %v4070_v29 = vmul.f32 0.125, %v3099_v27  ;;  %v3103_v38 = vadd.f32 %v3102_v55, %v2989_v48  ;;  %v2991_v7 = vpop.f32.mrf.mxu0  ;;  %3819 = vmatprep.subr.bf16.mxu0 %v11820_v45  ;;  %3769 = vmatmul.mubr.bf16.gmra.mxu1 %v13085_v33  ;;  %v11860_v45 = vld [vmem:[#allocation5 + $0x9e8] ss:$48 sps:$4 sm:$0xff]  }
 0x1e7   : > { %v3104_v20 = vpop.f32.mrf.mxu1  ;;  %3778 = vmatprep.mubr.bf16.mxu1 %v13091_v47  ;;  %3927 = vmatpush2.bf16.msra.mxu1 %v11857_v6  ;;  %v11863_v6 = vld [vmem:[#allocation5 + $0x988] ss:$48 sps:$4 sm:$0xff]  }
 0x1e8   : > { %16856 = vst [vmem:[#allocation35_spill] sm:$0xff] %v13288_v22  ;;  %v13291_v62 = vpack.c.bf16 %v4070_v29, %v4066_v9  ;;  %v3105_v11 = vadd.f32 %v3104_v20, %v2991_v7  ;;  %v2993_v0 = vpop.f32.mrf.mxu0  ;;  %v4073_v30 = vmul.f32 0.125, %v3103_v38  ;;  %3928 = vmatprep.subr.bf16.mxu1 %v11862_v8 }
 0x1e9   : > { %v3106_v3 = vpop.f32.mrf.mxu1  ;;  %3820 = vmatpush2.bf16.msra.mxu0 %v11818_v57 }
 0x1ea   : > { %16857 = vst [vmem:[#allocation36_spill] sm:$0xff] %v13291_v62  ;;  %v3107_v34 = vadd.f32 %v3106_v3, %v2993_v0  ;;  %v2995_v28 = vpop.f32.mrf.mxu0  ;;  %v11865_v0 = vld [vmem:[#allocation5 + $0x98c] ss:$48 sps:$4 sm:$0xff]   ;;  %v4074_v21 = vmul.f32 0.125, %v3105_v11 }
 0x1eb   : > { %v3108_v27 = vpop.f32.mrf.mxu1  ;;  %3929 = vmatpush2.bf16.msra.mxu1 %v11860_v45 }
 0x1ec   : > { %v4077_v53 = vmul.f32 0.125, %v3107_v34  ;;  %v3109_v48 = vadd.f32 %v3108_v27, %v2995_v28  ;;  %v13295_v55 = vpop.f32.mrf.mxu0  ;;  %3822 = vmatmul.mubr.bf16.vlgmr.msra.gmra.mxu0 %v12963_v16  ;;  %3930 = vmatprep.subr.bf16.mxu1 %v11865_v0  ;;  %v11868_v16 = vld [vmem:[#allocation5 + $0x92c] ss:$48 sps:$4 sm:$0xff]  }
 0x1ed   : > { %v13297_v19 = vpop.f32.mrf.mxu1  ;;  %3831 = vmatprep.mubr.bf16.mxu0 %v12969_v23  ;;  %v11866_v23 = vld [vmem:[#allocation5 + $0x928] ss:$48 sps:$4 sm:$0xff]  }
 0x1ee   : > { %v13300_v9 = vpack.c.bf16 %v4077_v53, %v4073_v30  ;;  %v4078_v29 = vmul.f32 0.125, %v3109_v48  ;;  %v3147_v38 = vpop.f32.mrf.mxu0  ;;  %3779 = vmatmul.mubr.bf16.gmra.mxu1 %v13103_v61 }
 0x1ef   : > { %v3260_v57 = vpop.f32.mrf.mxu1  ;;  %3931 = vmatpush2.bf16.msra.mxu1 %v11863_v6  ;;  %3934 = vmatprep.mubr.bf16.mxu1 %v12953_v54 }
 0x1f0   : > { %16858 = vst [vmem:[#allocation37_spill] sm:$0xff] %v13300_v9  ;;  %v13303_v7 = vpack.c.bf16 %v4078_v29, %v4074_v21  ;;  %v3261_v20 = vadd.f32 %v3260_v57, %v3147_v38  ;;  %v13305_v3 = vpop.f32.mrf.mxu0  ;;  %3932 = vmatprep.subr.bf16.mxu1 %v11868_v16 }
 0x1f1   : > { %v13307_v34 = vpop.f32.mrf.mxu1 }
 0x1f2   : > { %16859 = vst [vmem:[#allocation38_spill] sm:$0xff] %v13303_v7  ;;  %v3151_v8 = vpop.f32.mrf.mxu0 }
 0x1f3   : > { %v3264_v11 = vpop.f32.mrf.mxu1  ;;  %3933 = vmatpush2.bf16.msra.mxu1 %v11866_v23 }
 0x1f4   : > { %v3265_v28 = vadd.f32 %v3264_v11, %v3151_v8  ;;  %v3155_v27 = vpop.f32.mrf.mxu0  ;;  %3832 = vmatmul.mubr.bf16.gmra.mxu0 %v12983_v36 }
 0x1f5   : > { %v3268_v30 = vpop.f32.mrf.mxu1  ;;  %3841 = vmatprep.mubr.bf16.mxu0 %v12989_v43 }
 0x1f6   : > { %v13312_v53 = vpack.c.bf16 %v3265_v28, %v3261_v20  ;;  %v13314_v48 = vadd.f32 %v3268_v30, %v3155_v27  ;;  %v3157_v45 = vpop.f32.mrf.mxu0  ;;  %3935 = vmatmul.mubr.bf16.vlgmr.msra.gmra.mxu1 %v12965_v17 }
 0x1f7   : > { %v3270_v0 = vpop.f32.mrf.mxu1  ;;  %3944 = vmatprep.mubr.bf16.mxu1 %v12971_v24 }
 0x1f8   : > { %16860 = vst [vmem:[#allocation39_spill] sm:$0xff] %v13312_v53  ;;  %v3271_v21 = vadd.f32 %v3270_v0, %v3157_v45  ;;  %v13317_v29 = vpop.f32.mrf.mxu0 }
 0x1f9   : > { %v13319_v38 = vpop.f32.mrf.mxu1 }
 0x1fa   : > { %v3161_v54 = vpop.f32.mrf.mxu0 }
 0x1fb   : > { %v3274_v57 = vpop.f32.mrf.mxu1 }
 0x1fc   : > { %v3275_v36 = vadd.f32 %v3274_v57, %v3161_v54  ;;  %v13323_v20 = vpop.f32.mrf.mxu0  ;;  %3842 = vmatmul.mubr.bf16.gmra.mxu0 %v13003_v58 }
 0x1fd   : > { %v13325_v6 = vpop.f32.mrf.mxu1  ;;  %3851 = vmatprep.mubr.bf16.mxu0 %v13009_v1 }
 0x1fe   : > { %v13328_v43 = vpack.c.bf16 %v3275_v36, %v3271_v21  ;;  %v3167_v16 = vpop.f32.mrf.mxu0  ;;  %3945 = vmatmul.mubr.bf16.gmra.mxu1 %v12985_v37 }
 0x1ff   : > { %v3280_v8 = vpop.f32.mrf.mxu1  ;;  %3954 = vmatprep.mubr.bf16.mxu1 %v12991_v44 }
 0x200   : > { %16861 = vst [vmem:[#allocation40_spill] sm:$0xff] %v13328_v43  ;;  %v3281_v11 = vadd.f32 %v3280_v8, %v3167_v16  ;;  %v3169_v28 = vpop.f32.mrf.mxu0 }
 0x201   : > { %v3282_v23 = vpop.f32.mrf.mxu1 }
 0x202   : > { %v3171_v27 = vpop.f32.mrf.mxu0 }
 0x203   : > { %v3284_v17 = vpop.f32.mrf.mxu1 }
 0x204   : > { %v3285_v24 = vadd.f32 %v3284_v17, %v3171_v27  ;;  %v13333_v30 = vpop.f32.mrf.mxu0  ;;  %3852 = vmatmul.mubr.bf16.gmra.mxu0 %v13023_v14 }
 0x205   : > { %v13335_v45 = vpop.f32.mrf.mxu1  ;;  %3861 = vmatprep.mubr.bf16.mxu0 %v13029_v25 }
 0x206   : > { %v13338_v58 = vpack.c.bf16 %v3285_v24, %v3281_v11  ;;  %v3177_v1 = vpop.f32.mrf.mxu0  ;;  %3955 = vmatmul.mubr.bf16.gmra.mxu1 %v13005_v59 }
 0x207   : > { %v3290_v0 = vpop.f32.mrf.mxu1  ;;  %3964 = vmatprep.mubr.bf16.mxu1 %v13011_v2 }
 0x208   : > { %16862 = vst [vmem:[#allocation41_spill] sm:$0xff] %v13338_v58  ;;  %v3291_v21 = vadd.f32 %v3290_v0, %v3177_v1  ;;  %v13341_v54 = vpop.f32.mrf.mxu0 }
 0x209   : > { %v13343_v57 = vpop.f32.mrf.mxu1 }
 0x20a   : > { %v3181_v37 = vpop.f32.mrf.mxu0 }
 0x20b   : > { %v3294_v36 = vpop.f32.mrf.mxu1 }
 0x20c   : > { %v3295_v44 = vadd.f32 %v3294_v36, %v3181_v37  ;;  %v3185_v16 = vpop.f32.mrf.mxu0  ;;  %3862 = vmatmul.mubr.bf16.gmra.mxu0 %v13043_v40 }
 0x20d   : > { %v3298_v14 = vpop.f32.mrf.mxu1  ;;  %3871 = vmatprep.mubr.bf16.mxu0 %v13049_v49 }
 0x20e   : > { %v13348_v8 = vpack.c.bf16 %v3295_v44, %v3291_v21  ;;  %v3187_v25 = vpop.f32.mrf.mxu0  ;;  %3965 = vmatmul.mubr.bf16.gmra.mxu1 %v13025_v15 }
 0x20f   : > { %v3300_v11 = vpop.f32.mrf.mxu1  ;;  %3974 = vmatprep.mubr.bf16.mxu1 %v13031_v26 }
 0x210   : > { %16863 = vst [vmem:[#allocation42_spill] sm:$0xff] %v13348_v8  ;;  %v13351_v27 = vadd.f32 %v3300_v11, %v3187_v25  ;;  %v3189_v17 = vpop.f32.mrf.mxu0 }
 0x211   : > { %v3302_v24 = vpop.f32.mrf.mxu1 }
 0x212   : > { %16864 = vst [vmem:[#allocation43_spill] sm:$0xff] %v13351_v27  ;;  %v13353_v1 = vpop.f32.mrf.mxu0  ;;  %v3303_v15 = vadd.f32 %v3302_v24, %v3189_v17 }
 0x213   : > { %16865 = vst [vmem:[#allocation44_spill] sm:$0xff] %v13353_v1  ;;  %v13355_v59 = vpop.f32.mrf.mxu1 }
 0x214   : > { %16866 = vst [vmem:[#allocation45_spill] sm:$0xff] %v13355_v59  ;;  %v3195_v2 = vpop.f32.mrf.mxu0  ;;  %3872 = vmatmul.mubr.bf16.gmra.mxu0 %v13063_v4 }
 0x215   : > { %v3308_v40 = vpop.f32.mrf.mxu1  ;;  %3881 = vmatprep.mubr.bf16.mxu0 %v13069_v12 }
 0x216   : > { %v3197_v49 = vpop.f32.mrf.mxu0  ;;  %v3309_v44 = vadd.f32 %v3308_v40, %v3195_v2  ;;  %3975 = vmatmul.mubr.bf16.gmra.mxu1 %v13045_v41 }
 0x217   : > { %v3310_v0 = vpop.f32.mrf.mxu1  ;;  %3984 = vmatprep.mubr.bf16.mxu1 %v13051_v50 }
 0x218   : > { %v13361_v21 = vadd.f32 %v3310_v0, %v3197_v49  ;;  %v3199_v37 = vpop.f32.mrf.mxu0  ;;  %v3299_v49 = vadd.f32 %v3298_v14, %v3185_v16  ;;  %v3283_v0 = vadd.f32 %v3282_v23, %v3169_v28 }
 0x219   : > { %v3312_v36 = vpop.f32.mrf.mxu1 }
 0x21a   : > { %16867 = vst [vmem:[#allocation46_spill] sm:$0xff] %v13361_v21  ;;  %v3313_v25 = vadd.f32 %v3312_v36, %v3199_v37  ;;  %v13363_v11 = vpop.f32.mrf.mxu0  ;;  %v13375_v41 = vpack.c.bf16 %v3303_v15, %v3299_v49  ;;  %v3279_v37 = vadd.f32 %v13325_v6, %v13323_v20  ;;  %v3259_v20 = vadd.f32 %v13297_v19, %v13295_v55 }
 0x21b   : > { %16868 = vst [vmem:[#allocation47_spill] sm:$0xff] %v13363_v11  ;;  %v13365_v7 = vpop.f32.mrf.mxu1 }
 0x21c   : > { %16869 = vst [vmem:[#allocation48_spill] sm:$0xff] %v13365_v7  ;;  %v13368_v26 = vpack.c.bf16 %v3313_v25, %v3309_v44  ;;  %v3205_v4 = vpop.f32.mrf.mxu0  ;;  %3882 = vmatmul.mubr.bf16.gmra.mxu0 %v13083_v32  ;;  %v13390_v28 = vpack.c.bf16 %v3283_v0, %v3279_v37 }
 0x21d   : > { %v3318_v12 = vpop.f32.mrf.mxu1  ;;  %3891 = vmatprep.mubr.bf16.mxu0 %v13089_v46  ;;  %v3263_v46 = vadd.f32 %v13307_v34, %v13305_v3 }
 0x21e   : > { %4663 = vrot.lane.b32.xlu1 %v13368_v26, %s12763_s21  ;;  %v3207_v2 = vpop.f32.mrf.mxu0  ;;  %3985 = vmatmul.mubr.bf16.gmra.mxu1 %v13065_v5  ;;  %v3319_v15 = vadd.f32 %v3318_v12, %v3205_v4  ;;  %v3273_v12 = vadd.f32 %v13319_v38, %v13317_v29 }
 0x21f   : > { %v3320_v40 = vpop.f32.mrf.mxu1  ;;  %3994 = vmatprep.mubr.bf16.mxu1 %v13071_v13  ;;  %v13400_v34 = vpack.c.bf16 %v3263_v46, %v3259_v20  ;;  %v4251_v20 = vsel %vm16719_vm0, %v13368_v26, 0 }
 0x220   : > { %v13377_v17 = vadd.f32 %v3320_v40, %v3207_v2  ;;  %v3209_v24 = vpop.f32.mrf.mxu0 }
 0x221   : > { %v3322_v50 = vpop.f32.mrf.mxu1 }
 0x222   : > { %16870 = vst [vmem:[#allocation49_spill] sm:$0xff] %v13377_v17  ;;  %4661 = vrot.lane.b32.xlu1 %v13375_v41, %s12763_s21  ;;  %v13383_v32 = vpop.f32.mrf.mxu0  ;;  %v3323_v55 = vadd.f32 %v3322_v50, %v3209_v24  ;;  %v3293_v24 = vadd.f32 %v13343_v57, %v13341_v54  ;;  %v13433_v50 = vpack.c.bf16 %v3273_v12, %v13314_v48 }
 0x223   : > { %16871 = vst [vmem:[#allocation50_spill] sm:$0xff] %v13383_v32  ;;  %v13385_v16 = vpop.f32.mrf.mxu1 }
 0x224   : > { %16872 = vst [vmem:[#allocation51_spill] sm:$0xff] %v13385_v16  ;;  %v3215_v23 = vpop.f32.mrf.mxu0  ;;  %3892 = vmatmul.mubr.bf16.gmra.mxu0 %v13101_v60  ;;  %v4135_v40 = vpack.c.bf16 %v3323_v55, %v3319_v15 }
 0x225   : > { %v3328_v14 = vpop.f32.mrf.mxu1  ;;  %10455 = vmatprep.mubr.msk.bf16.mxu0 %vm16719_vm0, %v13176_v63 }
 0x226   : > { %4657 = vrot.lane.b32.xlu1 %v13390_v28, %s12763_s21  ;;  %v3217_v5 = vpop.f32.mrf.mxu0  ;;  %v3329_v44 = vadd.f32 %v3328_v14, %v3215_v23  ;;  %3995 = vmatmul.mubr.bf16.gmra.mxu1 %v13085_v33 }
 0x227   : > { %v3330_v3 = vpop.f32.mrf.mxu1  ;;  %4004 = vmatprep.mubr.bf16.mxu1 %v13091_v47  ;;  %v3289_v47 = vadd.f32 %v13335_v45, %v13333_v30  ;;  %v4254_v30 = vsel %vm16719_vm0, %v4135_v40, 0 }
 0x228   : > { %v13402_v6 = vadd.f32 %v3330_v3, %v3217_v5  ;;  %v3219_v13 = vpop.f32.mrf.mxu0 }
 0x229   : > { %v3332_v36 = vpop.f32.mrf.mxu1  ;;  %v4123_v54 = vpack.c.bf16 %v3293_v24, %v3289_v47 }
 0x22a   : > { %16873 = vst [vmem:[#allocation52_spill] sm:$0xff] %v13402_v6  ;;  %v3333_v60 = vadd.f32 %v3332_v36, %v3219_v13  ;;  %4653 = vrot.lane.b32.xlu1 %v13400_v34, %s12763_s21  ;;  %v13406_v19 = vpop.f32.mrf.mxu0 }
 0x22b   : > { %16874 = vst [vmem:[#allocation53_spill] sm:$0xff] %v13406_v19  ;;  %v13435_v37 = vpop.f32.mrf.mxu1 }
 0x22c   : > { %v4139_v25 = vpack.c.bf16 %v3333_v60, %v3329_v44  ;;  %v3371_v49 = vpop.f32.mrf.mxu0  ;;  %16876 = vst [vmem:[#allocation55_spill] sm:$0xff] %v13435_v37 }
 0x22e   : > { %4631 = vrot.lane.b32.xlu1 %v13184_v51, %s12763_s21  ;;  %4667 = vrot.lane.b32.xlu0 %v4139_v25, %s12763_s21  ;;  %v4257_v2 = vsel %vm16719_vm0, %v4139_v25, 0  ;;  %v3373_v0 = vpop.f32.mrf.mxu0  ;;  %v3484_v29 = vpop.f32.mrf.mxu1 }
 0x22f   : > { %10983 = vmatprep.subr.msk.bf16.mxu0 %vm16719_vm0, %v4139_v25  ;;  %4005 = vmatmul.mubr.bf16.gmra.mxu1 %v13103_v61  ;;  %v3485_v46 = vadd.f32 %v3484_v29, %v3371_v49 }
 0x230   : > { %10440 = vmatpush3.bf16.xpose.msra.mxu0 %v4257_v2  ;;  %v3375_v33 = vpop.f32.mrf.mxu0  ;;  %v3486_v23 = vpop.f32.mrf.mxu1  ;;  %v4248_v2 = vsel %vm16719_vm0, %v13375_v41, 0 }
 0x231   : > { %10984 = vmatprep.subr.msk.bf16.mxu0 %vm16719_vm0, %v4135_v40  ;;  %v13447_v14 = vadd.f32 %v3486_v23, %v3373_v0 }
 0x232   : > { %4635 = vrot.lane.b32.xlu1 %v13200_v39, %s12763_s21  ;;  %4665 = vrot.lane.b32.xlu0 %v4135_v40, %s12763_s21  ;;  %v13423_v4 = vpop.f32.mrf.mxu0  ;;  %v3488_v5 = vpop.f32.mrf.mxu1 }
 0x233   : > { %16875 = vst [vmem:[#allocation54_spill] sm:$0xff] %v13423_v4  ;;  %16878 = vst [vmem:[#allocation57_spill] sm:$0xff] %v13447_v14  ;;  %v3489_v13 = vadd.f32 %v3488_v5, %v3375_v33 }
 0x234   : > { %v3381_v57 = vpop.f32.mrf.mxu0  ;;  %v13453_v36 = vpop.f32.mrf.mxu1 }
 0x235   : > { %16879 = vst [vmem:[#allocation58_spill] sm:$0xff] %v13453_v36  ;;  %v13457_v60 = vpack.c.bf16 %v3489_v13, %v3485_v46 }
 0x236   : > { %4639 = vrot.lane.b32.xlu1 %v13216_v31, %s12763_s21  ;;  %4659 = vrot.lane.b32.xlu0 %v4123_v54, %s12763_s21  ;;  %v3383_v45 = vpop.f32.mrf.mxu0 }
 0x237   : > { %16880 = vst [vmem:[#allocation59_spill] sm:$0xff] %v13457_v60 }
 0x238   : > { %10442 = vmatpush3.bf16.xpose.msra.mxu0 %v4254_v30  ;;  %v3385_v61 = vpop.f32.mrf.mxu0 }
 0x239   : > { %10985 = vmatprep.subr.msk.bf16.mxu0 %vm16719_vm0, %v13368_v26 }
 0x23a   : > { %4643 = vrot.lane.b32.xlu1 %v13232_v42, %s12763_s21  ;;  %4655 = vrot.lane.b32.xlu0 %v13433_v50, %s12763_s21  ;;  %v13443_v38 = vpop.f32.mrf.mxu0 }
 0x23b   : > { %16877 = vst [vmem:[#allocation56_spill] sm:$0xff] %v13443_v38 }
 0x23c   : > { %v3391_v48 = vpop.f32.mrf.mxu0 }
 0x23e   : > { %4629 = vrot.lane.b32.xlu0 %v13176_v63, %s12763_s21  ;;  %v3393_v3 = vpop.f32.mrf.mxu0  ;;  %v3494_v63 = vpop.f32.mrf.mxu1 }
 0x23f   : > { %v3495_v25 = vadd.f32 %v3494_v63, %v3381_v57 }
 0x240   : > { %10444 = vmatpush3.bf16.xpose.msra.mxu0 %v4251_v20  ;;  %v3395_v44 = vpop.f32.mrf.mxu0  ;;  %v3496_v26 = vpop.f32.mrf.mxu1 }
 0x241   : > { %10986 = vmatprep.subr.msk.bf16.mxu0 %vm16719_vm0, %v13375_v41  ;;  %v13463_v49 = vadd.f32 %v3496_v26, %v3383_v45 }
 0x242   : > { %4633 = vrot.lane.b32.xlu0 %v13192_v35, %s12763_s21  ;;  %v13459_v55 = vpop.f32.mrf.mxu0  ;;  %v3498_v40 = vpop.f32.mrf.mxu1 }
 0x243   : > { %16881 = vst [vmem:[#allocation60_spill] sm:$0xff] %v13459_v55  ;;  %16882 = vst [vmem:[#allocation61_spill] sm:$0xff] %v13463_v49  ;;  %v3499_v24 = vadd.f32 %v3498_v40, %v3385_v61  ;;  %v4245_v61 = vsel %vm16719_vm0, %v4123_v54, 0 }
 0x244   : > { %v3401_v15 = vpop.f32.mrf.mxu0  ;;  %v13468_v33 = vpop.f32.mrf.mxu1 }
 0x245   : > { %16883 = vst [vmem:[#allocation62_spill] sm:$0xff] %v13468_v33  ;;  %v13472_v12 = vpack.c.bf16 %v3499_v24, %v3495_v25 }
 0x246   : > { %4637 = vrot.lane.b32.xlu0 %v13208_v52, %s12763_s21  ;;  %v3403_v0 = vpop.f32.mrf.mxu0  ;;  %v3504_v57 = vpop.f32.mrf.mxu1 }
 0x247   : > { %16884 = vst [vmem:[#allocation63_spill] sm:$0xff] %v13472_v12  ;;  %v3505_v45 = vadd.f32 %v3504_v57, %v3391_v48 }
 0x248   : > { %10446 = vmatpush3.bf16.xpose.msra.mxu0 %v4248_v2  ;;  %v3405_v47 = vpop.f32.mrf.mxu0  ;;  %v3506_v29 = vpop.f32.mrf.mxu1 }
 0x249   : > { %10987 = vmatprep.subr.msk.bf16.mxu0 %vm16719_vm0, %v4123_v54  ;;  %v13476_v46 = vadd.f32 %v3506_v29, %v3393_v3  ;;  %v4242_v54 = vsel %vm16719_vm0, %v13390_v28, 0 }
 0x24a   : > { %4641 = vrot.lane.b32.xlu0 %v13224_v56, %s12763_s21  ;;  %v13474_v30 = vpop.f32.mrf.mxu0  ;;  %v3508_v23 = vpop.f32.mrf.mxu1 }
 0x24b   : > { %16885 = vst [vmem:[#allocation64_spill] sm:$0xff] %v13474_v30  ;;  %16886 = vst [vmem:[#allocation65_spill] sm:$0xff] %v13476_v46  ;;  %v3509_v5 = vadd.f32 %v3508_v23, %v3395_v44 }
 0x24c   : > { %v3411_v41 = vpop.f32.mrf.mxu0  ;;  %v13481_v13 = vpop.f32.mrf.mxu1 }
 0x24d   : > { %16887 = vst [vmem:[#allocation66_spill] sm:$0xff] %v13481_v13  ;;  %v13483_v25 = vpack.c.bf16 %v3509_v5, %v3505_v45 }
 0x24e   : > { %v3413_v20 = vpop.f32.mrf.mxu0  ;;  %v3514_v26 = vpop.f32.mrf.mxu1 }
 0x24f   : > { %16888 = vst [vmem:[#allocation67_spill] sm:$0xff] %v13483_v25  ;;  %v3515_v2 = vadd.f32 %v3514_v26, %v3401_v15 }
 0x250   : > { %10448 = vmatpush3.bf16.xpose.msra.mxu0 %v4245_v61  ;;  %v3415_v63 = vpop.f32.mrf.mxu0  ;;  %v3516_v3 = vpop.f32.mrf.mxu1 }
 0x251   : > { %10988 = vmatprep.subr.msk.bf16.mxu0 %vm16719_vm0, %v13390_v28  ;;  %v13487_v24 = vadd.f32 %v3516_v3, %v3403_v0  ;;  %v4239_v28 = vsel %vm16719_vm0, %v13433_v50, 0 }
 0x252   : > { %v13485_v48 = vpop.f32.mrf.mxu0  ;;  %v3518_v44 = vpop.f32.mrf.mxu1 }
 0x253   : > { %16889 = vst [vmem:[#allocation68_spill] sm:$0xff] %v13485_v48  ;;  %16890 = vst [vmem:[#allocation69_spill] sm:$0xff] %v13487_v24  ;;  %v3519_v29 = vadd.f32 %v3518_v44, %v3405_v47 }
 0x254   : > { %v3421_v40 = vpop.f32.mrf.mxu0  ;;  %v13493_v45 = vpop.f32.mrf.mxu1 }
 0x255   : > { %16891 = vst [vmem:[#allocation70_spill] sm:$0xff] %v13493_v45  ;;  %v13495_v23 = vpack.c.bf16 %v3519_v29, %v3515_v2 }
 0x256   : > { %v3423_v57 = vpop.f32.mrf.mxu0  ;;  %v3524_v15 = vpop.f32.mrf.mxu1 }
 0x257   : > { %16892 = vst [vmem:[#allocation71_spill] sm:$0xff] %v13495_v23  ;;  %v3525_v0 = vadd.f32 %v3524_v15, %v3411_v41 }
 0x258   : > { %10450 = vmatpush3.bf16.xpose.msra.mxu0 %v4242_v54  ;;  %v3425_v61 = vpop.f32.mrf.mxu0  ;;  %v3526_v26 = vpop.f32.mrf.mxu1 }
 0x259   : > { %10989 = vmatprep.subr.msk.bf16.mxu0 %vm16719_vm0, %v13433_v50  ;;  %v13499_v62 = vadd.f32 %v3526_v26, %v3413_v20  ;;  %v4236_v50 = vsel %vm16719_vm0, %v13400_v34, 0 }
 0x25a   : > { %v13497_v5 = vpop.f32.mrf.mxu0  ;;  %v3528_v47 = vpop.f32.mrf.mxu1 }
 0x25b   : > { %16893 = vst [vmem:[#allocation72_spill] sm:$0xff] %v13497_v5  ;;  %16894 = vst [vmem:[#allocation73_spill] sm:$0xff] %v13499_v62  ;;  %v3529_v44 = vadd.f32 %v3528_v47, %v3415_v63 }
 0x25c   : > { %v3431_v3 = vpop.f32.mrf.mxu0  ;;  %v13505_v2 = vpop.f32.mrf.mxu1 }
 0x25d   : > { %16895 = vst [vmem:[#allocation74_spill] sm:$0xff] %v13505_v2  ;;  %v13507_v14 = vpack.c.bf16 %v3529_v44, %v3525_v0 }
 0x25e   : > { %v3433_v54 = vpop.f32.mrf.mxu0  ;;  %v3534_v41 = vpop.f32.mrf.mxu1 }
 0x25f   : > { %16896 = vst [vmem:[#allocation75_spill] sm:$0xff] %v13507_v14  ;;  %v3535_v20 = vadd.f32 %v3534_v41, %v3421_v40 }
 0x260   : > { %10452 = vmatpush3.bf16.xpose.msra.mxu0 %v4239_v28  ;;  %v3435_v29 = vpop.f32.mrf.mxu0  ;;  %v3536_v26 = vpop.f32.mrf.mxu1 }
 0x261   : > { %10990 = vmatprep.subr.msk.bf16.mxu0 %vm16719_vm0, %v13400_v34  ;;  %v13511_v4 = vadd.f32 %v3536_v26, %v3423_v57 }
 0x262   : > { %v13509_v15 = vpop.f32.mrf.mxu0  ;;  %v3538_v63 = vpop.f32.mrf.mxu1 }
 0x263   : > { %16897 = vst [vmem:[#allocation76_spill] sm:$0xff] %v13509_v15  ;;  %16898 = vst [vmem:[#allocation77_spill] sm:$0xff] %v13511_v4  ;;  %v3539_v47 = vadd.f32 %v3538_v63, %v3425_v61 }
 0x264   : > { %v3441_v36 = vpop.f32.mrf.mxu0  ;;  %v13515_v49 = vpop.f32.mrf.mxu1 }
 0x265   : > { %16899 = vst [vmem:[#allocation78_spill] sm:$0xff] %v13515_v49  ;;  %v13517_v0 = vpack.c.bf16 %v3539_v47, %v3535_v20 }
 0x266   : > { %v3443_v28 = vpop.f32.mrf.mxu0  ;;  %v3544_v44 = vpop.f32.mrf.mxu1 }
 0x267   : > { %16900 = vst [vmem:[#allocation79_spill] sm:$0xff] %v13517_v0  ;;  %v3545_v40 = vadd.f32 %v3544_v44, %v3431_v3 }
 0x268   : > { %10454 = vmatpush3.bf16.xpose.msra.mxu0 %v4236_v50  ;;  %v3445_v33 = vpop.f32.mrf.mxu0  ;;  %v3546_v41 = vpop.f32.mrf.mxu1 }
 0x269   : > { %v13521_v57 = vadd.f32 %v3546_v41, %v3433_v54 }
 0x26a   : > { %v13519_v38 = vpop.f32.mrf.mxu0  ;;  %v3548_v34 = vpop.f32.mrf.mxu1 }
 0x26b   : > { %16901 = vst [vmem:[#allocation80_spill] sm:$0xff] %v13519_v38  ;;  %16902 = vst [vmem:[#allocation81_spill] sm:$0xff] %v13521_v57  ;;  %v3549_v61 = vadd.f32 %v3548_v34, %v3435_v29 }
 0x26c   : > { %v3597_v46 = vpop.f32.mrf.mxu0  ;;  %v13527_v50 = vpop.f32.mrf.mxu1 }
 0x26d   : > { %16903 = vst [vmem:[#allocation82_spill] sm:$0xff] %v13527_v50  ;;  %v13529_v63 = vpack.c.bf16 %v3549_v61, %v3545_v40 }
 0x26e   : > { %v3599_v26 = vpop.f32.mrf.mxu0  ;;  %v3554_v47 = vpop.f32.mrf.mxu1 }
 0x26f   : > { %10456 = vmatmul.mubr.msk.bf16.vlgmr.msra.gmra.mxu0 %vm16719_vm0, %v13184_v51  ;;  %16904 = vst [vmem:[#allocation83_spill] sm:$0xff] %v13529_v63  ;;  %v3555_v44 = vadd.f32 %v3554_v47, %v3441_v36 }
 0x270   : > { %10459 = vmatprep.mubr.msk.bf16.mxu0 %vm16719_vm0, %v13192_v35  ;;  %v3601_v20 = vpop.f32.mrf.mxu0  ;;  %v3556_v54 = vpop.f32.mrf.mxu1 }
 0x271   : > { %v13533_v13 = vadd.f32 %v3556_v54, %v3443_v28 }
 0x272   : > { %v13531_v3 = vpop.f32.mrf.mxu0  ;;  %v3558_v51 = vpop.f32.mrf.mxu1 }
 0x273   : > { %16905 = vst [vmem:[#allocation84_spill] sm:$0xff] %v13531_v3  ;;  %16906 = vst [vmem:[#allocation85_spill] sm:$0xff] %v13533_v13  ;;  %v3559_v35 = vadd.f32 %v3558_v51, %v3445_v33 }
 0x274   : > { %v3607_v41 = vpop.f32.mrf.mxu0  ;;  %v13539_v29 = vpop.f32.mrf.mxu1 }
 0x275   : > { %16907 = vst [vmem:[#allocation86_spill] sm:$0xff] %v13539_v29  ;;  %v13541_v34 = vpack.c.bf16 %v3559_v35, %v3555_v44 }
 0x276   : > { %v3609_v55 = vpop.f32.mrf.mxu0  ;;  %v3710_v61 = vpop.f32.mrf.mxu1 }
 0x277   : > { %10460 = vmatmul.mubr.msk.bf16.gmra.mxu0 %vm16719_vm0, %v13200_v39  ;;  %16908 = vst [vmem:[#allocation87_spill] sm:$0xff] %v13541_v34  ;;  %v3711_v47 = vadd.f32 %v3710_v61, %v3597_v46 }
 0x278   : > { %10463 = vmatprep.mubr.msk.bf16.mxu0 %vm16719_vm0, %v13208_v52  ;;  %v3611_v40 = vpop.f32.mrf.mxu0  ;;  %v3712_v28 = vpop.f32.mrf.mxu1 }
 0x279   : > { %v13547_v24 = vadd.f32 %v3712_v28, %v3599_v26 }
 0x27a   : > { %v13543_v36 = vpop.f32.mrf.mxu0  ;;  %v3714_v39 = vpop.f32.mrf.mxu1 }
 0x27b   : > { %16909 = vst [vmem:[#allocation88_spill] sm:$0xff] %v13543_v36  ;;  %16910 = vst [vmem:[#allocation89_spill] sm:$0xff] %v13547_v24  ;;  %v3715_v33 = vadd.f32 %v3714_v39, %v3601_v20 }
 0x27c   : > { %v13545_v54 = vpop.f32.mrf.mxu0  ;;  %v13553_v44 = vpop.f32.mrf.mxu1 }
 0x27d   : > { %16911 = vst [vmem:[#allocation90_spill] sm:$0xff] %v13553_v44  ;;  %v13557_v35 = vpack.c.bf16 %v3715_v33, %v3711_v47 }
 0x27e   : > { %v3619_v52 = vpop.f32.mrf.mxu0  ;;  %v3720_v46 = vpop.f32.mrf.mxu1 }
 0x27f   : > { %10464 = vmatmul.mubr.msk.bf16.gmra.mxu0 %vm16719_vm0, %v13216_v31  ;;  %v3721_v26 = vadd.f32 %v3720_v46, %v3607_v41 }
 0x280   : > { %10467 = vmatprep.mubr.msk.bf16.mxu0 %vm16719_vm0, %v13224_v56  ;;  %v13555_v51 = vpop.f32.mrf.mxu0  ;;  %v3722_v28 = vpop.f32.mrf.mxu1 }
 0x281   : > { %v13563_v31 = vadd.f32 %v3722_v28, %v3609_v55 }
 0x282   : > { %v13559_v61 = vpop.f32.mrf.mxu0  ;;  %v3724_v56 = vpop.f32.mrf.mxu1 }
 0x283   : > { %16912 = vst [vmem:[#allocation91_spill] sm:$0xff] %v13563_v31  ;;  %v3725_v39 = vadd.f32 %v3724_v56, %v3611_v40 }
 0x284   : > { %v13561_v45 = vpop.f32.mrf.mxu0  ;;  %v13567_v30 = vpop.f32.mrf.mxu1 }
 0x285   : > { %16913 = vst [vmem:[#allocation92_spill] sm:$0xff] %v13567_v30  ;;  %v13571_v47 = vpack.c.bf16 %v3725_v39, %v3721_v26 }
 0x286   : > { %v3629_v20 = vpop.f32.mrf.mxu0  ;;  %v13573_v33 = vpop.f32.mrf.mxu1 }
 0x287   : > { %10468 = vmatmul.mubr.msk.bf16.gmra.mxu0 %vm16719_vm0, %v13232_v42 }
 0x288   : > { %v13569_v62 = vpop.f32.mrf.mxu0  ;;  %v3732_v46 = vpop.f32.mrf.mxu1 }
 0x289   : > { %v13579_v55 = vadd.f32 %v3732_v46, %v3619_v52 }
 0x28a   : > { %v13575_v41 = vpop.f32.mrf.mxu0  ;;  %v13581_v28 = vpop.f32.mrf.mxu1 }
 0x28b   : > { %16914 = vst [vmem:[#allocation93_spill] sm:$0xff] %v13579_v55 }
 0x28c   : > { %v13577_v2 = vpop.f32.mrf.mxu0  ;;  %v13583_v48 = vpop.f32.mrf.mxu1 }
 0x28e   : > { %v3639_v42 = vpop.f32.mrf.mxu0  ;;  %v13587_v56 = vpop.f32.mrf.mxu1 }
 0x290   : > { %v13585_v40 = vpop.f32.mrf.mxu0  ;;  %v3742_v39 = vpop.f32.mrf.mxu1 }
 0x291   : > { %v13591_v49 = vadd.f32 %v3742_v39, %v3629_v20  ;;  %v4664_v53 = vpop.permute.xlu1 %4663 }
 0x292   : > { %v13589_v26 = vpop.f32.mrf.mxu0  ;;  %v13593_v5 = vpop.f32.mrf.mxu1 }
 0x293   : > { %16915 = vst [vmem:[#allocation94_spill] sm:$0xff] %v13591_v49 }
 0x294   : > { %v3647_v4 = vpop.f32.mrf.mxu0  ;;  %v13597_v52 = vpop.f32.mrf.mxu1 }
 0x295   : > { %v4662_v11 = vpop.permute.xlu1 %4661 }
 0x296   : > { %v13595_v57 = vpop.f32.mrf.mxu0  ;;  %v13599_v50 = vpop.f32.mrf.mxu1 }
 0x298   : > { %v3651_v46 = vpop.f32.mrf.mxu0  ;;  %v3752_v13 = vpop.f32.mrf.mxu1 }
 0x299   : > { %v13603_v38 = vadd.f32 %v3752_v13, %v3639_v42 }
 0x29a   : > { %v13601_v15 = vpop.f32.mrf.mxu0  ;;  %v13605_v9 = vpop.f32.mrf.mxu1 }
 0x29c   : > { %v3657_v29 = vpop.f32.mrf.mxu0  ;;  %v13611_v18 = vpop.f32.mrf.mxu1 }
 0x29e   : > { %v13607_v22 = vpop.f32.mrf.mxu0  ;;  %v3760_v12 = vpop.f32.mrf.mxu1 }
 0x2a0   : > { %v4668_v20 = vpop.permute.xlu0 %4667  ;;  %v3661_v60 = vpop.f32.mrf.mxu0 }
 0x2a1   : > { %10991 = vmatprep.subr.msk.bf16.mxu0 %vm16719_vm0, %v4668_v20  ;;  %v4715_v39 = vsel %vm16719_vm0, %v4668_v20, 0  ;;  %v13616_v13 = vpop.f32.mrf.mxu1 }
 0x2a2   : > { %10504 = vmatpush3.bf16.xpose.msra.mxu0 %v4715_v39  ;;  %v13613_v25 = vpop.f32.mrf.mxu0 }
 0x2a3   : > { %v3764_v14 = vpop.f32.mrf.mxu1 }
 0x2a4   : > { %v4666_v23 = vpop.permute.xlu0 %4665  ;;  %v3667_v42 = vpop.f32.mrf.mxu0  ;;  %v3765_v36 = vadd.f32 %v3764_v14, %v3651_v46 }
 0x2a5   : > { %10992 = vmatprep.subr.msk.bf16.mxu0 %vm16719_vm0, %v4666_v23  ;;  %v4712_v34 = vsel %vm16719_vm0, %v4666_v23, 0  ;;  %v13621_v20 = vpop.f32.mrf.mxu1  ;;  %v4709_v23 = vsel %vm16719_vm0, %v4664_v53, 0 }
 0x2a6   : > { %v13618_v0 = vpop.f32.mrf.mxu0 }
 0x2a7   : > { %v3770_v39 = vpop.f32.mrf.mxu1 }
 0x2a8   : > { %v4660_v63 = vpop.permute.xlu0 %4659  ;;  %v3671_v10 = vpop.f32.mrf.mxu0  ;;  %v3771_v37 = vadd.f32 %v3770_v39, %v3657_v29  ;;  %v3745_v29 = vadd.f32 %v13593_v5, %v13569_v62  ;;  %v3731_v62 = vadd.f32 %v13573_v33, %v13545_v54  ;;  %v3735_v5 = vadd.f32 %v13581_v28, %v13555_v51 }
 0x2a9   : > { %v13628_v8 = vpop.f32.mrf.mxu1 }
 0x2aa   : > { %10506 = vmatpush3.bf16.xpose.msra.mxu0 %v4712_v34  ;;  %v13624_v43 = vpop.f32.mrf.mxu0  ;;  %v13687_v54 = vpack.c.bf16 %v3735_v5, %v3731_v62 }
 0x2ab   : > { %10993 = vmatprep.subr.msk.bf16.mxu0 %vm16719_vm0, %v4664_v53  ;;  %v3774_v59 = vpop.f32.mrf.mxu1  ;;  %v4706_v53 = vsel %vm16719_vm0, %v4662_v11, 0 }
 0x2ac   : > { %v13626_v58 = vpop.permute.xlu0 %4655  ;;  %v3823_v27 = vpop.f32.mrf.mxu0  ;;  %v3775_v19 = vadd.f32 %v3774_v59, %v3661_v60 }
 0x2ad   : > { %v13632_v7 = vpop.f32.mrf.mxu1 }
 0x2ae   : > { %v3825_v1 = vpop.f32.mrf.mxu0  ;;  %v13642_v55 = vpack.c.bf16 %v3775_v19, %v3771_v37  ;;  %v3755_v19 = vadd.f32 %v13605_v9, %v13585_v40  ;;  %v4658_v9 = vpop.permute.xlu1 %4657 }
 0x2af   : > { %v3780_v17 = vpop.f32.mrf.mxu1 }
 0x2b0   : > { %v4630_v21 = vpop.permute.xlu0 %4629  ;;  %v3827_v34 = vpop.f32.mrf.mxu0  ;;  %v3781_v24 = vadd.f32 %v3780_v17, %v3667_v42 }
 0x2b1   : > { %10519 = vmatprep.mubr.msk.bf16.mxu0 %vm16719_vm0, %v4630_v21  ;;  %v13637_v32 = vpop.f32.mrf.mxu1 }
 0x2b2   : > { %10508 = vmatpush3.bf16.xpose.msra.mxu0 %v4709_v23  ;;  %v13635_v16 = vpop.f32.mrf.mxu0  ;;  %v3761_v23 = vadd.f32 %v3760_v12, %v3647_v4  ;;  %v3751_v4 = vadd.f32 %v13599_v50, %v13577_v2 }
 0x2b3   : > { %10994 = vmatprep.subr.msk.bf16.mxu0 %vm16719_vm0, %v4662_v11  ;;  %16916 = vst [vmem:[#allocation95_spill] sm:$0xff] %v13635_v16  ;;  %v3784_v31 = vpop.f32.mrf.mxu1 }
 0x2b4   : > { %v3833_v6 = vpop.f32.mrf.mxu0  ;;  %v3785_v44 = vadd.f32 %v3784_v31, %v3671_v10  ;;  %v13652_v37 = vpack.c.bf16 %v3765_v36, %v3761_v23  ;;  %v13665_v36 = vpack.c.bf16 %v3755_v19, %v3751_v4 }
 0x2b5   : > { %v13640_v3 = vpop.f32.mrf.mxu1 }
 0x2b6   : > { %v3835_v21 = vpop.f32.mrf.mxu0  ;;  %v4171_v16 = vpack.c.bf16 %v3785_v44, %v3781_v24 }
 0x2b7   : > { %v3936_v59 = vpop.f32.mrf.mxu1 }
 0x2b8   : > { %v3837_v30 = vpop.f32.mrf.mxu0  ;;  %10471 = vmatprep.subr.bf16.mxu1 %v4171_v16  ;;  %5004 = vrot.lane.b32.xlu1 %v4171_v16, %s12763_s21  ;;  %v3937_v10 = vadd.f32 %v3936_v59, %v3823_v27  ;;  %v3741_v27 = vadd.f32 %v13587_v56, %v13561_v45 }
 0x2b9   : > { %10472 = vmatpush3.bf16.msra.mxu1 %v4171_v16  ;;  %v3938_v17 = vpop.f32.mrf.mxu1  ;;  %v4703_v16 = vsel %vm16719_vm0, %v4660_v63, 0 }
 0x2ba   : > { %10510 = vmatpush3.bf16.xpose.msra.mxu0 %v4706_v53  ;;  %v13645_v49 = vpop.f32.mrf.mxu0  ;;  %10473 = vmatprep.subr.bf16.mxu1 %v13642_v55  ;;  %v13655_v14 = vadd.f32 %v3938_v17, %v3825_v1  ;;  %v13678_v56 = vpack.c.bf16 %v3745_v29, %v3741_v27 }
 0x2bb   : > { %10995 = vmatprep.subr.msk.bf16.mxu0 %vm16719_vm0, %v4660_v63  ;;  %16917 = vst [vmem:[#allocation96_spill] sm:$0xff] %v13645_v49  ;;  %v3940_v12 = vpop.f32.mrf.mxu1 }
 0x2bc   : > { %v3843_v11 = vpop.f32.mrf.mxu0  ;;  %16918 = vst [vmem:[#allocation97_spill] sm:$0xff] %v13655_v14  ;;  %v3941_v24 = vadd.f32 %v3940_v12, %v3827_v34  ;;  %v4697_v12 = vsel %vm16719_vm0, %v13626_v58, 0 }
 0x2bd   : > { %10474 = vmatpush3.bf16.msra.mxu1 %v13642_v55  ;;  %v13661_v50 = vpop.f32.mrf.mxu1 }
 0x2be   : > { %v3845_v60 = vpop.f32.mrf.mxu0  ;;  %16919 = vst [vmem:[#allocation98_spill] sm:$0xff] %v13661_v50  ;;  %10475 = vmatprep.subr.bf16.mxu1 %v13652_v37  ;;  %v13668_v1 = vpack.c.bf16 %v3941_v24, %v3937_v10 }
 0x2bf   : > { %v3946_v63 = vpop.f32.mrf.mxu1 }
 0x2c0   : > { %v3847_v2 = vpop.f32.mrf.mxu0  ;;  %16920 = vst [vmem:[#allocation99_spill] sm:$0xff] %v13668_v1  ;;  %v3947_v44 = vadd.f32 %v3946_v63, %v3833_v6  ;;  %v4700_v6 = vsel %vm16719_vm0, %v4658_v9, 0 }
 0x2c1   : > { %10476 = vmatpush3.bf16.msra.mxu1 %v13652_v37  ;;  %v3948_v40 = vpop.f32.mrf.mxu1 }
 0x2c2   : > { %10512 = vmatpush3.bf16.xpose.msra.mxu0 %v4703_v16  ;;  %v13671_v45 = vpop.f32.mrf.mxu0  ;;  %10477 = vmatprep.subr.bf16.mxu1 %v13665_v36  ;;  %v13681_v46 = vadd.f32 %v3948_v40, %v3835_v21 }
 0x2c3   : > { %10996 = vmatprep.subr.msk.bf16.mxu0 %vm16719_vm0, %v4658_v9  ;;  %16921 = vst [vmem:[#allocation100_spill] sm:$0xff] %v13671_v45  ;;  %v3950_v39 = vpop.f32.mrf.mxu1 }
 0x2c4   : > { %v3853_v31 = vpop.f32.mrf.mxu0  ;;  %16922 = vst [vmem:[#allocation101_spill] sm:$0xff] %v13681_v46  ;;  %v3951_v34 = vadd.f32 %v3950_v39, %v3837_v30 }
 0x2c5   : > { %10478 = vmatpush3.bf16.msra.mxu1 %v13665_v36  ;;  %v13685_v23 = vpop.f32.mrf.mxu1 }
 0x2c6   : > { %v3855_v42 = vpop.f32.mrf.mxu0  ;;  %16923 = vst [vmem:[#allocation102_spill] sm:$0xff] %v13685_v23  ;;  %10479 = vmatprep.subr.bf16.mxu1 %v13678_v56  ;;  %v13690_v51 = vpack.c.bf16 %v3951_v34, %v3947_v44  ;;  %v3773_v34 = vadd.f32 %v13628_v8, %v13607_v22 }
 0x2c7   : > { %v3956_v30 = vpop.f32.mrf.mxu1 }
 0x2c8   : > { %v3857_v53 = vpop.f32.mrf.mxu0  ;;  %16924 = vst [vmem:[#allocation103_spill] sm:$0xff] %v13690_v51  ;;  %v3957_v28 = vadd.f32 %v3956_v30, %v3843_v11  ;;  %v4654_v11 = vpop.permute.xlu1 %4653 }
 0x2c9   : > { %10480 = vmatpush3.bf16.msra.mxu1 %v13678_v56  ;;  %v3958_v59 = vpop.f32.mrf.mxu1  ;;  %v4694_v39 = vsel %vm16719_vm0, %v4654_v11, 0 }
 0x2ca   : > { %10514 = vmatpush3.bf16.xpose.msra.mxu0 %v4700_v6  ;;  %v13694_v33 = vpop.f32.mrf.mxu0  ;;  %10481 = vmatprep.subr.bf16.mxu1 %v13687_v54  ;;  %v13698_v10 = vadd.f32 %v3958_v59, %v3845_v60  ;;  %v3783_v60 = vadd.f32 %v13637_v32, %v13618_v0 }
 0x2cb   : > { %10997 = vmatprep.subr.msk.bf16.mxu0 %vm16719_vm0, %v13626_v58  ;;  %16925 = vst [vmem:[#allocation104_spill] sm:$0xff] %v13694_v33  ;;  %v3960_v4 = vpop.f32.mrf.mxu1 }
 0x2cc   : > { %v3863_v21 = vpop.f32.mrf.mxu0  ;;  %16926 = vst [vmem:[#allocation105_spill] sm:$0xff] %v13698_v10  ;;  %v3961_v19 = vadd.f32 %v3960_v4, %v3847_v2  ;;  %v3787_v2 = vadd.f32 %v13640_v3, %v13624_v43  ;;  %v3763_v4 = vadd.f32 %v13616_v13, %v13595_v57 }
 0x2cd   : > { %10482 = vmatpush3.bf16.msra.mxu1 %v13687_v54  ;;  %v13703_v27 = vpop.f32.mrf.mxu1 }
 0x2ce   : > { %v3865_v17 = vpop.f32.mrf.mxu0  ;;  %16927 = vst [vmem:[#allocation106_spill] sm:$0xff] %v13703_v27  ;;  %10483 = vmatprep.subr.bf16.mxu1 %v13571_v47  ;;  %v13706_v16 = vpack.c.bf16 %v3961_v19, %v3957_v28  ;;  %v13719_v62 = vpack.c.bf16 %v3787_v2, %v3783_v60  ;;  %v3767_v19 = vadd.f32 %v13621_v20, %v13601_v15 }
 0x2cf   : > { %v3966_v9 = vpop.f32.mrf.mxu1  ;;  %v3757_v15 = vadd.f32 %v13611_v18, %v13589_v26 }
 0x2d0   : > { %v3867_v24 = vpop.f32.mrf.mxu0  ;;  %16928 = vst [vmem:[#allocation107_spill] sm:$0xff] %v13706_v16  ;;  %v3967_v29 = vadd.f32 %v3966_v9, %v3853_v31  ;;  %16931 = vst [vmem:[#allocation110_spill] sm:$0xff] %v13719_v62  ;;  %v13751_v57 = vpack.c.bf16 %v3767_v19, %v3763_v4  ;;  %v3747_v9 = vadd.f32 %v13597_v52, %v13575_v41  ;;  %v16944_v41 = vld [vmem:[#allocation94_spill] sm:$0xff] }
 0x2d1   : > { %10484 = vmatpush3.bf16.msra.mxu1 %v13571_v47  ;;  %v3968_v44 = vpop.f32.mrf.mxu1 }
 0x2d2   : > { %10516 = vmatpush3.bf16.xpose.msra.mxu0 %v4697_v12  ;;  %v13713_v58 = vpop.f32.mrf.mxu0  ;;  %10485 = vmatprep.subr.bf16.mxu1 %v13557_v35  ;;  %v13717_v40 = vadd.f32 %v3968_v44, %v3855_v42  ;;  %v3777_v42 = vadd.f32 %v13632_v7, %v13613_v25  ;;  %v4632_v7 = vpop.permute.xlu1 %4631  ;;  %16939 = vst [vmem:[#allocation118_spill] sm:$0xff] %v13751_v57 }
 0x2d3   : > { %10998 = vmatprep.subr.msk.bf16.mxu0 %vm16719_vm0, %v4654_v11  ;;  %16929 = vst [vmem:[#allocation108_spill] sm:$0xff] %v13713_v58  ;;  %v3970_v0 = vpop.f32.mrf.mxu1  ;;  %v4634_v11 = vpop.permute.xlu0 %4633  ;;  %v13773_v52 = vpack.c.bf16 %v3747_v9, %v16944_v41  ;;  %v16955_v9 = vld [vmem:[#allocation90_spill] sm:$0xff] }
 0x2d4   : > { %v3873_v63 = vpop.f32.mrf.mxu0  ;;  %16930 = vst [vmem:[#allocation109_spill] sm:$0xff] %v13717_v40  ;;  %v3971_v5 = vadd.f32 %v3970_v0, %v3857_v53  ;;  %v13740_v12 = vpack.c.bf16 %v3777_v42, %v3773_v34 }
 0x2d5   : > { %10486 = vmatpush3.bf16.msra.mxu1 %v13557_v35  ;;  %v13723_v3 = vpop.f32.mrf.mxu1  ;;  %16945 = vst [vmem:[#allocation94_spill] sm:$0xff] %v13773_v52 }
 0x2d6   : > { %v3875_v32 = vpop.f32.mrf.mxu0  ;;  %16932 = vst [vmem:[#allocation111_spill] sm:$0xff] %v13723_v3  ;;  %v13725_v31 = vpack.c.bf16 %v3971_v5, %v3967_v29  ;;  %16936 = vst [vmem:[#allocation115_spill] sm:$0xff] %v13740_v12  ;;  %v13760_v29 = vpack.c.bf16 %v3757_v15, %v13603_v38  ;;  %v4636_v44 = vpop.permute.xlu1 %4635  ;;  %v3737_v38 = vadd.f32 %v13583_v48, %v13559_v61 }
 0x2d7   : > { %v3976_v53 = vpop.f32.mrf.mxu1  ;;  %v4638_v5 = vpop.permute.xlu0 %4637 }
 0x2d8   : > { %v3877_v43 = vpop.f32.mrf.mxu0  ;;  %16933 = vst [vmem:[#allocation112_spill] sm:$0xff] %v13725_v31  ;;  %v3977_v30 = vadd.f32 %v3976_v53, %v3863_v21  ;;  %16941 = vst [vmem:[#allocation120_spill] sm:$0xff] %v13760_v29 }
 0x2d9   : > { %v3978_v28 = vpop.f32.mrf.mxu1 }
 0x2da   : > { %10518 = vmatpush3.bf16.xpose.msra.mxu0 %v4694_v39  ;;  %v13732_v6 = vpop.f32.mrf.mxu0  ;;  %v13734_v59 = vadd.f32 %v3978_v28, %v3865_v17  ;;  %v4640_v4 = vpop.permute.xlu1 %4639 }
 0x2db   : > { %10599 = vmatprep.subr.bf16.mxu0 %v13719_v62  ;;  %16934 = vst [vmem:[#allocation113_spill] sm:$0xff] %v13732_v6  ;;  %v3980_v8 = vpop.f32.mrf.mxu1 }
 0x2dc   : > { %16935 = vst [vmem:[#allocation114_spill] sm:$0xff] %v13734_v59  ;;  %v3883_v22 = vpop.f32.mrf.mxu0  ;;  %v3981_v25 = vadd.f32 %v3980_v8, %v3867_v24  ;;  %v16950_v8 = vld [vmem:[#allocation88_spill] sm:$0xff] }
 0x2dd   : > { %v13743_v60 = vpop.f32.mrf.mxu1 }
 0x2de   : > { %16937 = vst [vmem:[#allocation116_spill] sm:$0xff] %v13743_v60  ;;  %v13747_v21 = vpack.c.bf16 %v3981_v25, %v3977_v30  ;;  %v3885_v13 = vpop.f32.mrf.mxu0  ;;  %v16948_v30 = vld [vmem:[#allocation93_spill] sm:$0xff] }
 0x2df   : > { %v3986_v20 = vpop.f32.mrf.mxu1  ;;  %v13782_v28 = vpack.c.bf16 %v3737_v38, %v16948_v30 }
 0x2e0   : > { %16938 = vst [vmem:[#allocation117_spill] sm:$0xff] %v13747_v21  ;;  %v3987_v17 = vadd.f32 %v3986_v20, %v3873_v63  ;;  %v3887_v18 = vpop.f32.mrf.mxu0 }
 0x2e1   : > { %10520 = vmatmul.mubr.msk.bf16.vlgmr.msra.gmra.mxu0 %vm16719_vm0, %v4632_v7  ;;  %v3988_v24 = vpop.f32.mrf.mxu1  ;;  %16949 = vst [vmem:[#allocation93_spill] sm:$0xff] %v13782_v28  ;;  %v16951_v7 = vld [vmem:[#allocation92_spill] sm:$0xff] }
 0x2e2   : > { %10523 = vmatprep.mubr.msk.bf16.mxu0 %vm16719_vm0, %v4634_v11  ;;  %10600 = vmatpush3.bf16.msra.mxu0 %v13719_v62  ;;  %v13755_v2 = vadd.f32 %v3988_v24, %v3875_v32  ;;  %v13776_v39 = vpop.f32.mrf.mxu0  ;;  %v3727_v25 = vadd.f32 %v16951_v7, %v16950_v8  ;;  %v4642_v11 = vpop.permute.xlu0 %4641  ;;  %v16954_v24 = vld [vmem:[#allocation84_spill] sm:$0xff] }
 0x2e3   : > { %10601 = vmatprep.subr.bf16.mxu0 %v13740_v12  ;;  %v3990_v26 = vpop.f32.mrf.mxu1  ;;  %16946 = vst [vmem:[#allocation123_spill] sm:$0xff] %v13776_v39 }
 0x2e4   : > { %16940 = vst [vmem:[#allocation119_spill] sm:$0xff] %v13755_v2  ;;  %v3991_v0 = vadd.f32 %v3990_v26, %v3877_v43  ;;  %v3893_v48 = vpop.f32.mrf.mxu0  ;;  %v16956_v26 = vld [vmem:[#allocation91_spill] sm:$0xff] }
 0x2e5   : > { %v13764_v63 = vpop.f32.mrf.mxu1 }
 0x2e6   : > { %10602 = vmatpush3.bf16.msra.mxu0 %v13740_v12  ;;  %16942 = vst [vmem:[#allocation121_spill] sm:$0xff] %v13764_v63  ;;  %v13768_v32 = vpack.c.bf16 %v3991_v0, %v3987_v17 }
 0x2e7   : > { %10603 = vmatprep.subr.bf16.mxu0 %v13751_v57  ;;  %v3996_v43 = vpop.f32.mrf.mxu1 }
 0x2e8   : > { %16943 = vst [vmem:[#allocation122_spill] sm:$0xff] %v13768_v32  ;;  %v3997_v34 = vadd.f32 %v3996_v43, %v3883_v22  ;;  %v4644_v43 = vpop.permute.xlu1 %4643 }
 0x2e9   : > { %10524 = vmatmul.mubr.msk.bf16.gmra.mxu0 %vm16719_vm0, %v4636_v44  ;;  %v3998_v42 = vpop.f32.mrf.mxu1  ;;  %v13798_v44 = vpack.c.bf16 %v3727_v25, %v16956_v26 }
 0x2ea   : > { %10527 = vmatprep.mubr.msk.bf16.mxu0 %vm16719_vm0, %v4638_v5  ;;  %10604 = vmatpush3.bf16.msra.mxu0 %v13751_v57  ;;  %v13779_v53 = vadd.f32 %v3998_v42, %v3885_v13  ;;  %v3895_v13 = vpop.f32.mrf.mxu0  ;;  %v16959_v42 = vld [vmem:[#allocation89_spill] sm:$0xff] }
 0x2eb   : > { %10605 = vmatprep.subr.bf16.mxu0 %v13760_v29  ;;  %v4000_v61 = vpop.f32.mrf.mxu1  ;;  %16957 = vst [vmem:[#allocation84_spill] sm:$0xff] %v13798_v44 }
 0x2ec   : > { %16947 = vst [vmem:[#allocation124_spill] sm:$0xff] %v13779_v53  ;;  %v4001_v19 = vadd.f32 %v4000_v61, %v3887_v18  ;;  %v3717_v18 = vadd.f32 %v16955_v9, %v16954_v24  ;;  %v3897_v38 = vpop.f32.mrf.mxu0  ;;  %v4175_v61 = vlaneseq }
 0x2ed   : > { %v13788_v22 = vpop.f32.mrf.mxu1 }
 0x2ee   : > { %10606 = vmatpush3.bf16.msra.mxu0 %v13760_v29  ;;  %16952 = vst [vmem:[#allocation88_spill] sm:$0xff] %v13788_v22  ;;  %v13792_v15 = vpack.c.bf16 %v4001_v19, %v3997_v34  ;;  %v13805_v30 = vpack.c.bf16 %v3717_v18, %v16959_v42  ;;  %v13816_v8 = vand.u32 127, %v4175_v61  ;;  %v13818_v7 = vpop.f32.mrf.mxu0 }
 0x2ef   : > { %10607 = vmatprep.subr.bf16.mxu0 %v13773_v52  ;;  %v4006_v20 = vpop.f32.mrf.mxu1  ;;  %16963 = vst [vmem:[#allocation126_spill] sm:$0xff] %v13818_v7 }
 0x2f0   : > { %16953 = vst [vmem:[#allocation92_spill] sm:$0xff] %v13792_v15  ;;  %v4007_v17 = vadd.f32 %v4006_v20, %v3893_v48  ;;  %16960 = vst [vmem:[#allocation91_spill] sm:$0xff] %v13805_v30 }
 0x2f1   : > { %10528 = vmatmul.mubr.msk.bf16.gmra.mxu0 %vm16719_vm0, %v4640_v4  ;;  %v4008_v0 = vpop.f32.mrf.mxu1  ;;  %v13813_v4 = vshrl.u32 %v4175_v61, 7 }
 0x2f2   : > { %10531 = vmatprep.mubr.msk.bf16.mxu0 %vm16719_vm0, %v4642_v11  ;;  %10608 = vmatpush3.bf16.msra.mxu0 %v13773_v52  ;;  %v13801_v5 = vadd.f32 %v4008_v0, %v3895_v13 }
 0x2f3   : > { %10609 = vmatprep.subr.bf16.mxu0 %v13782_v28  ;;  %v4010_v41 = vpop.f32.mrf.mxu1  ;;  %16962 = vst [vmem:[#allocation125_spill] sm:$0xff] %v13813_v4  ;;  %v4178_v19 = vadd.s32 16, %v13813_v4  ;;  %v4177_v20 = vadd.s32 8, %v13813_v4  ;;  %vm13836_vm2 = vcmp.ge.s32.totalorder %v13813_v4, %v13816_v8  ;;  %v4179_v18 = vadd.s32 24, %v13813_v4 }
 0x2f4   : > { %16958 = vst [vmem:[#allocation90_spill] sm:$0xff] %v13801_v5  ;;  %v4011_v34 = vadd.f32 %v4010_v41, %v3897_v38  ;;  %v4182_v38 = vadd.s32 48, %v13813_v4  ;;  %v4183_v42 = vadd.s32 56, %v13813_v4  ;;  %v4181_v14 = vadd.s32 40, %v13813_v4 }
 0x2f5   : > { %vm13821_vm1 = vcmp.ge.s32.totalorder %v4178_v19, %v13816_v8  ;;  %vm13842_vm3 = vcmp.ge.s32.totalorder %v4177_v20, %v13816_v8  ;;  %vm13853_vm4 = vcmp.ge.s32.totalorder %v4179_v18, %v13816_v8  ;;  %v4180_v20 = vadd.s32 32, %v13813_v4 }
 0x2f6   : > { %10610 = vmatpush3.bf16.msra.mxu0 %v13782_v28  ;;  %v13809_v48 = vpack.c.bf16 %v4011_v34, %v4007_v17  ;;  %vm13864_vm5 = vcmp.ge.s32.totalorder %v4182_v38, %v13816_v8  ;;  %vm13875_vm6 = vcmp.ge.s32.totalorder %v4183_v42, %v13816_v8  ;;  %v4186_v50 = vadd.s32 80, %v13813_v4 }
 0x2f7   : > { %10611 = vmatprep.subr.bf16.mxu0 %v13798_v44  ;;  %vm13886_vm7 = vcmp.ge.s32.totalorder %v4180_v20, %v13816_v8  ;;  %vm13897_vm8 = vcmp.ge.s32.totalorder %v4181_v14, %v13816_v8  ;;  %v4187_v23 = vadd.s32 88, %v13813_v4  ;;  %v4184_v40 = vadd.s32 64, %v13813_v4 }
 0x2f8   : > { %16961 = vst [vmem:[#allocation89_spill] sm:$0xff] %v13809_v48  ;;  %vm13908_vm9 = vcmp.ge.s32.totalorder %v4186_v50, %v13816_v8  ;;  %v4185_v45 = vadd.s32 72, %v13813_v4  ;;  %v4190_v3 = vadd.s32 112, %v13813_v4  ;;  %v4191_v2 = vadd.s32 120, %v13813_v4 }
 0x2f9   : > { %10532 = vmatmul.mubr.msk.bf16.gmra.mxu0 %vm16719_vm0, %v4644_v43  ;;  %vm13919_vm10 = vcmp.ge.s32.totalorder %v4187_v23, %v13816_v8  ;;  %vm13930_vm11 = vcmp.ge.s32.totalorder %v4184_v40, %v13816_v8  ;;  %v4188_v58 = vadd.s32 96, %v13813_v4  ;;  %v4189_v63 = vadd.s32 104, %v13813_v4 }
 0x2fa   : > { %10612 = vmatpush3.bf16.msra.mxu0 %v13798_v44  ;;  %vm13941_vm12 = vcmp.ge.s32.totalorder %v4185_v45, %v13816_v8  ;;  %vm13952_vm13 = vcmp.ge.s32.totalorder %v4190_v3, %v13816_v8  ;;  %vm13963_vm14 = vcmp.ge.s32.totalorder %v4191_v2, %v13816_v8  ;;  %v17000_v4 = vmov 0 }
 0x2fb   : > { %10613 = vmatprep.subr.bf16.mxu0 %v13805_v30  ;;  %vm13974_vm15 = vcmp.ge.s32.totalorder %v4188_v58, %v13816_v8  ;;  %vm13984_vm0 = vcmp.ge.s32.totalorder %v4189_v63, %v13816_v8 }
 0x2fc   : > { %v17001_v4 = vsel %vm13984_vm0, 4294967295, %v17000_v4 }
 0x2fd   : > { %17002 = vst [vmem:[#allocation133_spill] sm:$0xff] %v17001_v4 }
 0x2fe   : > { %10614 = vmatpush3.bf16.msra.mxu0 %v13805_v30 }
 0x32a   : > { %v13825_v11 = vpop.permute.xlu1 %5004 }
 0x32b   : > { %10535 = vmatprep.subr.bf16.mxu1 %v13825_v11 }
 0x32f   : > { %v10457_v13 = vpop.f32.mrf.mxu0 }
 0x330   : > { %v13831_v17 = vsel %vm13821_vm1, %v10457_v13, -1e+30 }
 0x331   : > { %4376 = vmax.xlane.f32.xlu0 %v13831_v17  ;;  %v4293_v24 = vpop.f32.mrf.mxu0 }
 0x332   : > { %v13849_v41 = vsel %vm13836_vm2, %v4293_v24, -1e+30 }
 0x333   : > { %v10458_v26 = vpop.f32.mrf.mxu0 }
 0x334   : > { %v13871_v24 = vsel %vm13853_vm4, %v10458_v26, -1e+30 }
 0x335   : > { %4372 = vmax.xlane.f32.xlu0 %v13849_v41  ;;  %v4296_v43 = vpop.f32.mrf.mxu0 }
 0x336   : > { %v13860_v61 = vsel %vm13842_vm3, %v4296_v43, -1e+30  ;;  %v16974_v43 = vmov 0 }
 0x337   : > { %4374 = vmax.xlane.f32.xlu1 %v13860_v61  ;;  %v10461_v19 = vpop.f32.mrf.mxu0  ;;  %v16975_v43 = vsel %vm13875_vm6, 4294967295, %v16974_v43 }
 0x338   : > { %16976 = vst [vmem:[#allocation127_spill] sm:$0xff] %v16975_v43  ;;  %v13882_v38 = vsel %vm13864_vm5, %v10461_v19, -1e+30  ;;  %v16979_v19 = vmov 0 }
 0x339   : > { %4378 = vmax.xlane.f32.xlu0 %v13871_v24  ;;  %v4309_v18 = vpop.f32.mrf.mxu0  ;;  %v16980_v19 = vsel %vm13897_vm8, 4294967295, %v16979_v19 }
 0x33a   : > { %16981 = vst [vmem:[#allocation128_spill] sm:$0xff] %v16980_v19  ;;  %v13904_v20 = vsel %vm13886_vm7, %v4309_v18, -1e+30  ;;  %v16984_v18 = vmov 0 }
 0x33b   : > { %4384 = vmax.xlane.f32.xlu1 %v13882_v38  ;;  %v10462_v46 = vpop.f32.mrf.mxu0  ;;  %v16985_v18 = vsel %vm13919_vm10, 4294967295, %v16984_v18 }
 0x33c   : > { %v13893_v42 = vsel %vm13875_vm6, %v10462_v46, -1e+30  ;;  %v16982_v46 = vmov 0  ;;  %16986 = vst [vmem:[#allocation129_spill] sm:$0xff] %v16985_v18 }
 0x33d   : > { %4386 = vmax.xlane.f32.xlu0 %v13893_v42  ;;  %v4312_v10 = vpop.f32.mrf.mxu0  ;;  %v16983_v46 = vsel %vm13908_vm9, 4294967295, %v16982_v46 }
 0x33e   : > { %v13915_v14 = vsel %vm13897_vm8, %v4312_v10, -1e+30  ;;  %v16987_v10 = vmov 0 }
 0x33f   : > { %4380 = vmax.xlane.f32.xlu1 %v13904_v20  ;;  %v10465_v49 = vpop.f32.mrf.mxu0  ;;  %v16988_v10 = vsel %vm13930_vm11, 4294967295, %v16987_v10 }
 0x340   : > { %v13926_v50 = vsel %vm13908_vm9, %v10465_v49, -1e+30  ;;  %v16989_v49 = vmov 0 }
 0x341   : > { %4382 = vmax.xlane.f32.xlu0 %v13915_v14  ;;  %v4325_v27 = vpop.f32.mrf.mxu0  ;;  %v16990_v49 = vsel %vm13941_vm12, 4294967295, %v16989_v49 }
 0x342   : > { %16991 = vst [vmem:[#allocation130_spill] sm:$0xff] %v16990_v49  ;;  %v13948_v40 = vsel %vm13930_vm11, %v4325_v27, -1e+30  ;;  %v16994_v27 = vmov 0 }
 0x343   : > { %4392 = vmax.xlane.f32.xlu1 %v13926_v50  ;;  %v10466_v59 = vpop.f32.mrf.mxu0  ;;  %v16995_v27 = vsel %vm13963_vm14, 4294967295, %v16994_v27 }
 0x344   : > { %v13937_v23 = vsel %vm13919_vm10, %v10466_v59, -1e+30  ;;  %v16992_v59 = vmov 0  ;;  %16996 = vst [vmem:[#allocation131_spill] sm:$0xff] %v16995_v27 }
 0x345   : > { %4394 = vmax.xlane.f32.xlu0 %v13937_v23  ;;  %v4328_v33 = vpop.f32.mrf.mxu0  ;;  %v16993_v59 = vsel %vm13952_vm13, 4294967295, %v16992_v59 }
 0x346   : > { %v13959_v45 = vsel %vm13941_vm12, %v4328_v33, -1e+30  ;;  %v16997_v33 = vmov 0 }
 0x347   : > { %4388 = vmax.xlane.f32.xlu1 %v13948_v40  ;;  %v10469_v60 = vpop.f32.mrf.mxu0  ;;  %v16998_v33 = vsel %vm13974_vm15, 4294967295, %v16997_v33 }
 0x348   : > { %v13970_v3 = vsel %vm13952_vm13, %v10469_v60, -1e+30  ;;  %16999 = vst [vmem:[#allocation132_spill] sm:$0xff] %v16998_v33 }
 0x349   : > { %4390 = vmax.xlane.f32.xlu0 %v13959_v45  ;;  %v4341_v53 = vpop.f32.mrf.mxu0 }
 0x34a   : > { %v13990_v60 = vsel %vm13974_vm15, %v4341_v53, -1e+30 }
 0x34b   : > { %4400 = vmax.xlane.f32.xlu1 %v13970_v3  ;;  %v10470_v6 = vpop.f32.mrf.mxu0 }
 0x34c   : > { %v13980_v2 = vsel %vm13963_vm14, %v10470_v6, -1e+30 }
 0x34d   : > { %4402 = vmax.xlane.f32.xlu0 %v13980_v2  ;;  %v4344_v22 = vpop.f32.mrf.mxu0 }
 0x34e   : > { %v13995_v58 = vsel %vm13984_vm0, %v4344_v22, -1e+30 }
 0x34f   : > { %4396 = vmax.xlane.f32.xlu1 %v13990_v60 }
 0x351   : > { %4398 = vmax.xlane.f32.xlu0 %v13995_v58 }
 0x3a1   : > { %v10521_v6 = vpop.f32.mrf.mxu0 }
 0x3a2   : > { %v14000_v39 = vsel %vm13821_vm1, %v10521_v6, -1e+30 }
 0x3a3   : > { %4834 = vmax.xlane.f32.xlu1 %v14000_v39  ;;  %v4751_v63 = vpop.f32.mrf.mxu0 }
 0x3a4   : > { %v14005_v53 = vsel %vm13836_vm2, %v4751_v63, -1e+30 }
 0x3a5   : > { %v10522_v8 = vpop.f32.mrf.mxu0 }
 0x3a6   : > { %v14009_v5 = vsel %vm13853_vm4, %v10522_v8, -1e+30 }
 0x3a7   : > { %4830 = vmax.xlane.f32.xlu1 %v14005_v53  ;;  %v4754_v22 = vpop.f32.mrf.mxu0  ;;  %4836 = vmax.xlane.f32.xlu0 %v14009_v5 }
 0x3a8   : > { %v14017_v6 = vsel %vm13842_vm3, %v4754_v22, -1e+30 }
 0x3a9   : > { %v14013_v7 = vpop.f32.mrf.mxu0 }
 0x3ab   : > { %v14019_v44 = vpop.f32.mrf.mxu0  ;;  %4832 = vmax.xlane.f32.xlu0 %v14017_v6 }
 0x3ad   : > { %v10526_v63 = vpop.f32.mrf.mxu0 }
 0x3ae   : > { %v14024_v8 = vsel %vm13875_vm6, %v10526_v63, -1e+30 }
 0x3af   : > { %v4770_v30 = vpop.f32.mrf.mxu0  ;;  %4844 = vmax.xlane.f32.xlu0 %v14024_v8 }
 0x3b0   : > { %v14031_v52 = vsel %vm13897_vm8, %v4770_v30, -1e+30 }
 0x3b1   : > { %v14027_v28 = vpop.f32.mrf.mxu0 }
 0x3b3   : > { %v14033_v22 = vpop.f32.mrf.mxu0  ;;  %4840 = vmax.xlane.f32.xlu0 %v14031_v52 }
 0x3b5   : > { %v10530_v29 = vpop.f32.mrf.mxu0 }
 0x3b6   : > { %v14038_v57 = vsel %vm13919_vm10, %v10530_v29, -1e+30 }
 0x3b7   : > { %v4786_v63 = vpop.f32.mrf.mxu0  ;;  %4852 = vmax.xlane.f32.xlu0 %v14038_v57 }
 0x3b8   : > { %5002 = vrot.lane.b32.xlu1 %v13642_v55, %s12763_s21  ;;  %v14047_v30 = vsel %vm13941_vm12, %v4786_v63, -1e+30 }
 0x3b9   : > { %v14043_v62 = vpop.f32.mrf.mxu0 }
 0x3ba   : > { %v4377_v12 = vpop.xlane.xlu0 %4376 }
 0x3bb   : > { %v14049_v1 = vpop.f32.mrf.mxu0  ;;  %4848 = vmax.xlane.f32.xlu0 %v14047_v30 }
 0x3bd   : > { %v10534_v51 = vpop.f32.mrf.mxu0 }
 0x3be   : > { %v4373_v29 = vpop.xlane.xlu0 %4372  ;;  %v14054_v16 = vsel %vm13963_vm14, %v10534_v51, -1e+30 }
 0x3bf   : > { %v4802_v31 = vpop.f32.mrf.mxu0  ;;  %4860 = vmax.xlane.f32.xlu0 %v14054_v16 }
 0x3c0   : > { %v4375_v55 = vpop.xlane.xlu1 %4374  ;;  %v14059_v32 = vsel %vm13984_vm0, %v4802_v31, -1e+30  ;;  %vm17008_vm0 = vcmask 523264  }
 0x3c1   : > { %v4405_v63 = vsub.f32 %v13860_v61, %v4375_v55  ;;  %vm17010_vm14 = vmmov %vm17008_vm0 }
 0x3c2   : > { %v4379_v21 = vpop.xlane.xlu0 %4378  ;;  %vm17011_vm12 = vmmov %vm17008_vm0 }
 0x3c3   : > { %v4407_v15 = vsub.f32 %v13871_v24, %v4379_v21  ;;  %4856 = vmax.xlane.f32.xlu0 %v14059_v32  ;;  %v4422_v27 = vmul.f32 1.442695, %v4405_v63  ;;  %vm17015_vm10 = vmmov %vm17008_vm0 }
 0x3c4   : > { %vm17040_vm8 = vmmov %vm17008_vm0 }
 0x3c5   : > { %v4426_v48 = vmul.f32 1.442695, %v4407_v15  ;;  %vm17042_vm6 = vmmov %vm17008_vm0 }
 0x3c6   : > { %v4387_v49 = vpop.xlane.xlu0 %4386 }
 0x3c7   : > { %12061 = vpow2.f32 %v4426_v48  ;;  %v4411_v51 = vsub.f32 %v13893_v42, %v4387_v49 }
 0x3c8   : > { %12063 = vpow2.f32 %v4422_v27  ;;  %v4406_v27 = vsub.f32 %v13831_v17, %v4377_v12  ;;  %v14099_v12 = vsel %vm13908_vm9, %v14027_v28, -1e+30 }
 0x3c9   : > { %v4434_v19 = vmul.f32 1.442695, %v4411_v51 }
 0x3ca   : > { %v4383_v18 = vpop.xlane.xlu0 %4382 }
 0x3cb   : > { %v4409_v43 = vsub.f32 %v13915_v14, %v4383_v18  ;;  %12065 = vpow2.f32 %v4434_v19  ;;  %v4385_v19 = vpop.xlane.xlu1 %4384 }
 0x3cd   : > { %v4430_v31 = vmul.f32 1.442695, %v4409_v43 }
 0x3ce   : > { %v4395_v4 = vpop.xlane.xlu0 %4394 }
 0x3cf   : > { %v4415_v61 = vsub.f32 %v13937_v23, %v4395_v4  ;;  %12067 = vpow2.f32 %v4430_v31  ;;  %v14079_v23 = vsel %vm13864_vm5, %v14013_v7, -1e+30  ;;  %v4424_v7 = vmul.f32 1.442695, %v4406_v27 }
 0x3d0   : > { %v4404_v31 = vsub.f32 %v13849_v41, %v4373_v29  ;;  %v14109_v41 = vsel %vm13930_vm11, %v14033_v22, -1e+30 }
 0x3d1   : > { %v4442_v21 = vmul.f32 1.442695, %v4415_v61 }
 0x3d2   : > { %v4391_v55 = vpop.xlane.xlu0 %4390  ;;  %v4420_v61 = vmul.f32 1.442695, %v4404_v31 }
 0x3d3   : > { %v4413_v15 = vsub.f32 %v13959_v45, %v4391_v55  ;;  %12069 = vpow2.f32 %v4442_v21  ;;  %v4410_v55 = vsub.f32 %v13882_v38, %v4385_v19  ;;  %v14119_v38 = vsel %vm13952_vm13, %v14043_v62, -1e+30 }
 0x3d4   : > { %v14068_v24 = vpop.eup %12061 }
 0x3d5   : > { %4458 = vadd.xlane.f32.xlu0 %v14068_v24  ;;  %v4438_v42 = vmul.f32 1.442695, %v4413_v15  ;;  %v14072_v14 = vpop.eup %12063  ;;  %v4432_v28 = vmul.f32 1.442695, %v4410_v55 }
 0x3d6   : > { %v4403_v48 = vpop.xlane.xlu0 %4402 }
 0x3d7   : > { %v4419_v49 = vsub.f32 %v13980_v2, %v4403_v48  ;;  %12071 = vpow2.f32 %v4438_v42  ;;  %v4381_v2 = vpop.xlane.xlu1 %4380 }
 0x3d8   : > { %v14081_v45 = vpop.eup %12065  ;;  %v4408_v21 = vsub.f32 %v13904_v20, %v4381_v2  ;;  %v14129_v20 = vsel %vm13974_vm15, %v14049_v1, -1e+30  ;;  %vm17044_vm15 = vmmov %vm17008_vm0 }
 0x3d9   : > { %4454 = vadd.xlane.f32.xlu0 %v14072_v14  ;;  %v4450_v43 = vmul.f32 1.442695, %v4419_v49 }
 0x3da   : > { %v4399_v4 = vpop.xlane.xlu0 %4398  ;;  %v4428_v22 = vmul.f32 1.442695, %v4408_v21 }
 0x3db   : > { %v4417_v18 = vsub.f32 %v13995_v58, %v4399_v4  ;;  %12073 = vpow2.f32 %v4450_v43  ;;  %v14089_v58 = vsel %vm13886_vm7, %v14019_v44, -1e+30  ;;  %v4393_v44 = vpop.xlane.xlu1 %4392 }
 0x3dc   : > { %4842 = vmax.xlane.f32.xlu1 %v14079_v23  ;;  %v14091_v51 = vpop.eup %12067  ;;  %v4414_v42 = vsub.f32 %v13926_v50, %v4393_v44 }
 0x3dd   : > { %4466 = vadd.xlane.f32.xlu0 %v14081_v45  ;;  %v4446_v63 = vmul.f32 1.442695, %v4417_v18 }
 0x3de   : > { %v4440_v19 = vmul.f32 1.442695, %v4414_v42 }
 0x3df   : > { %12075 = vpow2.f32 %v4446_v63  ;;  %v4389_v15 = vpop.xlane.xlu1 %4388 }
 0x3e0   : > { %4838 = vmax.xlane.f32.xlu1 %v14089_v58  ;;  %v14101_v17 = vpop.eup %12069  ;;  %12077 = vpow2.f32 %v4424_v7  ;;  %v4412_v4 = vsub.f32 %v13948_v40, %v4389_v15 }
 0x3e1   : > { %4462 = vadd.xlane.f32.xlu0 %v14091_v51  ;;  %12079 = vpow2.f32 %v4420_v61 }
 0x3e2   : > { %12081 = vpow2.f32 %v4432_v28  ;;  %v4436_v50 = vmul.f32 1.442695, %v4412_v4 }
 0x3e3   : > { %v4401_v62 = vpop.xlane.xlu1 %4400  ;;  %12083 = vpow2.f32 %v4428_v22 }
 0x3e4   : > { %4850 = vmax.xlane.f32.xlu1 %v14099_v12  ;;  %v14111_v29 = vpop.eup %12071  ;;  %12085 = vpow2.f32 %v4440_v19  ;;  %v4418_v1 = vsub.f32 %v13970_v3, %v4401_v62 }
 0x3e5   : > { %4474 = vadd.xlane.f32.xlu0 %v14101_v17  ;;  %12087 = vpow2.f32 %v4436_v50 }
 0x3e6   : > { %v4448_v2 = vmul.f32 1.442695, %v4418_v1 }
 0x3e7   : > { %v4397_v27 = vpop.xlane.xlu1 %4396 }
 0x3e8   : > { %4846 = vmax.xlane.f32.xlu1 %v14109_v41  ;;  %v14121_v48 = vpop.eup %12073  ;;  %v4416_v63 = vsub.f32 %v13990_v60, %v4397_v27  ;;  %12089 = vpow2.f32 %v4448_v2 }
 0x3e9   : > { %4470 = vadd.xlane.f32.xlu0 %v14111_v29 }
 0x3ea   : > { %v4444_v40 = vmul.f32 1.442695, %v4416_v63 }
 0x3ec   : > { %4858 = vmax.xlane.f32.xlu1 %v14119_v38  ;;  %v14131_v49 = vpop.eup %12075  ;;  %12091 = vpow2.f32 %v4444_v40 }
 0x3ed   : > { %4482 = vadd.xlane.f32.xlu0 %v14121_v48  ;;  %v14136_v43 = vpop.eup %12077 }
 0x3ee   : > { %v14140_v18 = vpop.eup %12079 }
 0x3ef   : > { %v14144_v7 = vpop.eup %12081 }
 0x3f0   : > { %4854 = vmax.xlane.f32.xlu1 %v14129_v20  ;;  %v14147_v31 = vpop.eup %12083 }
 0x3f1   : > { %4478 = vadd.xlane.f32.xlu0 %v14131_v49  ;;  %v14150_v3 = vpop.eup %12085 }
 0x3f2   : > { %v14153_v44 = vpop.eup %12087 }
 0x3f4   : > { %4456 = vadd.xlane.f32.xlu1 %v14136_v43 }
 0x3f5   : > { %v14156_v60 = vpop.eup %12089 }
 0x3f8   : > { %4452 = vadd.xlane.f32.xlu1 %v14140_v18 }
 0x3f9   : > { %v14159_v61 = vpop.eup %12091 }
 0x3fc   : > { %4464 = vadd.xlane.f32.xlu1 %v14144_v7 }
 0x400   : > { %4460 = vadd.xlane.f32.xlu1 %v14147_v31 }
 0x404   : > { %4472 = vadd.xlane.f32.xlu1 %v14150_v3 }
 0x408   : > { %4468 = vadd.xlane.f32.xlu1 %v14153_v44 }
 0x40c   : > { %4480 = vadd.xlane.f32.xlu1 %v14156_v60 }
 0x410   : > { %4476 = vadd.xlane.f32.xlu1 %v14159_v61 }
 0x421   : > { %4998 = vrot.lane.b32.xlu1 %v13665_v36, %s12763_s21 }
 0x425   : > { %4996 = vrot.lane.b32.xlu1 %v13678_v56, %s12763_s21 }
 0x429   : > { %4994 = vrot.lane.b32.xlu1 %v13687_v54, %s12763_s21 }
 0x42c   : > { %v4835_v55 = vpop.xlane.xlu1 %4834 }
 0x42d   : > { %v4864_v28 = vsub.f32 %v14000_v39, %v4835_v55  ;;  %4992 = vrot.lane.b32.xlu1 %v13571_v47, %s12763_s21 }
 0x42f   : > { %v4882_v21 = vmul.f32 1.442695, %v4864_v28 }
 0x430   : > { %v4831_v15 = vpop.xlane.xlu1 %4830  ;;  %v4837_v22 = vpop.xlane.xlu0 %4836 }
 0x431   : > { %12093 = vpow2.f32 %v4882_v21  ;;  %v4862_v42 = vsub.f32 %v14005_v53, %v4831_v15  ;;  %v4865_v36 = vsub.f32 %v14009_v5, %v4837_v22  ;;  %4990 = vrot.lane.b32.xlu1 %v13557_v35, %s12763_s21 }
 0x433   : > { %v4878_v56 = vmul.f32 1.442695, %v4862_v42  ;;  %v4884_v54 = vmul.f32 1.442695, %v4865_v36 }
 0x434   : > { %v4833_v62 = vpop.xlane.xlu0 %4832  ;;  %v14192_v63 = vpop.permute.xlu1 %5002 }
 0x435   : > { %12095 = vpow2.f32 %v4878_v56  ;;  %v4863_v39 = vsub.f32 %v14017_v6, %v4833_v62 }
 0x436   : > { %12097 = vpow2.f32 %v4884_v54 }
 0x437   : > { %v4880_v47 = vmul.f32 1.442695, %v4863_v39 }
 0x438   : > { %v4845_v19 = vpop.xlane.xlu0 %4844 }
 0x439   : > { %12099 = vpow2.f32 %v4880_v47  ;;  %v4869_v62 = vsub.f32 %v14024_v8, %v4845_v19 }
 0x43c   : > { %v4841_v4 = vpop.xlane.xlu0 %4840 }
 0x43d   : > { %v4867_v53 = vsub.f32 %v14031_v52, %v4841_v4 }
 0x43e   : > { %v14176_v50 = vpop.eup %12093 }
 0x43f   : > { %4914 = vadd.xlane.f32.xlu0 %v14176_v50  ;;  %v4888_v35 = vmul.f32 1.442695, %v4867_v53 }
 0x440   : > { %v4853_v2 = vpop.xlane.xlu0 %4852 }
 0x441   : > { %12101 = vpow2.f32 %v4888_v35  ;;  %v4873_v53 = vsub.f32 %v14038_v57, %v4853_v2 }
 0x442   : > { %v14180_v5 = vpop.eup %12095 }
 0x443   : > { %4910 = vadd.xlane.f32.xlu0 %v14180_v5  ;;  %v14183_v1 = vpop.eup %12097 }
 0x444   : > { %v4849_v52 = vpop.xlane.xlu0 %4848 }
 0x445   : > { %v4871_v35 = vsub.f32 %v14047_v30, %v4849_v52 }
 0x446   : > { %v14186_v6 = vpop.eup %12099 }
 0x447   : > { %4916 = vadd.xlane.f32.xlu0 %v14183_v1  ;;  %v4896_v19 = vmul.f32 1.442695, %v4871_v35 }
 0x448   : > { %v4861_v40 = vpop.xlane.xlu0 %4860 }
 0x449   : > { %v4877_v30 = vsub.f32 %v14054_v16, %v4861_v40 }
 0x44b   : > { %4912 = vadd.xlane.f32.xlu0 %v14186_v6 }
 0x44c   : > { %v4857_v28 = vpop.xlane.xlu0 %4856 }
 0x44e   : > { %v14189_v27 = vpop.eup %12101 }
 0x455   : > { %4920 = vadd.xlane.f32.xlu1 %v14189_v27 }
 0x45e   : > { %v4459_v22 = vpop.xlane.xlu0 %4458 }
 0x461   : > { %5000 = vrot.lane.b32.xlu0 %v13652_v37, %s12763_s21 }
 0x462   : > { %v4455_v54 = vpop.xlane.xlu0 %4454 }
 0x465   : > { %v4843_v55 = vpop.xlane.xlu1 %4842 }
 0x466   : > { %v4868_v42 = vsub.f32 %v14079_v23, %v4843_v55  ;;  %v4467_v8 = vpop.xlane.xlu0 %4466 }
 0x468   : > { %v4890_v39 = vmul.f32 1.442695, %v4868_v42 }
 0x469   : > { %v4839_v21 = vpop.xlane.xlu1 %4838 }
 0x46a   : > { %v4866_v15 = vsub.f32 %v14089_v58, %v4839_v21  ;;  %v4892_v21 = vmul.f32 1.442695, %v4869_v62 }
 0x46c   : > { %v4886_v56 = vmul.f32 1.442695, %v4866_v15  ;;  %v4900_v15 = vmul.f32 1.442695, %v4873_v53 }
 0x46d   : > { %v4851_v36 = vpop.xlane.xlu1 %4850 }
 0x46e   : > { %12103 = vpow2.f32 %v4886_v56  ;;  %v4872_v4 = vsub.f32 %v14099_v12, %v4851_v36  ;;  %v4875_v36 = vsub.f32 %v14059_v32, %v4857_v28 }
 0x46f   : > { %12105 = vpow2.f32 %v4890_v39 }
 0x470   : > { %v4898_v55 = vmul.f32 1.442695, %v4872_v4 }
 0x471   : > { %v4847_v47 = vpop.xlane.xlu1 %4846 }
 0x472   : > { %v4870_v37 = vsub.f32 %v14109_v41, %v4847_v47  ;;  %v4463_v41 = vpop.xlane.xlu0 %4462  ;;  %v4904_v47 = vmul.f32 1.442695, %v4875_v36 }
 0x474   : > { %v4894_v58 = vmul.f32 1.442695, %v4870_v37 }
 0x475   : > { %v4859_v23 = vpop.xlane.xlu1 %4858 }
 0x476   : > { %12107 = vpow2.f32 %v4894_v58  ;;  %v4876_v42 = vsub.f32 %v14119_v38, %v4859_v23  ;;  %v4908_v38 = vmul.f32 1.442695, %v4877_v30  ;;  %v4475_v40 = vpop.xlane.xlu0 %4474 }
 0x477   : > { %12109 = vpow2.f32 %v4892_v21 }
 0x478   : > { %12111 = vpow2.f32 %v4898_v55  ;;  %v4906_v2 = vmul.f32 1.442695, %v4876_v42 }
 0x479   : > { %v4855_v56 = vpop.xlane.xlu1 %4854  ;;  %12113 = vpow2.f32 %v4900_v15 }
 0x47a   : > { %v4874_v12 = vsub.f32 %v14129_v20, %v4855_v56  ;;  %12115 = vpow2.f32 %v4896_v19  ;;  %v4471_v37 = vpop.xlane.xlu0 %4470 }
 0x47b   : > { %12117 = vrcp.f32 %v4459_v22  ;;  %v14207_v62 = vpop.eup %12103 }
 0x47c   : > { %v4902_v57 = vmul.f32 1.442695, %v4874_v12  ;;  %v14210_v39 = vpop.eup %12105 }
 0x47d   : > { %v4457_v52 = vpop.xlane.xlu1 %4456 }
 0x47e   : > { %12119 = vpow2.f32 %v4902_v57  ;;  %v4483_v42 = vpop.xlane.xlu0 %4482 }
 0x47f   : > { %12121 = vrcp.f32 %v4457_v52 }
 0x480   : > { %12123 = vrcp.f32 %v4455_v54  ;;  %4918 = vadd.xlane.f32.xlu0 %v14207_v62 }
 0x481   : > { %12125 = vpow2.f32 %v4906_v2  ;;  %v4453_v20 = vpop.xlane.xlu1 %4452 }
 0x482   : > { %12127 = vrcp.f32 %v4453_v20  ;;  %v4479_v20 = vpop.xlane.xlu0 %4478 }
 0x483   : > { %v14212_v16 = vpop.eup %12107  ;;  %12129 = vpow2.f32 %v4908_v38 }
 0x484   : > { %4922 = vadd.xlane.f32.xlu0 %v14210_v39  ;;  %4926 = vadd.xlane.f32.xlu1 %v14212_v16  ;;  %v14216_v28 = vpop.eup %12109  ;;  %12131 = vpow2.f32 %v4904_v47 }
 0x485   : > { %v4465_v32 = vpop.xlane.xlu1 %4464  ;;  %v14218_v22 = vpop.eup %12111 }
 0x486   : > { %12133 = vrcp.f32 %v4465_v32  ;;  %v14220_v54 = vpop.eup %12113 }
 0x487   : > { %12135 = vrcp.f32 %v4463_v41  ;;  %v14224_v4 = vpop.eup %12115 }
 0x488   : > { %4924 = vadd.xlane.f32.xlu0 %v14216_v28  ;;  %4930 = vadd.xlane.f32.xlu1 %v14218_v22  ;;  %12137 = vrcp.f32 %v4467_v8  ;;  %v12118_v35 = vpop.eup %12117 }
 0x489   : > { %v4461_v53 = vpop.xlane.xlu1 %4460  ;;  %v4503_v57 = vmul.f32 %v12118_v35, %v14068_v24  ;;  %v17003_v35 = vld [vmem:[#allocation53_spill] sm:$0xff] }
 0x48a   : > { %12139 = vrcp.f32 %v4461_v53 }
 0x48b   : > { %v14226_v58 = vpop.eup %12119 }
 0x48c   : > { %v12122_v21 = vpop.eup %12121  ;;  %4934 = vadd.xlane.f32.xlu1 %v14226_v58  ;;  %4928 = vadd.xlane.f32.xlu0 %v14224_v4 }
 0x48d   : > { %v12124_v23 = vpop.eup %12123  ;;  %v4473_v55 = vpop.xlane.xlu1 %4472  ;;  %v4502_v56 = vmul.f32 %v12122_v21, %v14136_v43  ;;  %v17004_v21 = vld [vmem:[#allocation55_spill] sm:$0xff] }
 0x48e   : > { %v14230_v15 = vpop.eup %12125  ;;  %12141 = vrcp.f32 %v4473_v55  ;;  %v4501_v12 = vmul.f32 %v12124_v23, %v14072_v14  ;;  %v3335_v23 = vadd.f32 %v17004_v21, %v17003_v35 }
 0x48f   : > { %v12128_v19 = vpop.eup %12127  ;;  %12143 = vrcp.f32 %v4471_v37  ;;  %v4517_v43 = vpack.c.bf16 %v4503_v57, %v4502_v56 }
 0x490   : > { %4938 = vadd.xlane.f32.xlu1 %v14230_v15  ;;  %4932 = vadd.xlane.f32.xlu0 %v14220_v54  ;;  %v4500_v8 = vmul.f32 %v12128_v19, %v14140_v18  ;;  %12145 = vrcp.f32 %v4475_v40  ;;  %v14238_v41 = vpop.eup %12129 }
 0x491   : > { %v4469_v30 = vpop.xlane.xlu1 %4468  ;;  %v14240_v52 = vpop.eup %12131 }
 0x492   : > { %12147 = vrcp.f32 %v4469_v30  ;;  %v4516_v2 = vpack.c.bf16 %v4501_v12, %v4500_v8  ;;  %v17005_v8 = vld [vmem:[#allocation52_spill] sm:$0xff] }
 0x493   : > { %v12134_v36 = vpop.eup %12133 }
 0x494   : > { %4936 = vadd.xlane.f32.xlu0 %v14240_v52  ;;  %10487 = vmatprep.mubr.bf16.mxu1 %v4516_v2  ;;  %v12136_v38 = vpop.eup %12135  ;;  %v4506_v47 = vmul.f32 %v12134_v36, %v14144_v7 }
 0x495   : > { %v4481_v18 = vpop.xlane.xlu1 %4480  ;;  %10488 = vmatmul.mubr.bf16.vlgmr.msra.gmra.mxu1 %v4517_v43  ;;  %v12138_v14 = vpop.eup %12137  ;;  %v4505_v32 = vmul.f32 %v12136_v38, %v14091_v51  ;;  %v14254_v51 = vpack.c.bf16 %v3335_v23, %v17005_v8 }
 0x496   : > { %10536 = vmatpush3.bf16.msra.mxu1 %v13825_v11  ;;  %12149 = vrcp.f32 %v4481_v18  ;;  %v4507_v53 = vmul.f32 %v12138_v14, %v14081_v45 }
 0x497   : > { %v12140_v24 = vpop.eup %12139  ;;  %10537 = vmatprep.subr.bf16.mxu1 %v14192_v63  ;;  %12151 = vrcp.f32 %v4479_v20 }
 0x498   : > { %4940 = vadd.xlane.f32.xlu0 %v14238_v41  ;;  %v4504_v40 = vmul.f32 %v12140_v24, %v14147_v31  ;;  %12153 = vrcp.f32 %v4483_v42  ;;  %v4519_v55 = vpack.c.bf16 %v4507_v53, %v4506_v47 }
 0x499   : > { %v4477_v37 = vpop.xlane.xlu1 %4476 }
 0x49a   : > { %12155 = vrcp.f32 %v4477_v37  ;;  %10538 = vmatpush3.bf16.msra.mxu1 %v14192_v63  ;;  %v4518_v11 = vpack.c.bf16 %v4505_v32, %v4504_v40 }
 0x49b   : > { %v12142_v7 = vpop.eup %12141 }
 0x49c   : > { %10491 = vmatprep.mubr.bf16.mxu1 %v4518_v11  ;;  %v12144_v19 = vpop.eup %12143  ;;  %v4510_v42 = vmul.f32 %v12142_v7, %v14150_v3 }
 0x49d   : > { %10492 = vmatmul.mubr.bf16.gmra.mxu1 %v4519_v55  ;;  %v12146_v56 = vpop.eup %12145  ;;  %v4509_v63 = vmul.f32 %v12144_v19, %v14111_v29  ;;  %v4999_v40 = vpop.permute.xlu1 %4998 }
 0x49e   : > { %v4511_v12 = vmul.f32 %v12146_v56, %v14101_v17  ;;  %v17006_v56 = vld [vmem:[#allocation50_spill] sm:$0xff] }
 0x49f   : > { %v12148_v31 = vpop.eup %12147 }
 0x4a0   : > { %v4508_v45 = vmul.f32 %v12148_v31, %v14153_v44  ;;  %v4521_v30 = vpack.c.bf16 %v4511_v12, %v4510_v42  ;;  %v17007_v31 = vld [vmem:[#allocation51_spill] sm:$0xff]  ;;  %v17013_v12 = vld [vmem:[#allocation48_spill] sm:$0xff] }
 0x4a1   : > { %5567 = vrot.lane.b32.xlu1 %v14254_v51, %s12763_s21  ;;  %v4997_v37 = vpop.permute.xlu1 %4996  ;;  %v3325_v8 = vadd.f32 %v17007_v31, %v17006_v56 }
 0x4a2   : > { %v4520_v57 = vpack.c.bf16 %v4509_v63, %v4508_v45  ;;  %v5157_v63 = vsel %vm17010_vm14, %v14254_v51, 0  ;;  %vm17020_vm14 = vmmov %vm17008_vm0 }
 0x4a3   : > { %v12150_v2 = vpop.eup %12149 }
 0x4a4   : > { %10495 = vmatprep.mubr.bf16.mxu1 %v4520_v57  ;;  %v12152_v43 = vpop.eup %12151  ;;  %v4514_v20 = vmul.f32 %v12150_v2, %v14156_v60 }
 0x4a5   : > { %10496 = vmatmul.mubr.bf16.gmra.mxu1 %v4521_v30  ;;  %v12154_v36 = vpop.eup %12153  ;;  %v4513_v44 = vmul.f32 %v12152_v43, %v14131_v49  ;;  %v4995_v49 = vpop.permute.xlu1 %4994  ;;  %v17016_v43 = vld [vmem:[#allocation44_spill] sm:$0xff] }
 0x4a6   : > { %v4515_v29 = vmul.f32 %v12154_v36, %v14121_v48  ;;  %v17017_v36 = vld [vmem:[#allocation45_spill] sm:$0xff] }
 0x4a7   : > { %v12156_v38 = vpop.eup %12155 }
 0x4a8   : > { %v4512_v3 = vmul.f32 %v12156_v38, %v14159_v61  ;;  %v4523_v14 = vpack.c.bf16 %v4515_v29, %v4514_v20  ;;  %v17018_v38 = vld [vmem:[#allocation43_spill] sm:$0xff] }
 0x4a9   : > { %v4993_v35 = vpop.permute.xlu1 %4992 }
 0x4aa   : > { %v4522_v18 = vpack.c.bf16 %v4513_v44, %v4512_v3 }
 0x4ac   : > { %10499 = vmatprep.mubr.bf16.mxu1 %v4522_v18 }
 0x4ad   : > { %10500 = vmatmul.mubr.bf16.gmra.mxu1 %v4523_v14  ;;  %v4991_v7 = vpop.permute.xlu1 %4990  ;;  %v17021_v14 = vld [vmem:[#allocation42_spill] sm:$0xff] }
 0x4c8   : > { %v4915_v17 = vpop.xlane.xlu0 %4914 }
 0x4cc   : > { %v4911_v24 = vpop.xlane.xlu0 %4910 }
 0x4cd   : > { %12157 = vrcp.f32 %v4911_v24 }
 0x4d0   : > { %v4917_v47 = vpop.xlane.xlu0 %4916 }
 0x4d4   : > { %v4913_v32 = vpop.xlane.xlu0 %4912 }
 0x4d5   : > { %12159 = vrcp.f32 %v4913_v32 }
 0x4d6   : > { %12161 = vrcp.f32 %v4917_v47 }
 0x4d7   : > { %12163 = vrcp.f32 %v4915_v17 }
 0x4d8   : > { %v5001_v53 = vpop.permute.xlu0 %5000 }
 0x4d9   : > { %10539 = vmatprep.subr.bf16.mxu1 %v5001_v53 }
 0x4da   : > { %10540 = vmatpush3.bf16.msra.mxu1 %v5001_v53  ;;  %v12158_v48 = vpop.eup %12157 }
 0x4db   : > { %10541 = vmatprep.subr.bf16.mxu1 %v4999_v40  ;;  %v4958_v61 = vmul.f32 %v12158_v48, %v14180_v5 }
 0x4de   : > { %10542 = vmatpush3.bf16.msra.mxu1 %v4999_v40  ;;  %v4921_v44 = vpop.xlane.xlu1 %4920 }
 0x4df   : > { %10543 = vmatprep.subr.bf16.mxu1 %v4997_v37  ;;  %12165 = vrcp.f32 %v4921_v44 }
 0x4e2   : > { %v12160_v60 = vpop.eup %12159  ;;  %10544 = vmatpush3.bf16.msra.mxu1 %v4997_v37  ;;  %v17024_v37 = vld [vmem:[#allocation41_spill] sm:$0xff] }
 0x4e3   : > { %10545 = vmatprep.subr.bf16.mxu1 %v4995_v49  ;;  %v4959_v11 = vmul.f32 %v12160_v60, %v14186_v6  ;;  %v12162_v23 = vpop.eup %12161  ;;  %v17009_v6 = vld [vmem:[#allocation49_spill] sm:$0xff] }
 0x4e4   : > { %v12164_v55 = vpop.eup %12163  ;;  %v4961_v19 = vmul.f32 %v12162_v23, %v14183_v1  ;;  %v14275_v45 = vpack.c.bf16 %v3325_v8, %v17009_v6  ;;  %v17012_v1 = vld [vmem:[#allocation47_spill] sm:$0xff]  ;;  %v5142_v23 = vsel %vm17008_vm0, %v17024_v37, 0 }
 0x4e5   : > { %v4974_v21 = vpack.c.bf16 %v4959_v11, %v4958_v61  ;;  %v4960_v42 = vmul.f32 %v12164_v55, %v14176_v50  ;;  %v3315_v57 = vadd.f32 %v17013_v12, %v17012_v1  ;;  %v17014_v50 = vld [vmem:[#allocation46_spill] sm:$0xff] }
 0x4e6   : > { %10546 = vmatpush3.bf16.msra.mxu1 %v4995_v49  ;;  %v5154_v2 = vsel %vm17008_vm0, %v14275_v45, 0 }
 0x4e7   : > { %10547 = vmatprep.subr.bf16.mxu1 %v4993_v35  ;;  %10551 = vmatprep.mubr.bf16.mxu1 %v4974_v21  ;;  %v4975_v5 = vpack.c.bf16 %v4961_v19, %v4960_v42  ;;  %v14284_v30 = vpack.c.bf16 %v3315_v57, %v17014_v50 }
 0x4ea   : > { %10548 = vmatpush3.bf16.msra.mxu1 %v4993_v35 }
 0x4eb   : > { %10549 = vmatprep.subr.bf16.mxu1 %v4991_v7 }
 0x4ec   : > { %v12166_v53 = vpop.eup %12165 }
 0x4ed   : > { %v4963_v11 = vmul.f32 %v12166_v53, %v14189_v27  ;;  %v17045_v53 = vld [vmem:[#allocation22_spill] sm:$0xff] }
 0x4ee   : > { %10550 = vmatpush3.bf16.msra.mxu1 %v4991_v7  ;;  %v17026_v7 = vld [vmem:[#allocation40_spill] sm:$0xff] }
 0x4ef   : > { %10999 = vmatprep.subr.msk.bf16.mxu1 %vm17008_vm0, %v14254_v51  ;;  %v3305_v51 = vadd.f32 %v17017_v36, %v17016_v43 }
 0x4f1   : > { %10552 = vmatmul.mubr.bf16.vlgmr.msra.gmra.mxu1 %v4975_v5  ;;  %v14293_v20 = vpack.c.bf16 %v3305_v51, %v17018_v38 }
 0x4f2   : > { %10568 = vmatpush3.bf16.xpose.msra.mxu1 %v5157_v63  ;;  %v17030_v63 = vld [vmem:[#allocation39_spill] sm:$0xff] }
 0x4f3   : > { %11000 = vmatprep.subr.msk.bf16.mxu1 %vm17011_vm12, %v14275_v45  ;;  %vm17019_vm12 = vmmov %vm17008_vm0  ;;  %v5148_v18 = vsel %vm17008_vm0, %v14293_v20, 0 }
 0x4f4   : > { %v5151_v3 = vsel %vm17019_vm12, %v14284_v30, 0  ;;  %vm17023_vm12 = vmmov %vm17008_vm0 }
 0x4f5   : > { %v5145_v32 = vsel %vm17023_vm12, %v17021_v14, 0  ;;  %vm17028_vm12 = vmmov %vm17008_vm0 }
 0x4fa   : > { %10570 = vmatpush3.bf16.xpose.msra.mxu1 %v5154_v2 }
 0x4fb   : > { %11001 = vmatprep.subr.msk.bf16.mxu1 %vm17015_vm10, %v14284_v30  ;;  %vm17022_vm10 = vmmov %vm17008_vm0 }
 0x502   : > { %10572 = vmatpush3.bf16.xpose.msra.mxu1 %v5151_v3 }
 0x503   : > { %11002 = vmatprep.subr.msk.bf16.mxu1 %vm17020_vm14, %v14293_v20  ;;  %vm17025_vm14 = vmmov %vm17008_vm0 }
 0x509   : > { %v4919_v29 = vpop.xlane.xlu0 %4918 }
 0x50a   : > { %12167 = vrcp.f32 %v4919_v29  ;;  %10574 = vmatpush3.bf16.xpose.msra.mxu1 %v5148_v18 }
 0x50b   : > { %11003 = vmatprep.subr.msk.bf16.mxu1 %vm17022_vm10, %v17021_v14  ;;  %vm17027_vm10 = vmmov %vm17008_vm0 }
 0x50d   : > { %v4927_v17 = vpop.xlane.xlu1 %4926  ;;  %v4923_v24 = vpop.xlane.xlu0 %4922 }
 0x50e   : > { %12169 = vrcp.f32 %v4923_v24 }
 0x511   : > { %v4931_v47 = vpop.xlane.xlu1 %4930  ;;  %v4925_v40 = vpop.xlane.xlu0 %4924 }
 0x512   : > { %10576 = vmatpush3.bf16.xpose.msra.mxu1 %v5145_v32  ;;  %12171 = vrcp.f32 %v4925_v40  ;;  %v17039_v32 = vld [vmem:[#allocation19_spill] sm:$0xff] }
 0x513   : > { %11004 = vmatprep.subr.msk.bf16.mxu1 %vm17025_vm14, %v17024_v37  ;;  %12173 = vrcp.f32 %v4927_v17  ;;  %vm17029_vm14 = vmmov %vm17008_vm0 }
 0x514   : > { %v5139_v8 = vsel %vm17029_vm14, %v17026_v7, 0  ;;  %vm17035_vm14 = vmmov %vm17008_vm0 }
 0x515   : > { %v4935_v49 = vpop.xlane.xlu1 %4934  ;;  %v4929_v48 = vpop.xlane.xlu0 %4928 }
 0x516   : > { %12175 = vrcp.f32 %v4929_v48 }
 0x517   : > { %v12168_v60 = vpop.eup %12167  ;;  %12177 = vrcp.f32 %v4931_v47 }
 0x518   : > { %v4962_v61 = vmul.f32 %v12168_v60, %v14207_v62 }
 0x519   : > { %v4939_v35 = vpop.xlane.xlu1 %4938  ;;  %v4933_v21 = vpop.xlane.xlu0 %4932 }
 0x51a   : > { %10578 = vmatpush3.bf16.xpose.msra.mxu1 %v5142_v23  ;;  %v4976_v55 = vpack.c.bf16 %v4963_v11, %v4962_v61  ;;  %12179 = vrcp.f32 %v4933_v21 }
 0x51b   : > { %11005 = vmatprep.subr.msk.bf16.mxu1 %vm17027_vm10, %v17026_v7  ;;  %12181 = vrcp.f32 %v4935_v49  ;;  %v12170_v62 = vpop.eup %12169  ;;  %vm17031_vm10 = vmmov %vm17008_vm0  ;;  %v14349_v49 = vpop.f32.mrf.mxu1 }
 0x51c   : > { %10555 = vmatprep.mubr.bf16.mxu1 %v4976_v55  ;;  %v4964_v42 = vmul.f32 %v12170_v62, %v14210_v39  ;;  %v5136_v39 = vsel %vm17031_vm10, %v17030_v63, 0  ;;  %vm17038_vm10 = vmmov %vm17008_vm0 }
 0x51d   : > { %v4937_v19 = vpop.xlane.xlu0 %4936  ;;  %v14313_v56 = vpop.permute.xlu1 %5567 }
 0x51e   : > { %12183 = vrcp.f32 %v4937_v19  ;;  %11007 = vmatprep.subr.msk.bf16.mxu0 %vm17028_vm12, %v14313_v56  ;;  %vm17033_vm12 = vmmov %vm17008_vm0 }
 0x51f   : > { %v12172_v27 = vpop.eup %12171  ;;  %12185 = vrcp.f32 %v4939_v35 }
 0x520   : > { %v4965_v5 = vmul.f32 %v12172_v27, %v14216_v28  ;;  %v12174_v6 = vpop.eup %12173 }
 0x521   : > { %v4941_v31 = vpop.xlane.xlu0 %4940  ;;  %v4966_v57 = vmul.f32 %v12174_v6, %v14212_v16 }
 0x522   : > { %12187 = vrcp.f32 %v4941_v31  ;;  %10580 = vmatpush3.bf16.xpose.msra.mxu1 %v5139_v8  ;;  %v4977_v1 = vpack.c.bf16 %v4965_v5, %v4964_v42 }
 0x523   : > { %11006 = vmatprep.subr.msk.bf16.mxu1 %vm17008_vm0, %v17030_v63  ;;  %v12176_v12 = vpop.eup %12175 }
 0x524   : > { %10556 = vmatmul.mubr.bf16.gmra.mxu1 %v4977_v1  ;;  %v4967_v50 = vmul.f32 %v12176_v12, %v14224_v4  ;;  %v12178_v2 = vpop.eup %12177 }
 0x525   : > { %v4968_v28 = vmul.f32 %v12178_v2, %v14218_v22  ;;  %v17032_v22 = vld [vmem:[#allocation15_spill] sm:$0xff] }
 0x526   : > { %v4978_v43 = vpack.c.bf16 %v4967_v50, %v4966_v57 }
 0x527   : > { %v12180_v36 = vpop.eup %12179 }
 0x528   : > { %v12182_v51 = vpop.eup %12181  ;;  %10559 = vmatprep.mubr.bf16.mxu1 %v4978_v43  ;;  %v4969_v38 = vmul.f32 %v12180_v36, %v14220_v54  ;;  %v17034_v54 = vld [vmem:[#allocation16_spill] sm:$0xff] }
 0x529   : > { %v4970_v29 = vmul.f32 %v12182_v51, %v14226_v58  ;;  %v17036_v58 = vld [vmem:[#allocation17_spill] sm:$0xff] }
 0x52a   : > { %10582 = vmatpush3.bf16.xpose.msra.mxu1 %v5136_v39  ;;  %v4979_v44 = vpack.c.bf16 %v4969_v38, %v4968_v28 }
 0x52b   : > { %v12184_v3 = vpop.eup %12183 }
 0x52c   : > { %v4971_v16 = vmul.f32 %v12184_v3, %v14240_v52  ;;  %v12186_v4 = vpop.eup %12185  ;;  %10560 = vmatmul.mubr.bf16.gmra.mxu1 %v4979_v44  ;;  %v17037_v52 = vld [vmem:[#allocation18_spill] sm:$0xff] }
 0x52d   : > { %v4972_v24 = vmul.f32 %v12186_v4, %v14230_v15  ;;  %v17041_v15 = vld [vmem:[#allocation20_spill] sm:$0xff] }
 0x52e   : > { %v4980_v18 = vpack.c.bf16 %v4971_v16, %v4970_v29 }
 0x52f   : > { %v12188_v17 = vpop.eup %12187 }
 0x530   : > { %10563 = vmatprep.mubr.bf16.mxu1 %v4980_v18  ;;  %v4973_v47 = vmul.f32 %v12188_v17, %v14238_v41  ;;  %v17043_v41 = vld [vmem:[#allocation21_spill] sm:$0xff] }
 0x532   : > { %v4981_v40 = vpack.c.bf16 %v4973_v47, %v4972_v24 }
 0x534   : > { %10564 = vmatmul.mubr.bf16.gmra.mxu1 %v4981_v40 }
 0x535   : > { %10583 = vmatprep.mubr.msk.bf16.mxu1 %vm17033_vm12, %v17032_v22  ;;  %vm17046_vm12 = vmmov %vm17008_vm0 }
 0x53c   : > { %10584 = vmatmul.mubr.msk.bf16.vlgmr.msra.gmra.mxu1 %vm17035_vm14, %v17034_v54 }
 0x53d   : > { %10587 = vmatprep.mubr.msk.bf16.mxu1 %vm17008_vm0, %v17036_v58 }
 0x544   : > { %10588 = vmatmul.mubr.msk.bf16.gmra.mxu1 %vm17038_vm10, %v17037_v52 }
 0x545   : > { %10591 = vmatprep.mubr.msk.bf16.mxu1 %vm17040_vm8, %v17039_v32 }
 0x54c   : > { %10592 = vmatmul.mubr.msk.bf16.gmra.mxu1 %vm17042_vm6, %v17041_v15  ;;  %vm17079_vm6 = vnez %v16998_v33 }
 0x54d   : > { %10595 = vmatprep.mubr.msk.bf16.mxu1 %vm17044_vm15, %v17043_v41 }
 0x554   : > { %10596 = vmatmul.mubr.msk.bf16.gmra.mxu1 %vm17046_vm12, %v17045_v53 }
 0x555   : > { %v14351_v48 = vpop.f32.mrf.mxu1 }
 0x556   : > { %17047 = vst [vmem:[#allocation53_spill] sm:$0xff] %v14351_v48 }
 0x557   : > { %v14353_v60 = vpop.f32.mrf.mxu1 }
 0x558   : > { %17048 = vst [vmem:[#allocation55_spill] sm:$0xff] %v14353_v60  ;;  %v17084_v60 = vld [vmem:[#allocation129_spill] sm:$0xff] }
 0x559   : > { %v14355_v61 = vpop.f32.mrf.mxu1  ;;  %vm17085_vm14 = vnez %v17084_v60 }
 0x55a   : > { %17049 = vst [vmem:[#allocation52_spill] sm:$0xff] %v14355_v61 }
 0x55b   : > { %v14357_v11 = vpop.f32.mrf.mxu1 }
 0x55c   : > { %17050 = vst [vmem:[#allocation50_spill] sm:$0xff] %v14357_v11  ;;  %v17086_v11 = vld [vmem:[#allocation130_spill] sm:$0xff] }
 0x55d   : > { %v14359_v35 = vpop.f32.mrf.mxu1  ;;  %vm17087_vm0 = vnez %v17086_v11 }
 0x55e   : > { %17051 = vst [vmem:[#allocation51_spill] sm:$0xff] %v14359_v35 }
 0x55f   : > { %v14361_v21 = vpop.f32.mrf.mxu1 }
 0x560   : > { %17052 = vst [vmem:[#allocation49_spill] sm:$0xff] %v14361_v21 }
 0x561   : > { %v14363_v23 = vpop.f32.mrf.mxu1 }
 0x562   : > { %17053 = vst [vmem:[#allocation47_spill] sm:$0xff] %v14363_v23 }
 0x563   : > { %v14365_v55 = vpop.f32.mrf.mxu1 }
 0x564   : > { %17054 = vst [vmem:[#allocation48_spill] sm:$0xff] %v14365_v55 }
 0x565   : > { %v14367_v19 = vpop.f32.mrf.mxu1 }
 0x566   : > { %17055 = vst [vmem:[#allocation46_spill] sm:$0xff] %v14367_v19 }
 0x567   : > { %v14369_v62 = vpop.f32.mrf.mxu1 }
 0x568   : > { %17056 = vst [vmem:[#allocation44_spill] sm:$0xff] %v14369_v62 }
 0x569   : > { %v14371_v27 = vpop.f32.mrf.mxu1 }
 0x56a   : > { %17057 = vst [vmem:[#allocation45_spill] sm:$0xff] %v14371_v27 }
 0x56b   : > { %v14373_v31 = vpop.f32.mrf.mxu1 }
 0x56c   : > { %17058 = vst [vmem:[#allocation43_spill] sm:$0xff] %v14373_v31 }
 0x56d   : > { %v14375_v8 = vpop.f32.mrf.mxu1 }
 0x56e   : > { %17059 = vst [vmem:[#allocation42_spill] sm:$0xff] %v14375_v8 }
 0x56f   : > { %v14377_v42 = vpop.f32.mrf.mxu1 }
 0x570   : > { %17060 = vst [vmem:[#allocation41_spill] sm:$0xff] %v14377_v42 }
 0x571   : > { %v14379_v5 = vpop.f32.mrf.mxu1 }
 0x572   : > { %17061 = vst [vmem:[#allocation40_spill] sm:$0xff] %v14379_v5 }
 0x573   : > { %v14381_v6 = vpop.f32.mrf.mxu1 }
 0x574   : > { %17062 = vst [vmem:[#allocation39_spill] sm:$0xff] %v14381_v6 }
 0x5b1   : > { %v14383_v1 = vpop.f32.mrf.mxu1 }
 0x5b2   : > { %17063 = vst [vmem:[#allocation15_spill] sm:$0xff] %v14383_v1 }
 0x5b3   : > { %v14385_v12 = vpop.f32.mrf.mxu1 }
 0x5b4   : > { %17064 = vst [vmem:[#allocation16_spill] sm:$0xff] %v14385_v12 }
 0x5b5   : > { %v14387_v57 = vpop.f32.mrf.mxu1 }
 0x5b6   : > { %17065 = vst [vmem:[#allocation17_spill] sm:$0xff] %v14387_v57 }
 0x5b7   : > { %v14391_v2 = vpop.f32.mrf.mxu1 }
 0x5b8   : > { %17066 = vst [vmem:[#allocation18_spill] sm:$0xff] %v14391_v2 }
 0x5e4   : > { %v14393_v43 = vpop.f32.mrf.mxu1 }
 0x5e5   : > { %17067 = vst [vmem:[#allocation19_spill] sm:$0xff] %v14393_v43 }
 0x5e6   : > { %v14395_v36 = vpop.f32.mrf.mxu1 }
 0x5e7   : > { %17068 = vst [vmem:[#allocation20_spill] sm:$0xff] %v14395_v36 }
 0x5e8   : > { %v14397_v51 = vpop.f32.mrf.mxu1 }
 0x5e9   : > { %17069 = vst [vmem:[#allocation21_spill] sm:$0xff] %v14397_v51 }
 0x5ea   : > { %v14401_v28 = vpop.f32.mrf.mxu1 }
 0x5eb   : > { %17070 = vst [vmem:[#allocation22_spill] sm:$0xff] %v14401_v28 }
 0x5ec   : > { %v14403_v38 = vpop.f32.mrf.mxu1 }
 0x5ed   : > { %17071 = vst [vmem:[#allocation134_spill] sm:$0xff] %v14403_v38 }
 0x5ee   : > { %v14405_v3 = vpop.f32.mrf.mxu1 }
 0x5ef   : > { %17072 = vst [vmem:[#allocation135_spill] sm:$0xff] %v14405_v3 }
 0x5f0   : > { %v14407_v44 = vpop.f32.mrf.mxu1 }
 0x5f1   : > { %17073 = vst [vmem:[#allocation136_spill] sm:$0xff] %v14407_v44 }
 0x5f2   : > { %v14411_v16 = vpop.f32.mrf.mxu1 }
 0x5f3   : > { %17074 = vst [vmem:[#allocation137_spill] sm:$0xff] %v14411_v16 }
 0x5f4   : > { %v14413_v4 = vpop.f32.mrf.mxu1 }
 0x5f5   : > { %17075 = vst [vmem:[#allocation138_spill] sm:$0xff] %v14413_v4 }
 0x5f6   : > { %v14415_v18 = vpop.f32.mrf.mxu1 }
 0x5f7   : > { %17076 = vst [vmem:[#allocation139_spill] sm:$0xff] %v14415_v18 }
 0x5f8   : > { %v14417_v17 = vpop.f32.mrf.mxu1 }
 0x5f9   : > { %17077 = vst [vmem:[#allocation140_spill] sm:$0xff] %v14417_v17 }
 0x5fa   : > { %v14421_v47 = vpop.f32.mrf.mxu1 }
 0x5fb   : > { %17078 = vst [vmem:[#allocation141_spill] sm:$0xff] %v14421_v47 }
 0x5fc   : > { %v10585_v40 = vpop.f32.mrf.mxu1 }
 0x5fd   : > { %v5258_v39 = vsel %vm13821_vm1, %v10585_v40, -1e+30 }
 0x5fe   : > { %5276 = vmax.xlane.f32.xlu1 %v5258_v39  ;;  %v5193_v50 = vpop.f32.mrf.mxu1 }
 0x5ff   : > { %v5256_v8 = vsel %vm13836_vm2, %v5193_v50, -1e+30 }
 0x600   : > { %v10586_v29 = vpop.f32.mrf.mxu1 }
 0x601   : > { %v5259_v5 = vsel %vm13853_vm4, %v10586_v29, -1e+30 }
 0x602   : > { %5272 = vmax.xlane.f32.xlu1 %v5256_v8  ;;  %5278 = vmax.xlane.f32.xlu0 %v5259_v5  ;;  %v5196_v42 = vpop.f32.mrf.mxu1 }
 0x603   : > { %v5257_v24 = vsel %vm13842_vm3, %v5196_v42, -1e+30 }
 0x604   : > { %v10589_v6 = vpop.f32.mrf.mxu1 }
 0x605   : > { %v5262_v19 = vsel %vm13864_vm5, %v10589_v6, -1e+30 }
 0x606   : > { %5274 = vmax.xlane.f32.xlu0 %v5257_v24  ;;  %5284 = vmax.xlane.f32.xlu1 %v5262_v19  ;;  %v5209_v40 = vpop.f32.mrf.mxu1 }
 0x607   : > { %v5260_v50 = vsel %vm13886_vm7, %v5209_v40, -1e+30 }
 0x608   : > { %v10590_v27 = vpop.f32.mrf.mxu1 }
 0x60a   : > { %5280 = vmax.xlane.f32.xlu1 %v5260_v50  ;;  %v5212_v62 = vpop.f32.mrf.mxu1 }
 0x60c   : > { %v10593_v29 = vpop.f32.mrf.mxu1 }
 0x60d   : > { %v14437_v31 = vsel %vm13908_vm9, %v10593_v29, -1e+30 }
 0x60e   : > { %5292 = vmax.xlane.f32.xlu1 %v14437_v31  ;;  %v5225_v42 = vpop.f32.mrf.mxu1 }
 0x60f   : > { %v14442_v6 = vsel %vm13930_vm11, %v5225_v42, -1e+30  ;;  %v17080_v42 = vld [vmem:[#allocation127_spill] sm:$0xff] }
 0x610   : > { %v10594_v35 = vpop.f32.mrf.mxu1  ;;  %vm17081_vm8 = vnez %v17080_v42 }
 0x611   : > { %v5263_v48 = vsel %vm17081_vm8, %v10590_v27, -1e+30 }
 0x612   : > { %5288 = vmax.xlane.f32.xlu1 %v14442_v6  ;;  %v5228_v23 = vpop.f32.mrf.mxu1 }
 0x614   : > { %v10597_v21 = vpop.f32.mrf.mxu1 }
 0x615   : > { %v14447_v40 = vsel %vm13952_vm13, %v10597_v21, -1e+30  ;;  %v17082_v21 = vld [vmem:[#allocation128_spill] sm:$0xff] }
 0x616   : > { %5300 = vmax.xlane.f32.xlu1 %v14447_v40  ;;  %v5241_v29 = vpop.f32.mrf.mxu1  ;;  %vm17083_vm15 = vnez %v17082_v21 }
 0x617   : > { %v14452_v55 = vsel %vm17079_vm6, %v5241_v29, -1e+30  ;;  %v5261_v61 = vsel %vm17083_vm15, %v5212_v62, -1e+30  ;;  %v14465_v29 = vsel %vm17085_vm14, %v10594_v35, -1e+30 }
 0x618   : > { %v10598_v4 = vpop.f32.mrf.mxu1  ;;  %v17090_v62 = vld [vmem:[#allocation133_spill] sm:$0xff] }
 0x619   : > { %vm17091_vm12 = vnez %v17090_v62 }
 0x61a   : > { %5296 = vmax.xlane.f32.xlu1 %v14452_v55  ;;  %v5244_v17 = vpop.f32.mrf.mxu1 }
 0x61b   : > { %v14480_v35 = vsel %vm17091_vm12, %v5244_v17, -1e+30  ;;  %vm17092_vm12 = vcmask 523264  }
 0x61c   : > { %5565 = vrot.lane.b32.xlu0 %v14275_v45, %s12763_s21  ;;  %v14470_v45 = vsel %vm17087_vm0, %v5228_v23, -1e+30  ;;  %vm17093_vm6 = vmmov %vm17092_vm12 }
 0x61d   : > { %vm17095_vm13 = vmmov %vm17093_vm6 }
 0x61e   : > { %vm17096_vm0 = vmmov %vm17093_vm6 }
 0x61f   : > { %vm17097_vm11 = vmmov %vm17096_vm0 }
 0x620   : > { %vm17098_vm14 = vmmov %vm17096_vm0 }
 0x62b   : > { %5563 = vrot.lane.b32.xlu1 %v14284_v30, %s12763_s21  ;;  %v17088_v30 = vld [vmem:[#allocation131_spill] sm:$0xff] }
 0x62c   : > { %vm17089_vm10 = vnez %v17088_v30 }
 0x62d   : > { %v14475_v27 = vsel %vm17089_vm10, %v10598_v4, -1e+30  ;;  %vm17094_vm10 = vmmov %vm17093_vm6 }
 0x63b   : > { %5286 = vmax.xlane.f32.xlu0 %v5263_v48 }
 0x63f   : > { %5282 = vmax.xlane.f32.xlu0 %v5261_v61 }
 0x643   : > { %5294 = vmax.xlane.f32.xlu0 %v14465_v29 }
 0x647   : > { %5290 = vmax.xlane.f32.xlu0 %v14470_v45 }
 0x64b   : > { %5302 = vmax.xlane.f32.xlu0 %v14475_v27 }
 0x64f   : > { %5298 = vmax.xlane.f32.xlu0 %v14480_v35 }
 0x687   : > { %v5277_v47 = vpop.xlane.xlu1 %5276 }
 0x688   : > { %v5306_v18 = vsub.f32 %v5258_v39, %v5277_v47 }
 0x68a   : > { %v5324_v23 = vmul.f32 1.442695, %v5306_v18 }
 0x68b   : > { %v5273_v38 = vpop.xlane.xlu1 %5272  ;;  %v5279_v44 = vpop.xlane.xlu0 %5278 }
 0x68c   : > { %12189 = vpow2.f32 %v5324_v23  ;;  %v5304_v16 = vsub.f32 %v5256_v8, %v5273_v38  ;;  %v5307_v3 = vsub.f32 %v5259_v5, %v5279_v44 }
 0x68e   : > { %v5320_v43 = vmul.f32 1.442695, %v5304_v16  ;;  %v5326_v4 = vmul.f32 1.442695, %v5307_v3 }
 0x68f   : > { %v5275_v51 = vpop.xlane.xlu0 %5274  ;;  %v5285_v28 = vpop.xlane.xlu1 %5284 }
 0x690   : > { %12191 = vpow2.f32 %v5320_v43  ;;  %v5305_v36 = vsub.f32 %v5257_v24, %v5275_v51  ;;  %v5310_v1 = vsub.f32 %v5262_v19, %v5285_v28 }
 0x691   : > { %12193 = vpow2.f32 %v5326_v4 }
 0x692   : > { %v5322_v17 = vmul.f32 1.442695, %v5305_v36  ;;  %v5332_v57 = vmul.f32 1.442695, %v5310_v1 }
 0x693   : > { %v5281_v2 = vpop.xlane.xlu1 %5280 }
 0x694   : > { %12195 = vpow2.f32 %v5322_v17  ;;  %v5308_v12 = vsub.f32 %v5260_v50, %v5281_v2 }
 0x695   : > { %12197 = vpow2.f32 %v5332_v57  ;;  %v14507_v57 = vpop.permute.xlu0 %5565 }
 0x696   : > { %v5328_v39 = vmul.f32 1.442695, %v5308_v12 }
 0x697   : > { %v5293_v51 = vpop.xlane.xlu1 %5292 }
 0x698   : > { %12199 = vpow2.f32 %v5328_v39  ;;  %v5314_v44 = vsub.f32 %v14437_v31, %v5293_v51 }
 0x699   : > { %v14483_v18 = vpop.eup %12189 }
 0x69a   : > { %5356 = vadd.xlane.f32.xlu1 %v14483_v18  ;;  %v5340_v47 = vmul.f32 1.442695, %v5314_v44 }
 0x69d   : > { %v14486_v8 = vpop.eup %12191 }
 0x69e   : > { %v14488_v5 = vpop.eup %12193  ;;  %5352 = vadd.xlane.f32.xlu1 %v14486_v8 }
 0x69f   : > { %5358 = vadd.xlane.f32.xlu0 %v14488_v5 }
 0x6a1   : > { %v14492_v19 = vpop.eup %12195 }
 0x6a2   : > { %v14494_v1 = vpop.eup %12197 }
 0x6a3   : > { %5364 = vadd.xlane.f32.xlu1 %v14494_v1  ;;  %5354 = vadd.xlane.f32.xlu0 %v14492_v19 }
 0x6a5   : > { %v14498_v12 = vpop.eup %12199 }
 0x6a7   : > { %5360 = vadd.xlane.f32.xlu1 %v14498_v12 }
 0x6b8   : > { %5561 = vrot.lane.b32.xlu1 %v14293_v20, %s12763_s21  ;;  %v5289_v20 = vpop.xlane.xlu1 %5288 }
 0x6b9   : > { %5559 = vrot.lane.b32.xlu0 %v17021_v14, %s12763_s21  ;;  %v5312_v14 = vsub.f32 %v14442_v6, %v5289_v20 }
 0x6bb   : > { %v5336_v50 = vmul.f32 1.442695, %v5312_v14 }
 0x6bc   : > { %v5301_v4 = vpop.xlane.xlu1 %5300 }
 0x6bd   : > { %5557 = vrot.lane.b32.xlu0 %v17024_v37, %s12763_s21  ;;  %v5318_v6 = vsub.f32 %v14447_v40, %v5301_v4 }
 0x6c4   : > { %v5287_v2 = vpop.xlane.xlu0 %5286 }
 0x6c5   : > { %v5311_v43 = vsub.f32 %v5263_v48, %v5287_v2 }
 0x6c7   : > { %v5334_v28 = vmul.f32 1.442695, %v5311_v43 }
 0x6c8   : > { %v5283_v36 = vpop.xlane.xlu0 %5282 }
 0x6c9   : > { %v5309_v38 = vsub.f32 %v5261_v61, %v5283_v36  ;;  %12201 = vpow2.f32 %v5334_v28 }
 0x6cb   : > { %v5330_v16 = vmul.f32 1.442695, %v5309_v38 }
 0x6cc   : > { %v5295_v3 = vpop.xlane.xlu0 %5294 }
 0x6cd   : > { %12203 = vpow2.f32 %v5330_v16  ;;  %v5315_v48 = vsub.f32 %v14465_v29, %v5295_v3  ;;  %v5297_v29 = vpop.xlane.xlu1 %5296 }
 0x6ce   : > { %12205 = vpow2.f32 %v5340_v47  ;;  %v5316_v51 = vsub.f32 %v14452_v55, %v5297_v29 }
 0x6cf   : > { %12207 = vpow2.f32 %v5336_v50  ;;  %v5342_v17 = vmul.f32 1.442695, %v5315_v48 }
 0x6d0   : > { %v5291_v24 = vpop.xlane.xlu0 %5290  ;;  %v5344_v28 = vmul.f32 1.442695, %v5316_v51 }
 0x6d1   : > { %v5313_v31 = vsub.f32 %v14470_v45, %v5291_v24  ;;  %v5564_v47 = vpop.permute.xlu1 %5563 }
 0x6d3   : > { %v5338_v43 = vmul.f32 1.442695, %v5313_v31 }
 0x6d4   : > { %v5303_v37 = vpop.xlane.xlu0 %5302 }
 0x6d5   : > { %v5319_v38 = vsub.f32 %v14475_v27, %v5303_v37 }
 0x6d6   : > { %v14514_v39 = vpop.eup %12201 }
 0x6d7   : > { %v5350_v44 = vmul.f32 1.442695, %v5319_v38 }
 0x6d8   : > { %v5299_v23 = vpop.xlane.xlu0 %5298 }
 0x6d9   : > { %v5317_v61 = vsub.f32 %v14480_v35, %v5299_v23  ;;  %v5348_v35 = vmul.f32 1.442695, %v5318_v6 }
 0x6da   : > { %v14518_v36 = vpop.eup %12203 }
 0x6db   : > { %v5346_v2 = vmul.f32 1.442695, %v5317_v61  ;;  %v14522_v45 = vpop.eup %12205 }
 0x6dc   : > { %5366 = vadd.xlane.f32.xlu0 %v14514_v39  ;;  %v14526_v40 = vpop.eup %12207 }
 0x6dd   : > { %12209 = vpow2.f32 %v5346_v2 }
 0x6de   : > { %12211 = vpow2.f32 %v5342_v17 }
 0x6df   : > { %12213 = vpow2.f32 %v5338_v43 }
 0x6e0   : > { %5362 = vadd.xlane.f32.xlu0 %v14518_v36  ;;  %12215 = vpow2.f32 %v5348_v35 }
 0x6e1   : > { %12217 = vpow2.f32 %v5344_v28 }
 0x6e2   : > { %12219 = vpow2.f32 %v5350_v44 }
 0x6e4   : > { %5372 = vadd.xlane.f32.xlu0 %v14522_v45 }
 0x6e8   : > { %5368 = vadd.xlane.f32.xlu0 %v14526_v40 }
 0x6ea   : > { %v14529_v3 = vpop.eup %12209 }
 0x6eb   : > { %v14531_v16 = vpop.eup %12211  ;;  %5378 = vadd.xlane.f32.xlu1 %v14529_v3 }
 0x6ec   : > { %5374 = vadd.xlane.f32.xlu0 %v14531_v16  ;;  %v14535_v55 = vpop.eup %12213 }
 0x6ed   : > { %v14538_v27 = vpop.eup %12215 }
 0x6ee   : > { %v14541_v20 = vpop.eup %12217 }
 0x6ef   : > { %v14544_v24 = vpop.eup %12219 }
 0x6f0   : > { %5370 = vadd.xlane.f32.xlu0 %v14535_v55 }
 0x6f4   : > { %5380 = vadd.xlane.f32.xlu0 %v14538_v27 }
 0x6f8   : > { %5376 = vadd.xlane.f32.xlu0 %v14541_v20 }
 0x6fc   : > { %5382 = vadd.xlane.f32.xlu0 %v14544_v24  ;;  %5553 = vrot.lane.b32.xlu1 %v17030_v63, %s12763_s21 }
 0x700   : > { %5537 = vrot.lane.b32.xlu1 %v17039_v32, %s12763_s21 }
 0x704   : > { %5541 = vrot.lane.b32.xlu1 %v17043_v41, %s12763_s21 }
 0x712   : > { %5555 = vrot.lane.b32.xlu0 %v17026_v7, %s12763_s21 }
 0x716   : > { %5529 = vrot.lane.b32.xlu0 %v17032_v22, %s12763_s21 }
 0x71a   : > { %5531 = vrot.lane.b32.xlu0 %v17034_v54, %s12763_s21 }
 0x71e   : > { %5533 = vrot.lane.b32.xlu0 %v17036_v58, %s12763_s21 }
 0x722   : > { %5535 = vrot.lane.b32.xlu0 %v17037_v52, %s12763_s21 }
 0x723   : > { %v5357_v63 = vpop.xlane.xlu1 %5356 }
 0x726   : > { %5539 = vrot.lane.b32.xlu0 %v17041_v15, %s12763_s21 }
 0x727   : > { %v5353_v41 = vpop.xlane.xlu1 %5352 }
 0x728   : > { %v5359_v32 = vpop.xlane.xlu0 %5358 }
 0x729   : > { %12221 = vrcp.f32 %v5359_v32 }
 0x72a   : > { %5543 = vrot.lane.b32.xlu0 %v17045_v53, %s12763_s21  ;;  %12223 = vrcp.f32 %v5353_v41  ;;  %v5615_v53 = vsel %vm17092_vm12, %v14313_v56, 0  ;;  %vm17099_vm12 = vmmov %vm17096_vm0 }
 0x72b   : > { %12225 = vrcp.f32 %v5357_v63 }
 0x72c   : > { %v5355_v7 = vpop.xlane.xlu0 %5354  ;;  %v5365_v4 = vpop.xlane.xlu1 %5364 }
 0x72d   : > { %12227 = vrcp.f32 %v5355_v7 }
 0x730   : > { %v5560_v61 = vpop.permute.xlu0 %5559 }
 0x734   : > { %v5558_v17 = vpop.permute.xlu0 %5557 }
 0x736   : > { %v12222_v22 = vpop.eup %12221 }
 0x737   : > { %v12224_v54 = vpop.eup %12223  ;;  %v5403_v52 = vmul.f32 %v12222_v22, %v14488_v5  ;;  %v5612_v5 = vsel %vm17094_vm10, %v14507_v57, 0  ;;  %vm17101_vm10 = vmmov %vm17096_vm0 }
 0x738   : > { %v12226_v58 = vpop.eup %12225  ;;  %v5400_v37 = vmul.f32 %v12224_v54, %v14486_v8  ;;  %v5361_v8 = vpop.xlane.xlu1 %5360 }
 0x739   : > { %v5402_v50 = vmul.f32 %v12226_v58, %v14483_v18  ;;  %v5609_v18 = vsel %vm17096_vm0, %v5564_v47, 0 }
 0x73a   : > { %v12228_v14 = vpop.eup %12227 }
 0x73b   : > { %v5401_v15 = vmul.f32 %v12228_v14, %v14492_v19  ;;  %v5417_v23 = vpack.c.bf16 %v5403_v52, %v5402_v50 }
 0x73c   : > { %v5562_v19 = vpop.permute.xlu1 %5561 }
 0x73d   : > { %v5416_v48 = vpack.c.bf16 %v5401_v15, %v5400_v37  ;;  %v5606_v56 = vsel %vm17098_vm14, %v5562_v19, 0  ;;  %vm17104_vm14 = vmmov %vm17096_vm0 }
 0x73f   : > { %10615 = vmatprep.mubr.bf16.mxu0 %v5416_v48 }
 0x740   : > { %10616 = vmatmul.mubr.bf16.vlgmr.msra.gmra.mxu0 %v5417_v23 }
 0x741   : > { %10632 = vmatpush3.bf16.xpose.msra.mxu0 %v5615_v53 }
 0x742   : > { %11008 = vmatprep.subr.msk.bf16.mxu0 %vm17093_vm6, %v14507_v57  ;;  %vm17100_vm6 = vmmov %vm17096_vm0 }
 0x743   : > { %v5603_v31 = vsel %vm17100_vm6, %v5560_v61, 0  ;;  %vm17107_vm6 = vmmov %vm17096_vm0 }
 0x749   : > { %10634 = vmatpush3.bf16.xpose.msra.mxu0 %v5612_v5 }
 0x74a   : > { %11009 = vmatprep.subr.msk.bf16.mxu0 %vm17095_vm13, %v5564_v47  ;;  %vm17102_vm13 = vmmov %vm17096_vm0 }
 0x74b   : > { %v5600_v2 = vsel %vm17102_vm13, %v5558_v17, 0  ;;  %vm17109_vm13 = vmmov %vm17096_vm0 }
 0x751   : > { %10636 = vmatpush3.bf16.xpose.msra.mxu0 %v5609_v18 }
 0x752   : > { %11010 = vmatprep.subr.msk.bf16.mxu0 %vm17097_vm11, %v5562_v19  ;;  %vm17103_vm11 = vmmov %vm17096_vm0 }
 0x759   : > { %10638 = vmatpush3.bf16.xpose.msra.mxu0 %v5606_v56 }
 0x75a   : > { %11011 = vmatprep.subr.msk.bf16.mxu0 %vm17099_vm12, %v5560_v61  ;;  %vm17105_vm12 = vmmov %vm17096_vm0 }
 0x761   : > { %10640 = vmatpush3.bf16.xpose.msra.mxu0 %v5603_v31 }
 0x762   : > { %11012 = vmatprep.subr.msk.bf16.mxu0 %vm17101_vm10, %v5558_v17  ;;  %vm17108_vm10 = vmmov %vm17096_vm0 }
 0x765   : > { %v5367_v57 = vpop.xlane.xlu0 %5366 }
 0x766   : > { %12229 = vrcp.f32 %v5367_v57  ;;  %v17106_v57 = vld [vmem:[#allocation89_spill] sm:$0xff] }
 0x767   : > { %12231 = vrcp.f32 %v5361_v8 }
 0x768   : > { %12233 = vrcp.f32 %v5365_v4 }
 0x769   : > { %v5363_v6 = vpop.xlane.xlu0 %5362  ;;  %10642 = vmatpush3.bf16.xpose.msra.mxu0 %v5600_v2 }
 0x76a   : > { %12235 = vrcp.f32 %v5363_v6 }
 0x76d   : > { %v5373_v43 = vpop.xlane.xlu0 %5372 }
 0x771   : > { %v5369_v29 = vpop.xlane.xlu0 %5368 }
 0x773   : > { %v12230_v35 = vpop.eup %12229 }
 0x774   : > { %v12232_v51 = vpop.eup %12231  ;;  %v5407_v47 = vmul.f32 %v12230_v35, %v14514_v39  ;;  %v5379_v58 = vpop.xlane.xlu1 %5378  ;;  %v17111_v35 = vld [vmem:[#allocation122_spill] sm:$0xff] }
 0x775   : > { %v5375_v28 = vpop.xlane.xlu0 %5374  ;;  %v12234_v38 = vpop.eup %12233  ;;  %v5404_v63 = vmul.f32 %v12232_v51, %v14498_v12  ;;  %v17114_v51 = vld [vmem:[#allocation117_spill] sm:$0xff] }
 0x776   : > { %12237 = vrcp.f32 %v5375_v28  ;;  %v5406_v7 = vmul.f32 %v12234_v38, %v14494_v1  ;;  %v17115_v28 = vld [vmem:[#allocation112_spill] sm:$0xff] }
 0x777   : > { %v12236_v44 = vpop.eup %12235  ;;  %12239 = vrcp.f32 %v5369_v29  ;;  %v17110_v29 = vld [vmem:[#allocation92_spill] sm:$0xff] }
 0x778   : > { %v5405_v32 = vmul.f32 %v12236_v44, %v14518_v36  ;;  %12241 = vrcp.f32 %v5373_v43  ;;  %v5419_v54 = vpack.c.bf16 %v5407_v47, %v5406_v7  ;;  %v5554_v8 = vpop.permute.xlu1 %5553  ;;  %v17117_v47 = vld [vmem:[#allocation107_spill] sm:$0xff] }
 0x779   : > { %v5371_v41 = vpop.xlane.xlu0 %5370 }
 0x77a   : > { %12243 = vrcp.f32 %v5371_v41  ;;  %v5418_v22 = vpack.c.bf16 %v5405_v32, %v5404_v63  ;;  %v17118_v63 = vld [vmem:[#allocation103_spill] sm:$0xff] }
 0x77b   : > { %12245 = vrcp.f32 %v5379_v58  ;;  %v17120_v41 = vld [vmem:[#allocation99_spill] sm:$0xff] }
 0x77c   : > { %10619 = vmatprep.mubr.bf16.mxu0 %v5418_v22 }
 0x77d   : > { %10620 = vmatmul.mubr.bf16.gmra.mxu0 %v5419_v54  ;;  %v5381_v14 = vpop.xlane.xlu0 %5380 }
 0x781   : > { %v5377_v52 = vpop.xlane.xlu0 %5376 }
 0x782   : > { %12247 = vrcp.f32 %v5377_v52 }
 0x783   : > { %v12238_v39 = vpop.eup %12237  ;;  %12249 = vrcp.f32 %v5381_v14 }
 0x784   : > { %v12240_v37 = vpop.eup %12239  ;;  %v5411_v50 = vmul.f32 %v12238_v39, %v14531_v16 }
 0x785   : > { %v5383_v12 = vpop.xlane.xlu0 %5382  ;;  %v12242_v15 = vpop.eup %12241  ;;  %v5408_v1 = vmul.f32 %v12240_v37, %v14526_v40 }
 0x786   : > { %12251 = vrcp.f32 %v5383_v12  ;;  %v5410_v53 = vmul.f32 %v12242_v15, %v14522_v45  ;;  %v5594_v45 = vsel %vm17105_vm12, %v5554_v8, 0  ;;  %vm17116_vm12 = vmmov %vm17096_vm0 }
 0x787   : > { %v12244_v36 = vpop.eup %12243 }
 0x788   : > { %v5409_v48 = vmul.f32 %v12244_v36, %v14535_v55  ;;  %v5421_v18 = vpack.c.bf16 %v5411_v50, %v5410_v53  ;;  %v12246_v19 = vpop.eup %12245 }
 0x789   : > { %v5556_v23 = vpop.permute.xlu0 %5555  ;;  %v5413_v55 = vmul.f32 %v12246_v19, %v14529_v3 }
 0x78a   : > { %11013 = vmatprep.subr.msk.bf16.mxu0 %vm17103_vm11, %v5556_v23  ;;  %v5597_v4 = vsel %vm17104_vm14, %v5556_v23, 0  ;;  %v5420_v5 = vpack.c.bf16 %v5409_v48, %v5408_v1  ;;  %vm17112_vm11 = vmmov %vm17096_vm0 }
 0x78b   : > { %10644 = vmatpush3.bf16.xpose.msra.mxu0 %v5597_v4  ;;  %vm17113_vm14 = vmmov %vm17096_vm0 }
 0x78c   : > { %10623 = vmatprep.mubr.bf16.mxu0 %v5420_v5  ;;  %11014 = vmatprep.subr.msk.bf16.mxu0 %vm17096_vm0, %v5554_v8 }
 0x78d   : > { %10624 = vmatmul.mubr.bf16.gmra.mxu0 %v5421_v18  ;;  %v5530_v31 = vpop.permute.xlu0 %5529 }
 0x78f   : > { %v12248_v16 = vpop.eup %12247 }
 0x790   : > { %v5412_v40 = vmul.f32 %v12248_v16, %v14541_v20  ;;  %v12250_v56 = vpop.eup %12249 }
 0x791   : > { %v5414_v2 = vmul.f32 %v12250_v56, %v14538_v27  ;;  %v5532_v20 = vpop.permute.xlu0 %5531  ;;  %v17137_v56 = vld [vmem:[#allocation115_spill] sm:$0xff] }
 0x792   : > { %v5422_v61 = vpack.c.bf16 %v5413_v55, %v5412_v40 }
 0x793   : > { %v12252_v17 = vpop.eup %12251  ;;  %10646 = vmatpush3.bf16.xpose.msra.mxu0 %v5594_v45  ;;  %v17138_v45 = vld [vmem:[#allocation110_spill] sm:$0xff] }
 0x794   : > { %10627 = vmatprep.mubr.bf16.mxu0 %v5422_v61  ;;  %10727 = vmatprep.subr.bf16.mxu0 %v17106_v57  ;;  %v5415_v6 = vmul.f32 %v12252_v17, %v14544_v24  ;;  %v5538_v24 = vpop.permute.xlu1 %5537 }
 0x795   : > { %v5534_v3 = vpop.permute.xlu0 %5533 }
 0x796   : > { %v5423_v43 = vpack.c.bf16 %v5415_v6, %v5414_v2 }
 0x798   : > { %10628 = vmatmul.mubr.bf16.gmra.mxu0 %v5423_v43  ;;  %v5542_v44 = vpop.permute.xlu1 %5541 }
 0x799   : > { %10647 = vmatprep.mubr.msk.bf16.mxu0 %vm17107_vm6, %v5530_v31  ;;  %v5536_v27 = vpop.permute.xlu0 %5535  ;;  %vm17119_vm6 = vmmov %vm17096_vm0 }
 0x79d   : > { %v5540_v38 = vpop.permute.xlu0 %5539 }
 0x7a0   : > { %10648 = vmatmul.mubr.msk.bf16.vlgmr.msra.gmra.mxu0 %vm17108_vm10, %v5532_v20  ;;  %vm17139_vm10 = vnez %v17084_v60 }
 0x7a1   : > { %10728 = vmatpush3.bf16.msra.mxu0 %v17106_v57  ;;  %10651 = vmatprep.mubr.msk.bf16.mxu0 %vm17109_vm13, %v5534_v3  ;;  %v5544_v32 = vpop.permute.xlu0 %5543  ;;  %vm17140_vm13 = vnez %v16988_v10 }
 0x7a2   : > { %10729 = vmatprep.subr.bf16.mxu0 %v17110_v29 }
 0x7a5   : > { %10730 = vmatpush3.bf16.msra.mxu0 %v17110_v29 }
 0x7a6   : > { %10731 = vmatprep.subr.bf16.mxu0 %v17111_v35 }
 0x7a8   : > { %10652 = vmatmul.mubr.msk.bf16.gmra.mxu0 %vm17112_vm11, %v5536_v27  ;;  %vm17141_vm11 = vnez %v17086_v11 }
 0x7a9   : > { %10732 = vmatpush3.bf16.msra.mxu0 %v17111_v35  ;;  %10655 = vmatprep.mubr.msk.bf16.mxu0 %vm17113_vm14, %v5538_v24  ;;  %vm17142_vm14 = vnez %v16993_v59 }
 0x7aa   : > { %10733 = vmatprep.subr.bf16.mxu0 %v17114_v51 }
 0x7ad   : > { %10734 = vmatpush3.bf16.msra.mxu0 %v17114_v51 }
 0x7ae   : > { %10735 = vmatprep.subr.bf16.mxu0 %v17115_v28 }
 0x7b0   : > { %10656 = vmatmul.mubr.msk.bf16.gmra.mxu0 %vm17096_vm0, %v5540_v38  ;;  %vm17143_vm0 = vnez %v17088_v30 }
 0x7b1   : > { %10736 = vmatpush3.bf16.msra.mxu0 %v17115_v28  ;;  %10659 = vmatprep.mubr.msk.bf16.mxu0 %vm17116_vm12, %v5542_v44  ;;  %vm17144_vm12 = vnez %v16998_v33 }
 0x7b2   : > { %10737 = vmatprep.subr.bf16.mxu0 %v17117_v47 }
 0x7b5   : > { %10738 = vmatpush3.bf16.msra.mxu0 %v17117_v47 }
 0x7b6   : > { %10739 = vmatprep.subr.bf16.mxu0 %v17118_v63 }
 0x7b8   : > { %10660 = vmatmul.mubr.msk.bf16.gmra.mxu0 %vm17119_vm6, %v5544_v32  ;;  %vm17145_vm6 = vnez %v17090_v62 }
 0x7b9   : > { %10740 = vmatpush3.bf16.msra.mxu0 %v17118_v63 }
 0x7ba   : > { %10741 = vmatprep.subr.bf16.mxu0 %v17120_v41 }
 0x7bd   : > { %10742 = vmatpush3.bf16.msra.mxu0 %v17120_v41 }
 0x800   : > { %v14625_v7 = vpop.f32.mrf.mxu0 }
 0x801   : > { %17121 = vst [vmem:[#allocation127_spill] sm:$0xff] %v14625_v7 }
 0x802   : > { %v14627_v22 = vpop.f32.mrf.mxu0 }
 0x803   : > { %17122 = vst [vmem:[#allocation128_spill] sm:$0xff] %v14627_v22 }
 0x804   : > { %v14629_v54 = vpop.f32.mrf.mxu0 }
 0x805   : > { %17123 = vst [vmem:[#allocation129_spill] sm:$0xff] %v14629_v54 }
 0x806   : > { %v14631_v58 = vpop.f32.mrf.mxu0 }
 0x807   : > { %17124 = vst [vmem:[#allocation130_spill] sm:$0xff] %v14631_v58 }
 0x83d   : > { %v14633_v14 = vpop.f32.mrf.mxu0 }
 0x83e   : > { %17125 = vst [vmem:[#allocation89_spill] sm:$0xff] %v14633_v14 }
 0x83f   : > { %v14635_v52 = vpop.f32.mrf.mxu0 }
 0x840   : > { %17126 = vst [vmem:[#allocation92_spill] sm:$0xff] %v14635_v52 }
 0x841   : > { %v14637_v39 = vpop.f32.mrf.mxu0 }
 0x842   : > { %17127 = vst [vmem:[#allocation142_spill] sm:$0xff] %v14637_v39 }
 0x843   : > { %v14639_v37 = vpop.f32.mrf.mxu0 }
 0x844   : > { %17128 = vst [vmem:[#allocation143_spill] sm:$0xff] %v14639_v37 }
 0x84d   : > { %v14641_v12 = vpop.f32.mrf.mxu0 }
 0x84e   : > { %17129 = vst [vmem:[#allocation144_spill] sm:$0xff] %v14641_v12 }
 0x84f   : > { %v14643_v15 = vpop.f32.mrf.mxu0 }
 0x850   : > { %17130 = vst [vmem:[#allocation145_spill] sm:$0xff] %v14643_v15 }
 0x851   : > { %v14645_v36 = vpop.f32.mrf.mxu0 }
 0x852   : > { %17131 = vst [vmem:[#allocation146_spill] sm:$0xff] %v14645_v36 }
 0x853   : > { %v14647_v50 = vpop.f32.mrf.mxu0 }
 0x854   : > { %17132 = vst [vmem:[#allocation147_spill] sm:$0xff] %v14647_v50 }
 0x858   : > { %v14649_v1 = vpop.f32.mrf.mxu0 }
 0x859   : > { %17133 = vst [vmem:[#allocation148_spill] sm:$0xff] %v14649_v1 }
 0x85a   : > { %v14651_v48 = vpop.f32.mrf.mxu0 }
 0x85b   : > { %17134 = vst [vmem:[#allocation149_spill] sm:$0xff] %v14651_v48 }
 0x85c   : > { %v14653_v23 = vpop.f32.mrf.mxu0 }
 0x85d   : > { %17135 = vst [vmem:[#allocation150_spill] sm:$0xff] %v14653_v23 }
 0x85e   : > { %v14655_v53 = vpop.f32.mrf.mxu0 }
 0x85f   : > { %17136 = vst [vmem:[#allocation151_spill] sm:$0xff] %v14655_v53 }
 0x860   : > { %v10649_v4 = vpop.f32.mrf.mxu0 }
 0x861   : > { %v5716_v5 = vsel %vm13821_vm1, %v10649_v4, -1e+30 }
 0x862   : > { %5734 = vmax.xlane.f32.xlu0 %v5716_v5  ;;  %v5651_v8 = vpop.f32.mrf.mxu0 }
 0x863   : > { %v5714_v18 = vsel %vm13836_vm2, %v5651_v8, -1e+30 }
 0x864   : > { %5730 = vmax.xlane.f32.xlu1 %v5714_v18  ;;  %v10650_v19 = vpop.f32.mrf.mxu0 }
 0x865   : > { %v5717_v40 = vsel %vm13853_vm4, %v10650_v19, -1e+30 }
 0x866   : > { %v5654_v16 = vpop.f32.mrf.mxu0 }
 0x867   : > { %v14665_v55 = vsel %vm13842_vm3, %v5654_v16, -1e+30 }
 0x868   : > { %5736 = vmax.xlane.f32.xlu1 %v5717_v40  ;;  %5732 = vmax.xlane.f32.xlu0 %v14665_v55  ;;  %v10653_v61 = vpop.f32.mrf.mxu0 }
 0x869   : > { %v14674_v3 = vsel %vm13864_vm5, %v10653_v61, -1e+30 }
 0x86a   : > { %v5667_v17 = vpop.f32.mrf.mxu0 }
 0x86b   : > { %v14684_v38 = vsel %vm13886_vm7, %v5667_v17, -1e+30 }
 0x86c   : > { %v10654_v31 = vpop.f32.mrf.mxu0 }
 0x86d   : > { %v14678_v27 = vsel %vm17081_vm8, %v10654_v31, -1e+30 }
 0x86e   : > { %v5670_v2 = vpop.f32.mrf.mxu0 }
 0x86f   : > { %v14688_v44 = vsel %vm17083_vm15, %v5670_v2, -1e+30 }
 0x870   : > { %v10657_v6 = vpop.f32.mrf.mxu0 }
 0x871   : > { %v14694_v4 = vsel %vm13908_vm9, %v10657_v6, -1e+30 }
 0x872   : > { %v5683_v43 = vpop.f32.mrf.mxu0 }
 0x873   : > { %v14704_v16 = vsel %vm17140_vm13, %v5683_v43, -1e+30  ;;  %v17146_v43 = vld [vmem:[#allocation118_spill] sm:$0xff] }
 0x874   : > { %v10658_v20 = vpop.f32.mrf.mxu0 }
 0x875   : > { %v14698_v8 = vsel %vm17139_vm10, %v10658_v20, -1e+30  ;;  %v17147_v20 = vld [vmem:[#allocation120_spill] sm:$0xff] }
 0x876   : > { %v5686_v24 = vpop.f32.mrf.mxu0 }
 0x878   : > { %v10661_v32 = vpop.f32.mrf.mxu0 }
 0x879   : > { %5902 = vrot.lane.b32.xlu1 %v17137_v56, %s12763_s21  ;;  %v14708_v56 = vsel %vm17141_vm11, %v5686_v24, -1e+30  ;;  %v14714_v61 = vsel %vm17142_vm14, %v10661_v32, -1e+30  ;;  %v17148_v24 = vld [vmem:[#allocation94_spill] sm:$0xff]  ;;  %v17149_v32 = vld [vmem:[#allocation93_spill] sm:$0xff] }
 0x87a   : > { %v5699_v19 = vpop.f32.mrf.mxu0 }
 0x87b   : > { %v14724_v2 = vsel %vm17144_vm12, %v5699_v19, -1e+30  ;;  %v17150_v19 = vld [vmem:[#allocation91_spill] sm:$0xff] }
 0x87e   : > { %5904 = vrot.lane.b32.xlu0 %v17138_v45, %s12763_s21  ;;  %v10662_v45 = vpop.f32.mrf.mxu0 }
 0x87f   : > { %v14718_v17 = vsel %vm17143_vm0, %v10662_v45, -1e+30 }
 0x880   : > { %v5702_v31 = vpop.f32.mrf.mxu0 }
 0x881   : > { %v14728_v6 = vsel %vm17145_vm6, %v5702_v31, -1e+30  ;;  %vm17153_vm6 = vcmask 523264  }
 0x882   : > { %vm17154_vm0 = vmmov %vm17153_vm6 }
 0x883   : > { %vm17157_vm11 = vmmov %vm17154_vm0 }
 0x884   : > { %vm17159_vm10 = vmmov %vm17154_vm0 }
 0x885   : > { %vm17160_vm15 = vmmov %vm17154_vm0 }
 0x886   : > { %vm17162_vm8 = vmmov %vm17154_vm0 }
 0x887   : > { %vm17187_vm12 = vmmov %vm17154_vm0 }
 0x89d   : > { %5742 = vmax.xlane.f32.xlu0 %v14674_v3  ;;  %5744 = vmax.xlane.f32.xlu1 %v14678_v27 }
 0x8a1   : > { %5738 = vmax.xlane.f32.xlu0 %v14684_v38  ;;  %5740 = vmax.xlane.f32.xlu1 %v14688_v44 }
 0x8a5   : > { %5750 = vmax.xlane.f32.xlu0 %v14694_v4  ;;  %5752 = vmax.xlane.f32.xlu1 %v14698_v8 }
 0x8a9   : > { %5746 = vmax.xlane.f32.xlu0 %v14704_v16  ;;  %5748 = vmax.xlane.f32.xlu1 %v14708_v56 }
 0x8ad   : > { %5758 = vmax.xlane.f32.xlu0 %v14714_v61  ;;  %5760 = vmax.xlane.f32.xlu1 %v14718_v17 }
 0x8b1   : > { %5754 = vmax.xlane.f32.xlu0 %v14724_v2  ;;  %5756 = vmax.xlane.f32.xlu1 %v14728_v6 }
 0x8c7   : > { %5900 = vrot.lane.b32.xlu0 %v17146_v43, %s12763_s21 }
 0x8cb   : > { %5898 = vrot.lane.b32.xlu0 %v17147_v20, %s12763_s21 }
 0x8cf   : > { %5896 = vrot.lane.b32.xlu0 %v17148_v24, %s12763_s21 }
 0x8d3   : > { %5894 = vrot.lane.b32.xlu0 %v17149_v32, %s12763_s21 }
 0x8d7   : > { %5890 = vrot.lane.b32.xlu0 %v17150_v19, %s12763_s21 }
 0x8eb   : > { %v5735_v45 = vpop.xlane.xlu0 %5734 }
 0x8ec   : > { %v5764_v31 = vsub.f32 %v5716_v5, %v5735_v45 }
 0x8ed   : > { %v5731_v23 = vpop.xlane.xlu1 %5730 }
 0x8ee   : > { %v5782_v1 = vmul.f32 1.442695, %v5764_v31  ;;  %v5762_v53 = vsub.f32 %v5714_v18, %v5731_v23 }
 0x8f0   : > { %12253 = vpow2.f32 %v5782_v1  ;;  %v5778_v48 = vmul.f32 1.442695, %v5762_v53 }
 0x8f1   : > { %v5737_v43 = vpop.xlane.xlu1 %5736  ;;  %v5733_v36 = vpop.xlane.xlu0 %5732 }
 0x8f2   : > { %v5765_v12 = vsub.f32 %v5717_v40, %v5737_v43  ;;  %12255 = vpow2.f32 %v5778_v48  ;;  %v5763_v24 = vsub.f32 %v14665_v55, %v5733_v36 }
 0x8f4   : > { %v5784_v20 = vmul.f32 1.442695, %v5765_v12  ;;  %v5780_v19 = vmul.f32 1.442695, %v5763_v24 }
 0x8f5   : > { %v5905_v50 = vpop.permute.xlu0 %5904  ;;  %v5903_v32 = vpop.permute.xlu1 %5902 }
 0x8f6   : > { %10663 = vmatprep.subr.bf16.mxu1 %v5905_v50  ;;  %12257 = vpow2.f32 %v5784_v20 }
 0x8f7   : > { %10664 = vmatpush3.bf16.msra.mxu1 %v5905_v50  ;;  %12259 = vpow2.f32 %v5780_v19  ;;  %v17151_v50 = vld [vmem:[#allocation84_spill] sm:$0xff] }
 0x8f8   : > { %10665 = vmatprep.subr.bf16.mxu1 %v5903_v32 }
 0x8fb   : > { %10666 = vmatpush3.bf16.msra.mxu1 %v5903_v32 }
 0x8fd   : > { %v14743_v5 = vpop.eup %12253 }
 0x8fe   : > { %5814 = vadd.xlane.f32.xlu1 %v14743_v5 }
 0x8ff   : > { %v14746_v1 = vpop.eup %12255 }
 0x902   : > { %5810 = vadd.xlane.f32.xlu1 %v14746_v1 }
 0x903   : > { %v14749_v12 = vpop.eup %12257 }
 0x904   : > { %v14752_v36 = vpop.eup %12259 }
 0x906   : > { %5816 = vadd.xlane.f32.xlu1 %v14749_v12 }
 0x90a   : > { %5812 = vadd.xlane.f32.xlu1 %v14752_v36 }
 0x91b   : > { %5892 = vrot.lane.b32.xlu1 %v17151_v50, %s12763_s21 }
 0x926   : > { %v5745_v48 = vpop.xlane.xlu1 %5744  ;;  %v5743_v23 = vpop.xlane.xlu0 %5742 }
 0x927   : > { %v5768_v40 = vsub.f32 %v14674_v3, %v5743_v23  ;;  %v5769_v31 = vsub.f32 %v14678_v27, %v5745_v48 }
 0x929   : > { %v5790_v19 = vmul.f32 1.442695, %v5768_v40  ;;  %v5792_v15 = vmul.f32 1.442695, %v5769_v31 }
 0x92a   : > { %v5741_v53 = vpop.xlane.xlu1 %5740  ;;  %v5739_v18 = vpop.xlane.xlu0 %5738 }
 0x92b   : > { %v5767_v55 = vsub.f32 %v14688_v44, %v5741_v53  ;;  %v5766_v45 = vsub.f32 %v14684_v38, %v5739_v18 }
 0x92d   : > { %v5788_v43 = vmul.f32 1.442695, %v5767_v55  ;;  %v5786_v20 = vmul.f32 1.442695, %v5766_v45 }
 0x92e   : > { %v5753_v24 = vpop.xlane.xlu1 %5752  ;;  %v5751_v32 = vpop.xlane.xlu0 %5750 }
 0x92f   : > { %12261 = vpow2.f32 %v5788_v43  ;;  %v5772_v44 = vsub.f32 %v14694_v4, %v5751_v32  ;;  %v5773_v27 = vsub.f32 %v14698_v8, %v5753_v24 }
 0x930   : > { %12263 = vpow2.f32 %v5786_v20 }
 0x931   : > { %12265 = vpow2.f32 %v5790_v19  ;;  %v5798_v18 = vmul.f32 1.442695, %v5772_v44  ;;  %v5800_v40 = vmul.f32 1.442695, %v5773_v27 }
 0x932   : > { %v5749_v50 = vpop.xlane.xlu1 %5748  ;;  %v5747_v39 = vpop.xlane.xlu0 %5746  ;;  %12267 = vpow2.f32 %v5792_v15 }
 0x933   : > { %v5771_v14 = vsub.f32 %v14708_v56, %v5749_v50  ;;  %v5770_v3 = vsub.f32 %v14704_v16, %v5747_v39 }
 0x935   : > { %v5796_v38 = vmul.f32 1.442695, %v5771_v14  ;;  %v5794_v48 = vmul.f32 1.442695, %v5770_v3 }
 0x936   : > { %v5761_v23 = vpop.xlane.xlu1 %5760  ;;  %v5759_v53 = vpop.xlane.xlu0 %5758 }
 0x937   : > { %12269 = vpow2.f32 %v5794_v48  ;;  %v5776_v15 = vsub.f32 %v14714_v61, %v5759_v53  ;;  %v5777_v14 = vsub.f32 %v14718_v17, %v5761_v23  ;;  %v17152_v53 = vld [vmem:[#allocation87_spill] sm:$0xff] }
 0x938   : > { %12271 = vpow2.f32 %v5796_v38 }
 0x939   : > { %12273 = vpow2.f32 %v5798_v18  ;;  %v5808_v20 = vmul.f32 1.442695, %v5777_v14 }
 0x93a   : > { %v5757_v55 = vpop.xlane.xlu1 %5756  ;;  %v5755_v45 = vpop.xlane.xlu0 %5754  ;;  %12275 = vpow2.f32 %v5800_v40 }
 0x93b   : > { %v5775_v31 = vsub.f32 %v14728_v6, %v5757_v55  ;;  %v5774_v56 = vsub.f32 %v14724_v2, %v5755_v45  ;;  %v5806_v2 = vmul.f32 1.442695, %v5776_v15 }
 0x93c   : > { %v14767_v39 = vpop.eup %12261 }
 0x93d   : > { %v5804_v4 = vmul.f32 1.442695, %v5775_v31  ;;  %v5802_v8 = vmul.f32 1.442695, %v5774_v56  ;;  %5820 = vadd.xlane.f32.xlu0 %v14767_v39  ;;  %v14772_v16 = vpop.eup %12263 }
 0x93e   : > { %v5901_v43 = vpop.permute.xlu0 %5900  ;;  %v14775_v6 = vpop.eup %12265 }
 0x93f   : > { %5818 = vadd.xlane.f32.xlu1 %v14772_v16  ;;  %10667 = vmatprep.subr.bf16.mxu1 %v5901_v43  ;;  %12277 = vpow2.f32 %v5802_v8  ;;  %v14778_v61 = vpop.eup %12267 }
 0x940   : > { %10668 = vmatpush3.bf16.msra.mxu1 %v5901_v43  ;;  %12279 = vpow2.f32 %v5804_v4 }
 0x941   : > { %5822 = vadd.xlane.f32.xlu0 %v14775_v6  ;;  %12281 = vpow2.f32 %v5806_v2 }
 0x942   : > { %v5899_v17 = vpop.permute.xlu0 %5898  ;;  %12283 = vpow2.f32 %v5808_v20 }
 0x943   : > { %5824 = vadd.xlane.f32.xlu1 %v14778_v61  ;;  %10669 = vmatprep.subr.bf16.mxu1 %v5899_v17 }
 0x944   : > { %10670 = vmatpush3.bf16.msra.mxu1 %v5899_v17  ;;  %v14781_v24 = vpop.eup %12269 }
 0x945   : > { %v14783_v32 = vpop.eup %12271  ;;  %5826 = vadd.xlane.f32.xlu0 %v14781_v24 }
 0x946   : > { %v5897_v19 = vpop.permute.xlu0 %5896  ;;  %v14787_v50 = vpop.eup %12273 }
 0x947   : > { %5828 = vadd.xlane.f32.xlu1 %v14783_v32  ;;  %10671 = vmatprep.subr.bf16.mxu1 %v5897_v19  ;;  %v14789_v3 = vpop.eup %12275 }
 0x948   : > { %10672 = vmatpush3.bf16.msra.mxu1 %v5897_v19 }
 0x949   : > { %5830 = vadd.xlane.f32.xlu0 %v14787_v50 }
 0x94a   : > { %v5895_v44 = vpop.permute.xlu0 %5894 }
 0x94b   : > { %5832 = vadd.xlane.f32.xlu1 %v14789_v3  ;;  %10673 = vmatprep.subr.bf16.mxu1 %v5895_v44 }
 0x94c   : > { %10674 = vmatpush3.bf16.msra.mxu1 %v5895_v44  ;;  %v14793_v27 = vpop.eup %12277 }
 0x94d   : > { %v14795_v38 = vpop.eup %12279  ;;  %5834 = vadd.xlane.f32.xlu0 %v14793_v27 }
 0x94e   : > { %v14799_v48 = vpop.eup %12281  ;;  %v5891_v56 = vpop.permute.xlu0 %5890 }
 0x94f   : > { %5836 = vadd.xlane.f32.xlu1 %v14795_v38  ;;  %v14801_v23 = vpop.eup %12283 }
 0x951   : > { %5838 = vadd.xlane.f32.xlu0 %v14799_v48 }
 0x953   : > { %5840 = vadd.xlane.f32.xlu1 %v14801_v23 }
 0x967   : > { %6467 = vrot.lane.b32.xlu0 %v17152_v53, %s12763_s21 }
 0x987   : > { %v5815_v18 = vpop.xlane.xlu1 %5814 }
 0x98b   : > { %v5811_v40 = vpop.xlane.xlu1 %5810 }
 0x98f   : > { %v5817_v55 = vpop.xlane.xlu1 %5816 }
 0x990   : > { %12285 = vrcp.f32 %v5817_v55  ;;  %v17163_v55 = vld [vmem:[#allocation71_spill] sm:$0xff] }
 0x991   : > { %12287 = vrcp.f32 %v5811_v40  ;;  %v17155_v40 = vld [vmem:[#allocation83_spill] sm:$0xff] }
 0x992   : > { %12289 = vrcp.f32 %v5815_v18  ;;  %v6057_v18 = vsel %vm17154_vm0, %v17152_v53, 0 }
 0x993   : > { %v5813_v45 = vpop.xlane.xlu1 %5812 }
 0x994   : > { %12291 = vrcp.f32 %v5813_v45 }
 0x997   : > { %v5893_v31 = vpop.permute.xlu1 %5892 }
 0x998   : > { %10675 = vmatprep.subr.bf16.mxu1 %v5893_v31 }
 0x999   : > { %10676 = vmatpush3.bf16.msra.mxu1 %v5893_v31 }
 0x99a   : > { %10677 = vmatprep.subr.bf16.mxu1 %v5891_v56 }
 0x99d   : > { %10678 = vmatpush3.bf16.msra.mxu1 %v5891_v56  ;;  %v12286_v15 = vpop.eup %12285 }
 0x99e   : > { %11015 = vmatprep.subr.msk.bf16.mxu1 %vm17153_vm6, %v17152_v53  ;;  %v12288_v14 = vpop.eup %12287  ;;  %v5861_v43 = vmul.f32 %v12286_v15, %v14749_v12  ;;  %vm17156_vm6 = vmmov %vm17154_vm0  ;;  %v6054_v12 = vsel %vm17157_vm11, %v17155_v40, 0  ;;  %v17166_v15 = vld [vmem:[#allocation67_spill] sm:$0xff] }
 0x99f   : > { %v12290_v4 = vpop.eup %12289  ;;  %v5858_v2 = vmul.f32 %v12288_v14, %v14746_v1  ;;  %v17158_v1 = vld [vmem:[#allocation79_spill] sm:$0xff]  ;;  %vm17165_vm11 = vmmov %vm17154_vm0 }
 0x9a0   : > { %v5860_v17 = vmul.f32 %v12290_v4, %v14743_v5  ;;  %v6051_v5 = vsel %vm17160_vm15, %v17158_v1, 0  ;;  %v6045_v31 = vsel %vm17165_vm11, %v17163_v55, 0  ;;  %vm17167_vm15 = vmmov %vm17154_vm0 }
 0x9a1   : > { %v12292_v8 = vpop.eup %12291  ;;  %vm17173_vm11 = vmmov %vm17154_vm0 }
 0x9a2   : > { %v5859_v20 = vmul.f32 %v12292_v8, %v14752_v36  ;;  %v5875_v44 = vpack.c.bf16 %v5861_v43, %v5860_v17  ;;  %v17161_v36 = vld [vmem:[#allocation75_spill] sm:$0xff] }
 0x9a3   : > { %v6048_v53 = vsel %vm17154_vm0, %v17161_v36, 0 }
 0x9a4   : > { %v5874_v19 = vpack.c.bf16 %v5859_v20, %v5858_v2  ;;  %v17169_v20 = vld [vmem:[#allocation63_spill] sm:$0xff] }
 0x9a6   : > { %10679 = vmatprep.mubr.bf16.mxu1 %v5874_v19 }
 0x9a7   : > { %10680 = vmatmul.mubr.bf16.vlgmr.msra.gmra.mxu1 %v5875_v44 }
 0x9a8   : > { %10696 = vmatpush3.bf16.xpose.msra.mxu1 %v6057_v18 }
 0x9a9   : > { %11016 = vmatprep.subr.msk.bf16.mxu1 %vm17156_vm6, %v17155_v40  ;;  %vm17164_vm6 = vmmov %vm17154_vm0 }
 0x9b0   : > { %10698 = vmatpush3.bf16.xpose.msra.mxu1 %v6054_v12 }
 0x9b1   : > { %11017 = vmatprep.subr.msk.bf16.mxu1 %vm17159_vm10, %v17158_v1  ;;  %vm17170_vm10 = vmmov %vm17154_vm0 }
 0x9b8   : > { %10700 = vmatpush3.bf16.xpose.msra.mxu1 %v6051_v5  ;;  %v6039_v5 = vsel %vm17154_vm0, %v17169_v20, 0 }
 0x9b9   : > { %11018 = vmatprep.subr.msk.bf16.mxu1 %vm17162_vm8, %v17161_v36  ;;  %vm17168_vm8 = vmmov %vm17154_vm0 }
 0x9ba   : > { %v6042_v43 = vsel %vm17168_vm8, %v17166_v15, 0  ;;  %vm17176_vm8 = vmmov %vm17154_vm0 }
 0x9c0   : > { %10702 = vmatpush3.bf16.xpose.msra.mxu1 %v6048_v53 }
 0x9c1   : > { %11019 = vmatprep.subr.msk.bf16.mxu1 %vm17164_vm6, %v17163_v55  ;;  %vm17172_vm6 = vmmov %vm17154_vm0 }
 0x9c6   : > { %v5821_v45 = vpop.xlane.xlu0 %5820 }
 0x9c7   : > { %12293 = vrcp.f32 %v5821_v45 }
 0x9c8   : > { %10704 = vmatpush3.bf16.xpose.msra.mxu1 %v6045_v31  ;;  %v5819_v56 = vpop.xlane.xlu1 %5818 }
 0x9c9   : > { %12295 = vrcp.f32 %v5819_v56  ;;  %11020 = vmatprep.subr.msk.bf16.mxu1 %vm17167_vm15, %v17166_v15  ;;  %vm17174_vm15 = vmmov %vm17154_vm0 }
 0x9ca   : > { %v5823_v14 = vpop.xlane.xlu0 %5822 }
 0x9cb   : > { %12297 = vrcp.f32 %v5823_v14  ;;  %v17171_v14 = vld [vmem:[#allocation59_spill] sm:$0xff] }
 0x9cc   : > { %v5825_v4 = vpop.xlane.xlu1 %5824 }
 0x9cd   : > { %12299 = vrcp.f32 %v5825_v4 }
 0x9ce   : > { %v5827_v8 = vpop.xlane.xlu0 %5826 }
 0x9cf   : > { %12301 = vrcp.f32 %v5827_v8 }
 0x9d0   : > { %10706 = vmatpush3.bf16.xpose.msra.mxu1 %v6042_v43  ;;  %v5829_v2 = vpop.xlane.xlu1 %5828 }
 0x9d1   : > { %12303 = vrcp.f32 %v5829_v2  ;;  %11021 = vmatprep.subr.msk.bf16.mxu1 %vm17170_vm10, %v17169_v20  ;;  %vm17178_vm10 = vmmov %vm17154_vm0 }
 0x9d2   : > { %v5831_v17 = vpop.xlane.xlu0 %5830 }
 0x9d3   : > { %12305 = vrcp.f32 %v5831_v17 }
 0x9d4   : > { %v12294_v19 = vpop.eup %12293  ;;  %v5833_v44 = vpop.xlane.xlu1 %5832 }
 0x9d5   : > { %12307 = vrcp.f32 %v5833_v44  ;;  %v5863_v45 = vmul.f32 %v12294_v19, %v14767_v39 }
 0x9d6   : > { %v12296_v18 = vpop.eup %12295  ;;  %v5835_v12 = vpop.xlane.xlu0 %5834 }
 0x9d7   : > { %v5862_v53 = vmul.f32 %v12296_v18, %v14772_v16  ;;  %12309 = vrcp.f32 %v5835_v12  ;;  %v6036_v12 = vsel %vm17173_vm11, %v17171_v14, 0  ;;  %vm17183_vm11 = vmmov %vm17154_vm0 }
 0x9d8   : > { %v12298_v31 = vpop.eup %12297  ;;  %10708 = vmatpush3.bf16.xpose.msra.mxu1 %v6039_v5  ;;  %v5837_v56 = vpop.xlane.xlu1 %5836 }
 0x9d9   : > { %12311 = vrcp.f32 %v5837_v56  ;;  %11022 = vmatprep.subr.msk.bf16.mxu1 %vm17172_vm6, %v17171_v14  ;;  %v5876_v4 = vpack.c.bf16 %v5863_v45, %v5862_v53  ;;  %v5864_v2 = vmul.f32 %v12298_v31, %v14775_v6  ;;  %vm17181_vm6 = vmmov %vm17154_vm0 }
 0x9da   : > { %v12300_v8 = vpop.eup %12299  ;;  %v5839_v43 = vpop.xlane.xlu0 %5838 }
 0x9db   : > { %10683 = vmatprep.mubr.bf16.mxu1 %v5876_v4  ;;  %v5865_v17 = vmul.f32 %v12300_v8, %v14778_v61  ;;  %12313 = vrcp.f32 %v5839_v43 }
 0x9dc   : > { %v5841_v16 = vpop.xlane.xlu1 %5840  ;;  %v12302_v44 = vpop.eup %12301 }
 0x9dd   : > { %12315 = vrcp.f32 %v5841_v16  ;;  %v5877_v39 = vpack.c.bf16 %v5865_v17, %v5864_v2  ;;  %v5866_v5 = vmul.f32 %v12302_v44, %v14781_v24 }
 0x9de   : > { %v12304_v19 = vpop.eup %12303  ;;  %v14845_v18 = vpop.permute.xlu0 %6467 }
 0x9df   : > { %10684 = vmatmul.mubr.bf16.gmra.mxu1 %v5877_v39  ;;  %v5867_v53 = vmul.f32 %v12304_v19, %v14783_v32  ;;  %11023 = vmatprep.subr.msk.bf16.mxu0 %vm17174_vm15, %v14845_v18  ;;  %vm17185_vm15 = vmmov %vm17154_vm0 }
 0x9e0   : > { %10710 = vmatpush3.bf16.xpose.msra.mxu1 %v6036_v12  ;;  %v12306_v6 = vpop.eup %12305  ;;  %v17179_v12 = vld [vmem:[#allocation27_spill] sm:$0xff] }
 0x9e1   : > { %v5878_v61 = vpack.c.bf16 %v5867_v53, %v5866_v5  ;;  %v5868_v31 = vmul.f32 %v12306_v6, %v14787_v50  ;;  %v17175_v50 = vld [vmem:[#allocation23_spill] sm:$0xff]  ;;  %v17188_v5 = vld [vmem:[#allocation37_spill] sm:$0xff] }
 0x9e2   : > { %v12308_v45 = vpop.eup %12307 }
 0x9e3   : > { %10687 = vmatprep.mubr.bf16.mxu1 %v5878_v61  ;;  %v5869_v56 = vmul.f32 %v12308_v45, %v14789_v3  ;;  %v17177_v3 = vld [vmem:[#allocation25_spill] sm:$0xff] }
 0x9e4   : > { %v12310_v4 = vpop.eup %12309 }
 0x9e5   : > { %v5879_v8 = vpack.c.bf16 %v5869_v56, %v5868_v31  ;;  %v5870_v24 = vmul.f32 %v12310_v4, %v14793_v27  ;;  %v17180_v27 = vld [vmem:[#allocation29_spill] sm:$0xff] }
 0x9e6   : > { %v12312_v43 = vpop.eup %12311 }
 0x9e7   : > { %10688 = vmatmul.mubr.bf16.gmra.mxu1 %v5879_v8  ;;  %v5871_v32 = vmul.f32 %v12312_v43, %v14795_v38  ;;  %v17182_v38 = vld [vmem:[#allocation31_spill] sm:$0xff] }
 0x9e8   : > { %v12314_v2 = vpop.eup %12313 }
 0x9e9   : > { %v5880_v17 = vpack.c.bf16 %v5871_v32, %v5870_v24  ;;  %v5872_v44 = vmul.f32 %v12314_v2, %v14799_v48  ;;  %v17184_v48 = vld [vmem:[#allocation33_spill] sm:$0xff] }
 0x9ea   : > { %v12316_v16 = vpop.eup %12315 }
 0x9eb   : > { %10691 = vmatprep.mubr.bf16.mxu1 %v5880_v17  ;;  %v5873_v39 = vmul.f32 %v12316_v16, %v14801_v23  ;;  %v17186_v23 = vld [vmem:[#allocation35_spill] sm:$0xff] }
 0x9ed   : > { %v5881_v19 = vpack.c.bf16 %v5873_v39, %v5872_v44 }
 0x9ef   : > { %10692 = vmatmul.mubr.bf16.gmra.mxu1 %v5881_v19 }
 0x9f0   : > { %10711 = vmatprep.mubr.msk.bf16.mxu1 %vm17176_vm8, %v17175_v50  ;;  %vm17189_vm8 = vmmov %vm17154_vm0 }
 0x9f7   : > { %10712 = vmatmul.mubr.msk.bf16.vlgmr.msra.gmra.mxu1 %vm17178_vm10, %v17177_v3  ;;  %vm17207_vm10 = vnez %v17080_v42 }
 0x9f8   : > { %10715 = vmatprep.mubr.msk.bf16.mxu1 %vm17154_vm0, %v17179_v12  ;;  %vm17208_vm0 = vnez %v17082_v21 }
 0x9ff   : > { %10716 = vmatmul.mubr.msk.bf16.gmra.mxu1 %vm17181_vm6, %v17180_v27  ;;  %vm17209_vm6 = vnez %v17084_v60 }
 0xa00   : > { %10719 = vmatprep.mubr.msk.bf16.mxu1 %vm17183_vm11, %v17182_v38  ;;  %vm17210_vm11 = vnez %v17086_v11 }
 0xa07   : > { %10720 = vmatmul.mubr.msk.bf16.gmra.mxu1 %vm17185_vm15, %v17184_v48  ;;  %vm17211_vm15 = vnez %v17088_v30 }
 0xa08   : > { %10723 = vmatprep.mubr.msk.bf16.mxu1 %vm17187_vm12, %v17186_v23  ;;  %vm17206_vm12 = vnez %v16998_v33 }
 0xa0f   : > { %10724 = vmatmul.mubr.msk.bf16.gmra.mxu1 %vm17189_vm8, %v17188_v5  ;;  %vm17212_vm8 = vnez %v17090_v62 }
 0xa67   : > { %v14875_v53 = vpop.f32.mrf.mxu1 }
 0xa68   : > { %17190 = vst [vmem:[#allocation115_spill] sm:$0xff] %v14875_v53 }
 0xa69   : > { %v14877_v6 = vpop.f32.mrf.mxu1 }
 0xa6a   : > { %17191 = vst [vmem:[#allocation110_spill] sm:$0xff] %v14877_v6 }
 0xa6b   : > { %v14879_v61 = vpop.f32.mrf.mxu1 }
 0xa6c   : > { %17192 = vst [vmem:[#allocation118_spill] sm:$0xff] %v14879_v61 }
 0xa6d   : > { %v14883_v31 = vpop.f32.mrf.mxu1 }
 0xa6e   : > { %17193 = vst [vmem:[#allocation120_spill] sm:$0xff] %v14883_v31 }
 0xa9f   : > { %v14885_v56 = vpop.f32.mrf.mxu1 }
 0xaa0   : > { %17194 = vst [vmem:[#allocation94_spill] sm:$0xff] %v14885_v56 }
 0xaa1   : > { %v14887_v4 = vpop.f32.mrf.mxu1 }
 0xaa2   : > { %17195 = vst [vmem:[#allocation93_spill] sm:$0xff] %v14887_v4 }
 0xaa3   : > { %v14889_v8 = vpop.f32.mrf.mxu1 }
 0xaa4   : > { %17196 = vst [vmem:[#allocation91_spill] sm:$0xff] %v14889_v8 }
 0xaa5   : > { %v14893_v24 = vpop.f32.mrf.mxu1 }
 0xaa6   : > { %17197 = vst [vmem:[#allocation84_spill] sm:$0xff] %v14893_v24 }
 0xaa7   : > { %v14895_v32 = vpop.f32.mrf.mxu1 }
 0xaa8   : > { %17198 = vst [vmem:[#allocation87_spill] sm:$0xff] %v14895_v32 }
 0xaa9   : > { %v14897_v2 = vpop.f32.mrf.mxu1 }
 0xaaa   : > { %17199 = vst [vmem:[#allocation83_spill] sm:$0xff] %v14897_v2 }
 0xaab   : > { %v14899_v17 = vpop.f32.mrf.mxu1 }
 0xaac   : > { %17200 = vst [vmem:[#allocation79_spill] sm:$0xff] %v14899_v17 }
 0xaad   : > { %v14903_v44 = vpop.f32.mrf.mxu1 }
 0xaae   : > { %17201 = vst [vmem:[#allocation75_spill] sm:$0xff] %v14903_v44 }
 0xaaf   : > { %v14905_v39 = vpop.f32.mrf.mxu1 }
 0xab0   : > { %17202 = vst [vmem:[#allocation71_spill] sm:$0xff] %v14905_v39 }
 0xab1   : > { %v14907_v19 = vpop.f32.mrf.mxu1 }
 0xab2   : > { %17203 = vst [vmem:[#allocation67_spill] sm:$0xff] %v14907_v19 }
 0xab3   : > { %v14909_v45 = vpop.f32.mrf.mxu1 }
 0xab4   : > { %17204 = vst [vmem:[#allocation63_spill] sm:$0xff] %v14909_v45 }
 0xab5   : > { %v14913_v37 = vpop.f32.mrf.mxu1 }
 0xab6   : > { %17205 = vst [vmem:[#allocation59_spill] sm:$0xff] %v14913_v37 }
 0xab7   : > { %v10713_v52 = vpop.f32.mrf.mxu1 }
 0xab8   : > { %v6158_v54 = vsel %vm13821_vm1, %v10713_v52, -1e+30 }
 0xab9   : > { %6176 = vmax.xlane.f32.xlu0 %v6158_v54  ;;  %v6093_v7 = vpop.f32.mrf.mxu1 }
 0xaba   : > { %v6156_v58 = vsel %vm13836_vm2, %v6093_v7, -1e+30 }
 0xabb   : > { %v10714_v16 = vpop.f32.mrf.mxu1 }
 0xabc   : > { %v6159_v22 = vsel %vm13853_vm4, %v10714_v16, -1e+30 }
 0xabd   : > { %6172 = vmax.xlane.f32.xlu0 %v6156_v58  ;;  %6178 = vmax.xlane.f32.xlu1 %v6159_v22  ;;  %v6096_v19 = vpop.f32.mrf.mxu1 }
 0xabe   : > { %v6157_v52 = vsel %vm13842_vm3, %v6096_v19, -1e+30 }
 0xabf   : > { %v10717_v32 = vpop.f32.mrf.mxu1 }
 0xac0   : > { %v14923_v43 = vsel %vm13864_vm5, %v10717_v32, -1e+30 }
 0xac1   : > { %6174 = vmax.xlane.f32.xlu1 %v6157_v52  ;;  %6184 = vmax.xlane.f32.xlu0 %v14923_v43  ;;  %v6109_v39 = vpop.f32.mrf.mxu1 }
 0xac2   : > { %v14930_v7 = vsel %vm13886_vm7, %v6109_v39, -1e+30 }
 0xac3   : > { %v10718_v45 = vpop.f32.mrf.mxu1 }
 0xac5   : > { %6180 = vmax.xlane.f32.xlu0 %v14930_v7  ;;  %v6112_v16 = vpop.f32.mrf.mxu1 }
 0xac7   : > { %v10721_v37 = vpop.f32.mrf.mxu1 }
 0xac8   : > { %v14935_v32 = vsel %vm13908_vm9, %v10721_v37, -1e+30 }
 0xac9   : > { %6192 = vmax.xlane.f32.xlu0 %v14935_v32  ;;  %v6125_v19 = vpop.f32.mrf.mxu1 }
 0xaca   : > { %v14940_v44 = vsel %vm17140_vm13, %v6125_v19, -1e+30  ;;  %v6163_v19 = vsel %vm17207_vm10, %v10718_v45, -1e+30 }
 0xacb   : > { %v10722_v17 = vpop.f32.mrf.mxu1 }
 0xacd   : > { %6188 = vmax.xlane.f32.xlu0 %v14940_v44  ;;  %v6128_v39 = vpop.f32.mrf.mxu1 }
 0xacf   : > { %v10725_v2 = vpop.f32.mrf.mxu1 }
 0xad0   : > { %v14945_v56 = vsel %vm17142_vm14, %v10725_v2, -1e+30  ;;  %v6161_v2 = vsel %vm17208_vm0, %v6112_v16, -1e+30 }
 0xad1   : > { %6200 = vmax.xlane.f32.xlu0 %v14945_v56  ;;  %v6141_v37 = vpop.f32.mrf.mxu1 }
 0xad2   : > { %6465 = vrot.lane.b32.xlu1 %v17155_v40, %s12763_s21  ;;  %v14952_v8 = vsel %vm17206_vm12, %v6141_v37, -1e+30  ;;  %v14963_v40 = vsel %vm17209_vm6, %v10722_v17, -1e+30  ;;  %v14968_v37 = vsel %vm17210_vm11, %v6128_v39, -1e+30 }
 0xad3   : > { %v10726_v24 = vpop.f32.mrf.mxu1 }
 0xad5   : > { %6196 = vmax.xlane.f32.xlu0 %v14952_v8  ;;  %v6144_v45 = vpop.f32.mrf.mxu1 }
 0xad6   : > { %v14978_v17 = vsel %vm17212_vm8, %v6144_v45, -1e+30  ;;  %vm17213_vm8 = vcmask 523264  }
 0xad7   : > { %vm17214_vm12 = vmmov %vm17213_vm8 }
 0xad8   : > { %vm17216_vm14 = vmmov %vm17213_vm8 }
 0xad9   : > { %vm17217_vm11 = vmmov %vm17213_vm8 }
 0xada   : > { %vm17218_vm13 = vmmov %vm17213_vm8 }
 0xadb   : > { %vm17219_vm6 = vmmov %vm17213_vm8 }
 0xadc   : > { %vm17221_vm9 = vmmov %vm17219_vm6 }
 0xaeb   : > { %6463 = vrot.lane.b32.xlu0 %v17158_v1, %s12763_s21  ;;  %v14973_v1 = vsel %vm17211_vm15, %v10726_v24, -1e+30  ;;  %vm17215_vm15 = vmmov %vm17213_vm8 }
 0xaf6   : > { %6186 = vmax.xlane.f32.xlu1 %v6163_v19 }
 0xafa   : > { %6182 = vmax.xlane.f32.xlu1 %v6161_v2 }
 0xafe   : > { %6194 = vmax.xlane.f32.xlu1 %v14963_v40 }
 0xb02   : > { %6190 = vmax.xlane.f32.xlu1 %v14968_v37 }
 0xb06   : > { %6202 = vmax.xlane.f32.xlu1 %v14973_v1 }
 0xb0a   : > { %6198 = vmax.xlane.f32.xlu1 %v14978_v17 }
 0xb42   : > { %v6177_v16 = vpop.xlane.xlu0 %6176 }
 0xb43   : > { %v6206_v4 = vsub.f32 %v6158_v54, %v6177_v16 }
 0xb45   : > { %v6224_v39 = vmul.f32 1.442695, %v6206_v4 }
 0xb46   : > { %v6179_v53 = vpop.xlane.xlu1 %6178  ;;  %v6173_v61 = vpop.xlane.xlu0 %6172 }
 0xb47   : > { %12317 = vpow2.f32 %v6224_v39  ;;  %v6207_v31 = vsub.f32 %v6159_v22, %v6179_v53  ;;  %v6204_v6 = vsub.f32 %v6156_v58, %v6173_v61 }
 0xb49   : > { %v6226_v63 = vmul.f32 1.442695, %v6207_v31  ;;  %v6220_v24 = vmul.f32 1.442695, %v6204_v6 }
 0xb4a   : > { %v6175_v41 = vpop.xlane.xlu1 %6174 }
 0xb4b   : > { %12319 = vpow2.f32 %v6226_v63  ;;  %v6205_v47 = vsub.f32 %v6157_v52, %v6175_v41  ;;  %v6185_v63 = vpop.xlane.xlu0 %6184 }
 0xb4c   : > { %12321 = vpow2.f32 %v6220_v24 }
 0xb4d   : > { %v6222_v28 = vmul.f32 1.442695, %v6205_v47  ;;  %v6210_v47 = vsub.f32 %v14923_v43, %v6185_v63 }
 0xb4e   : > { %v14998_v53 = vpop.permute.xlu1 %6465 }
 0xb4f   : > { %12323 = vpow2.f32 %v6222_v28  ;;  %v6181_v41 = vpop.xlane.xlu0 %6180  ;;  %v6232_v61 = vmul.f32 1.442695, %v6210_v47 }
 0xb50   : > { %v6208_v6 = vsub.f32 %v14930_v7, %v6181_v41 }
 0xb51   : > { %12325 = vpow2.f32 %v6232_v61 }
 0xb52   : > { %v6228_v52 = vmul.f32 1.442695, %v6208_v6 }
 0xb53   : > { %v6193_v28 = vpop.xlane.xlu0 %6192 }
 0xb54   : > { %v14981_v45 = vpop.eup %12317  ;;  %v6214_v39 = vsub.f32 %v14935_v32, %v6193_v28  ;;  %12327 = vpow2.f32 %v6228_v52 }
 0xb55   : > { %6256 = vadd.xlane.f32.xlu0 %v14981_v45 }
 0xb56   : > { %v6240_v62 = vmul.f32 1.442695, %v6214_v39 }
 0xb57   : > { %v6189_v58 = vpop.xlane.xlu0 %6188 }
 0xb58   : > { %v14984_v51 = vpop.eup %12319  ;;  %v6212_v33 = vsub.f32 %v14940_v44, %v6189_v58 }
 0xb59   : > { %v14986_v54 = vpop.eup %12321  ;;  %6258 = vadd.xlane.f32.xlu1 %v14984_v51 }
 0xb5a   : > { %6252 = vadd.xlane.f32.xlu0 %v14986_v54 }
 0xb5b   : > { %v6201_v31 = vpop.xlane.xlu0 %6200 }
 0xb5c   : > { %v14990_v22 = vpop.eup %12323 }
 0xb5d   : > { %6254 = vadd.xlane.f32.xlu1 %v14990_v22 }
 0xb5f   : > { %v6197_v43 = vpop.xlane.xlu0 %6196 }
 0xb60   : > { %v6216_v47 = vsub.f32 %v14952_v8, %v6197_v43 }
 0xb62   : > { %v6244_v6 = vmul.f32 1.442695, %v6216_v47  ;;  %v6515_v47 = vsel %vm17213_vm8, %v14845_v18, 0  ;;  %vm17220_vm8 = vmmov %vm17219_vm6 }
 0xb6e   : > { %6461 = vrot.lane.b32.xlu1 %v17161_v36, %s12763_s21 }
 0xb70   : > { %6459 = vrot.lane.b32.xlu0 %v17163_v55, %s12763_s21  ;;  %v6218_v55 = vsub.f32 %v14945_v56, %v6201_v31  ;;  %v15006_v56 = vpop.eup %12325 }
 0xb71   : > { %v15011_v58 = vpop.eup %12327 }
 0xb72   : > { %v6248_v41 = vmul.f32 1.442695, %v6218_v55 }
 0xb7f   : > { %v6187_v4 = vpop.xlane.xlu1 %6186 }
 0xb80   : > { %v6211_v16 = vsub.f32 %v6163_v19, %v6187_v4  ;;  %v6236_v19 = vmul.f32 1.442695, %v6212_v33 }
 0xb82   : > { %v6234_v36 = vmul.f32 1.442695, %v6211_v16 }
 0xb83   : > { %v6183_v24 = vpop.xlane.xlu1 %6182 }
 0xb84   : > { %v6209_v35 = vsub.f32 %v6161_v2, %v6183_v24  ;;  %12329 = vpow2.f32 %v6234_v36 }
 0xb86   : > { %v6230_v63 = vmul.f32 1.442695, %v6209_v35 }
 0xb87   : > { %v6195_v7 = vpop.xlane.xlu1 %6194 }
 0xb88   : > { %12331 = vpow2.f32 %v6230_v63  ;;  %v6215_v32 = vsub.f32 %v14963_v40, %v6195_v7 }
 0xb89   : > { %12333 = vpow2.f32 %v6240_v62 }
 0xb8a   : > { %12335 = vpow2.f32 %v6248_v41  ;;  %v6242_v35 = vmul.f32 1.442695, %v6215_v32 }
 0xb8b   : > { %v6191_v28 = vpop.xlane.xlu1 %6190  ;;  %12337 = vpow2.f32 %v6236_v19 }
 0xb8c   : > { %12339 = vpow2.f32 %v6244_v6  ;;  %v6213_v2 = vsub.f32 %v14968_v37, %v6191_v28 }
 0xb8d   : > { %12341 = vpow2.f32 %v6242_v35 }
 0xb8e   : > { %v6238_v61 = vmul.f32 1.442695, %v6213_v2 }
 0xb8f   : > { %6264 = vadd.xlane.f32.xlu0 %v15006_v56  ;;  %v6203_v44 = vpop.xlane.xlu1 %6202 }
 0xb90   : > { %v6219_v8 = vsub.f32 %v14973_v1, %v6203_v44 }
 0xb91   : > { %v15014_v40 = vpop.eup %12329 }
 0xb92   : > { %v6250_v33 = vmul.f32 1.442695, %v6219_v8  ;;  %6260 = vadd.xlane.f32.xlu1 %v15011_v58 }
 0xb93   : > { %v6199_v62 = vpop.xlane.xlu1 %6198 }
 0xb94   : > { %12343 = vpow2.f32 %v6250_v33  ;;  %v6217_v31 = vsub.f32 %v14978_v17, %v6199_v62 }
 0xb95   : > { %v15017_v4 = vpop.eup %12331  ;;  %12345 = vpow2.f32 %v6238_v61 }
 0xb96   : > { %6262 = vadd.xlane.f32.xlu0 %v15017_v4  ;;  %6266 = vadd.xlane.f32.xlu1 %v15014_v40  ;;  %v15021_v37 = vpop.eup %12333  ;;  %v6246_v1 = vmul.f32 1.442695, %v6217_v31 }
 0xb97   : > { %v15023_v52 = vpop.eup %12335 }
 0xb98   : > { %v15027_v16 = vpop.eup %12337  ;;  %12347 = vpow2.f32 %v6246_v1 }
 0xb99   : > { %v15029_v17 = vpop.eup %12339 }
 0xb9a   : > { %6272 = vadd.xlane.f32.xlu1 %v15021_v37  ;;  %6280 = vadd.xlane.f32.xlu0 %v15023_v52  ;;  %v15033_v39 = vpop.eup %12341 }
 0xb9e   : > { %6268 = vadd.xlane.f32.xlu1 %v15027_v16  ;;  %6276 = vadd.xlane.f32.xlu0 %v15029_v17 }
 0xba1   : > { %v15035_v36 = vpop.eup %12343 }
 0xba2   : > { %6274 = vadd.xlane.f32.xlu1 %v15033_v39  ;;  %6282 = vadd.xlane.f32.xlu0 %v15035_v36  ;;  %v15039_v24 = vpop.eup %12345 }
 0xba5   : > { %v15042_v55 = vpop.eup %12347 }
 0xba6   : > { %6270 = vadd.xlane.f32.xlu1 %v15039_v24 }
 0xbaa   : > { %6278 = vadd.xlane.f32.xlu1 %v15042_v55 }
 0xbb8   : > { %6455 = vrot.lane.b32.xlu0 %v17169_v20, %s12763_s21 }
 0xbbb   : > { %6457 = vrot.lane.b32.xlu1 %v17166_v15, %s12763_s21  ;;  %v6464_v15 = vpop.permute.xlu0 %6463 }
 0xbbc   : > { %6453 = vrot.lane.b32.xlu0 %v17171_v14, %s12763_s21 }
 0xbbf   : > { %6429 = vrot.lane.b32.xlu1 %v17175_v50, %s12763_s21 }
 0xbc0   : > { %6431 = vrot.lane.b32.xlu0 %v17177_v3, %s12763_s21 }
 0xbc3   : > { %6433 = vrot.lane.b32.xlu1 %v17179_v12, %s12763_s21 }
 0xbc4   : > { %6435 = vrot.lane.b32.xlu0 %v17180_v27, %s12763_s21 }
 0xbc7   : > { %6437 = vrot.lane.b32.xlu1 %v17182_v38, %s12763_s21 }
 0xbc8   : > { %6439 = vrot.lane.b32.xlu0 %v17184_v48, %s12763_s21 }
 0xbcb   : > { %6441 = vrot.lane.b32.xlu1 %v17186_v23, %s12763_s21 }
 0xbcc   : > { %6443 = vrot.lane.b32.xlu0 %v17188_v5, %s12763_s21 }
 0xbde   : > { %v6257_v20 = vpop.xlane.xlu0 %6256 }
 0xbe2   : > { %v6259_v14 = vpop.xlane.xlu1 %6258 }
 0xbe3   : > { %v6253_v50 = vpop.xlane.xlu0 %6252  ;;  %12349 = vrcp.f32 %v6259_v14 }
 0xbe4   : > { %12351 = vrcp.f32 %v6253_v50 }
 0xbe5   : > { %12353 = vrcp.f32 %v6257_v20 }
 0xbe6   : > { %v6255_v3 = vpop.xlane.xlu1 %6254 }
 0xbe7   : > { %12355 = vrcp.f32 %v6255_v3  ;;  %v6460_v19 = vpop.permute.xlu0 %6459 }
 0xbe8   : > { %v6503_v18 = vsel %vm17221_vm9, %v6460_v19, 0  ;;  %vm17222_vm9 = vmmov %vm17219_vm6 }
 0xbf0   : > { %v12350_v12 = vpop.eup %12349 }
 0xbf1   : > { %v12352_v27 = vpop.eup %12351  ;;  %v6303_v48 = vmul.f32 %v12350_v12, %v14984_v51  ;;  %v6512_v51 = vsel %vm17215_vm15, %v14998_v53, 0  ;;  %vm17229_vm15 = vmmov %vm17219_vm6 }
 0xbf2   : > { %v12354_v38 = vpop.eup %12353  ;;  %v6300_v23 = vmul.f32 %v12352_v27, %v14986_v54  ;;  %v6509_v54 = vsel %vm17217_vm11, %v6464_v15, 0  ;;  %vm17228_vm11 = vmmov %vm17219_vm6 }
 0xbf3   : > { %v6302_v5 = vmul.f32 %v12354_v38, %v14981_v45  ;;  %v6462_v45 = vpop.permute.xlu1 %6461 }
 0xbf4   : > { %v12356_v43 = vpop.eup %12355 }
 0xbf5   : > { %v6301_v63 = vmul.f32 %v12356_v43, %v14990_v22  ;;  %v6317_v41 = vpack.c.bf16 %v6303_v48, %v6302_v5  ;;  %v6506_v22 = vsel %vm17219_vm6, %v6462_v45, 0 }
 0xbf7   : > { %v6316_v7 = vpack.c.bf16 %v6301_v63, %v6300_v23 }
 0xbf9   : > { %10743 = vmatprep.mubr.bf16.mxu0 %v6316_v7 }
 0xbfa   : > { %10744 = vmatmul.mubr.bf16.vlgmr.msra.gmra.mxu0 %v6317_v41 }
 0xbfb   : > { %10760 = vmatpush3.bf16.xpose.msra.mxu0 %v6515_v47 }
 0xbfc   : > { %11024 = vmatprep.subr.msk.bf16.mxu0 %vm17214_vm12, %v14998_v53  ;;  %vm17225_vm12 = vmmov %vm17219_vm6 }
 0xc03   : > { %10762 = vmatpush3.bf16.xpose.msra.mxu0 %v6512_v51 }
 0xc04   : > { %11025 = vmatprep.subr.msk.bf16.mxu0 %vm17216_vm14, %v6464_v15  ;;  %vm17224_vm14 = vmmov %vm17219_vm6 }
 0xc0b   : > { %10764 = vmatpush3.bf16.xpose.msra.mxu0 %v6509_v54 }
 0xc0c   : > { %11026 = vmatprep.subr.msk.bf16.mxu0 %vm17218_vm13, %v6462_v45  ;;  %vm17223_vm13 = vmmov %vm17219_vm6 }
 0xc13   : > { %10766 = vmatpush3.bf16.xpose.msra.mxu0 %v6506_v22 }
 0xc14   : > { %11027 = vmatprep.subr.msk.bf16.mxu0 %vm17220_vm8, %v6460_v19  ;;  %vm17235_vm8 = vmmov %vm17219_vm6 }
 0xc18   : > { %v6265_v32 = vpop.xlane.xlu0 %6264 }
 0xc19   : > { %12357 = vrcp.f32 %v6265_v32 }
 0xc1b   : > { %10768 = vmatpush3.bf16.xpose.msra.mxu0 %v6503_v18  ;;  %v6261_v53 = vpop.xlane.xlu1 %6260 }
 0xc1c   : > { %12359 = vrcp.f32 %v6261_v53  ;;  %v17226_v53 = vld [vmem:[#allocation126_spill] sm:$0xff] }
 0xc1f   : > { %v6267_v28 = vpop.xlane.xlu1 %6266  ;;  %v6263_v6 = vpop.xlane.xlu0 %6262 }
 0xc20   : > { %12361 = vrcp.f32 %v6267_v28 }
 0xc21   : > { %12363 = vrcp.f32 %v6263_v6 }
 0xc23   : > { %v6273_v35 = vpop.xlane.xlu1 %6272  ;;  %v6281_v44 = vpop.xlane.xlu0 %6280 }
 0xc26   : > { %v12358_v8 = vpop.eup %12357 }
 0xc27   : > { %v6269_v2 = vpop.xlane.xlu1 %6268  ;;  %v6277_v61 = vpop.xlane.xlu0 %6276  ;;  %v6306_v15 = vmul.f32 %v12358_v8, %v15006_v56 }
 0xc29   : > { %v12360_v62 = vpop.eup %12359 }
 0xc2a   : > { %v6304_v50 = vmul.f32 %v12360_v62, %v15011_v58 }
 0xc2b   : > { %v6275_v33 = vpop.xlane.xlu1 %6274  ;;  %v6283_v38 = vpop.xlane.xlu0 %6282 }
 0xc2c   : > { %12365 = vrcp.f32 %v6275_v33  ;;  %v17231_v33 = vld [vmem:[#allocation88_spill] sm:$0xff] }
 0xc2d   : > { %v12362_v31 = vpop.eup %12361  ;;  %12367 = vrcp.f32 %v6269_v2 }
 0xc2e   : > { %v12364_v1 = vpop.eup %12363  ;;  %v6307_v20 = vmul.f32 %v12362_v31, %v15014_v40  ;;  %12369 = vrcp.f32 %v6273_v35  ;;  %v17233_v31 = vld [vmem:[#allocation121_spill] sm:$0xff] }
 0xc2f   : > { %v6271_v14 = vpop.xlane.xlu1 %6270  ;;  %v6305_v3 = vmul.f32 %v12364_v1, %v15017_v4  ;;  %v6456_v48 = vpop.permute.xlu0 %6455  ;;  %v17234_v1 = vld [vmem:[#allocation124_spill] sm:$0xff] }
 0xc30   : > { %12371 = vrcp.f32 %v6271_v14  ;;  %v6319_v12 = vpack.c.bf16 %v6307_v20, %v6306_v15  ;;  %v6497_v54 = vsel %vm17225_vm12, %v6456_v48, 0  ;;  %v17237_v14 = vld [vmem:[#allocation108_spill] sm:$0xff]  ;;  %vm17253_vm12 = vmmov %vm17219_vm6 }
 0xc31   : > { %v6318_v27 = vpack.c.bf16 %v6305_v3, %v6304_v50  ;;  %12373 = vrcp.f32 %v6277_v61  ;;  %v17232_v61 = vld [vmem:[#allocation113_spill] sm:$0xff]  ;;  %v17238_v50 = vld [vmem:[#allocation116_spill] sm:$0xff] }
 0xc32   : > { %v3983_v3 = vadd.f32 %v17238_v50, %v17237_v14 }
 0xc33   : > { %10747 = vmatprep.mubr.bf16.mxu0 %v6318_v27  ;;  %v6279_v43 = vpop.xlane.xlu1 %6278  ;;  %v6454_v19 = vpop.permute.xlu0 %6453 }
 0xc34   : > { %12375 = vrcp.f32 %v6279_v43  ;;  %10748 = vmatmul.mubr.bf16.gmra.mxu0 %v6319_v12  ;;  %v6494_v8 = vsel %vm17228_vm11, %v6454_v19, 0  ;;  %v17239_v12 = vld [vmem:[#allocation119_spill] sm:$0xff]  ;;  %v17240_v43 = vld [vmem:[#allocation104_spill] sm:$0xff]  ;;  %vm17260_vm11 = vmmov %vm17219_vm6 }
 0xc35   : > { %12377 = vrcp.f32 %v6283_v38 }
 0xc36   : > { %12379 = vrcp.f32 %v6281_v44  ;;  %v17227_v44 = vld [vmem:[#allocation90_spill] sm:$0xff] }
 0xc37   : > { %v6458_v56 = vpop.permute.xlu1 %6457 }
 0xc38   : > { %11028 = vmatprep.subr.msk.bf16.mxu0 %vm17222_vm9, %v6458_v56  ;;  %v6500_v40 = vsel %vm17223_vm13, %v6458_v56, 0  ;;  %vm17236_vm9 = vmmov %vm17219_vm6  ;;  %v17241_v56 = vld [vmem:[#allocation111_spill] sm:$0xff] }
 0xc39   : > { %10770 = vmatpush3.bf16.xpose.msra.mxu0 %v6500_v40  ;;  %v12366_v58 = vpop.eup %12365  ;;  %v3973_v40 = vadd.f32 %v17241_v56, %v17240_v43  ;;  %vm17243_vm13 = vmmov %vm17219_vm6 }
 0xc3a   : > { %11029 = vmatprep.subr.msk.bf16.mxu0 %vm17224_vm14, %v6456_v48  ;;  %v12368_v4 = vpop.eup %12367  ;;  %v6311_v5 = vmul.f32 %v12366_v58, %v15033_v39  ;;  %v17242_v48 = vld [vmem:[#allocation114_spill] sm:$0xff]  ;;  %vm17244_vm14 = vmmov %vm17219_vm6 }
 0xc3b   : > { %v12370_v23 = vpop.eup %12369  ;;  %v6308_v7 = vmul.f32 %v12368_v4, %v15027_v16  ;;  %v15129_v58 = vpack.c.bf16 %v3983_v3, %v17242_v48 }
 0xc3c   : > { %v6310_v51 = vmul.f32 %v12370_v23, %v15021_v37  ;;  %v4013_v37 = vadd.f32 %v14349_v49, %v17226_v53  ;;  %v17230_v49 = vld [vmem:[#allocation123_spill] sm:$0xff]  ;;  %v17245_v23 = vld [vmem:[#allocation100_spill] sm:$0xff] }
 0xc3d   : > { %v12372_v63 = vpop.eup %12371  ;;  %v4003_v62 = vadd.f32 %v17231_v33, %v17230_v49 }
 0xc3e   : > { %v6309_v41 = vmul.f32 %v12372_v63, %v15039_v24  ;;  %v12374_v47 = vpop.eup %12373  ;;  %v6321_v18 = vpack.c.bf16 %v6311_v5, %v6310_v51  ;;  %v15103_v2 = vpack.c.bf16 %v4013_v37, %v17227_v44  ;;  %v17246_v63 = vld [vmem:[#allocation106_spill] sm:$0xff]  ;;  %v17249_v51 = vld [vmem:[#allocation96_spill] sm:$0xff] }
 0xc3f   : > { %v6312_v39 = vmul.f32 %v12374_v47, %v15029_v17  ;;  %v15113_v15 = vpack.c.bf16 %v4003_v62, %v17234_v1  ;;  %v3963_v5 = vadd.f32 %v17246_v63, %v17245_v23 }
 0xc40   : > { %v6320_v45 = vpack.c.bf16 %v6309_v41, %v6308_v7  ;;  %v17247_v7 = vld [vmem:[#allocation109_spill] sm:$0xff] }
 0xc41   : > { %v12376_v22 = vpop.eup %12375  ;;  %10772 = vmatpush3.bf16.xpose.msra.mxu0 %v6497_v54  ;;  %v15138_v41 = vpack.c.bf16 %v3973_v40, %v17247_v7  ;;  %v17250_v54 = vld [vmem:[#allocation102_spill] sm:$0xff] }
 0xc42   : > { %v12378_v32 = vpop.eup %12377  ;;  %10751 = vmatprep.mubr.bf16.mxu0 %v6320_v45  ;;  %11030 = vmatprep.subr.msk.bf16.mxu0 %vm17219_vm6, %v6454_v19  ;;  %v6313_v16 = vmul.f32 %v12376_v22, %v15042_v55  ;;  %v6430_v55 = vpop.permute.xlu1 %6429  ;;  %v3953_v45 = vadd.f32 %v17250_v54, %v17249_v51  ;;  %v17251_v22 = vld [vmem:[#allocation105_spill] sm:$0xff] }
 0xc43   : > { %10752 = vmatmul.mubr.bf16.gmra.mxu0 %v6321_v18  ;;  %v12380_v24 = vpop.eup %12379  ;;  %v6315_v6 = vmul.f32 %v12378_v32, %v15035_v36  ;;  %v6432_v36 = vpop.permute.xlu0 %6431  ;;  %17248 = vst [vmem:[#allocation23_spill] sm:$0xff] %v15138_v41  ;;  %v15145_v19 = vpack.c.bf16 %v3963_v5, %v17251_v22  ;;  %v17254_v32 = vld [vmem:[#allocation95_spill] sm:$0xff] }
 0xc44   : > { %v6322_v28 = vpack.c.bf16 %v6313_v16, %v6312_v39  ;;  %v6314_v35 = vmul.f32 %v12380_v24, %v15023_v52  ;;  %v3993_v52 = vadd.f32 %v17233_v31, %v17232_v61  ;;  %v17255_v39 = vld [vmem:[#allocation98_spill] sm:$0xff]  ;;  %v17256_v24 = vld [vmem:[#allocation101_spill] sm:$0xff] }
 0xc45   : > { %17252 = vst [vmem:[#allocation25_spill] sm:$0xff] %v15145_v19  ;;  %v3943_v16 = vadd.f32 %v17255_v39, %v17254_v32  ;;  %v15154_v53 = vpack.c.bf16 %v3953_v45, %v17256_v24 }
 0xc46   : > { %10755 = vmatprep.mubr.bf16.mxu0 %v6322_v28  ;;  %v6323_v17 = vpack.c.bf16 %v6315_v6, %v6314_v35  ;;  %v6434_v20 = vpop.permute.xlu1 %6433  ;;  %v15122_v27 = vpack.c.bf16 %v3993_v52, %v17239_v12  ;;  %v17258_v28 = vld [vmem:[#allocation97_spill] sm:$0xff] }
 0xc47   : > { %v6436_v38 = vpop.permute.xlu0 %6435  ;;  %17257 = vst [vmem:[#allocation27_spill] sm:$0xff] %v15154_v53  ;;  %v15159_v6 = vpack.c.bf16 %v3943_v16, %v17258_v28 }
 0xc49   : > { %10774 = vmatpush3.bf16.xpose.msra.mxu0 %v6494_v8  ;;  %17259 = vst [vmem:[#allocation29_spill] sm:$0xff] %v15159_v6 }
 0xc4a   : > { %10855 = vmatprep.subr.bf16.mxu0 %v15103_v2  ;;  %v6438_v4 = vpop.permute.xlu1 %6437 }
 0xc4b   : > { %10756 = vmatmul.mubr.bf16.gmra.mxu0 %v6323_v17  ;;  %v6440_v47 = vpop.permute.xlu0 %6439 }
 0xc4c   : > { %10775 = vmatprep.mubr.msk.bf16.mxu0 %vm17229_vm15, %v6430_v55  ;;  %vm17277_vm15 = vnez %v16983_v46 }
 0xc4e   : > { %v6442_v18 = vpop.permute.xlu1 %6441 }
 0xc4f   : > { %v6444_v37 = vpop.permute.xlu0 %6443 }
 0xc53   : > { %10776 = vmatmul.mubr.msk.bf16.vlgmr.msra.gmra.mxu0 %vm17235_vm8, %v6432_v36  ;;  %vm17278_vm8 = vnez %v17084_v60 }
 0xc54   : > { %10856 = vmatpush3.bf16.msra.mxu0 %v15103_v2  ;;  %10779 = vmatprep.mubr.msk.bf16.mxu0 %vm17236_vm9, %v6434_v20  ;;  %vm17279_vm9 = vnez %v16988_v10 }
 0xc55   : > { %10857 = vmatprep.subr.bf16.mxu0 %v15113_v15 }
 0xc58   : > { %10858 = vmatpush3.bf16.msra.mxu0 %v15113_v15 }
 0xc59   : > { %10859 = vmatprep.subr.bf16.mxu0 %v15122_v27 }
 0xc5b   : > { %10780 = vmatmul.mubr.msk.bf16.gmra.mxu0 %vm17243_vm13, %v6436_v38  ;;  %vm17280_vm13 = vnez %v17086_v11 }
 0xc5c   : > { %10860 = vmatpush3.bf16.msra.mxu0 %v15122_v27  ;;  %10783 = vmatprep.mubr.msk.bf16.mxu0 %vm17244_vm14, %v6438_v4  ;;  %vm17281_vm14 = vnez %v16993_v59 }
 0xc5d   : > { %10861 = vmatprep.subr.bf16.mxu0 %v15129_v58 }
 0xc60   : > { %10862 = vmatpush3.bf16.msra.mxu0 %v15129_v58 }
 0xc61   : > { %10863 = vmatprep.subr.bf16.mxu0 %v15138_v41 }
 0xc63   : > { %10784 = vmatmul.mubr.msk.bf16.gmra.mxu0 %vm17253_vm12, %v6440_v47  ;;  %vm17282_vm12 = vnez %v17088_v30 }
 0xc64   : > { %10864 = vmatpush3.bf16.msra.mxu0 %v15138_v41  ;;  %10787 = vmatprep.mubr.msk.bf16.mxu0 %vm17219_vm6, %v6442_v18 }
 0xc65   : > { %10865 = vmatprep.subr.bf16.mxu0 %v15145_v19 }
 0xc68   : > { %10866 = vmatpush3.bf16.msra.mxu0 %v15145_v19 }
 0xc69   : > { %10867 = vmatprep.subr.bf16.mxu0 %v15154_v53 }
 0xc6b   : > { %10788 = vmatmul.mubr.msk.bf16.gmra.mxu0 %vm17260_vm11, %v6444_v37 }
 0xc6c   : > { %10868 = vmatpush3.bf16.msra.mxu0 %v15154_v53 }
 0xc6d   : > { %10869 = vmatprep.subr.bf16.mxu0 %v15159_v6 }
 0xc70   : > { %10870 = vmatpush3.bf16.msra.mxu0 %v15159_v6 }
 0xcba   : > { %v15165_v35 = vpop.f32.mrf.mxu0 }
 0xcbb   : > { %17261 = vst [vmem:[#allocation31_spill] sm:$0xff] %v15165_v35 }
 0xcbc   : > { %v15167_v44 = vpop.f32.mrf.mxu0 }
 0xcbd   : > { %17262 = vst [vmem:[#allocation33_spill] sm:$0xff] %v15167_v44 }
 0xcbe   : > { %v15169_v8 = vpop.f32.mrf.mxu0 }
 0xcbf   : > { %17263 = vst [vmem:[#allocation35_spill] sm:$0xff] %v15169_v8 }
 0xcc0   : > { %v15171_v17 = vpop.f32.mrf.mxu0 }
 0xcc1   : > { %17264 = vst [vmem:[#allocation37_spill] sm:$0xff] %v15171_v17 }
 0xcf4   : > { %v15173_v55 = vpop.f32.mrf.mxu0 }
 0xcf5   : > { %17265 = vst [vmem:[#allocation126_spill] sm:$0xff] %v15173_v55 }
 0xcf6   : > { %v15175_v49 = vpop.f32.mrf.mxu0 }
 0xcf7   : > { %17266 = vst [vmem:[#allocation90_spill] sm:$0xff] %v15175_v49 }
 0xcf8   : > { %v15177_v33 = vpop.f32.mrf.mxu0 }
 0xcf9   : > { %17267 = vst [vmem:[#allocation123_spill] sm:$0xff] %v15177_v33 }
 0xcfa   : > { %v15179_v62 = vpop.f32.mrf.mxu0 }
 0xcfb   : > { %17268 = vst [vmem:[#allocation88_spill] sm:$0xff] %v15179_v62 }
 0xd03   : > { %v15181_v36 = vpop.f32.mrf.mxu0 }
 0xd04   : > { %17269 = vst [vmem:[#allocation113_spill] sm:$0xff] %v15181_v36 }
 0xd05   : > { %v15183_v61 = vpop.f32.mrf.mxu0 }
 0xd06   : > { %17270 = vst [vmem:[#allocation121_spill] sm:$0xff] %v15183_v61 }
 0xd07   : > { %v15185_v31 = vpop.f32.mrf.mxu0 }
 0xd08   : > { %17271 = vst [vmem:[#allocation124_spill] sm:$0xff] %v15185_v31 }
 0xd09   : > { %v15187_v52 = vpop.f32.mrf.mxu0 }
 0xd0a   : > { %17272 = vst [vmem:[#allocation108_spill] sm:$0xff] %v15187_v52 }
 0xd0b   : > { %v15189_v1 = vpop.f32.mrf.mxu0 }
 0xd0c   : > { %17273 = vst [vmem:[#allocation116_spill] sm:$0xff] %v15189_v1 }
 0xd0d   : > { %v15191_v20 = vpop.f32.mrf.mxu0 }
 0xd0e   : > { %17274 = vst [vmem:[#allocation119_spill] sm:$0xff] %v15191_v20 }
 0xd0f   : > { %v15193_v14 = vpop.f32.mrf.mxu0 }
 0xd10   : > { %17275 = vst [vmem:[#allocation104_spill] sm:$0xff] %v15193_v14 }
 0xd11   : > { %v15195_v50 = vpop.f32.mrf.mxu0 }
 0xd12   : > { %17276 = vst [vmem:[#allocation111_spill] sm:$0xff] %v15195_v50 }
 0xd13   : > { %v10777_v3 = vpop.f32.mrf.mxu0 }
 0xd14   : > { %v6616_v12 = vsel %vm13821_vm1, %v10777_v3, -1e+30 }
 0xd15   : > { %6634 = vmax.xlane.f32.xlu0 %v6616_v12  ;;  %v6551_v38 = vpop.f32.mrf.mxu0 }
 0xd16   : > { %v6614_v43 = vsel %vm13836_vm2, %v6551_v38, -1e+30 }
 0xd17   : > { %6630 = vmax.xlane.f32.xlu1 %v6614_v43  ;;  %v10778_v56 = vpop.f32.mrf.mxu0 }
 0xd18   : > { %v6617_v48 = vsel %vm13853_vm4, %v10778_v56, -1e+30 }
 0xd19   : > { %v6554_v40 = vpop.f32.mrf.mxu0 }
 0xd1a   : > { %v15205_v4 = vsel %vm13842_vm3, %v6554_v40, -1e+30 }
 0xd1b   : > { %6636 = vmax.xlane.f32.xlu1 %v6617_v48  ;;  %6632 = vmax.xlane.f32.xlu0 %v15205_v4  ;;  %v10781_v23 = vpop.f32.mrf.mxu0 }
 0xd1c   : > { %v15214_v45 = vsel %vm13864_vm5, %v10781_v23, -1e+30  ;;  %v17283_v23 = vld [vmem:[#allocation132_spill] sm:$0xff] }
 0xd1d   : > { %v6567_v63 = vpop.f32.mrf.mxu0  ;;  %vm17284_vm6 = vnez %v17283_v23 }
 0xd1f   : > { %v10782_v5 = vpop.f32.mrf.mxu0 }
 0xd20   : > { %v15218_v22 = vsel %vm17207_vm10, %v10782_v5, -1e+30  ;;  %v17285_v5 = vld [vmem:[#allocation133_spill] sm:$0xff] }
 0xd21   : > { %v6570_v7 = vpop.f32.mrf.mxu0  ;;  %vm17286_vm11 = vnez %v17285_v5 }
 0xd23   : > { %v10785_v47 = vpop.f32.mrf.mxu0 }
 0xd24   : > { %v15234_v39 = vsel %vm17277_vm15, %v10785_v47, -1e+30  ;;  %v17287_v47 = vld [vmem:[#allocation122_spill] sm:$0xff] }
 0xd25   : > { %v6583_v51 = vpop.f32.mrf.mxu0 }
 0xd26   : > { %v15244_v37 = vsel %vm17279_vm9, %v6583_v51, -1e+30  ;;  %v17288_v51 = vld [vmem:[#allocation117_spill] sm:$0xff] }
 0xd27   : > { %v10786_v54 = vpop.f32.mrf.mxu0 }
 0xd28   : > { %v15238_v16 = vsel %vm17278_vm8, %v10786_v54, -1e+30  ;;  %v17289_v54 = vld [vmem:[#allocation112_spill] sm:$0xff] }
 0xd29   : > { %v6586_v18 = vpop.f32.mrf.mxu0 }
 0xd2a   : > { %v15248_v28 = vsel %vm17280_vm13, %v6586_v18, -1e+30  ;;  %v17290_v18 = vld [vmem:[#allocation107_spill] sm:$0xff] }
 0xd2b   : > { %v10789_v32 = vpop.f32.mrf.mxu0 }
 0xd2c   : > { %6802 = vrot.lane.b32.xlu1 %v17110_v29, %s12763_s21  ;;  %v15228_v29 = vsel %vm17208_vm0, %v6570_v7, -1e+30  ;;  %v15254_v38 = vsel %vm17281_vm14, %v10789_v32, -1e+30  ;;  %v17291_v32 = vld [vmem:[#allocation99_spill] sm:$0xff] }
 0xd2d   : > { %v6599_v24 = vpop.f32.mrf.mxu0 }
 0xd2f   : > { %v10790_v3 = vpop.f32.mrf.mxu0 }
 0xd30   : > { %v15258_v56 = vsel %vm17282_vm12, %v10790_v3, -1e+30 }
 0xd31   : > { %6804 = vrot.lane.b32.xlu0 %v17106_v57, %s12763_s21  ;;  %v15224_v57 = vsel %vm13886_vm7, %v6567_v63, -1e+30  ;;  %v6602_v40 = vpop.f32.mrf.mxu0  ;;  %v15264_v63 = vsel %vm17284_vm6, %v6599_v24, -1e+30 }
 0xd32   : > { %v15268_v7 = vsel %vm17286_vm11, %v6602_v40, -1e+30  ;;  %vm17296_vm11 = vcmask 523264  }
 0xd33   : > { %vm17300_vm12 = vmmov %vm17296_vm11 }
 0xd34   : > { %vm17304_vm13 = vmmov %vm17296_vm11 }
 0xd35   : > { %vm17305_vm8 = vmmov %vm17296_vm11 }
 0xd36   : > { %vm17338_vm0 = vmmov %vm17305_vm8 }
 0xd37   : > { %vm17340_vm10 = vmmov %vm17338_vm0 }
 0xd38   : > { %vm17342_vm6 = vmmov %vm17338_vm0 }
 0xd50   : > { %6642 = vmax.xlane.f32.xlu0 %v15214_v45  ;;  %6644 = vmax.xlane.f32.xlu1 %v15218_v22 }
 0xd54   : > { %6638 = vmax.xlane.f32.xlu0 %v15224_v57  ;;  %6640 = vmax.xlane.f32.xlu1 %v15228_v29 }
 0xd58   : > { %6650 = vmax.xlane.f32.xlu0 %v15234_v39  ;;  %6652 = vmax.xlane.f32.xlu1 %v15238_v16 }
 0xd5c   : > { %6646 = vmax.xlane.f32.xlu0 %v15244_v37  ;;  %6648 = vmax.xlane.f32.xlu1 %v15248_v28 }
 0xd60   : > { %6658 = vmax.xlane.f32.xlu0 %v15254_v38  ;;  %6660 = vmax.xlane.f32.xlu1 %v15258_v56 }
 0xd64   : > { %6654 = vmax.xlane.f32.xlu0 %v15264_v63  ;;  %6656 = vmax.xlane.f32.xlu1 %v15268_v7 }
 0xd7a   : > { %6800 = vrot.lane.b32.xlu0 %v17287_v47, %s12763_s21 }
 0xd7e   : > { %6798 = vrot.lane.b32.xlu0 %v17288_v51, %s12763_s21 }
 0xd82   : > { %6796 = vrot.lane.b32.xlu0 %v17289_v54, %s12763_s21 }
 0xd86   : > { %6794 = vrot.lane.b32.xlu0 %v17290_v18, %s12763_s21 }
 0xd8a   : > { %6790 = vrot.lane.b32.xlu0 %v17291_v32, %s12763_s21 }
 0xd9e   : > { %v6635_v24 = vpop.xlane.xlu0 %6634 }
 0xd9f   : > { %v6664_v3 = vsub.f32 %v6616_v12, %v6635_v24 }
 0xda0   : > { %v6631_v40 = vpop.xlane.xlu1 %6630 }
 0xda1   : > { %v6682_v1 = vmul.f32 1.442695, %v6664_v3  ;;  %v6662_v14 = vsub.f32 %v6614_v43, %v6631_v40 }
 0xda3   : > { %12381 = vpow2.f32 %v6682_v1  ;;  %v6678_v20 = vmul.f32 1.442695, %v6662_v14 }
 0xda4   : > { %v6637_v47 = vpop.xlane.xlu1 %6636  ;;  %v6633_v50 = vpop.xlane.xlu0 %6632 }
 0xda5   : > { %v6665_v36 = vsub.f32 %v6617_v48, %v6637_v47  ;;  %12383 = vpow2.f32 %v6678_v20  ;;  %v6663_v54 = vsub.f32 %v15205_v4, %v6633_v50 }
 0xda7   : > { %v6684_v51 = vmul.f32 1.442695, %v6665_v36  ;;  %v6680_v32 = vmul.f32 1.442695, %v6663_v54 }
 0xda8   : > { %v6805_v31 = vpop.permute.xlu0 %6804  ;;  %v6803_v18 = vpop.permute.xlu1 %6802 }
 0xda9   : > { %10791 = vmatprep.subr.bf16.mxu1 %v6805_v31  ;;  %12385 = vpow2.f32 %v6684_v51 }
 0xdaa   : > { %10792 = vmatpush3.bf16.msra.mxu1 %v6805_v31  ;;  %12387 = vpow2.f32 %v6680_v32  ;;  %v17292_v31 = vld [vmem:[#allocation103_spill] sm:$0xff] }
 0xdab   : > { %10793 = vmatprep.subr.bf16.mxu1 %v6803_v18 }
 0xdae   : > { %10794 = vmatpush3.bf16.msra.mxu1 %v6803_v18 }
 0xdb0   : > { %v15283_v12 = vpop.eup %12381 }
 0xdb1   : > { %6714 = vadd.xlane.f32.xlu1 %v15283_v12 }
 0xdb2   : > { %v15286_v1 = vpop.eup %12383 }
 0xdb5   : > { %6710 = vadd.xlane.f32.xlu1 %v15286_v1 }
 0xdb6   : > { %v15289_v36 = vpop.eup %12385 }
 0xdb7   : > { %v15292_v20 = vpop.eup %12387 }
 0xdb9   : > { %6716 = vadd.xlane.f32.xlu1 %v15289_v36 }
 0xdbd   : > { %6712 = vadd.xlane.f32.xlu1 %v15292_v20 }
 0xdce   : > { %6792 = vrot.lane.b32.xlu1 %v17292_v31, %s12763_s21 }
 0xdd9   : > { %v6645_v14 = vpop.xlane.xlu1 %6644  ;;  %v6643_v50 = vpop.xlane.xlu0 %6642 }
 0xdda   : > { %v6668_v4 = vsub.f32 %v15214_v45, %v6643_v50  ;;  %v6669_v40 = vsub.f32 %v15218_v22, %v6645_v14 }
 0xddc   : > { %v6690_v32 = vmul.f32 1.442695, %v6668_v4  ;;  %v6692_v61 = vmul.f32 1.442695, %v6669_v40 }
 0xddd   : > { %v6641_v43 = vpop.xlane.xlu1 %6640  ;;  %v6639_v48 = vpop.xlane.xlu0 %6638 }
 0xdde   : > { %v6667_v24 = vsub.f32 %v15228_v29, %v6641_v43  ;;  %v6666_v3 = vsub.f32 %v15224_v57, %v6639_v48 }
 0xde0   : > { %v6688_v47 = vmul.f32 1.442695, %v6667_v24  ;;  %v6686_v51 = vmul.f32 1.442695, %v6666_v3 }
 0xde1   : > { %v6653_v54 = vpop.xlane.xlu1 %6652  ;;  %v6651_v18 = vpop.xlane.xlu0 %6650 }
 0xde2   : > { %12389 = vpow2.f32 %v6688_v47  ;;  %v6672_v29 = vsub.f32 %v15234_v39, %v6651_v18  ;;  %v6673_v22 = vsub.f32 %v15238_v16, %v6653_v54 }
 0xde3   : > { %12391 = vpow2.f32 %v6686_v51 }
 0xde4   : > { %12393 = vpow2.f32 %v6690_v32  ;;  %v6698_v48 = vmul.f32 1.442695, %v6672_v29  ;;  %v6700_v4 = vmul.f32 1.442695, %v6673_v22 }
 0xde5   : > { %v6649_v31 = vpop.xlane.xlu1 %6648  ;;  %v6647_v52 = vpop.xlane.xlu0 %6646  ;;  %12395 = vpow2.f32 %v6692_v61 }
 0xde6   : > { %v6671_v55 = vsub.f32 %v15248_v28, %v6649_v31  ;;  %v6670_v45 = vsub.f32 %v15244_v37, %v6647_v52 }
 0xde8   : > { %v6696_v57 = vmul.f32 1.442695, %v6671_v55  ;;  %v6694_v14 = vmul.f32 1.442695, %v6670_v45 }
 0xde9   : > { %v6661_v50 = vpop.xlane.xlu1 %6660  ;;  %v6659_v43 = vpop.xlane.xlu0 %6658 }
 0xdea   : > { %12397 = vpow2.f32 %v6694_v14  ;;  %v6676_v61 = vsub.f32 %v15254_v38, %v6659_v43  ;;  %v6677_v55 = vsub.f32 %v15258_v56, %v6661_v50  ;;  %v17293_v43 = vld [vmem:[#allocation80_spill] sm:$0xff] }
 0xdeb   : > { %12399 = vpow2.f32 %v6696_v57 }
 0xdec   : > { %12401 = vpow2.f32 %v6698_v48  ;;  %v6708_v51 = vmul.f32 1.442695, %v6677_v55  ;;  %v17294_v48 = vld [vmem:[#allocation86_spill] sm:$0xff] }
 0xded   : > { %v6657_v24 = vpop.xlane.xlu1 %6656  ;;  %v6655_v3 = vpop.xlane.xlu0 %6654  ;;  %12403 = vpow2.f32 %v6700_v4  ;;  %v3561_v4 = vadd.f32 %v17294_v48, %v17293_v43  ;;  %v17297_v48 = vld [vmem:[#allocation76_spill] sm:$0xff] }
 0xdee   : > { %v6675_v40 = vsub.f32 %v15268_v7, %v6657_v24  ;;  %v6674_v28 = vsub.f32 %v15264_v63, %v6655_v3  ;;  %v6706_v63 = vmul.f32 1.442695, %v6676_v61  ;;  %v17295_v24 = vld [vmem:[#allocation85_spill] sm:$0xff] }
 0xdef   : > { %v15307_v52 = vpop.eup %12389  ;;  %v4142_v3 = vpack.c.bf16 %v3561_v4, %v17295_v24  ;;  %v17298_v4 = vld [vmem:[#allocation82_spill] sm:$0xff] }
 0xdf0   : > { %v6704_v39 = vmul.f32 1.442695, %v6675_v40  ;;  %v6702_v16 = vmul.f32 1.442695, %v6674_v28  ;;  %6720 = vadd.xlane.f32.xlu0 %v15307_v52  ;;  %v15312_v37 = vpop.eup %12391  ;;  %v3551_v24 = vadd.f32 %v17298_v4, %v17297_v48  ;;  %v17311_v48 = vld [vmem:[#allocation64_spill] sm:$0xff]  ;;  %v17312_v4 = vld [vmem:[#allocation70_spill] sm:$0xff] }
 0xdf1   : > { %v6801_v47 = vpop.permute.xlu0 %6800  ;;  %v15315_v7 = vpop.eup %12393 }
 0xdf2   : > { %6718 = vadd.xlane.f32.xlu1 %v15312_v37  ;;  %10795 = vmatprep.subr.bf16.mxu1 %v6801_v47  ;;  %12405 = vpow2.f32 %v6702_v16  ;;  %v15318_v38 = vpop.eup %12395 }
 0xdf3   : > { %10796 = vmatpush3.bf16.msra.mxu1 %v6801_v47  ;;  %12407 = vpow2.f32 %v6704_v39 }
 0xdf4   : > { %6722 = vadd.xlane.f32.xlu0 %v15315_v7  ;;  %12409 = vpow2.f32 %v6706_v63 }
 0xdf5   : > { %v6799_v56 = vpop.permute.xlu0 %6798  ;;  %12411 = vpow2.f32 %v6708_v51 }
 0xdf6   : > { %6724 = vadd.xlane.f32.xlu1 %v15318_v38  ;;  %10797 = vmatprep.subr.bf16.mxu1 %v6799_v56 }
 0xdf7   : > { %10798 = vmatpush3.bf16.msra.mxu1 %v6799_v56  ;;  %v15321_v54 = vpop.eup %12397 }
 0xdf8   : > { %v15323_v18 = vpop.eup %12399  ;;  %6726 = vadd.xlane.f32.xlu0 %v15321_v54 }
 0xdf9   : > { %v6797_v32 = vpop.permute.xlu0 %6796  ;;  %v15327_v31 = vpop.eup %12401 }
 0xdfa   : > { %6728 = vadd.xlane.f32.xlu1 %v15323_v18  ;;  %10799 = vmatprep.subr.bf16.mxu1 %v6797_v32  ;;  %v15329_v45 = vpop.eup %12403 }
 0xdfb   : > { %10800 = vmatpush3.bf16.msra.mxu1 %v6797_v32 }
 0xdfc   : > { %6730 = vadd.xlane.f32.xlu0 %v15327_v31 }
 0xdfd   : > { %v6795_v29 = vpop.permute.xlu0 %6794 }
 0xdfe   : > { %6732 = vadd.xlane.f32.xlu1 %v15329_v45  ;;  %10801 = vmatprep.subr.bf16.mxu1 %v6795_v29 }
 0xdff   : > { %10802 = vmatpush3.bf16.msra.mxu1 %v6795_v29  ;;  %v15333_v22 = vpop.eup %12405 }
 0xe00   : > { %v15335_v57 = vpop.eup %12407  ;;  %6734 = vadd.xlane.f32.xlu0 %v15333_v22 }
 0xe01   : > { %v15339_v14 = vpop.eup %12409  ;;  %v6791_v16 = vpop.permute.xlu0 %6790 }
 0xe02   : > { %6736 = vadd.xlane.f32.xlu1 %v15335_v57  ;;  %v15341_v50 = vpop.eup %12411 }
 0xe04   : > { %6738 = vadd.xlane.f32.xlu0 %v15339_v14 }
 0xe06   : > { %6740 = vadd.xlane.f32.xlu1 %v15341_v50 }
 0xe1a   : > { %7367 = vrot.lane.b32.xlu0 %v4142_v3, %s12763_s21 }
 0xe3a   : > { %v6715_v40 = vpop.xlane.xlu1 %6714 }
 0xe3e   : > { %v6711_v28 = vpop.xlane.xlu1 %6710 }
 0xe42   : > { %v6717_v61 = vpop.xlane.xlu1 %6716 }
 0xe43   : > { %12413 = vrcp.f32 %v6717_v61 }
 0xe44   : > { %12415 = vrcp.f32 %v6711_v28 }
 0xe45   : > { %12417 = vrcp.f32 %v6715_v40 }
 0xe46   : > { %v6713_v55 = vpop.xlane.xlu1 %6712 }
 0xe47   : > { %12419 = vrcp.f32 %v6713_v55  ;;  %v17299_v55 = vld [vmem:[#allocation81_spill] sm:$0xff] }
 0xe4a   : > { %v6793_v39 = vpop.permute.xlu1 %6792 }
 0xe4b   : > { %10803 = vmatprep.subr.bf16.mxu1 %v6793_v39 }
 0xe4c   : > { %10804 = vmatpush3.bf16.msra.mxu1 %v6793_v39  ;;  %v15357_v39 = vpack.c.bf16 %v3551_v24, %v17299_v55  ;;  %v3521_v24 = vadd.f32 %v17312_v4, %v17311_v48  ;;  %v17315_v55 = vld [vmem:[#allocation60_spill] sm:$0xff]  ;;  %v17322_v4 = vld [vmem:[#allocation61_spill] sm:$0xff] }
 0xe4d   : > { %10805 = vmatprep.subr.bf16.mxu1 %v6791_v16 }
 0xe50   : > { %10806 = vmatpush3.bf16.msra.mxu1 %v6791_v16  ;;  %v12414_v47 = vpop.eup %12413  ;;  %v6957_v16 = vsel %vm17296_vm11, %v4142_v3, 0 }
 0xe51   : > { %11031 = vmatprep.subr.msk.bf16.mxu1 %vm17296_vm11, %v4142_v3  ;;  %v12416_v63 = vpop.eup %12415  ;;  %v6761_v32 = vmul.f32 %v12414_v47, %v15289_v36  ;;  %v17302_v36 = vld [vmem:[#allocation78_spill] sm:$0xff]  ;;  %v17303_v47 = vld [vmem:[#allocation77_spill] sm:$0xff]  ;;  %vm17310_vm11 = vmmov %vm17305_vm8 }
 0xe52   : > { %v12418_v51 = vpop.eup %12417  ;;  %v6758_v29 = vmul.f32 %v12416_v63, %v15286_v1  ;;  %v17301_v1 = vld [vmem:[#allocation72_spill] sm:$0xff] }
 0xe53   : > { %v6760_v40 = vmul.f32 %v12418_v51, %v15283_v12  ;;  %v6954_v12 = vsel %vm17304_vm13, %v15357_v39, 0  ;;  %v17306_v51 = vld [vmem:[#allocation68_spill] sm:$0xff]  ;;  %vm17314_vm13 = vmmov %vm17305_vm8 }
 0xe54   : > { %v12420_v56 = vpop.eup %12419 }
 0xe55   : > { %v6759_v43 = vmul.f32 %v12420_v56, %v15292_v20  ;;  %v6775_v61 = vpack.c.bf16 %v6761_v32, %v6760_v40  ;;  %v3541_v20 = vadd.f32 %v17302_v36, %v17301_v1  ;;  %v17307_v56 = vld [vmem:[#allocation74_spill] sm:$0xff]  ;;  %v17308_v32 = vld [vmem:[#allocation73_spill] sm:$0xff] }
 0xe56   : > { %v3531_v3 = vadd.f32 %v17307_v56, %v17306_v51  ;;  %v17313_v40 = vld [vmem:[#allocation69_spill] sm:$0xff] }
 0xe57   : > { %v6774_v28 = vpack.c.bf16 %v6759_v43, %v6758_v29  ;;  %v15365_v63 = vpack.c.bf16 %v3541_v20, %v17303_v47  ;;  %v17317_v20 = vld [vmem:[#allocation65_spill] sm:$0xff] }
 0xe58   : > { %v15374_v29 = vpack.c.bf16 %v3531_v3, %v17308_v32  ;;  %v17320_v3 = vld [vmem:[#allocation56_spill] sm:$0xff]  ;;  %v17321_v32 = vld [vmem:[#allocation62_spill] sm:$0xff] }
 0xe59   : > { %10807 = vmatprep.mubr.bf16.mxu1 %v6774_v28  ;;  %v15383_v28 = vpack.c.bf16 %v3521_v24, %v17313_v40 }
 0xe5a   : > { %10808 = vmatmul.mubr.bf16.vlgmr.msra.gmra.mxu1 %v6775_v61  ;;  %v6948_v61 = vsel %vm17305_vm8, %v15374_v29, 0 }
 0xe5b   : > { %10824 = vmatpush3.bf16.xpose.msra.mxu1 %v6957_v16  ;;  %v17316_v16 = vld [vmem:[#allocation66_spill] sm:$0xff] }
 0xe5c   : > { %11032 = vmatprep.subr.msk.bf16.mxu1 %vm17300_vm12, %v15357_v39  ;;  %vm17309_vm12 = vmmov %vm17305_vm8  ;;  %v3511_v1 = vadd.f32 %v17316_v16, %v17315_v55  ;;  %v17324_v16 = vld [vmem:[#allocation54_spill] sm:$0xff] }
 0xe5d   : > { %v6951_v43 = vsel %vm17309_vm12, %v15365_v63, 0  ;;  %vm17318_vm12 = vmmov %vm17305_vm8 }
 0xe5e   : > { %v15392_v47 = vpack.c.bf16 %v3511_v1, %v17317_v20  ;;  %v17325_v1 = vld [vmem:[#allocation58_spill] sm:$0xff] }
 0xe63   : > { %10826 = vmatpush3.bf16.xpose.msra.mxu1 %v6954_v12  ;;  %v6945_v12 = vsel %vm17318_vm12, %v15383_v28, 0  ;;  %vm17327_vm12 = vmmov %vm17305_vm8 }
 0xe64   : > { %11033 = vmatprep.subr.msk.bf16.mxu1 %vm17305_vm8, %v15365_v63 }
 0xe6b   : > { %10828 = vmatpush3.bf16.xpose.msra.mxu1 %v6951_v43  ;;  %v3501_v43 = vadd.f32 %v17321_v32, %v17320_v3  ;;  %v17326_v3 = vld [vmem:[#allocation57_spill] sm:$0xff] }
 0xe6c   : > { %11034 = vmatprep.subr.msk.bf16.mxu1 %vm17310_vm11, %v15374_v29  ;;  %vm17319_vm11 = vmmov %vm17305_vm8 }
 0xe6d   : > { %v15401_v24 = vpack.c.bf16 %v3501_v43, %v17322_v4 }
 0xe73   : > { %10830 = vmatpush3.bf16.xpose.msra.mxu1 %v6948_v61  ;;  %v6942_v61 = vsel %vm17305_vm8, %v15392_v47, 0 }
 0xe74   : > { %11035 = vmatprep.subr.msk.bf16.mxu1 %vm17314_vm13, %v15383_v28  ;;  %vm17323_vm13 = vmmov %vm17305_vm8 }
 0xe79   : > { %v6721_v36 = vpop.xlane.xlu0 %6720 }
 0xe7a   : > { %12421 = vrcp.f32 %v6721_v36  ;;  %v3491_v36 = vadd.f32 %v17325_v1, %v17324_v16 }
 0xe7b   : > { %10832 = vmatpush3.bf16.xpose.msra.mxu1 %v6945_v12  ;;  %v6719_v51 = vpop.xlane.xlu1 %6718 }
 0xe7c   : > { %12423 = vrcp.f32 %v6719_v51  ;;  %11036 = vmatprep.subr.msk.bf16.mxu1 %vm17319_vm11, %v15392_v47  ;;  %v15410_v32 = vpack.c.bf16 %v3491_v36, %v17326_v3  ;;  %vm17328_vm11 = vmmov %vm17305_vm8 }
 0xe7d   : > { %v6723_v56 = vpop.xlane.xlu0 %6722 }
 0xe7e   : > { %12425 = vrcp.f32 %v6723_v56 }
 0xe7f   : > { %v6725_v48 = vpop.xlane.xlu1 %6724 }
 0xe80   : > { %12427 = vrcp.f32 %v6725_v48  ;;  %v6939_v48 = vsel %vm17327_vm12, %v15401_v24, 0  ;;  %vm17331_vm12 = vmmov %vm17305_vm8 }
 0xe81   : > { %v6727_v40 = vpop.xlane.xlu0 %6726 }
 0xe82   : > { %12429 = vrcp.f32 %v6727_v40 }
 0xe83   : > { %10834 = vmatpush3.bf16.xpose.msra.mxu1 %v6942_v61  ;;  %v6729_v55 = vpop.xlane.xlu1 %6728 }
 0xe84   : > { %12431 = vrcp.f32 %v6729_v55  ;;  %11037 = vmatprep.subr.msk.bf16.mxu1 %vm17323_vm13, %v15401_v24  ;;  %vm17329_vm13 = vmmov %vm17305_vm8 }
 0xe85   : > { %v6731_v20 = vpop.xlane.xlu0 %6730 }
 0xe86   : > { %12433 = vrcp.f32 %v6731_v20 }
 0xe87   : > { %v12422_v12 = vpop.eup %12421  ;;  %v6733_v51 = vpop.xlane.xlu1 %6732 }
 0xe88   : > { %12435 = vrcp.f32 %v6733_v51  ;;  %v6763_v40 = vmul.f32 %v12422_v12, %v15307_v52 }
 0xe89   : > { %v12424_v56 = vpop.eup %12423  ;;  %v6735_v43 = vpop.xlane.xlu0 %6734 }
 0xe8a   : > { %v6762_v4 = vmul.f32 %v12424_v56, %v15312_v37  ;;  %12437 = vrcp.f32 %v6735_v43  ;;  %v6936_v43 = vsel %vm17305_vm8, %v15410_v32, 0 }
 0xe8b   : > { %v12426_v61 = vpop.eup %12425  ;;  %10836 = vmatpush3.bf16.xpose.msra.mxu1 %v6939_v48  ;;  %v6737_v55 = vpop.xlane.xlu1 %6736 }
 0xe8c   : > { %12439 = vrcp.f32 %v6737_v55  ;;  %11038 = vmatprep.subr.msk.bf16.mxu1 %vm17328_vm11, %v15410_v32  ;;  %v6776_v16 = vpack.c.bf16 %v6763_v40, %v6762_v4  ;;  %v6764_v20 = vmul.f32 %v12426_v61, %v15315_v7  ;;  %vm17333_vm11 = vmmov %vm17305_vm8 }
 0xe8d   : > { %v12428_v1 = vpop.eup %12427  ;;  %v6739_v36 = vpop.xlane.xlu0 %6738 }
 0xe8e   : > { %10811 = vmatprep.mubr.bf16.mxu1 %v6776_v16  ;;  %v6765_v51 = vmul.f32 %v12428_v1, %v15318_v38  ;;  %12441 = vrcp.f32 %v6739_v36 }
 0xe8f   : > { %v6741_v37 = vpop.xlane.xlu1 %6740  ;;  %v12430_v56 = vpop.eup %12429 }
 0xe90   : > { %12443 = vrcp.f32 %v6741_v37  ;;  %v6777_v52 = vpack.c.bf16 %v6765_v51, %v6764_v20  ;;  %v6766_v48 = vmul.f32 %v12430_v56, %v15321_v54 }
 0xe91   : > { %v12432_v12 = vpop.eup %12431  ;;  %v15420_v3 = vpop.permute.xlu0 %7367 }
 0xe92   : > { %10812 = vmatmul.mubr.bf16.gmra.mxu1 %v6777_v52  ;;  %v6767_v4 = vmul.f32 %v12432_v12, %v15323_v18  ;;  %11039 = vmatprep.subr.msk.bf16.mxu0 %vm17329_vm13, %v15420_v3  ;;  %vm17336_vm13 = vmmov %vm17305_vm8 }
 0xe93   : > { %10838 = vmatpush3.bf16.xpose.msra.mxu1 %v6936_v43  ;;  %v12434_v7 = vpop.eup %12433  ;;  %v17334_v43 = vld [vmem:[#allocation28_spill] sm:$0xff] }
 0xe94   : > { %v6778_v38 = vpack.c.bf16 %v6767_v4, %v6766_v48  ;;  %v6768_v61 = vmul.f32 %v12434_v7, %v15327_v31  ;;  %v17330_v31 = vld [vmem:[#allocation24_spill] sm:$0xff]  ;;  %v17343_v48 = vld [vmem:[#allocation38_spill] sm:$0xff] }
 0xe95   : > { %v12436_v40 = vpop.eup %12435 }
 0xe96   : > { %10815 = vmatprep.mubr.bf16.mxu1 %v6778_v38  ;;  %v6769_v55 = vmul.f32 %v12436_v40, %v15329_v45  ;;  %v17332_v45 = vld [vmem:[#allocation26_spill] sm:$0xff] }
 0xe97   : > { %v12438_v16 = vpop.eup %12437 }
 0xe98   : > { %v6779_v1 = vpack.c.bf16 %v6769_v55, %v6768_v61  ;;  %v6770_v54 = vmul.f32 %v12438_v16, %v15333_v22  ;;  %v17335_v22 = vld [vmem:[#allocation30_spill] sm:$0xff] }
 0xe99   : > { %v12440_v36 = vpop.eup %12439 }
 0xe9a   : > { %10816 = vmatmul.mubr.bf16.gmra.mxu1 %v6779_v1  ;;  %v6771_v18 = vmul.f32 %v12440_v36, %v15335_v57  ;;  %v17337_v57 = vld [vmem:[#allocation32_spill] sm:$0xff] }
 0xe9b   : > { %v12442_v20 = vpop.eup %12441 }
 0xe9c   : > { %v6780_v51 = vpack.c.bf16 %v6771_v18, %v6770_v54  ;;  %v6772_v56 = vmul.f32 %v12442_v20, %v15339_v14  ;;  %v17339_v14 = vld [vmem:[#allocation34_spill] sm:$0xff] }
 0xe9d   : > { %v12444_v37 = vpop.eup %12443 }
 0xe9e   : > { %10819 = vmatprep.mubr.bf16.mxu1 %v6780_v51  ;;  %v6773_v52 = vmul.f32 %v12444_v37, %v15341_v50  ;;  %v17341_v50 = vld [vmem:[#allocation36_spill] sm:$0xff] }
 0xea0   : > { %v6781_v12 = vpack.c.bf16 %v6773_v52, %v6772_v56 }
 0xea2   : > { %10820 = vmatmul.mubr.bf16.gmra.mxu1 %v6781_v12 }
 0xea3   : > { %10839 = vmatprep.mubr.msk.bf16.mxu1 %vm17331_vm12, %v17330_v31  ;;  %vm17344_vm12 = vmmov %vm17338_vm0 }
 0xeaa   : > { %10840 = vmatmul.mubr.msk.bf16.vlgmr.msra.gmra.mxu1 %vm17333_vm11, %v17332_v45  ;;  %vm17364_vm11 = vnez %v17084_v60 }
 0xeab   : > { %10843 = vmatprep.mubr.msk.bf16.mxu1 %vm17305_vm8, %v17334_v43  ;;  %vm17365_vm8 = vnez %v17086_v11 }
 0xeb2   : > { %10844 = vmatmul.mubr.msk.bf16.gmra.mxu1 %vm17336_vm13, %v17335_v22  ;;  %vm17366_vm13 = vnez %v17088_v30 }
 0xeb3   : > { %10847 = vmatprep.mubr.msk.bf16.mxu1 %vm17338_vm0, %v17337_v57  ;;  %vm17362_vm0 = vnez %v17080_v42 }
 0xeba   : > { %10848 = vmatmul.mubr.msk.bf16.gmra.mxu1 %vm17340_vm10, %v17339_v14  ;;  %vm17361_vm10 = vnez %v17283_v23 }
 0xebb   : > { %10851 = vmatprep.mubr.msk.bf16.mxu1 %vm17342_vm6, %v17341_v50  ;;  %vm17363_vm6 = vnez %v17082_v21 }
 0xec2   : > { %10852 = vmatmul.mubr.msk.bf16.gmra.mxu1 %vm17344_vm12, %v17343_v48  ;;  %vm17367_vm12 = vnez %v17285_v5 }
 0xf1a   : > { %v15450_v4 = vpop.f32.mrf.mxu1 }
 0xf1b   : > { %17345 = vst [vmem:[#allocation114_spill] sm:$0xff] %v15450_v4 }
 0xf1c   : > { %v15452_v7 = vpop.f32.mrf.mxu1 }
 0xf1d   : > { %17346 = vst [vmem:[#allocation100_spill] sm:$0xff] %v15452_v7 }
 0xf1e   : > { %v15454_v38 = vpop.f32.mrf.mxu1 }
 0xf1f   : > { %17347 = vst [vmem:[#allocation106_spill] sm:$0xff] %v15454_v38 }
 0xf20   : > { %v15458_v61 = vpop.f32.mrf.mxu1 }
 0xf21   : > { %17348 = vst [vmem:[#allocation109_spill] sm:$0xff] %v15458_v61 }
 0xf52   : > { %v15460_v55 = vpop.f32.mrf.mxu1 }
 0xf53   : > { %17349 = vst [vmem:[#allocation96_spill] sm:$0xff] %v15460_v55 }
 0xf54   : > { %v15462_v16 = vpop.f32.mrf.mxu1 }
 0xf55   : > { %17350 = vst [vmem:[#allocation102_spill] sm:$0xff] %v15462_v16 }
 0xf56   : > { %v15464_v1 = vpop.f32.mrf.mxu1 }
 0xf57   : > { %17351 = vst [vmem:[#allocation105_spill] sm:$0xff] %v15464_v1 }
 0xf58   : > { %v15468_v54 = vpop.f32.mrf.mxu1 }
 0xf59   : > { %17352 = vst [vmem:[#allocation95_spill] sm:$0xff] %v15468_v54 }
 0xf5a   : > { %v15470_v18 = vpop.f32.mrf.mxu1 }
 0xf5b   : > { %17353 = vst [vmem:[#allocation98_spill] sm:$0xff] %v15470_v18 }
 0xf5c   : > { %v15472_v20 = vpop.f32.mrf.mxu1 }
 0xf5d   : > { %17354 = vst [vmem:[#allocation101_spill] sm:$0xff] %v15472_v20 }
 0xf5e   : > { %v15474_v51 = vpop.f32.mrf.mxu1 }
 0xf5f   : > { %17355 = vst [vmem:[#allocation97_spill] sm:$0xff] %v15474_v51 }
 0xf60   : > { %v15478_v56 = vpop.f32.mrf.mxu1 }
 0xf61   : > { %17356 = vst [vmem:[#allocation122_spill] sm:$0xff] %v15478_v56 }
 0xf62   : > { %v15482_v12 = vpop.f32.mrf.mxu1 }
 0xf63   : > { %17357 = vst [vmem:[#allocation117_spill] sm:$0xff] %v15482_v12 }
 0xf64   : > { %v15484_v40 = vpop.f32.mrf.mxu1 }
 0xf65   : > { %17358 = vst [vmem:[#allocation112_spill] sm:$0xff] %v15484_v40 }
 0xf66   : > { %v15486_v36 = vpop.f32.mrf.mxu1 }
 0xf67   : > { %17359 = vst [vmem:[#allocation107_spill] sm:$0xff] %v15486_v36 }
 0xf68   : > { %v15490_v49 = vpop.f32.mrf.mxu1 }
 0xf69   : > { %17360 = vst [vmem:[#allocation99_spill] sm:$0xff] %v15490_v49 }
 0xf6a   : > { %v10841_v37 = vpop.f32.mrf.mxu1 }
 0xf6b   : > { %v7058_v35 = vsel %vm13821_vm1, %v10841_v37, -1e+30 }
 0xf6c   : > { %7076 = vmax.xlane.f32.xlu0 %v7058_v35  ;;  %v6993_v52 = vpop.f32.mrf.mxu1 }
 0xf6d   : > { %v7056_v44 = vsel %vm13836_vm2, %v6993_v52, -1e+30 }
 0xf6e   : > { %v10842_v8 = vpop.f32.mrf.mxu1 }
 0xf6f   : > { %v7059_v17 = vsel %vm13853_vm4, %v10842_v8, -1e+30 }
 0xf70   : > { %7072 = vmax.xlane.f32.xlu0 %v7056_v44  ;;  %7078 = vmax.xlane.f32.xlu1 %v7059_v17  ;;  %v6996_v33 = vpop.f32.mrf.mxu1 }
 0xf71   : > { %v7057_v62 = vsel %vm13842_vm3, %v6996_v33, -1e+30 }
 0xf72   : > { %v10845_v12 = vpop.f32.mrf.mxu1 }
 0xf73   : > { %v15504_v36 = vsel %vm13864_vm5, %v10845_v12, -1e+30 }
 0xf74   : > { %7074 = vmax.xlane.f32.xlu1 %v7057_v62  ;;  %7084 = vmax.xlane.f32.xlu0 %v15504_v36  ;;  %v7009_v37 = vpop.f32.mrf.mxu1 }
 0xf75   : > { %v15509_v52 = vsel %vm13886_vm7, %v7009_v37, -1e+30 }
 0xf76   : > { %v10846_v40 = vpop.f32.mrf.mxu1 }
 0xf78   : > { %7080 = vmax.xlane.f32.xlu0 %v15509_v52  ;;  %v7012_v8 = vpop.f32.mrf.mxu1 }
 0xf7a   : > { %v10849_v49 = vpop.f32.mrf.mxu1 }
 0xf7b   : > { %v15514_v33 = vsel %vm17277_vm15, %v10849_v49, -1e+30 }
 0xf7c   : > { %7092 = vmax.xlane.f32.xlu0 %v15514_v33  ;;  %v7025_v12 = vpop.f32.mrf.mxu1 }
 0xf7d   : > { %v15519_v51 = vsel %vm17279_vm9, %v7025_v12, -1e+30  ;;  %v7063_v12 = vsel %vm17362_vm0, %v10846_v40, -1e+30 }
 0xf7e   : > { %v10850_v18 = vpop.f32.mrf.mxu1 }
 0xf80   : > { %7088 = vmax.xlane.f32.xlu0 %v15519_v51  ;;  %v7028_v37 = vpop.f32.mrf.mxu1 }
 0xf82   : > { %v10853_v20 = vpop.f32.mrf.mxu1 }
 0xf83   : > { %v15524_v56 = vsel %vm17281_vm14, %v10853_v20, -1e+30  ;;  %v7061_v20 = vsel %vm17363_vm6, %v7012_v8, -1e+30 }
 0xf84   : > { %7100 = vmax.xlane.f32.xlu0 %v15524_v56  ;;  %v7041_v49 = vpop.f32.mrf.mxu1 }
 0xf85   : > { %7365 = vrot.lane.b32.xlu1 %v15357_v39, %s12763_s21  ;;  %v15531_v55 = vsel %vm17361_vm10, %v7041_v49, -1e+30  ;;  %v15542_v39 = vsel %vm17364_vm11, %v10850_v18, -1e+30  ;;  %v15547_v49 = vsel %vm17365_vm8, %v7028_v37, -1e+30 }
 0xf86   : > { %v10854_v1 = vpop.f32.mrf.mxu1 }
 0xf88   : > { %7096 = vmax.xlane.f32.xlu0 %v15531_v55  ;;  %v7044_v40 = vpop.f32.mrf.mxu1 }
 0xf89   : > { %v15557_v18 = vsel %vm17367_vm12, %v7044_v40, -1e+30  ;;  %vm17368_vm12 = vcmask 523264  }
 0xf8a   : > { %vm17370_vm10 = vmmov %vm17368_vm12 }
 0xf8b   : > { %vm17371_vm14 = vmmov %vm17370_vm10 }
 0xf8c   : > { %vm17372_vm8 = vmmov %vm17370_vm10 }
 0xf8d   : > { %vm17373_vm9 = vmmov %vm17372_vm8 }
 0xf8e   : > { %vm17374_vm11 = vmmov %vm17372_vm8 }
 0xf8f   : > { %vm17376_vm15 = vmmov %vm17372_vm8 }
 0xf9e   : > { %7363 = vrot.lane.b32.xlu0 %v15365_v63, %s12763_s21  ;;  %v15552_v63 = vsel %vm17366_vm13, %v10854_v1, -1e+30  ;;  %vm17369_vm13 = vmmov %vm17368_vm12 }
 0xfa9   : > { %7086 = vmax.xlane.f32.xlu1 %v7063_v12 }
 0xfad   : > { %7082 = vmax.xlane.f32.xlu1 %v7061_v20 }
 0xfb1   : > { %7094 = vmax.xlane.f32.xlu1 %v15542_v39 }
 0xfb5   : > { %7090 = vmax.xlane.f32.xlu1 %v15547_v49 }
 0xfb9   : > { %7102 = vmax.xlane.f32.xlu1 %v15552_v63 }
 0xfbd   : > { %7098 = vmax.xlane.f32.xlu1 %v15557_v18 }
 0xff5   : > { %v7077_v8 = vpop.xlane.xlu0 %7076 }
 0xff6   : > { %v7106_v54 = vsub.f32 %v7058_v35, %v7077_v8 }
 0xff8   : > { %v7124_v37 = vmul.f32 1.442695, %v7106_v54 }
 0xff9   : > { %v7079_v16 = vpop.xlane.xlu1 %7078  ;;  %v7073_v4 = vpop.xlane.xlu0 %7072 }
 0xffa   : > { %12445 = vpow2.f32 %v7124_v37  ;;  %v7107_v38 = vsub.f32 %v7059_v17, %v7079_v16  ;;  %v7104_v61 = vsub.f32 %v7056_v44, %v7073_v4 }
 0xffc   : > { %v7126_v7 = vmul.f32 1.442695, %v7107_v38  ;;  %v7120_v1 = vmul.f32 1.442695, %v7104_v61 }
 0xffd   : > { %v7075_v53 = vpop.xlane.xlu1 %7074 }
 0xffe   : > { %12447 = vpow2.f32 %v7126_v7  ;;  %v7105_v6 = vsub.f32 %v7057_v62, %v7075_v53  ;;  %v7085_v53 = vpop.xlane.xlu0 %7084 }
 0xfff   : > { %12449 = vpow2.f32 %v7120_v1 }
0x1000   : > { %v7122_v30 = vmul.f32 1.442695, %v7105_v6  ;;  %v7110_v6 = vsub.f32 %v15504_v36, %v7085_v53 }
0x1001   : > { %v15577_v4 = vpop.permute.xlu1 %7365 }
0x1002   : > { %12451 = vpow2.f32 %v7122_v30  ;;  %v7081_v17 = vpop.xlane.xlu0 %7080  ;;  %v7132_v38 = vmul.f32 1.442695, %v7110_v6 }
0x1003   : > { %v7108_v7 = vsub.f32 %v15509_v52, %v7081_v17 }
0x1004   : > { %12453 = vpow2.f32 %v7132_v38 }
0x1005   : > { %v7128_v54 = vmul.f32 1.442695, %v7108_v7 }
0x1006   : > { %v7093_v30 = vpop.xlane.xlu0 %7092 }
0x1007   : > { %v15560_v40 = vpop.eup %12445  ;;  %v7114_v37 = vsub.f32 %v15514_v33, %v7093_v30  ;;  %12455 = vpow2.f32 %v7128_v54 }
0x1008   : > { %7156 = vadd.xlane.f32.xlu0 %v15560_v40 }
0x1009   : > { %v7140_v19 = vmul.f32 1.442695, %v7114_v37 }
0x100a   : > { %v7089_v62 = vpop.xlane.xlu0 %7088 }
0x100b   : > { %v15563_v5 = vpop.eup %12447  ;;  %v7112_v23 = vsub.f32 %v15519_v51, %v7089_v62 }
0x100c   : > { %v15565_v35 = vpop.eup %12449  ;;  %7158 = vadd.xlane.f32.xlu1 %v15563_v5 }
0x100d   : > { %7152 = vadd.xlane.f32.xlu0 %v15565_v35 }
0x100e   : > { %v7101_v61 = vpop.xlane.xlu0 %7100 }
0x100f   : > { %v15569_v44 = vpop.eup %12451 }
0x1010   : > { %7154 = vadd.xlane.f32.xlu1 %v15569_v44 }
0x1012   : > { %v7097_v36 = vpop.xlane.xlu0 %7096 }
0x1013   : > { %v7116_v6 = vsub.f32 %v15531_v55, %v7097_v36  ;;  %v7415_v36 = vsel %vm17368_vm12, %v15420_v3, 0  ;;  %vm17375_vm12 = vmmov %vm17372_vm8 }
0x1015   : > { %v7144_v7 = vmul.f32 1.442695, %v7116_v6 }
0x1021   : > { %7361 = vrot.lane.b32.xlu1 %v15374_v29, %s12763_s21 }
0x1023   : > { %7359 = vrot.lane.b32.xlu0 %v15383_v28, %s12763_s21  ;;  %v7118_v28 = vsub.f32 %v15524_v56, %v7101_v61  ;;  %v15585_v56 = vpop.eup %12453 }
0x1024   : > { %v15590_v62 = vpop.eup %12455 }
0x1025   : > { %v7148_v17 = vmul.f32 1.442695, %v7118_v28 }
0x1032   : > { %v7087_v16 = vpop.xlane.xlu1 %7086 }
0x1033   : > { %v7111_v8 = vsub.f32 %v7063_v12, %v7087_v16  ;;  %v7136_v12 = vmul.f32 1.442695, %v7112_v23 }
0x1035   : > { %v7134_v29 = vmul.f32 1.442695, %v7111_v8 }
0x1036   : > { %v7083_v1 = vpop.xlane.xlu1 %7082 }
0x1037   : > { %v7109_v41 = vsub.f32 %v7061_v20, %v7083_v1  ;;  %12457 = vpow2.f32 %v7134_v29 }
0x1039   : > { %v7130_v53 = vmul.f32 1.442695, %v7109_v41 }
0x103a   : > { %v7095_v52 = vpop.xlane.xlu1 %7094 }
0x103b   : > { %12459 = vpow2.f32 %v7130_v53  ;;  %v7115_v33 = vsub.f32 %v15542_v39, %v7095_v52 }
0x103c   : > { %12461 = vpow2.f32 %v7140_v19 }
0x103d   : > { %12463 = vpow2.f32 %v7148_v17  ;;  %v7142_v41 = vmul.f32 1.442695, %v7115_v33 }
0x103e   : > { %v7091_v30 = vpop.xlane.xlu1 %7090  ;;  %12465 = vpow2.f32 %v7136_v12 }
0x103f   : > { %12467 = vpow2.f32 %v7144_v7  ;;  %v7113_v20 = vsub.f32 %v15547_v49, %v7091_v30 }
0x1040   : > { %12469 = vpow2.f32 %v7142_v41 }
0x1041   : > { %v7138_v38 = vmul.f32 1.442695, %v7113_v20 }
0x1042   : > { %7164 = vadd.xlane.f32.xlu0 %v15585_v56  ;;  %v7103_v51 = vpop.xlane.xlu1 %7102 }
0x1043   : > { %v7119_v55 = vsub.f32 %v15552_v63, %v7103_v51 }
0x1044   : > { %v15593_v39 = vpop.eup %12457 }
0x1045   : > { %v7150_v19 = vmul.f32 1.442695, %v7119_v55  ;;  %7160 = vadd.xlane.f32.xlu1 %v15590_v62 }
0x1046   : > { %v7099_v23 = vpop.xlane.xlu1 %7098 }
0x1047   : > { %12471 = vpow2.f32 %v7150_v19  ;;  %v7117_v61 = vsub.f32 %v15557_v18, %v7099_v23 }
0x1048   : > { %v15596_v16 = vpop.eup %12459  ;;  %12473 = vpow2.f32 %v7138_v38 }
0x1049   : > { %7162 = vadd.xlane.f32.xlu0 %v15596_v16  ;;  %7166 = vadd.xlane.f32.xlu1 %v15593_v39  ;;  %v15600_v49 = vpop.eup %12461  ;;  %v7146_v63 = vmul.f32 1.442695, %v7117_v61 }
0x104a   : > { %v15602_v54 = vpop.eup %12463 }
0x104b   : > { %v15606_v8 = vpop.eup %12465  ;;  %12475 = vpow2.f32 %v7146_v63 }
0x104c   : > { %v15608_v18 = vpop.eup %12467 }
0x104d   : > { %7172 = vadd.xlane.f32.xlu1 %v15600_v49  ;;  %7180 = vadd.xlane.f32.xlu0 %v15602_v54  ;;  %v15612_v37 = vpop.eup %12469 }
0x1051   : > { %7168 = vadd.xlane.f32.xlu1 %v15606_v8  ;;  %7176 = vadd.xlane.f32.xlu0 %v15608_v18 }
0x1054   : > { %v15614_v29 = vpop.eup %12471 }
0x1055   : > { %7174 = vadd.xlane.f32.xlu1 %v15612_v37  ;;  %7182 = vadd.xlane.f32.xlu0 %v15614_v29  ;;  %v15618_v1 = vpop.eup %12473 }
0x1058   : > { %v15621_v28 = vpop.eup %12475 }
0x1059   : > { %7170 = vadd.xlane.f32.xlu1 %v15618_v1 }
0x105d   : > { %7178 = vadd.xlane.f32.xlu1 %v15621_v28 }
0x106b   : > { %7355 = vrot.lane.b32.xlu0 %v15401_v24, %s12763_s21 }
0x106e   : > { %7357 = vrot.lane.b32.xlu1 %v15392_v47, %s12763_s21  ;;  %v7364_v47 = vpop.permute.xlu0 %7363 }
0x106f   : > { %7353 = vrot.lane.b32.xlu0 %v15410_v32, %s12763_s21 }
0x1072   : > { %7329 = vrot.lane.b32.xlu1 %v17330_v31, %s12763_s21 }
0x1073   : > { %7331 = vrot.lane.b32.xlu0 %v17332_v45, %s12763_s21 }
0x1076   : > { %7333 = vrot.lane.b32.xlu1 %v17334_v43, %s12763_s21 }
0x1077   : > { %7335 = vrot.lane.b32.xlu0 %v17335_v22, %s12763_s21 }
0x107a   : > { %7337 = vrot.lane.b32.xlu1 %v17337_v57, %s12763_s21 }
0x107b   : > { %7339 = vrot.lane.b32.xlu0 %v17339_v14, %s12763_s21 }
0x107e   : > { %7341 = vrot.lane.b32.xlu1 %v17341_v50, %s12763_s21 }
0x107f   : > { %7343 = vrot.lane.b32.xlu0 %v17343_v48, %s12763_s21 }
0x1082   : > { %7702 = vrot.lane.b32.xlu1 %v15113_v15, %s12763_s21 }
0x1083   : > { %7704 = vrot.lane.b32.xlu0 %v15103_v2, %s12763_s21 }
0x1087   : > { %7700 = vrot.lane.b32.xlu0 %v15122_v27, %s12763_s21 }
0x108b   : > { %7698 = vrot.lane.b32.xlu0 %v15129_v58, %s12763_s21 }
0x1091   : > { %v7157_v24 = vpop.xlane.xlu0 %7156 }
0x1095   : > { %v7159_v32 = vpop.xlane.xlu1 %7158 }
0x1096   : > { %v7153_v31 = vpop.xlane.xlu0 %7152  ;;  %12477 = vrcp.f32 %v7159_v32 }
0x1097   : > { %12479 = vrcp.f32 %v7153_v31 }
0x1098   : > { %12481 = vrcp.f32 %v7157_v24 }
0x1099   : > { %v7155_v45 = vpop.xlane.xlu1 %7154 }
0x109a   : > { %12483 = vrcp.f32 %v7155_v45  ;;  %v7360_v53 = vpop.permute.xlu0 %7359 }
0x109b   : > { %v7403_v3 = vsel %vm17376_vm15, %v7360_v53, 0  ;;  %vm17377_vm15 = vmmov %vm17372_vm8 }
0x10a3   : > { %v12478_v43 = vpop.eup %12477 }
0x10a4   : > { %v12480_v15 = vpop.eup %12479  ;;  %v7203_v2 = vmul.f32 %v12478_v43, %v15563_v5  ;;  %v7412_v5 = vsel %vm17370_vm10, %v15577_v4, 0  ;;  %vm17380_vm10 = vmmov %vm17372_vm8 }
0x10a5   : > { %v12482_v22 = vpop.eup %12481  ;;  %v7200_v27 = vmul.f32 %v12480_v15, %v15565_v35  ;;  %v7409_v35 = vsel %vm17372_vm8, %v7364_v47, 0 }
0x10a6   : > { %v7202_v58 = vmul.f32 %v12482_v22, %v15560_v40  ;;  %v7362_v40 = vpop.permute.xlu1 %7361 }
0x10a7   : > { %v12484_v57 = vpop.eup %12483 }
0x10a8   : > { %v7201_v14 = vmul.f32 %v12484_v57, %v15569_v44  ;;  %v7217_v48 = vpack.c.bf16 %v7203_v2, %v7202_v58  ;;  %v7406_v44 = vsel %vm17374_vm11, %v7362_v40, 0  ;;  %vm17381_vm11 = vmmov %vm17372_vm8 }
0x10aa   : > { %v7216_v50 = vpack.c.bf16 %v7201_v14, %v7200_v27 }
0x10ac   : > { %10871 = vmatprep.mubr.bf16.mxu0 %v7216_v50 }
0x10ad   : > { %10872 = vmatmul.mubr.bf16.vlgmr.msra.gmra.mxu0 %v7217_v48 }
0x10ae   : > { %10888 = vmatpush3.bf16.xpose.msra.mxu0 %v7415_v36 }
0x10af   : > { %11040 = vmatprep.subr.msk.bf16.mxu0 %vm17369_vm13, %v15577_v4  ;;  %vm17382_vm13 = vmmov %vm17372_vm8 }
0x10b6   : > { %10890 = vmatpush3.bf16.xpose.msra.mxu0 %v7412_v5 }
0x10b7   : > { %11041 = vmatprep.subr.msk.bf16.mxu0 %vm17371_vm14, %v7364_v47  ;;  %vm17379_vm14 = vmmov %vm17372_vm8 }
0x10be   : > { %10892 = vmatpush3.bf16.xpose.msra.mxu0 %v7409_v35 }
0x10bf   : > { %11042 = vmatprep.subr.msk.bf16.mxu0 %vm17373_vm9, %v7362_v40  ;;  %vm17378_vm9 = vmmov %vm17372_vm8 }
0x10c6   : > { %10894 = vmatpush3.bf16.xpose.msra.mxu0 %v7406_v44 }
0x10c7   : > { %11043 = vmatprep.subr.msk.bf16.mxu0 %vm17375_vm12, %v7360_v53  ;;  %vm17383_vm12 = vmmov %vm17372_vm8 }
0x10cb   : > { %v7165_v52 = vpop.xlane.xlu0 %7164 }
0x10cc   : > { %12485 = vrcp.f32 %v7165_v52 }
0x10ce   : > { %10896 = vmatpush3.bf16.xpose.msra.mxu0 %v7403_v3  ;;  %v7161_v4 = vpop.xlane.xlu1 %7160 }
0x10cf   : > { %12487 = vrcp.f32 %v7161_v4 }
0x10d2   : > { %v7167_v17 = vpop.xlane.xlu1 %7166  ;;  %v7163_v6 = vpop.xlane.xlu0 %7162 }
0x10d3   : > { %12489 = vrcp.f32 %v7167_v17 }
0x10d4   : > { %12491 = vrcp.f32 %v7163_v6 }
0x10d6   : > { %v7173_v12 = vpop.xlane.xlu1 %7172  ;;  %v7181_v33 = vpop.xlane.xlu0 %7180 }
0x10d9   : > { %v12486_v41 = vpop.eup %12485 }
0x10da   : > { %v7169_v30 = vpop.xlane.xlu1 %7168  ;;  %v7177_v7 = vpop.xlane.xlu0 %7176  ;;  %v7206_v38 = vmul.f32 %v12486_v41, %v15585_v56 }
0x10dc   : > { %v12488_v55 = vpop.eup %12487 }
0x10dd   : > { %v7204_v24 = vmul.f32 %v12488_v55, %v15590_v62 }
0x10de   : > { %v7175_v51 = vpop.xlane.xlu1 %7174  ;;  %v7183_v20 = vpop.xlane.xlu0 %7182 }
0x10df   : > { %12493 = vrcp.f32 %v7175_v51 }
0x10e0   : > { %v12490_v19 = vpop.eup %12489  ;;  %12495 = vrcp.f32 %v7169_v30 }
0x10e1   : > { %v12492_v23 = vpop.eup %12491  ;;  %v7207_v61 = vmul.f32 %v12490_v19, %v15593_v39  ;;  %12497 = vrcp.f32 %v7173_v12 }
0x10e2   : > { %v7171_v63 = vpop.xlane.xlu1 %7170  ;;  %v7356_v47 = vpop.permute.xlu0 %7355  ;;  %v7205_v32 = vmul.f32 %v12492_v23, %v15596_v16 }
0x10e3   : > { %12499 = vrcp.f32 %v7171_v63  ;;  %v7219_v31 = vpack.c.bf16 %v7207_v61, %v7206_v38  ;;  %v7397_v44 = vsel %vm17380_vm10, %v7356_v47, 0  ;;  %vm17387_vm10 = vmmov %vm17372_vm8 }
0x10e4   : > { %v7218_v45 = vpack.c.bf16 %v7205_v32, %v7204_v24  ;;  %12501 = vrcp.f32 %v7177_v7 }
0x10e6   : > { %10875 = vmatprep.mubr.bf16.mxu0 %v7218_v45  ;;  %v7179_v43 = vpop.xlane.xlu1 %7178  ;;  %v7354_v15 = vpop.permute.xlu0 %7353 }
0x10e7   : > { %12503 = vrcp.f32 %v7179_v43  ;;  %10876 = vmatmul.mubr.bf16.gmra.mxu0 %v7219_v31  ;;  %v7394_v41 = vsel %vm17372_vm8, %v7354_v15, 0 }
0x10e8   : > { %12505 = vrcp.f32 %v7183_v20 }
0x10e9   : > { %12507 = vrcp.f32 %v7181_v33 }
0x10ea   : > { %v7358_v56 = vpop.permute.xlu1 %7357  ;;  %v7332_v39 = vpop.permute.xlu0 %7331 }
0x10eb   : > { %v7400_v22 = vsel %vm17377_vm15, %v7358_v56, 0  ;;  %11044 = vmatprep.subr.msk.bf16.mxu0 %vm17378_vm9, %v7358_v56  ;;  %vm17384_vm15 = vmmov %vm17372_vm8 }
0x10ec   : > { %10898 = vmatpush3.bf16.xpose.msra.mxu0 %v7400_v22  ;;  %v12494_v62 = vpop.eup %12493  ;;  %vm17385_vm9 = vmmov %vm17372_vm8 }
0x10ed   : > { %11045 = vmatprep.subr.msk.bf16.mxu0 %vm17379_vm14, %v7356_v47  ;;  %v12496_v16 = vpop.eup %12495  ;;  %v7211_v58 = vmul.f32 %v12494_v62, %v15612_v37  ;;  %vm17386_vm14 = vmmov %vm17372_vm8 }
0x10ee   : > { %v7330_v57 = vpop.permute.xlu1 %7329  ;;  %v7336_v2 = vpop.permute.xlu0 %7335  ;;  %v7208_v50 = vmul.f32 %v12496_v16, %v15606_v8 }
0x10ef   : > { %v12498_v27 = vpop.eup %12497 }
0x10f0   : > { %v12500_v14 = vpop.eup %12499  ;;  %v7210_v40 = vmul.f32 %v12498_v27, %v15600_v49 }
0x10f1   : > { %v7209_v48 = vmul.f32 %v12500_v14, %v15618_v1  ;;  %v12502_v36 = vpop.eup %12501 }
0x10f2   : > { %v7334_v5 = vpop.permute.xlu1 %7333  ;;  %v7340_v35 = vpop.permute.xlu0 %7339  ;;  %v7221_v52 = vpack.c.bf16 %v7211_v58, %v7210_v40  ;;  %v7212_v37 = vmul.f32 %v12502_v36, %v15608_v18 }
0x10f3   : > { %v7220_v53 = vpack.c.bf16 %v7209_v48, %v7208_v50 }
0x10f4   : > { %v12504_v3 = vpop.eup %12503  ;;  %10900 = vmatpush3.bf16.xpose.msra.mxu0 %v7397_v44 }
0x10f5   : > { %v12506_v4 = vpop.eup %12505  ;;  %10879 = vmatprep.mubr.bf16.mxu0 %v7220_v53  ;;  %11046 = vmatprep.subr.msk.bf16.mxu0 %vm17381_vm11, %v7354_v15  ;;  %v7213_v8 = vmul.f32 %v12504_v3, %v15621_v28  ;;  %vm17388_vm11 = vmmov %vm17372_vm8  ;;  %v17395_v3 = vld [vmem:[#allocation132_spill] sm:$0xff] }
0x10f6   : > { %v7338_v1 = vpop.permute.xlu1 %7337  ;;  %10880 = vmatmul.mubr.bf16.gmra.mxu0 %v7221_v52  ;;  %v7344_v17 = vpop.permute.xlu0 %7343  ;;  %v7215_v49 = vmul.f32 %v12506_v4, %v15614_v29  ;;  %v17397_v52 = vld [vmem:[#allocation25_spill] sm:$0xff] }
0x10f7   : > { %v12508_v6 = vpop.eup %12507  ;;  %v7222_v12 = vpack.c.bf16 %v7213_v8, %v7212_v37  ;;  %v17399_v37 = vld [vmem:[#allocation131_spill] sm:$0xff] }
0x10f8   : > { %v7214_v7 = vmul.f32 %v12508_v6, %v15602_v54 }
0x10f9   : > { %10883 = vmatprep.mubr.bf16.mxu0 %v7222_v12 }
0x10fa   : > { %v7342_v33 = vpop.permute.xlu1 %7341  ;;  %v7705_v30 = vpop.permute.xlu0 %7704  ;;  %v7223_v18 = vpack.c.bf16 %v7215_v49, %v7214_v7 }
0x10fb   : > { %10919 = vmatprep.subr.bf16.mxu1 %v7705_v30 }
0x10fc   : > { %10902 = vmatpush3.bf16.xpose.msra.mxu0 %v7394_v41  ;;  %10920 = vmatpush3.bf16.msra.mxu1 %v7705_v30 }
0x10fe   : > { %v7703_v51 = vpop.permute.xlu1 %7702  ;;  %10884 = vmatmul.mubr.bf16.gmra.mxu0 %v7223_v18  ;;  %v7701_v28 = vpop.permute.xlu0 %7700 }
0x10ff   : > { %10903 = vmatprep.mubr.msk.bf16.mxu0 %vm17382_vm13, %v7330_v57  ;;  %10921 = vmatprep.subr.bf16.mxu1 %v7703_v51  ;;  %vm17446_vm13 = vmmov %vm17372_vm8 }
0x1100   : > { %10922 = vmatpush3.bf16.msra.mxu1 %v7703_v51 }
0x1101   : > { %10923 = vmatprep.subr.bf16.mxu1 %v7701_v28 }
0x1102   : > { %v7699_v29 = vpop.permute.xlu0 %7698 }
0x1104   : > { %10924 = vmatpush3.bf16.msra.mxu1 %v7701_v28 }
0x1105   : > { %10925 = vmatprep.subr.bf16.mxu1 %v7699_v29 }
0x1106   : > { %10904 = vmatmul.mubr.msk.bf16.vlgmr.msra.gmra.mxu0 %vm17383_vm12, %v7332_v39  ;;  %vm17448_vm12 = vmmov %vm17372_vm8 }
0x1107   : > { %10907 = vmatprep.mubr.msk.bf16.mxu0 %vm17384_vm15, %v7334_v5  ;;  %vm17450_vm15 = vmmov %vm17372_vm8 }
0x1108   : > { %10926 = vmatpush3.bf16.msra.mxu1 %v7699_v29 }
0x110e   : > { %10908 = vmatmul.mubr.msk.bf16.gmra.mxu0 %vm17385_vm9, %v7336_v2  ;;  %vm17452_vm9 = vmmov %vm17372_vm8 }
0x110f   : > { %10911 = vmatprep.mubr.msk.bf16.mxu0 %vm17386_vm14, %v7338_v1  ;;  %v17401_v1 = vld [vmem:[#allocation133_spill] sm:$0xff]  ;;  %vm17454_vm14 = vmmov %vm17372_vm8 }
0x1116   : > { %10912 = vmatmul.mubr.msk.bf16.gmra.mxu0 %vm17387_vm10, %v7340_v35  ;;  %vm17456_vm10 = vmmov %vm17372_vm8 }
0x1117   : > { %10915 = vmatprep.mubr.msk.bf16.mxu0 %vm17388_vm11, %v7342_v33  ;;  %vm17458_vm11 = vmmov %vm17372_vm8 }
0x111e   : > { %10916 = vmatmul.mubr.msk.bf16.gmra.mxu0 %vm17372_vm8, %v7344_v17 }
0x116d   : > { %v15696_v54 = vpop.f32.mrf.mxu0 }
0x116f   : > { %v15698_v20 = vpop.f32.mrf.mxu0 }
0x1171   : > { %v15700_v55 = vpop.f32.mrf.mxu0 }
0x1173   : > { %v15702_v19 = vpop.f32.mrf.mxu0 }
0x11a7   : > { %v15704_v23 = vpop.f32.mrf.mxu0 }
0x11a9   : > { %v15706_v38 = vpop.f32.mrf.mxu0 }
0x11ab   : > { %v15708_v61 = vpop.f32.mrf.mxu0 }
0x11ad   : > { %v15710_v63 = vpop.f32.mrf.mxu0 }
0x11b6   : > { %v15712_v47 = vpop.f32.mrf.mxu0 }
0x11b8   : > { %v15714_v24 = vpop.f32.mrf.mxu0 }
0x11ba   : > { %v15716_v32 = vpop.f32.mrf.mxu0 }
0x11bc   : > { %v15718_v31 = vpop.f32.mrf.mxu0 }
0x11be   : > { %v15720_v45 = vpop.f32.mrf.mxu0 }
0x11c0   : > { %v15722_v43 = vpop.f32.mrf.mxu0 }
0x11c2   : > { %v15724_v15 = vpop.f32.mrf.mxu0 }
0x11c3   : > { %17389 = vst [vmem:[#allocation103_spill] sm:$0xff] %v15724_v15  ;;  %v17558_v15 = vld [vmem:[#allocation33_spill] sm:$0xff] }
0x11c4   : > { %v15726_v56 = vpop.f32.mrf.mxu0 }
0x11c6   : > { %v10905_v39 = vpop.f32.mrf.mxu0 }
0x11c7   : > { %v7516_v22 = vsel %vm13821_vm1, %v10905_v39, -1e+30  ;;  %vm17390_vm1 = vnez %v16983_v46 }
0x11c8   : > { %7534 = vmax.xlane.f32.xlu0 %v7516_v22  ;;  %v7451_v62 = vpop.f32.mrf.mxu0 }
0x11c9   : > { %v7514_v16 = vsel %vm13836_vm2, %v7451_v62, -1e+30  ;;  %vm17391_vm2 = vnez %v17084_v60 }
0x11ca   : > { %7530 = vmax.xlane.f32.xlu1 %v7514_v16  ;;  %v10906_v57 = vpop.f32.mrf.mxu0 }
0x11cb   : > { %v7517_v27 = vsel %vm13853_vm4, %v10906_v57, -1e+30  ;;  %vm17393_vm4 = vnez %v17086_v11  ;;  %v17398_v11 = vld [vmem:[#allocation23_spill] sm:$0xff] }
0x11cc   : > { %v7454_v2 = vpop.f32.mrf.mxu0 }
0x11cd   : > { %v7515_v14 = vsel %vm13842_vm3, %v7454_v2, -1e+30  ;;  %vm17392_vm3 = vnez %v16988_v10 }
0x11ce   : > { %7536 = vmax.xlane.f32.xlu1 %v7517_v27  ;;  %7532 = vmax.xlane.f32.xlu0 %v7515_v14  ;;  %v10909_v58 = vpop.f32.mrf.mxu0 }
0x11cf   : > { %v7520_v25 = vsel %vm13864_vm5, %v10909_v58, -1e+30  ;;  %vm17394_vm5 = vnez %v16993_v59 }
0x11d0   : > { %v7467_v50 = vpop.f32.mrf.mxu0 }
0x11d1   : > { %v7518_v34 = vsel %vm13886_vm7, %v7467_v50, -1e+30  ;;  %vm17396_vm7 = vnez %v17395_v3 }
0x11d2   : > { %7542 = vmax.xlane.f32.xlu0 %v7520_v25  ;;  %v10910_v48 = vpop.f32.mrf.mxu0 }
0x11d3   : > { %v7521_v9 = vsel %vm17362_vm0, %v10910_v48, -1e+30  ;;  %vm17400_vm0 = vnez %v17399_v37 }
0x11d4   : > { %7544 = vmax.xlane.f32.xlu1 %v7521_v9  ;;  %v7470_v36 = vpop.f32.mrf.mxu0 }
0x11d5   : > { %v7519_v5 = vsel %vm17363_vm6, %v7470_v36, -1e+30  ;;  %vm17402_vm6 = vnez %v17401_v1 }
0x11d6   : > { %7538 = vmax.xlane.f32.xlu0 %v7518_v34  ;;  %v10913_v0 = vpop.f32.mrf.mxu0 }
0x11d7   : > { %v15746_v13 = vsel %vm17390_vm1, %v10913_v0, -1e+30  ;;  %vm17461_vm1 = vmmov %vm17372_vm8 }
0x11d8   : > { %7540 = vmax.xlane.f32.xlu1 %v7519_v5  ;;  %v7483_v35 = vpop.f32.mrf.mxu0 }
0x11d9   : > { %v15756_v21 = vsel %vm17392_vm3, %v7483_v35, -1e+30  ;;  %vm17465_vm3 = vmmov %vm17461_vm1 }
0x11da   : > { %7550 = vmax.xlane.f32.xlu0 %v15746_v13  ;;  %v10914_v42 = vpop.f32.mrf.mxu0 }
0x11db   : > { %v15751_v40 = vsel %vm17391_vm2, %v10914_v42, -1e+30  ;;  %vm17463_vm2 = vmmov %vm17461_vm1 }
0x11dc   : > { %7552 = vmax.xlane.f32.xlu1 %v15751_v40  ;;  %v7486_v26 = vpop.f32.mrf.mxu0 }
0x11dd   : > { %v15761_v46 = vsel %vm17393_vm4, %v7486_v26, -1e+30  ;;  %vm17467_vm4 = vmmov %vm17461_vm1 }
0x11de   : > { %7546 = vmax.xlane.f32.xlu0 %v15756_v21  ;;  %v10917_v44 = vpop.f32.mrf.mxu0 }
0x11df   : > { %v15766_v60 = vsel %vm17394_vm5, %v10917_v44, -1e+30  ;;  %vm17469_vm5 = vmmov %vm17461_vm1 }
0x11e0   : > { %7548 = vmax.xlane.f32.xlu1 %v15761_v46  ;;  %v7499_v53 = vpop.f32.mrf.mxu0 }
0x11e1   : > { %v15771_v10 = vsel %vm17396_vm7, %v7499_v53, -1e+30  ;;  %vm17471_vm7 = vmmov %vm17461_vm1 }
0x11e2   : > { %7558 = vmax.xlane.f32.xlu0 %v15766_v60  ;;  %v10918_v4 = vpop.f32.mrf.mxu0 }
0x11e3   : > { %v15780_v59 = vsel %vm17400_vm0, %v10918_v4, -1e+30  ;;  %vm17473_vm0 = vmmov %vm17461_vm1 }
0x11e4   : > { %v7502_v8 = vpop.f32.mrf.mxu0 }
0x11e5   : > { %v15785_v17 = vsel %vm17402_vm6, %v7502_v8, -1e+30  ;;  %vm17475_vm6 = vmmov %vm17473_vm0 }
0x11e6   : > { %7554 = vmax.xlane.f32.xlu0 %v15771_v10 }
0x11f1   : > { %7694 = vrot.lane.b32.xlu1 %v17397_v52, %s12763_s21 }
0x11fc   : > { %7696 = vrot.lane.b32.xlu0 %v17398_v11, %s12763_s21 }
0x1215   : > { %7560 = vmax.xlane.f32.xlu1 %v15780_v59 }
0x1219   : > { %7556 = vmax.xlane.f32.xlu1 %v15785_v17 }
0x1251   : > { %v7535_v6 = vpop.xlane.xlu0 %7534 }
0x1252   : > { %v7564_v12 = vsub.f32 %v7516_v22, %v7535_v6  ;;  %v17403_v6 = vld [vmem:[#allocation29_spill] sm:$0xff] }
0x1253   : > { %v7531_v49 = vpop.xlane.xlu1 %7530 }
0x1254   : > { %v7582_v33 = vmul.f32 1.442695, %v7564_v12  ;;  %v7562_v30 = vsub.f32 %v7514_v16, %v7531_v49  ;;  %v17404_v12 = vld [vmem:[#allocation27_spill] sm:$0xff] }
0x1256   : > { %12509 = vpow2.f32 %v7582_v33  ;;  %v7578_v7 = vmul.f32 1.442695, %v7562_v30 }
0x1257   : > { %v7537_v41 = vpop.xlane.xlu1 %7536  ;;  %v7533_v18 = vpop.xlane.xlu0 %7532 }
0x1258   : > { %v7565_v51 = vsub.f32 %v7517_v27, %v7537_v41  ;;  %12511 = vpow2.f32 %v7578_v7  ;;  %v7563_v29 = vsub.f32 %v7515_v14, %v7533_v18 }
0x125a   : > { %v7584_v28 = vmul.f32 1.442695, %v7565_v51  ;;  %v7580_v2 = vmul.f32 1.442695, %v7563_v29 }
0x125b   : > { %v7543_v39 = vpop.xlane.xlu0 %7542 }
0x125c   : > { %v7568_v62 = vsub.f32 %v7520_v25, %v7543_v39  ;;  %12513 = vpow2.f32 %v7584_v28 }
0x125d   : > { %v7545_v57 = vpop.xlane.xlu1 %7544 }
0x125e   : > { %v7590_v58 = vmul.f32 1.442695, %v7568_v62  ;;  %v7569_v22 = vsub.f32 %v7521_v9, %v7545_v57 }
0x125f   : > { %v7539_v50 = vpop.xlane.xlu0 %7538 }
0x1260   : > { %12515 = vpow2.f32 %v7590_v58  ;;  %v7566_v48 = vsub.f32 %v7518_v34, %v7539_v50  ;;  %v7592_v42 = vmul.f32 1.442695, %v7569_v22 }
0x1261   : > { %v7541_v36 = vpop.xlane.xlu1 %7540  ;;  %12517 = vpow2.f32 %v7580_v2 }
0x1262   : > { %v7586_v16 = vmul.f32 1.442695, %v7566_v48  ;;  %v7567_v0 = vsub.f32 %v7519_v5, %v7541_v36 }
0x1263   : > { %v15788_v35 = vpop.eup %12509  ;;  %v7551_v27 = vpop.xlane.xlu0 %7550 }
0x1264   : > { %12519 = vpow2.f32 %v7586_v16  ;;  %v7588_v14 = vmul.f32 1.442695, %v7567_v0  ;;  %7614 = vadd.xlane.f32.xlu1 %v15788_v35  ;;  %v7572_v41 = vsub.f32 %v15746_v13, %v7551_v27  ;;  %v17405_v16 = vld [vmem:[#allocation16_spill] sm:$0xff]  ;;  %v17406_v0 = vld [vmem:[#allocation18_spill] sm:$0xff] }
0x1265   : > { %v15791_v25 = vpop.eup %12511  ;;  %v7553_v9 = vpop.xlane.xlu1 %7552  ;;  %v11138_v27 = vpack.i.bf16 %v17406_v0, %v17405_v16  ;;  %v17432_v0 = vld [vmem:[#allocation136_spill] sm:$0xff] }
0x1266   : > { %12521 = vpow2.f32 %v7588_v14  ;;  %v7573_v30 = vsub.f32 %v15751_v40, %v7553_v9  ;;  %v7598_v28 = vmul.f32 1.442695, %v7572_v41  ;;  %v17408_v14 = vld [vmem:[#allocation120_spill] sm:$0xff]  ;;  %v17409_v9 = vld [vmem:[#allocation118_spill] sm:$0xff]  ;;  %v17419_v41 = vld [vmem:[#allocation91_spill] sm:$0xff] }
0x1267   : > { %v7547_v26 = vpop.xlane.xlu0 %7546  ;;  %12523 = vpow2.f32 %v7592_v42  ;;  %v17407_v42 = vld [vmem:[#allocation110_spill] sm:$0xff] }
0x1268   : > { %7610 = vadd.xlane.f32.xlu1 %v15791_v25  ;;  %v7570_v49 = vsub.f32 %v15756_v21, %v7547_v26  ;;  %v7600_v51 = vmul.f32 1.442695, %v7573_v30  ;;  %v11133_v26 = vpack.i.bf16 %v17408_v14, %v17407_v42  ;;  %v17418_v30 = vld [vmem:[#allocation22_spill] sm:$0xff]  ;;  %v17435_v14 = vld [vmem:[#allocation67_spill] sm:$0xff] }
0x1269   : > { %v15794_v34 = vpop.eup %12513  ;;  %v7549_v3 = vpop.xlane.xlu1 %7548 }
0x126a   : > { %v7571_v33 = vsub.f32 %v15761_v46, %v7549_v3  ;;  %v7594_v7 = vmul.f32 1.442695, %v7570_v49 }
0x126b   : > { %v7559_v44 = vpop.xlane.xlu0 %7558 }
0x126c   : > { %7616 = vadd.xlane.f32.xlu1 %v15794_v34  ;;  %v7596_v18 = vmul.f32 1.442695, %v7571_v33  ;;  %12525 = vpow2.f32 %v7594_v7  ;;  %v7576_v62 = vsub.f32 %v15766_v60, %v7559_v44  ;;  %v17410_v44 = vld [vmem:[#allocation115_spill] sm:$0xff]  ;;  %v17417_v33 = vld [vmem:[#allocation20_spill] sm:$0xff] }
0x126d   : > { %v15797_v5 = vpop.eup %12515  ;;  %v7695_v1 = vpop.permute.xlu1 %7694  ;;  %v17411_v3 = vpack.i.bf16 %v17409_v9, %v17410_v44  ;;  %v11158_v7 = vpack.i.bf16 %v17418_v30, %v17417_v33  ;;  %v17437_v44 = vld [vmem:[#allocation139_spill] sm:$0xff]  ;;  %v17442_v30 = vld [vmem:[#allocation140_spill] sm:$0xff] }
0x126e   : > { %7622 = vadd.xlane.f32.xlu0 %v15797_v5  ;;  %v15800_v53 = vpop.eup %12517  ;;  %12527 = vpow2.f32 %v7596_v18  ;;  %v7606_v2 = vmul.f32 1.442695, %v7576_v62  ;;  %v17420_v18 = vld [vmem:[#allocation94_spill] sm:$0xff]  ;;  %v17424_v62 = vld [vmem:[#allocation21_spill] sm:$0xff] }
0x126f   : > { %v7555_v52 = vpop.xlane.xlu0 %7554  ;;  %12529 = vpow2.f32 %v7600_v51  ;;  %v17421_v51 = vpack.i.bf16 %v17419_v41, %v17420_v18 }
0x1270   : > { %7612 = vadd.xlane.f32.xlu1 %v15800_v53  ;;  %v7574_v29 = vsub.f32 %v15771_v10, %v7555_v52  ;;  %12531 = vpow2.f32 %v7598_v28  ;;  %v17412_v52 = vld [vmem:[#allocation93_spill] sm:$0xff]  ;;  %v17422_v28 = vld [vmem:[#allocation83_spill] sm:$0xff] }
0x1271   : > { %v15803_v11 = vpop.eup %12519 }
0x1272   : > { %7618 = vadd.xlane.f32.xlu0 %v15803_v11  ;;  %v7602_v21 = vmul.f32 1.442695, %v7574_v29  ;;  %v17423_v29 = vld [vmem:[#allocation75_spill] sm:$0xff] }
0x1273   : > { %v15806_v4 = vpop.eup %12521  ;;  %v7697_v37 = vpop.permute.xlu0 %7696 }
0x1274   : > { %7620 = vadd.xlane.f32.xlu1 %v15806_v4  ;;  %10927 = vmatprep.subr.bf16.mxu1 %v7697_v37  ;;  %v15809_v8 = vpop.eup %12523  ;;  %12533 = vpow2.f32 %v7602_v21  ;;  %v17425_v21 = vld [vmem:[#allocation19_spill] sm:$0xff] }
0x1275   : > { %10928 = vmatpush3.bf16.msra.mxu1 %v7697_v37  ;;  %v17413_v37 = vld [vmem:[#allocation84_spill] sm:$0xff] }
0x1276   : > { %7624 = vadd.xlane.f32.xlu0 %v15809_v8  ;;  %10929 = vmatprep.subr.bf16.mxu1 %v7695_v1 }
0x1279   : > { %10930 = vmatpush3.bf16.msra.mxu1 %v7695_v1  ;;  %v15824_v50 = vpop.eup %12525  ;;  %v11153_v1 = vpack.i.bf16 %v17413_v37, %v17412_v52 }
0x127b   : > { %v15827_v10 = vpop.eup %12527 }
0x127c   : > { %v15830_v60 = vpop.eup %12529 }
0x1285   : > { %7690 = vrot.lane.b32.xlu1 %v17403_v6, %s12763_s21  ;;  %v17414_v6 = vld [vmem:[#allocation17_spill] sm:$0xff] }
0x128c   : > { %7692 = vrot.lane.b32.xlu0 %v17404_v12, %s12763_s21  ;;  %v17415_v12 = vld [vmem:[#allocation15_spill] sm:$0xff] }
0x128d   : > { %v17416_v49 = vpack.i.bf16 %v17414_v6, %v17415_v12  ;;  %v17439_v6 = vld [vmem:[#allocation63_spill] sm:$0xff] }
0x128e   : > { %v17440_v12 = vld [vmem:[#allocation71_spill] sm:$0xff] }
0x129e   : > { %v7561_v39 = vpop.xlane.xlu1 %7560 }
0x129f   : > { %v7577_v46 = vsub.f32 %v15780_v59, %v7561_v39  ;;  %v15833_v59 = vpop.eup %12531  ;;  %v11173_v39 = vpack.i.bf16 %v17423_v29, %v17422_v28 }
0x12a1   : > { %v7608_v58 = vmul.f32 1.442695, %v7577_v46  ;;  %v17427_v46 = vld [vmem:[#allocation135_spill] sm:$0xff] }
0x12a2   : > { %v7557_v57 = vpop.xlane.xlu1 %7556 }
0x12a3   : > { %v7575_v40 = vsub.f32 %v15785_v17, %v7557_v57  ;;  %v15836_v17 = vpop.eup %12533  ;;  %v17426_v57 = vpack.i.bf16 %v17424_v62, %v17425_v21 }
0x12a5   : > { %v7604_v13 = vmul.f32 1.442695, %v7575_v40  ;;  %v17428_v40 = vld [vmem:[#allocation137_spill] sm:$0xff] }
0x12a7   : > { %12535 = vpow2.f32 %v7604_v13  ;;  %v17429_v13 = vld [vmem:[#allocation79_spill] sm:$0xff] }
0x12a8   : > { %12537 = vpow2.f32 %v7606_v2  ;;  %v11178_v2 = vpack.i.bf16 %v17428_v40, %v17427_v46 }
0x12a9   : > { %7626 = vadd.xlane.f32.xlu1 %v15824_v50  ;;  %12539 = vpow2.f32 %v7608_v58  ;;  %v17430_v58 = vld [vmem:[#allocation87_spill] sm:$0xff] }
0x12aa   : > { %v17431_v16 = vpack.i.bf16 %v17429_v13, %v17430_v58 }
0x12ab   : > { %7628 = vadd.xlane.f32.xlu0 %v15827_v10 }
0x12ad   : > { %7632 = vadd.xlane.f32.xlu1 %v15830_v60 }
0x12af   : > { %7630 = vadd.xlane.f32.xlu0 %v15833_v59 }
0x12b3   : > { %7634 = vadd.xlane.f32.xlu0 %v15836_v17 }
0x12b4   : > { %v15839_v22 = vpop.eup %12535 }
0x12b5   : > { %7636 = vadd.xlane.f32.xlu1 %v15839_v22  ;;  %v15842_v48 = vpop.eup %12537 }
0x12b6   : > { %v15845_v36 = vpop.eup %12539 }
0x12b7   : > { %7638 = vadd.xlane.f32.xlu0 %v15842_v48 }
0x12b9   : > { %7640 = vadd.xlane.f32.xlu1 %v15845_v36 }
0x12ca   : > { %11139 = vrot.lane.b32.xlu1 %v11138_v27, %s12763_s21  ;;  %v17433_v27 = vld [vmem:[#allocation134_spill] sm:$0xff] }
0x12cb   : > { %v17434_v42 = vpack.i.bf16 %v17432_v0, %v17433_v27 }
0x12cd   : > { %11134 = vrot.lane.b32.xlu0 %v11133_v26, %s12763_s21  ;;  %v17436_v26 = vld [vmem:[#allocation59_spill] sm:$0xff] }
0x12ce   : > { %11144 = vrot.lane.b32.xlu1 %v17411_v3, %s12763_s21  ;;  %v11213_v9 = vpack.i.bf16 %v17436_v26, %v17435_v14  ;;  %v17438_v3 = vld [vmem:[#allocation141_spill] sm:$0xff]  ;;  %v11869_v26 = vld [vmem:[#allocation7 + $0xe0] ss:$16 sps:$4 sm:$0xff]  }
0x12cf   : > { %v11218_v52 = vpack.i.bf16 %v17438_v3, %v17437_v44  ;;  %v11874_v3 = vld [vmem:[#allocation7 + $0xc4] ss:$16 sps:$4 sm:$0xff]  }
0x12d1   : > { %11149 = vrot.lane.b32.xlu0 %v17416_v49, %s12763_s21  ;;  %v17441_v49 = vpack.i.bf16 %v17439_v6, %v17440_v12  ;;  %v11877_v6 = vld [vmem:[#allocation7 + $0xa4] ss:$16 sps:$4 sm:$0xff]  }
0x12d2   : > { %11154 = vrot.lane.b32.xlu1 %v11153_v1, %s12763_s21 }
0x12d5   : > { %11159 = vrot.lane.b32.xlu0 %v11158_v7, %s12763_s21  ;;  %v17443_v7 = vld [vmem:[#allocation138_spill] sm:$0xff] }
0x12d6   : > { %11164 = vrot.lane.b32.xlu1 %v17421_v51, %s12763_s21  ;;  %v17444_v41 = vpack.i.bf16 %v17442_v30, %v17443_v7  ;;  %v11883_v30 = vld [vmem:[#allocation7 + $0x64] ss:$16 sps:$4 sm:$0xff]   ;;  %v11881_v7 = vld [vmem:[#allocation7 + $0x60] ss:$16 sps:$4 sm:$0xff]  }
0x12d9   : > { %11169 = vrot.lane.b32.xlu0 %v17426_v57, %s12763_s21 }
0x12da   : > { %11174 = vrot.lane.b32.xlu1 %v11173_v39, %s12763_s21 }
0x12de   : > { %11179 = vrot.lane.b32.xlu1 %v11178_v2, %s12763_s21  ;;  %v11871_v2 = vld [vmem:[#allocation7 + $0xe4] ss:$16 sps:$4 sm:$0xff]  }
0x12e2   : > { %11194 = vrot.lane.b32.xlu1 %v17431_v16, %s12763_s21 }
0x12e6   : > { %11204 = vrot.lane.b32.xlu1 %v17434_v42, %s12763_s21 }
0x12ea   : > { %11214 = vrot.lane.b32.xlu1 %v11213_v9, %s12763_s21 }
0x12ed   : > { %v7615_v37 = vpop.xlane.xlu1 %7614 }
0x12ee   : > { %11219 = vrot.lane.b32.xlu1 %v11218_v52, %s12763_s21 }
0x12f1   : > { %v7611_v1 = vpop.xlane.xlu1 %7610 }
0x12f2   : > { %11234 = vrot.lane.b32.xlu1 %v17441_v49, %s12763_s21  ;;  %v11875_v49 = vld [vmem:[#allocation7 + $0xa0] ss:$16 sps:$4 sm:$0xff]  }
0x12f5   : > { %v7617_v33 = vpop.xlane.xlu1 %7616 }
0x12f6   : > { %11244 = vrot.lane.b32.xlu1 %v17444_v41, %s12763_s21  ;;  %12541 = vrcp.f32 %v7617_v33  ;;  %v11886_v41 = vld [vmem:[#allocation7 + $0x44] ss:$16 sps:$4 sm:$0xff]  }
0x12f7   : > { %v7623_v18 = vpop.xlane.xlu0 %7622  ;;  %12543 = vrcp.f32 %v7611_v1 }
0x12f8   : > { %12545 = vrcp.f32 %v7615_v37 }
0x12f9   : > { %v7613_v51 = vpop.xlane.xlu1 %7612 }
0x12fa   : > { %12547 = vrcp.f32 %v7613_v51  ;;  %v11892_v51 = vld [vmem:[#allocation7 + $0x4] ss:$16 sps:$4 sm:$0xff]  }
0x12fb   : > { %v7619_v28 = vpop.xlane.xlu0 %7618 }
0x12fc   : > { %12549 = vrcp.f32 %v7619_v28  ;;  %v11890_v28 = vld [vmem:[#allocation7] ss:$16 sps:$4 sm:$0xff]  }
0x12fd   : > { %v7621_v29 = vpop.xlane.xlu1 %7620 }
0x12fe   : > { %12551 = vrcp.f32 %v7621_v29  ;;  %v11895_v29 = vld [vmem:[#allocation7 + $0x1e4] ss:$16 sps:$4 sm:$0xff]  }
0x12ff   : > { %v7625_v39 = vpop.xlane.xlu0 %7624 }
0x1300   : > { %12553 = vrcp.f32 %v7625_v39  ;;  %v11893_v39 = vld [vmem:[#allocation7 + $0x1e0] ss:$16 sps:$4 sm:$0xff]  }
0x1301   : > { %12555 = vrcp.f32 %v7623_v18  ;;  %v7691_v46 = vpop.permute.xlu1 %7690  ;;  %v11889_v18 = vld [vmem:[#allocation7 + $0x24] ss:$16 sps:$4 sm:$0xff]  }
0x1303   : > { %v7693_v62 = vpop.permute.xlu0 %7692  ;;  %v12542_v21 = vpop.eup %12541 }
0x1304   : > { %10931 = vmatprep.subr.bf16.mxu1 %v7693_v62  ;;  %v12544_v57 = vpop.eup %12543  ;;  %v7661_v58 = vmul.f32 %v12542_v21, %v15794_v34  ;;  %v11896_v21 = vld [vmem:[#allocation7 + $0x1c0] ss:$16 sps:$4 sm:$0xff]  }
0x1305   : > { %10932 = vmatpush3.bf16.msra.mxu1 %v7693_v62  ;;  %v12546_v40 = vpop.eup %12545  ;;  %v7658_v16 = vmul.f32 %v12544_v57, %v15791_v25  ;;  %v11898_v62 = vld [vmem:[#allocation7 + $0x1c4] ss:$16 sps:$4 sm:$0xff]  }
0x1306   : > { %10933 = vmatprep.subr.bf16.mxu1 %v7691_v46  ;;  %v7660_v42 = vmul.f32 %v12546_v40, %v15788_v35  ;;  %v11901_v57 = vld [vmem:[#allocation7 + $0x1a4] ss:$16 sps:$4 sm:$0xff]   ;;  %v11899_v40 = vld [vmem:[#allocation7 + $0x1a0] ss:$16 sps:$4 sm:$0xff]  }
0x1307   : > { %v12548_v13 = vpop.eup %12547 }
0x1308   : > { %v7659_v0 = vmul.f32 %v12548_v13, %v15800_v53  ;;  %v7675_v44 = vpack.c.bf16 %v7661_v58, %v7660_v42  ;;  %v11872_v53 = vld [vmem:[#allocation7 + $0xc0] ss:$16 sps:$4 sm:$0xff]  }
0x1309   : > { %v12550_v27 = vpop.eup %12549  ;;  %10934 = vmatpush3.bf16.msra.mxu1 %v7691_v46  ;;  %v11905_v42 = vld [vmem:[#allocation7 + $0x160] ss:$16 sps:$4 sm:$0xff]  }
0x130a   : > { %v7674_v14 = vpack.c.bf16 %v7659_v0, %v7658_v16  ;;  %8953 = vmatprep.subr.bf16.mxu1 %v11871_v2  ;;  %v7662_v52 = vmul.f32 %v12550_v27, %v15803_v11  ;;  %v11880_v11 = vld [vmem:[#allocation7 + $0x84] ss:$16 sps:$4 sm:$0xff]   ;;  %v11902_v16 = vld [vmem:[#allocation7 + $0x180] ss:$16 sps:$4 sm:$0xff]  }
0x130b   : > { %v12552_v9 = vpop.eup %12551  ;;  %v11904_v2 = vld [vmem:[#allocation7 + $0x184] ss:$16 sps:$4 sm:$0xff]  }
0x130c   : > { %10935 = vmatprep.mubr.bf16.mxu1 %v7674_v14  ;;  %v7663_v37 = vmul.f32 %v12552_v9, %v15806_v4  ;;  %v11878_v4 = vld [vmem:[#allocation7 + $0x80] ss:$16 sps:$4 sm:$0xff]   ;;  %v11907_v0 = vld [vmem:[#allocation7 + $0x164] ss:$16 sps:$4 sm:$0xff]  }
0x130d   : > { %v12554_v34 = vpop.eup %12553  ;;  %10936 = vmatmul.mubr.bf16.vlgmr.msra.gmra.mxu1 %v7675_v44  ;;  %v11910_v14 = vld [vmem:[#allocation7 + $0x144] ss:$16 sps:$4 sm:$0xff]   ;;  %v11908_v44 = vld [vmem:[#allocation7 + $0x140] ss:$16 sps:$4 sm:$0xff]  }
0x130e   : > { %v12556_v25 = vpop.eup %12555  ;;  %v7676_v1 = vpack.c.bf16 %v7663_v37, %v7662_v52  ;;  %8954 = vmatpush1.bf16.msra.mxu1 %v11869_v26  ;;  %v7665_v35 = vmul.f32 %v12554_v34, %v15809_v8  ;;  %v11884_v8 = vld [vmem:[#allocation7 + $0x40] ss:$16 sps:$4 sm:$0xff]  }
0x130f   : > { %8955 = vmatprep.subr.bf16.mxu1 %v11874_v3  ;;  %v7664_v12 = vmul.f32 %v12556_v25, %v15797_v5  ;;  %v11887_v5 = vld [vmem:[#allocation7 + $0x20] ss:$16 sps:$4 sm:$0xff]   ;;  %v11913_v3 = vld [vmem:[#allocation7 + $0x124] ss:$16 sps:$4 sm:$0xff]  }
0x1310   : > { %10939 = vmatprep.mubr.bf16.mxu1 %v7676_v1  ;;  %v11911_v1 = vld [vmem:[#allocation7 + $0x120] ss:$16 sps:$4 sm:$0xff]  }
0x1311   : > { %v7677_v33 = vpack.c.bf16 %v7665_v35, %v7664_v12 }
0x1312   : > { %8956 = vmatpush1.bf16.msra.mxu1 %v11872_v53 }
0x1313   : > { %8957 = vmatprep.subr.bf16.mxu1 %v11877_v6  ;;  %v11916_v6 = vld [vmem:[#allocation7 + $0x104] ss:$16 sps:$4 sm:$0xff]  }
0x1315   : > { %10940 = vmatmul.mubr.bf16.gmra.mxu1 %v7677_v33 }
0x1316   : > { %8958 = vmatpush1.bf16.msra.mxu1 %v11875_v49 }
0x1317   : > { %8959 = vmatprep.subr.bf16.mxu1 %v11880_v11  ;;  %v11914_v11 = vld [vmem:[#allocation7 + $0x100] ss:$16 sps:$4 sm:$0xff]  }
0x131a   : > { %8960 = vmatpush1.bf16.msra.mxu1 %v11878_v4 }
0x131b   : > { %8961 = vmatprep.subr.bf16.mxu1 %v11883_v30 }
0x131e   : > { %8962 = vmatpush1.bf16.msra.mxu1 %v11881_v7  ;;  %v11919_v7 = vld [vmem:[#allocation7 + $0xec] ss:$16 sps:$4 sm:$0xff]  }
0x131f   : > { %8963 = vmatprep.subr.bf16.mxu1 %v11886_v41 }
0x1322   : > { %8964 = vmatpush1.bf16.msra.mxu1 %v11884_v8 }
0x1323   : > { %8965 = vmatprep.subr.bf16.mxu1 %v11889_v18 }
0x1326   : > { %8966 = vmatpush1.bf16.msra.mxu1 %v11887_v5 }
0x1327   : > { %8967 = vmatprep.subr.bf16.mxu1 %v11892_v51 }
0x132a   : > { %8968 = vmatpush1.bf16.msra.mxu1 %v11890_v28 }
0x132b   : > { %8969 = vmatprep.subr.bf16.mxu1 %v11895_v29 }
0x132e   : > { %8970 = vmatpush2.bf16.msra.mxu1 %v11893_v39 }
0x132f   : > { %8971 = vmatprep.subr.bf16.mxu1 %v11898_v62 }
0x1332   : > { %v7627_v46 = vpop.xlane.xlu1 %7626  ;;  %8972 = vmatpush2.bf16.msra.mxu1 %v11896_v21 }
0x1333   : > { %12557 = vrcp.f32 %v7627_v46  ;;  %8973 = vmatprep.subr.bf16.mxu1 %v11901_v57  ;;  %v17445_v46 = vld [vmem:[#allocation128_spill] sm:$0xff] }
0x1334   : > { %v7629_v13 = vpop.xlane.xlu0 %7628 }
0x1335   : > { %12559 = vrcp.f32 %v7629_v13 }
0x1336   : > { %v7633_v58 = vpop.xlane.xlu1 %7632  ;;  %8974 = vmatpush2.bf16.msra.mxu1 %v11899_v40 }
0x1337   : > { %8975 = vmatprep.subr.bf16.mxu1 %v11904_v2  ;;  %12561 = vrcp.f32 %v7633_v58  ;;  %v17447_v2 = vld [vmem:[#allocation130_spill] sm:$0xff] }
0x1338   : > { %v7631_v27 = vpop.xlane.xlu0 %7630 }
0x1339   : > { %12563 = vrcp.f32 %v7631_v27 }
0x133a   : > { %8976 = vmatpush2.bf16.msra.mxu1 %v11902_v16 }
0x133b   : > { %8977 = vmatprep.subr.bf16.mxu1 %v11907_v0 }
0x133c   : > { %v7635_v26 = vpop.xlane.xlu0 %7634 }
0x133d   : > { %12565 = vrcp.f32 %v7635_v26 }
0x133e   : > { %v7637_v9 = vpop.xlane.xlu1 %7636  ;;  %8978 = vmatpush2.bf16.msra.mxu1 %v11905_v42 }
0x133f   : > { %12567 = vrcp.f32 %v7637_v9  ;;  %8979 = vmatprep.subr.bf16.mxu1 %v11910_v14  ;;  %v17451_v14 = vld [vmem:[#allocation55_spill] sm:$0xff] }
0x1340   : > { %v12558_v52 = vpop.eup %12557  ;;  %v7639_v37 = vpop.xlane.xlu0 %7638 }
0x1341   : > { %12569 = vrcp.f32 %v7639_v37  ;;  %v7666_v53 = vmul.f32 %v12558_v52, %v15824_v50  ;;  %v17455_v37 = vld [vmem:[#allocation129_spill] sm:$0xff] }
0x1342   : > { %v12560_v34 = vpop.eup %12559  ;;  %v7641_v25 = vpop.xlane.xlu1 %7640  ;;  %8980 = vmatpush2.bf16.msra.mxu1 %v11908_v44 }
0x1343   : > { %12571 = vrcp.f32 %v7641_v25  ;;  %v7667_v35 = vmul.f32 %v12560_v34, %v15827_v10  ;;  %8981 = vmatprep.subr.bf16.mxu1 %v11913_v3  ;;  %v17453_v3 = vld [vmem:[#allocation127_spill] sm:$0xff] }
0x1344   : > { %v12562_v12 = vpop.eup %12561  ;;  %v11135_v18 = vpop.permute.xlu0 %11134  ;;  %v11917_v25 = vld [vmem:[#allocation7 + $0xe8] ss:$16 sps:$4 sm:$0xff]  }
0x1345   : > { %v7678_v49 = vpack.c.bf16 %v7667_v35, %v7666_v53  ;;  %v7669_v41 = vmul.f32 %v12562_v12, %v15830_v60  ;;  %v11137_v28 = vunpack.i.h.bf16 %v11135_v18  ;;  %v11136_v29 = vunpack.i.l.bf16 %v11135_v18  ;;  %v11922_v53 = vld [vmem:[#allocation7 + $0xcc] ss:$16 sps:$4 sm:$0xff]  }
0x1346   : > { %v12564_v33 = vpop.eup %12563  ;;  %8982 = vmatpush2.bf16.msra.mxu1 %v11911_v1  ;;  %v11140_v4 = vpop.permute.xlu1 %11139 }
0x1347   : > { %10943 = vmatprep.mubr.bf16.mxu1 %v7678_v49  ;;  %v7668_v30 = vmul.f32 %v12564_v33, %v15833_v59  ;;  %8983 = vmatprep.subr.bf16.mxu1 %v11916_v6  ;;  %v8083_v40 = vsel %vm17446_vm13, %v17445_v46, %v11136_v29  ;;  %v8084_v13 = vsel %vm17448_vm12, %v17447_v2, %v11137_v28  ;;  %v11142_v16 = vunpack.i.h.bf16 %v11140_v4  ;;  %v11923_v29 = vld [vmem:[#allocation7 + $0xa8] ss:$16 sps:$4 sm:$0xff]   ;;  %vm17477_vm13 = vmmov %vm17473_vm0 }
0x1348   : > { %v11141_v0 = vunpack.i.l.bf16 %v11140_v4  ;;  %v15924_v27 = vpack.c.bf16 %v8084_v13, %v8083_v40  ;;  %v11150_v44 = vpop.permute.xlu0 %11149  ;;  %v11920_v4 = vld [vmem:[#allocation7 + $0xc8] ss:$16 sps:$4 sm:$0xff]   ;;  %v11931_v13 = vld [vmem:[#allocation7 + $0x6c] ss:$16 sps:$4 sm:$0xff]   ;;  %vm17479_vm12 = vmmov %vm17473_vm0 }
0x1349   : > { %v7679_v8 = vpack.c.bf16 %v7669_v41, %v7668_v30  ;;  %v11152_v35 = vunpack.i.h.bf16 %v11150_v44  ;;  %v11151_v6 = vunpack.i.l.bf16 %v11150_v44  ;;  %v11925_v30 = vld [vmem:[#allocation7 + $0xac] ss:$16 sps:$4 sm:$0xff]   ;;  %v11926_v2 = vld [vmem:[#allocation7 + $0x88] ss:$16 sps:$4 sm:$0xff]  }
0x134a   : > { %8984 = vmatpush2.bf16.msra.mxu1 %v11914_v11  ;;  %v12566_v50 = vpop.eup %12565  ;;  %v11145_v5 = vpop.permute.xlu1 %11144  ;;  %v8067_v26 = vsel %vm17452_vm9, %v17451_v14, %v11141_v0  ;;  %vm17483_vm9 = vmmov %vm17473_vm0 }
0x134b   : > { %9179 = vmatprep.subr.bf16.mxu1 %v11919_v7  ;;  %10944 = vmatmul.mubr.bf16.gmra.mxu1 %v7679_v8  ;;  %v7670_v39 = vmul.f32 %v12566_v50, %v15836_v17  ;;  %v11147_v17 = vunpack.i.h.bf16 %v11145_v5  ;;  %v11146_v42 = vunpack.i.l.bf16 %v11145_v5  ;;  %v17457_v7 = vld [vmem:[#allocation52_spill] sm:$0xff]  ;;  %v17459_v8 = vld [vmem:[#allocation53_spill] sm:$0xff] }
0x134c   : > { %v12568_v10 = vpop.eup %12567  ;;  %v8070_v41 = vsel %vm17458_vm11, %v17457_v7, %v11152_v35  ;;  %v8069_v50 = vsel %vm17372_vm8, %v17459_v8, %v11151_v6  ;;  %v11160_v18 = vpop.permute.xlu0 %11159  ;;  %v11932_v35 = vld [vmem:[#allocation7 + $0x48] ss:$16 sps:$4 sm:$0xff]   ;;  %v11937_v6 = vld [vmem:[#allocation7 + $0x2c] ss:$16 sps:$4 sm:$0xff]   ;;  %vm17489_vm11 = vmmov %vm17473_vm0 }
0x134d   : > { %v7671_v51 = vmul.f32 %v12568_v10, %v15839_v22  ;;  %v8085_v52 = vsel %vm17454_vm14, %v17453_v3, %v11146_v42  ;;  %v8086_v34 = vsel %vm17456_vm10, %v17455_v37, %v11147_v17  ;;  %v17460_v10 = vld [vmem:[#allocation92_spill] sm:$0xff]  ;;  %v17468_v42 = vld [vmem:[#allocation89_spill] sm:$0xff]  ;;  %vm17485_vm14 = vmmov %vm17473_vm0 }
0x134e   : > { %v12570_v62 = vpop.eup %12569  ;;  %v11155_v58 = vpop.permute.xlu1 %11154  ;;  %v15937_v12 = vpack.c.bf16 %v8086_v34, %v8085_v52  ;;  %v11934_v3 = vld [vmem:[#allocation7 + $0x4c] ss:$16 sps:$4 sm:$0xff]   ;;  %vm17487_vm10 = vmmov %vm17473_vm0 }
0x134f   : > { %v7680_v21 = vpack.c.bf16 %v7671_v51, %v7670_v39  ;;  %v7672_v60 = vmul.f32 %v12570_v62, %v15842_v48  ;;  %v11157_v49 = vunpack.i.h.bf16 %v11155_v58  ;;  %v11156_v33 = vunpack.i.l.bf16 %v11155_v58  ;;  %v17462_v51 = vld [vmem:[#allocation143_spill] sm:$0xff]  ;;  %v11928_v62 = vld [vmem:[#allocation7 + $0x8c] ss:$16 sps:$4 sm:$0xff]   ;;  %vm17491_vm8 = vmmov %vm17473_vm0 }
0x1350   : > { %v12572_v59 = vpop.eup %12571  ;;  %v15949_v39 = vpack.c.bf16 %v8070_v41, %v8069_v50  ;;  %v17464_v58 = vld [vmem:[#allocation48_spill] sm:$0xff]  ;;  %v11170_v17 = vpop.permute.xlu0 %11169  ;;  %v17476_v41 = vld [vmem:[#allocation145_spill] sm:$0xff]  ;;  %v17478_v50 = vld [vmem:[#allocation147_spill] sm:$0xff] }
0x1351   : > { %v7673_v57 = vmul.f32 %v12572_v59, %v15845_v36  ;;  %10947 = vmatprep.mubr.bf16.mxu1 %v7680_v21  ;;  %v17449_v36 = vld [vmem:[#allocation50_spill] sm:$0xff]  ;;  %v8087_v5 = vsel %vm17461_vm1, %v17460_v10, %v11156_v33  ;;  %v8088_v28 = vsel %vm17463_vm2, %v17462_v51, %v11157_v49  ;;  %v11162_v59 = vunpack.i.h.bf16 %v11160_v18  ;;  %v17472_v49 = vld [vmem:[#allocation47_spill] sm:$0xff]  ;;  %vm17493_vm1 = vmmov %vm17473_vm0 }
0x1352   : > { %v8068_v48 = vsel %vm17450_vm15, %v17449_v36, %v11142_v16  ;;  %v11165_v9 = vpop.permute.xlu1 %11164  ;;  %v11161_v21 = vunpack.i.l.bf16 %v11160_v18  ;;  %v17466_v16 = vld [vmem:[#allocation49_spill] sm:$0xff]  ;;  %v11172_v52 = vunpack.i.h.bf16 %v11170_v17  ;;  %v11171_v37 = vunpack.i.l.bf16 %v11170_v17  ;;  %vm17481_vm15 = vmmov %vm17473_vm0 }
0x1353   : > { %v7681_v22 = vpack.c.bf16 %v7673_v57, %v7672_v60  ;;  %v15935_v1 = vpack.c.bf16 %v8068_v48, %v8067_v26  ;;  %v15951_v60 = vpack.c.bf16 %v8088_v28, %v8087_v5  ;;  %v11167_v46 = vunpack.i.h.bf16 %v11165_v9  ;;  %v17470_v48 = vld [vmem:[#allocation142_spill] sm:$0xff]  ;;  %v11935_v18 = vld [vmem:[#allocation7 + $0x28] ss:$16 sps:$4 sm:$0xff]   ;;  %vm17495_vm2 = vmmov %vm17473_vm0 }
0x1354   : > { %v11166_v40 = vunpack.i.l.bf16 %v11165_v9  ;;  %v8071_v0 = vsel %vm17467_vm4, %v17466_v16, %v11161_v21  ;;  %v11929_v9 = vld [vmem:[#allocation7 + $0x68] ss:$16 sps:$4 sm:$0xff]   ;;  %v8074_v33 = vsel %vm17473_vm0, %v17472_v49, %v11172_v52  ;;  %v11940_v5 = vld [vmem:[#allocation7 + $0xc] ss:$16 sps:$4 sm:$0xff]   ;;  %vm17499_vm4 = vmmov %vm17473_vm0 }
0x1355   : > { %10948 = vmatmul.mubr.bf16.gmra.mxu1 %v7681_v22  ;;  %v8072_v22 = vsel %vm17465_vm3, %v17464_v58, %v11162_v59  ;;  %v8090_v14 = vsel %vm17471_vm7, %v17470_v48, %v11167_v46  ;;  %v11938_v46 = vld [vmem:[#allocation7 + $0x8] ss:$16 sps:$4 sm:$0xff]   ;;  %v17482_v58 = vld [vmem:[#allocation44_spill] sm:$0xff]  ;;  %v17490_v49 = vld [vmem:[#allocation46_spill] sm:$0xff] }
0x1356   : > { %8985 = vmatprep.mubr.bf16.mxu1 %v15924_v27  ;;  %v11175_v11 = vpop.permute.xlu1 %11174  ;;  %v8089_v36 = vsel %vm17469_vm5, %v17468_v42, %v11166_v40  ;;  %v15963_v44 = vpack.c.bf16 %v8072_v22, %v8071_v0  ;;  %v11943_v40 = vld [vmem:[#allocation7 + $0x1ec] ss:$16 sps:$4 sm:$0xff]   ;;  %v11941_v42 = vld [vmem:[#allocation7 + $0x1e8] ss:$16 sps:$4 sm:$0xff]   ;;  %vm17497_vm3 = vmmov %vm17473_vm0 }
0x1357   : > { %v15965_v34 = vpack.c.bf16 %v8090_v14, %v8089_v36  ;;  %v17486_v0 = vld [vmem:[#allocation146_spill] sm:$0xff]  ;;  %vm17501_vm5 = vmmov %vm17473_vm0 }
0x1358   : > { %v11946_v48 = vld [vmem:[#allocation7 + $0x1cc] ss:$16 sps:$4 sm:$0xff]   ;;  %vm17503_vm7 = vmmov %vm17473_vm0 }
0x135a   : > { %v11180_v57 = vpop.permute.xlu1 %11179 }
0x135b   : > { %v11182_v51 = vunpack.i.h.bf16 %v11180_v57  ;;  %v11181_v28 = vunpack.i.l.bf16 %v11180_v57  ;;  %v17484_v57 = vld [vmem:[#allocation144_spill] sm:$0xff] }
0x135d   : > { %8986 = vmatmul.mubr.bf16.vlgmr.msra.gmra.mxu1 %v15935_v1  ;;  %v8075_v22 = vsel %vm17483_vm9, %v17482_v58, %v11181_v28  ;;  %vm17559_vm9 = vmmov %vm17473_vm0 }
0x135e   : > { %8995 = vmatprep.mubr.bf16.mxu1 %v15937_v12  ;;  %9180 = vmatpush1.bf16.msra.mxu1 %v11917_v25  ;;  %v11195_v26 = vpop.permute.xlu1 %11194  ;;  %v11177_v25 = vunpack.i.h.bf16 %v11175_v11 }
0x135f   : > { %9181 = vmatprep.subr.bf16.mxu1 %v11922_v53  ;;  %v11176_v53 = vunpack.i.l.bf16 %v11175_v11  ;;  %v11196_v59 = vunpack.i.l.bf16 %v11195_v26 }
0x1360   : > { %v8092_v11 = vsel %vm17479_vm12, %v17478_v50, %v11177_v25  ;;  %v11944_v25 = vld [vmem:[#allocation7 + $0x1c8] ss:$16 sps:$4 sm:$0xff]   ;;  %vm17554_vm12 = vmmov %vm17473_vm0 }
0x1361   : > { %v8091_v8 = vsel %vm17477_vm13, %v17476_v41, %v11176_v53  ;;  %v8093_v16 = vsel %vm17485_vm14, %v17484_v57, %v11196_v59  ;;  %v11949_v53 = vld [vmem:[#allocation7 + $0x1ac] ss:$16 sps:$4 sm:$0xff]   ;;  %v11947_v50 = vld [vmem:[#allocation7 + $0x1a8] ss:$16 sps:$4 sm:$0xff]   ;;  %vm17553_vm13 = vmmov %vm17473_vm0 }
0x1362   : > { %9182 = vmatpush1.bf16.msra.mxu1 %v11920_v4  ;;  %v17474_v4 = vld [vmem:[#allocation51_spill] sm:$0xff]  ;;  %v11205_v7 = vpop.permute.xlu1 %11204  ;;  %v17500_v57 = vld [vmem:[#allocation148_spill] sm:$0xff]  ;;  %vm17560_vm14 = vmmov %vm17473_vm0 }
0x1363   : > { %9183 = vmatprep.subr.bf16.mxu1 %v11925_v30  ;;  %v8073_v30 = vsel %vm17475_vm6, %v17474_v4, %v11171_v37  ;;  %v11207_v14 = vunpack.i.h.bf16 %v11205_v7  ;;  %v17492_v4 = vld [vmem:[#allocation149_spill] sm:$0xff]  ;;  %vm17506_vm6 = vmmov %vm17473_vm0 }
0x1364   : > { %v15977_v10 = vpack.c.bf16 %v8074_v33, %v8073_v30 }
0x1365   : > { %8996 = vmatmul.mubr.bf16.gmra.mxu1 %v15949_v39 }
0x1366   : > { %9005 = vmatprep.mubr.bf16.mxu1 %v15951_v60  ;;  %9184 = vmatpush1.bf16.msra.mxu1 %v11923_v29  ;;  %v15979_v29 = vpack.c.bf16 %v8092_v11, %v8091_v8  ;;  %v11215_v21 = vpop.permute.xlu1 %11214 }
0x1367   : > { %9185 = vmatprep.subr.bf16.mxu1 %v11928_v62  ;;  %v11197_v62 = vunpack.i.h.bf16 %v11195_v26  ;;  %v11206_v26 = vunpack.i.l.bf16 %v11205_v7  ;;  %v11217_v52 = vunpack.i.h.bf16 %v11215_v21  ;;  %v11216_v37 = vunpack.i.l.bf16 %v11215_v21  ;;  %v17494_v7 = vld [vmem:[#allocation151_spill] sm:$0xff] }
0x1368   : > { %v11950_v21 = vld [vmem:[#allocation7 + $0x188] ss:$16 sps:$4 sm:$0xff]  }
0x1369   : > { %v8094_v17 = vsel %vm17487_vm10, %v17486_v0, %v11197_v62  ;;  %v8077_v33 = vsel %vm17491_vm8, %v17490_v49, %v11206_v26  ;;  %v8095_v30 = vsel %vm17493_vm1, %v17492_v4, %v11216_v37  ;;  %v8096_v41 = vsel %vm17495_vm2, %v17494_v7, %v11217_v52  ;;  %v17502_v0 = vld [vmem:[#allocation150_spill] sm:$0xff]  ;;  %v11956_v37 = vld [vmem:[#allocation7 + $0x148] ss:$16 sps:$4 sm:$0xff]   ;;  %vm17561_vm10 = vmmov %vm17473_vm0 }
0x136a   : > { %9186 = vmatpush1.bf16.msra.mxu1 %v11926_v2  ;;  %v17480_v2 = vld [vmem:[#allocation43_spill] sm:$0xff]  ;;  %v16007_v28 = vpack.c.bf16 %v8096_v41, %v8095_v30  ;;  %v11965_v30 = vld [vmem:[#allocation7 + $0x2e0] ss:$16 sps:$4 sm:$0xff]   ;;  %v11964_v41 = vld [vmem:[#allocation7 + $0x10c] ss:$16 sps:$4 sm:$0xff]  }
0x136b   : > { %9187 = vmatprep.subr.bf16.mxu1 %v11931_v13  ;;  %v8076_v13 = vsel %vm17481_vm15, %v17480_v2, %v11182_v51  ;;  %v11959_v4 = vld [vmem:[#allocation7 + $0x128] ss:$16 sps:$4 sm:$0xff]   ;;  %vm17557_vm15 = vmmov %vm17473_vm0 }
0x136c   : > { %v15991_v36 = vpack.c.bf16 %v8076_v13, %v8075_v22  ;;  %v17498_v13 = vld [vmem:[#allocation41_spill] sm:$0xff]  ;;  %vm17566_vm8 = vmmov %vm17473_vm0 }
0x136d   : > { %9006 = vmatmul.mubr.bf16.gmra.mxu1 %v15963_v44  ;;  %vm17567_vm1 = vmmov %vm17473_vm0 }
0x136e   : > { %9015 = vmatprep.mubr.bf16.mxu1 %v15965_v34  ;;  %9188 = vmatpush1.bf16.msra.mxu1 %v11929_v9  ;;  %v11220_v9 = vpop.permute.xlu1 %11219  ;;  %vm17568_vm2 = vmmov %vm17473_vm0 }
0x136f   : > { %9189 = vmatprep.subr.bf16.mxu1 %v11934_v3  ;;  %v15993_v3 = vpack.c.bf16 %v8094_v17, %v8093_v16  ;;  %v11221_v51 = vunpack.i.l.bf16 %v11220_v9 }
0x1371   : > { %v8079_v58 = vsel %vm17499_vm4, %v17498_v13, %v11221_v51  ;;  %v11971_v51 = vld [vmem:[#allocation7 + $0x2a0] ss:$16 sps:$4 sm:$0xff]   ;;  %vm17572_vm4 = vmmov %vm17473_vm0 }
0x1372   : > { %9190 = vmatpush1.bf16.msra.mxu1 %v11932_v35  ;;  %v17488_v35 = vld [vmem:[#allocation45_spill] sm:$0xff]  ;;  %v11235_v8 = vpop.permute.xlu1 %11234  ;;  %v11986_v13 = vld [vmem:[#allocation7 + $0x200] ss:$16 sps:$4 sm:$0xff]  }
0x1373   : > { %9191 = vmatprep.subr.bf16.mxu1 %v11937_v6  ;;  %v8078_v6 = vsel %vm17489_vm11, %v17488_v35, %v11207_v14  ;;  %v11237_v62 = vunpack.i.h.bf16 %v11235_v8  ;;  %v11236_v59 = vunpack.i.l.bf16 %v11235_v8  ;;  %v11958_v14 = vld [vmem:[#allocation7 + $0x14c] ss:$16 sps:$4 sm:$0xff]   ;;  %v11968_v8 = vld [vmem:[#allocation7 + $0x2c0] ss:$16 sps:$4 sm:$0xff]   ;;  %vm17564_vm11 = vmmov %vm17473_vm0 }
0x1374   : > { %v16005_v11 = vpack.c.bf16 %v8078_v6, %v8077_v33  ;;  %v17505_v6 = vld [vmem:[#allocation42_spill] sm:$0xff]  ;;  %v11967_v33 = vld [vmem:[#allocation7 + $0x2e4] ss:$16 sps:$4 sm:$0xff]  }
0x1375   : > { %9016 = vmatmul.mubr.bf16.gmra.mxu1 %v15977_v10  ;;  %v8097_v16 = vsel %vm17501_vm5, %v17500_v57, %v11236_v59  ;;  %v8098_v17 = vsel %vm17503_vm7, %v17502_v0, %v11237_v62  ;;  %9066 = vmatprep.subr.bf16.mxu0 %v11967_v33  ;;  %v11976_v62 = vld [vmem:[#allocation7 + $0x284] ss:$16 sps:$4 sm:$0xff]   ;;  %v11974_v59 = vld [vmem:[#allocation7 + $0x280] ss:$16 sps:$4 sm:$0xff]   ;;  %vm17573_vm5 = vmmov %vm17473_vm0 }
0x1376   : > { %9025 = vmatprep.mubr.bf16.mxu1 %v15979_v29  ;;  %9192 = vmatpush1.bf16.msra.mxu1 %v11935_v18  ;;  %v11952_v18 = vld [vmem:[#allocation7 + $0x18c] ss:$16 sps:$4 sm:$0xff]   ;;  %v11245_v22 = vpop.permute.xlu1 %11244  ;;  %v16021_v52 = vpack.c.bf16 %v8098_v17, %v8097_v16  ;;  %v11997_v57 = vld [vmem:[#allocation7 + $0x3a4] ss:$16 sps:$4 sm:$0xff]   ;;  %v11998_v16 = vld [vmem:[#allocation7 + $0x380] ss:$16 sps:$4 sm:$0xff]  }
0x1377   : > { %9193 = vmatprep.subr.bf16.mxu1 %v11940_v5  ;;  %v11222_v5 = vunpack.i.h.bf16 %v11220_v9  ;;  %v11247_v26 = vunpack.i.h.bf16 %v11245_v22  ;;  %v11246_v9 = vunpack.i.l.bf16 %v11245_v22  ;;  %9067 = vmatpush1.bf16.msra.mxu0 %v11965_v30  ;;  %v11992_v22 = vld [vmem:[#allocation7 + $0x3c0] ss:$16 sps:$4 sm:$0xff]   ;;  %v12003_v0 = vld [vmem:[#allocation7 + $0x364] ss:$16 sps:$4 sm:$0xff]   ;;  %v16057_v30 = vld [vmem:[#allocation7 + $0x2c8] ss:$16 sps:$4 sm:$0xff]  }
0x1378   : > { %v12004_v17 = vld [vmem:[#allocation7 + $0x340] ss:$16 sps:$4 sm:$0xff]   ;;  %vm17574_vm7 = vmmov %vm17473_vm0 }
0x1379   : > { %v8081_v49 = vsel %vm17506_vm6, %v17505_v6, %v11246_v9  ;;  %v12010_v9 = vld [vmem:[#allocation7 + $0x300] ss:$16 sps:$4 sm:$0xff]   ;;  %v17508_v6 = vld [vmem:[#allocation109_spill] sm:$0xff]  ;;  %vm17577_vm6 = vmmov %vm17473_vm0 }
0x137a   : > { %9194 = vmatpush1.bf16.msra.mxu1 %v11938_v46  ;;  %v11955_v46 = vld [vmem:[#allocation7 + $0x16c] ss:$16 sps:$4 sm:$0xff]  }
0x137b   : > { %9195 = vmatprep.subr.bf16.mxu1 %v11943_v40  ;;  %v17496_v40 = vld [vmem:[#allocation39_spill] sm:$0xff] }
0x137c   : > { %v8080_v2 = vsel %vm17497_vm3, %v17496_v40, %v11222_v5  ;;  %v11973_v5 = vld [vmem:[#allocation7 + $0x2a4] ss:$16 sps:$4 sm:$0xff]   ;;  %v11980_v40 = vld [vmem:[#allocation7 + $0x240] ss:$16 sps:$4 sm:$0xff]   ;;  %vm17570_vm3 = vmmov %vm17473_vm0 }
0x137d   : > { %9026 = vmatmul.mubr.bf16.gmra.mxu1 %v15991_v36 }
0x137e   : > { %9035 = vmatprep.mubr.bf16.mxu1 %v15993_v3  ;;  %9196 = vmatpush2.bf16.msra.mxu1 %v11941_v42  ;;  %v11953_v42 = vld [vmem:[#allocation7 + $0x168] ss:$16 sps:$4 sm:$0xff]  }
0x137f   : > { %9197 = vmatprep.subr.bf16.mxu1 %v11946_v48  ;;  %v16019_v48 = vpack.c.bf16 %v8080_v2, %v8079_v58  ;;  %v11985_v2 = vld [vmem:[#allocation7 + $0x224] ss:$16 sps:$4 sm:$0xff]  }
0x1380   : > { %v11991_v58 = vld [vmem:[#allocation7 + $0x3e4] ss:$16 sps:$4 sm:$0xff]  }
0x1382   : > { %9198 = vmatpush2.bf16.msra.mxu1 %v11944_v25  ;;  %v11961_v25 = vld [vmem:[#allocation7 + $0x12c] ss:$16 sps:$4 sm:$0xff]  }
0x1383   : > { %9199 = vmatprep.subr.bf16.mxu1 %v11949_v53  ;;  %v17504_v53 = vld [vmem:[#allocation40_spill] sm:$0xff] }
0x1384   : > { %v8082_v35 = vsel %vm17473_vm0, %v17504_v53, %v11247_v26  ;;  %v12015_v53 = vld [vmem:[#allocation7 + $0x2ec] ss:$16 sps:$4 sm:$0xff]  }
0x1385   : > { %9036 = vmatmul.mubr.bf16.gmra.mxu1 %v16005_v11  ;;  %v16029_v7 = vpack.c.bf16 %v8082_v35, %v8081_v49  ;;  %v17507_v35 = vld [vmem:[#allocation100_spill] sm:$0xff] }
0x1386   : > { %9045 = vmatprep.mubr.bf16.mxu1 %v16007_v28  ;;  %9200 = vmatpush2.bf16.msra.mxu1 %v11947_v50  ;;  %v11970_v50 = vld [vmem:[#allocation7 + $0x2c4] ss:$16 sps:$4 sm:$0xff]   ;;  %v11188_v49 = vpack.i.bf16 %v17508_v6, %v17507_v35 }
0x1387   : > { %9201 = vmatprep.subr.bf16.mxu1 %v11952_v18  ;;  %v11962_v18 = vld [vmem:[#allocation7 + $0x108] ss:$16 sps:$4 sm:$0xff]   ;;  %9068 = vmatprep.subr.bf16.mxu0 %v11970_v50 }
0x1388   : > { %9069 = vmatpush1.bf16.msra.mxu0 %v11968_v8  ;;  %v16064_v8 = vld [vmem:[#allocation7 + $0x2a8] ss:$16 sps:$4 sm:$0xff]  }
0x1389   : > { %9070 = vmatprep.subr.bf16.mxu0 %v11973_v5  ;;  %v17510_v5 = vld [vmem:[#allocation114_spill] sm:$0xff]  ;;  %v17526_v35 = vld [vmem:[#allocation107_spill] sm:$0xff]  ;;  %v17527_v6 = vld [vmem:[#allocation117_spill] sm:$0xff] }
0x138a   : > { %9202 = vmatpush2.bf16.msra.mxu1 %v11950_v21  ;;  %v11979_v21 = vld [vmem:[#allocation7 + $0x264] ss:$16 sps:$4 sm:$0xff]  }
0x138b   : > { %9203 = vmatprep.subr.bf16.mxu1 %v11955_v46  ;;  %v11977_v46 = vld [vmem:[#allocation7 + $0x260] ss:$16 sps:$4 sm:$0xff]  }
0x138c   : > { %9071 = vmatpush1.bf16.msra.mxu0 %v11971_v51 }
0x138d   : > { %9046 = vmatmul.mubr.bf16.gmra.mxu1 %v16019_v48  ;;  %9072 = vmatprep.subr.bf16.mxu0 %v11976_v62  ;;  %v16072_v62 = vld [vmem:[#allocation7 + $0x28c] ss:$16 sps:$4 sm:$0xff]  }
0x138e   : > { %9055 = vmatprep.mubr.bf16.mxu1 %v16021_v52  ;;  %9204 = vmatpush2.bf16.msra.mxu1 %v11953_v42  ;;  %v12009_v42 = vld [vmem:[#allocation7 + $0x324] ss:$16 sps:$4 sm:$0xff]  }
0x138f   : > { %9205 = vmatprep.subr.bf16.mxu1 %v11958_v14 }
0x1390   : > { %9073 = vmatpush1.bf16.msra.mxu0 %v11974_v59 }
0x1391   : > { %9074 = vmatprep.subr.bf16.mxu0 %v11979_v21  ;;  %v16074_v21 = vld [vmem:[#allocation7 + $0x288] ss:$16 sps:$4 sm:$0xff]  }
0x1392   : > { %9206 = vmatpush2.bf16.msra.mxu1 %v11956_v37 }
0x1393   : > { %9207 = vmatprep.subr.bf16.mxu1 %v11961_v25 }
0x1394   : > { %9075 = vmatpush1.bf16.msra.mxu0 %v11977_v46  ;;  %v16079_v46 = vld [vmem:[#allocation7 + $0x26c] ss:$16 sps:$4 sm:$0xff]  }
0x1395   : > { %9056 = vmatmul.mubr.bf16.gmra.mxu1 %v16029_v7 }
0x1396   : > { %9208 = vmatpush2.bf16.msra.mxu1 %v11959_v4  ;;  %9211 = vmatprep.mubr.bf16.mxu1 %v15924_v27  ;;  %v11982_v27 = vld [vmem:[#allocation7 + $0x244] ss:$16 sps:$4 sm:$0xff]  }
0x1397   : > { %9209 = vmatprep.subr.bf16.mxu1 %v11964_v41  ;;  %9076 = vmatprep.subr.bf16.mxu0 %v11982_v27  ;;  %v16062_v41 = vld [vmem:[#allocation7 + $0x2ac] ss:$16 sps:$4 sm:$0xff]  }
0x1398   : > { %9077 = vmatpush1.bf16.msra.mxu0 %v11980_v40  ;;  %v17512_v27 = vld [vmem:[#allocation102_spill] sm:$0xff]  ;;  %v17513_v40 = vld [vmem:[#allocation95_spill] sm:$0xff] }
0x1399   : > { %9078 = vmatprep.subr.bf16.mxu0 %v11985_v2  ;;  %v11228_v2 = vpack.i.bf16 %v17513_v40, %v17512_v27  ;;  %v16163_v27 = vld [vmem:[#allocation7 + $0x32c] ss:$16 sps:$4 sm:$0xff]  }
0x139a   : > { %9210 = vmatpush2.bf16.msra.mxu1 %v11962_v18  ;;  %v17509_v18 = vld [vmem:[#allocation106_spill] sm:$0xff] }
0x139b   : > { %10951 = vmatprep.subr.bf16.mxu1 %v12015_v53  ;;  %v17511_v51 = vpack.i.bf16 %v17509_v18, %v17510_v5  ;;  %v16157_v18 = vld [vmem:[#allocation7 + $0x34c] ss:$16 sps:$4 sm:$0xff]  }
0x139d   : > { %9212 = vmatmul.mubr.bf16.vlgmr.msra.gmra.mxu1 %v15935_v1  ;;  %v11983_v1 = vld [vmem:[#allocation7 + $0x220] ss:$16 sps:$4 sm:$0xff]  }
0x139e   : > { %9221 = vmatprep.mubr.bf16.mxu1 %v15937_v12  ;;  %9079 = vmatpush1.bf16.msra.mxu0 %v11983_v1  ;;  %v11988_v12 = vld [vmem:[#allocation7 + $0x204] ss:$16 sps:$4 sm:$0xff]   ;;  %v16083_v1 = vld [vmem:[#allocation7 + $0x268] ss:$16 sps:$4 sm:$0xff]  }
0x139f   : > { %9080 = vmatprep.subr.bf16.mxu0 %v11988_v12  ;;  %v16088_v12 = vld [vmem:[#allocation7 + $0x24c] ss:$16 sps:$4 sm:$0xff]  }
0x13a2   : > { %9081 = vmatpush1.bf16.msra.mxu0 %v11986_v13 }
0x13a3   : > { %9082 = vmatprep.subr.bf16.mxu0 %v11991_v58  ;;  %v16090_v58 = vld [vmem:[#allocation7 + $0x248] ss:$16 sps:$4 sm:$0xff]  }
0x13a5   : > { %9222 = vmatmul.mubr.bf16.gmra.mxu1 %v15949_v39  ;;  %v11989_v39 = vld [vmem:[#allocation7 + $0x3e0] ss:$16 sps:$4 sm:$0xff]  }
0x13a6   : > { %9231 = vmatprep.mubr.bf16.mxu1 %v15951_v60  ;;  %9083 = vmatpush2.bf16.msra.mxu0 %v11989_v39  ;;  %v11994_v60 = vld [vmem:[#allocation7 + $0x3c4] ss:$16 sps:$4 sm:$0xff]   ;;  %v16095_v39 = vld [vmem:[#allocation7 + $0x22c] ss:$16 sps:$4 sm:$0xff]  }
0x13a7   : > { %9084 = vmatprep.subr.bf16.mxu0 %v11994_v60  ;;  %v16097_v60 = vld [vmem:[#allocation7 + $0x228] ss:$16 sps:$4 sm:$0xff]  }
0x13aa   : > { %9085 = vmatpush2.bf16.msra.mxu0 %v11992_v22  ;;  %v17514_v22 = vld [vmem:[#allocation105_spill] sm:$0xff] }
0x13ab   : > { %9086 = vmatprep.subr.bf16.mxu0 %v11997_v57  ;;  %v17515_v57 = vld [vmem:[#allocation96_spill] sm:$0xff] }
0x13ad   : > { %9232 = vmatmul.mubr.bf16.gmra.mxu1 %v15963_v44  ;;  %v11995_v44 = vld [vmem:[#allocation7 + $0x3a0] ss:$16 sps:$4 sm:$0xff]  }
0x13ae   : > { %9241 = vmatprep.mubr.bf16.mxu1 %v15965_v34  ;;  %9087 = vmatpush2.bf16.msra.mxu0 %v11995_v44  ;;  %v12000_v34 = vld [vmem:[#allocation7 + $0x384] ss:$16 sps:$4 sm:$0xff]   ;;  %v17516_v44 = vpack.i.bf16 %v17514_v22, %v17515_v57  ;;  %v16169_v57 = vld [vmem:[#allocation7 + $0x30c] ss:$16 sps:$4 sm:$0xff]  }
0x13af   : > { %9088 = vmatprep.subr.bf16.mxu0 %v12000_v34  ;;  %v16105_v34 = vld [vmem:[#allocation7 + $0x20c] ss:$16 sps:$4 sm:$0xff]  }
0x13b2   : > { %9089 = vmatpush2.bf16.msra.mxu0 %v11998_v16  ;;  %v16107_v16 = vld [vmem:[#allocation7 + $0x208] ss:$16 sps:$4 sm:$0xff]  }
0x13b3   : > { %9090 = vmatprep.subr.bf16.mxu0 %v12003_v0  ;;  %v17517_v0 = vld [vmem:[#allocation122_spill] sm:$0xff] }
0x13b5   : > { %9242 = vmatmul.mubr.bf16.gmra.mxu1 %v15977_v10  ;;  %v12001_v10 = vld [vmem:[#allocation7 + $0x360] ss:$16 sps:$4 sm:$0xff]  }
0x13b6   : > { %9251 = vmatprep.mubr.bf16.mxu1 %v15979_v29  ;;  %9091 = vmatpush2.bf16.msra.mxu0 %v12001_v10  ;;  %v12006_v29 = vld [vmem:[#allocation7 + $0x344] ss:$16 sps:$4 sm:$0xff]  }
0x13b7   : > { %9092 = vmatprep.subr.bf16.mxu0 %v12006_v29  ;;  %v17518_v10 = vld [vmem:[#allocation101_spill] sm:$0xff] }
0x13b8   : > { %v17519_v29 = vpack.i.bf16 %v17517_v0, %v17518_v10 }
0x13ba   : > { %9093 = vmatpush2.bf16.msra.mxu0 %v12004_v17  ;;  %v16115_v17 = vld [vmem:[#allocation7 + $0x3ec] ss:$16 sps:$4 sm:$0xff]  }
0x13bb   : > { %9094 = vmatprep.subr.bf16.mxu0 %v12009_v42  ;;  %v16117_v42 = vld [vmem:[#allocation7 + $0x3e8] ss:$16 sps:$4 sm:$0xff]  }
0x13bd   : > { %9252 = vmatmul.mubr.bf16.gmra.mxu1 %v15991_v36  ;;  %v12007_v36 = vld [vmem:[#allocation7 + $0x320] ss:$16 sps:$4 sm:$0xff]  }
0x13be   : > { %9261 = vmatprep.mubr.bf16.mxu1 %v15993_v3  ;;  %9095 = vmatpush2.bf16.msra.mxu0 %v12007_v36  ;;  %v12012_v3 = vld [vmem:[#allocation7 + $0x304] ss:$16 sps:$4 sm:$0xff]  }
0x13bf   : > { %9096 = vmatprep.subr.bf16.mxu0 %v12012_v3  ;;  %v17520_v36 = vld [vmem:[#allocation97_spill] sm:$0xff] }
0x13c2   : > { %9097 = vmatpush2.bf16.msra.mxu0 %v12010_v9  ;;  %v16127_v9 = vld [vmem:[#allocation7 + $0x3c8] ss:$16 sps:$4 sm:$0xff]  }
0x13c3   : > { %9292 = vmatprep.subr.bf16.mxu0 %v12015_v53  ;;  %v16137_v53 = vld [vmem:[#allocation7 + $0x3a8] ss:$16 sps:$4 sm:$0xff]  }
0x13c5   : > { %9262 = vmatmul.mubr.bf16.gmra.mxu1 %v16005_v11 }
0x13c6   : > { %9271 = vmatprep.mubr.bf16.mxu1 %v16007_v28 }
0x13cd   : > { %v10937_v14 = vpop.f32.mrf.mxu1  ;;  %9272 = vmatmul.mubr.bf16.gmra.mxu1 %v16019_v48  ;;  %v16051_v48 = vld [vmem:[#allocation7 + $0x2e8] ss:$16 sps:$4 sm:$0xff]  }
0x13ce   : > { %9281 = vmatprep.mubr.bf16.mxu1 %v16021_v52  ;;  %10967 = vmatpush1.bf16.msra.mxu1 %v16051_v48  ;;  %v16055_v52 = vld [vmem:[#allocation7 + $0x2cc] ss:$16 sps:$4 sm:$0xff]  }
0x13cf   : > { %v7748_v26 = vpop.f32.mrf.mxu1  ;;  %10952 = vmatprep.subr.bf16.mxu1 %v16055_v52 }
0x13d1   : > { %v10938_v11 = vpop.f32.mrf.mxu1 }
0x13d2   : > { %v11198_v4 = vpack.i.bf16 %v10938_v11, %v10937_v14  ;;  %10968 = vmatpush1.bf16.msra.mxu1 %v16057_v30  ;;  %v17521_v14 = vld [vmem:[#allocation98_spill] sm:$0xff]  ;;  %v17523_v11 = vld [vmem:[#allocation99_spill] sm:$0xff] }
0x13d3   : > { %v7751_v37 = vpop.f32.mrf.mxu1  ;;  %10953 = vmatprep.subr.bf16.mxu1 %v16062_v41  ;;  %v17522_v3 = vpack.i.bf16 %v17520_v36, %v17521_v14 }
0x13d4   : > { %v11183_v28 = vpack.i.bf16 %v7751_v37, %v7748_v26  ;;  %v16125_v26 = vld [vmem:[#allocation7 + $0x3cc] ss:$16 sps:$4 sm:$0xff]  }
0x13d5   : > { %v10941_v25 = vpop.f32.mrf.mxu1  ;;  %9282 = vmatmul.mubr.bf16.gmra.mxu1 %v16029_v7  ;;  %v17524_v37 = vld [vmem:[#allocation112_spill] sm:$0xff] }
0x13d6   : > { %11184 = vrot.lane.b32.xlu0 %v11183_v28, %s12763_s21  ;;  %10969 = vmatpush1.bf16.msra.mxu1 %v16064_v8  ;;  %v17525_v28 = vpack.i.bf16 %v17523_v11, %v17524_v37 }
0x13d7   : > { %v7764_v33 = vpop.f32.mrf.mxu1  ;;  %10954 = vmatprep.subr.bf16.mxu1 %v16072_v62 }
0x13d9   : > { %v10942_v7 = vpop.f32.mrf.mxu1 }
0x13da   : > { %11189 = vrot.lane.b32.xlu0 %v11188_v49, %s12763_s21  ;;  %10970 = vmatpush1.bf16.msra.mxu1 %v16074_v21  ;;  %v11238_v13 = vpack.i.bf16 %v10942_v7, %v10941_v25  ;;  %v16135_v25 = vld [vmem:[#allocation7 + $0x3ac] ss:$16 sps:$4 sm:$0xff]   ;;  %v17528_v49 = vpack.i.bf16 %v17526_v35, %v17527_v6 }
0x13db   : > { %v7767_v50 = vpop.f32.mrf.mxu1  ;;  %10955 = vmatprep.subr.bf16.mxu1 %v16079_v46  ;;  %v16151_v7 = vld [vmem:[#allocation7 + $0x36c] ss:$16 sps:$4 sm:$0xff]  }
0x13dc   : > { %v11223_v59 = vpack.i.bf16 %v7767_v50, %v7764_v33  ;;  %v16145_v33 = vld [vmem:[#allocation7 + $0x38c] ss:$16 sps:$4 sm:$0xff]   ;;  %v16153_v50 = vld [vmem:[#allocation7 + $0x368] ss:$16 sps:$4 sm:$0xff]  }
0x13de   : > { %11199 = vrot.lane.b32.xlu0 %v11198_v4, %s12763_s21  ;;  %10971 = vmatpush1.bf16.msra.mxu1 %v16083_v1  ;;  %v16147_v4 = vld [vmem:[#allocation7 + $0x388] ss:$16 sps:$4 sm:$0xff]  }
0x13df   : > { %10956 = vmatprep.subr.bf16.mxu1 %v16088_v12 }
0x13e2   : > { %11209 = vrot.lane.b32.xlu0 %v17511_v51, %s12763_s21  ;;  %10972 = vmatpush1.bf16.msra.mxu1 %v16090_v58  ;;  %v16159_v51 = vld [vmem:[#allocation7 + $0x348] ss:$16 sps:$4 sm:$0xff]  }
0x13e3   : > { %10957 = vmatprep.subr.bf16.mxu1 %v16095_v39 }
0x13e6   : > { %11224 = vrot.lane.b32.xlu0 %v11223_v59, %s12763_s21  ;;  %10973 = vmatpush1.bf16.msra.mxu1 %v16097_v60 }
0x13e7   : > { %10958 = vmatprep.subr.bf16.mxu1 %v16105_v34 }
0x13ea   : > { %11229 = vrot.lane.b32.xlu0 %v11228_v2, %s12763_s21  ;;  %10974 = vmatpush1.bf16.msra.mxu1 %v16107_v16  ;;  %v16165_v2 = vld [vmem:[#allocation7 + $0x328] ss:$16 sps:$4 sm:$0xff]  }
0x13eb   : > { %10959 = vmatprep.subr.bf16.mxu1 %v16115_v17 }
0x13ee   : > { %11239 = vrot.lane.b32.xlu0 %v11238_v13, %s12763_s21  ;;  %10975 = vmatpush2.bf16.msra.mxu1 %v16117_v42 }
0x13ef   : > { %10960 = vmatprep.subr.bf16.mxu1 %v16125_v26 }
0x13f2   : > { %11249 = vrot.lane.b32.xlu0 %v17516_v44, %s12763_s21  ;;  %10976 = vmatpush2.bf16.msra.mxu1 %v16127_v9  ;;  %v16171_v44 = vld [vmem:[#allocation7 + $0x308] ss:$16 sps:$4 sm:$0xff]  }
0x13f3   : > { %10961 = vmatprep.subr.bf16.mxu1 %v16135_v25 }
0x13f6   : > { %11259 = vrot.lane.b32.xlu0 %v17519_v29, %s12763_s21  ;;  %10977 = vmatpush2.bf16.msra.mxu1 %v16137_v53 }
0x13f7   : > { %10962 = vmatprep.subr.bf16.mxu1 %v16145_v33 }
0x13fa   : > { %11269 = vrot.lane.b32.xlu0 %v17522_v3, %s12763_s21  ;;  %10978 = vmatpush2.bf16.msra.mxu1 %v16147_v4 }
0x13fb   : > { %10963 = vmatprep.subr.bf16.mxu1 %v16151_v7 }
0x13fe   : > { %11279 = vrot.lane.b32.xlu0 %v17525_v28, %s12763_s21  ;;  %10979 = vmatpush2.bf16.msra.mxu1 %v16153_v50 }
0x13ff   : > { %10964 = vmatprep.subr.bf16.mxu1 %v16157_v18 }
0x1402   : > { %11289 = vrot.lane.b32.xlu0 %v17528_v49, %s12763_s21  ;;  %10980 = vmatpush2.bf16.msra.mxu1 %v16159_v51 }
0x1403   : > { %10965 = vmatprep.subr.bf16.mxu1 %v16163_v27 }
0x1406   : > { %10981 = vmatpush2.bf16.msra.mxu1 %v16165_v2 }
0x1407   : > { %10966 = vmatprep.subr.bf16.mxu1 %v16169_v57 }
0x140a   : > { %10982 = vmatpush2.bf16.msra.mxu1 %v16171_v44 }
0x140b   : > { %v10945_v5 = vpop.f32.mrf.mxu1 }
0x140d   : > { %v7780_v59 = vpop.f32.mrf.mxu1 }
0x140f   : > { %v10946_v40 = vpop.f32.mrf.mxu1 }
0x1410   : > { %v11263_v10 = vpack.i.bf16 %v10946_v40, %v10945_v5 }
0x1411   : > { %v7783_v13 = vpop.f32.mrf.mxu1 }
0x1412   : > { %v11253_v22 = vpack.i.bf16 %v7783_v13, %v7780_v59 }
0x1414   : > { %11254 = vrot.lane.b32.xlu1 %v11253_v22, %s12763_s21 }
0x1415   : > { %v10949_v0 = vpop.f32.mrf.mxu1 }
0x1417   : > { %v7796_v29 = vpop.f32.mrf.mxu1 }
0x1418   : > { %11264 = vrot.lane.b32.xlu1 %v11263_v10, %s12763_s21 }
0x1419   : > { %v10950_v36 = vpop.f32.mrf.mxu1 }
0x141a   : > { %v11283_v28 = vpack.i.bf16 %v10950_v36, %v10949_v0 }
0x141b   : > { %v7799_v14 = vpop.f32.mrf.mxu1 }
0x141c   : > { %v11273_v3 = vpack.i.bf16 %v7799_v14, %v7796_v29 }
0x141d   : > { %v16177_v11 = vpop.f32.mrf.mxu1 }
0x141e   : > { %17529 = vst [vmem:[#allocation80_spill] sm:$0xff] %v16177_v11  ;;  %11274 = vrot.lane.b32.xlu1 %v11273_v3, %s12763_s21 }
0x141f   : > { %v16180_v37 = vpop.f32.mrf.mxu1 }
0x1420   : > { %17530 = vst [vmem:[#allocation86_spill] sm:$0xff] %v16180_v37 }
0x1421   : > { %v16182_v35 = vpop.f32.mrf.mxu1 }
0x1422   : > { %17531 = vst [vmem:[#allocation85_spill] sm:$0xff] %v16182_v35  ;;  %11284 = vrot.lane.b32.xlu1 %v11283_v28, %s12763_s21  ;;  %v17545_v28 = vld [vmem:[#allocation125_spill] sm:$0xff] }
0x1423   : > { %v16185_v6 = vpop.f32.mrf.mxu1 }
0x1424   : > { %17532 = vst [vmem:[#allocation76_spill] sm:$0xff] %v16185_v6 }
0x1425   : > { %v16187_v49 = vpop.f32.mrf.mxu1 }
0x1426   : > { %17533 = vst [vmem:[#allocation82_spill] sm:$0xff] %v16187_v49 }
0x1427   : > { %v16189_v5 = vpop.f32.mrf.mxu1 }
0x1428   : > { %17534 = vst [vmem:[#allocation81_spill] sm:$0xff] %v16189_v5  ;;  %v16212_v5 = vld [vmem:[#allocation8] sm:$0xf] }
0x1429   : > { %v16191_v59 = vpop.f32.mrf.mxu1 }
0x142a   : > { %17535 = vst [vmem:[#allocation72_spill] sm:$0xff] %v16191_v59  ;;  %v8295_v59 = vsub.s32 0, %v17545_v28 }
0x142b   : > { %v16193_v40 = vpop.f32.mrf.mxu1 }
0x142c   : > { %17536 = vst [vmem:[#allocation78_spill] sm:$0xff] %v16193_v40 }
0x142d   : > { %v16195_v13 = vpop.f32.mrf.mxu1 }
0x142e   : > { %17537 = vst [vmem:[#allocation77_spill] sm:$0xff] %v16195_v13 }
0x142f   : > { %v16197_v22 = vpop.f32.mrf.mxu1 }
0x1430   : > { %17538 = vst [vmem:[#allocation68_spill] sm:$0xff] %v16197_v22  ;;  %v8299_v22 = vsub.s32 1, %v17545_v28 }
0x1431   : > { %v16199_v10 = vpop.f32.mrf.mxu1 }
0x1432   : > { %17539 = vst [vmem:[#allocation74_spill] sm:$0xff] %v16199_v10 }
0x1433   : > { %v16201_v0 = vpop.f32.mrf.mxu1 }
0x1434   : > { %17540 = vst [vmem:[#allocation73_spill] sm:$0xff] %v16201_v0  ;;  %v16220_v0 = vrot.slane %v16212_v5, %v8295_v59 }
0x1435   : > { %v16203_v29 = vpop.f32.mrf.mxu1 }
0x1436   : > { %17541 = vst [vmem:[#allocation64_spill] sm:$0xff] %v16203_v29 }
0x1437   : > { %v16205_v36 = vpop.f32.mrf.mxu1 }
0x1438   : > { %17542 = vst [vmem:[#allocation70_spill] sm:$0xff] %v16205_v36  ;;  %v16223_v36 = vrot.slane %v16212_v5, %v8299_v22 }
0x1439   : > { %v16207_v14 = vpop.f32.mrf.mxu1 }
0x143a   : > { %17543 = vst [vmem:[#allocation69_spill] sm:$0xff] %v16207_v14 }
0x143b   : > { %v16209_v3 = vpop.f32.mrf.mxu1 }
0x143c   : > { %17544 = vst [vmem:[#allocation60_spill] sm:$0xff] %v16209_v3 }
0x143d   : > { %v16214_v40 = vpop.f32.mrf.mxu1 }
0x143e   : > { %17546 = vst [vmem:[#allocation66_spill] sm:$0xff] %v16214_v40 }
0x143f   : > { %v16217_v13 = vpop.f32.mrf.mxu1 }
0x1440   : > { %17547 = vst [vmem:[#allocation65_spill] sm:$0xff] %v16217_v13 }
0x1441   : > { %v9031_v29 = vpop.f32.mrf.mxu1 }
0x1442   : > { %v16226_v14 = vadd.f32 %v9031_v29, %v16220_v0 }
0x1443   : > { %v9033_v3 = vpop.f32.mrf.mxu1 }
0x1444   : > { %17548 = vst [vmem:[#allocation56_spill] sm:$0xff] %v16226_v14  ;;  %v16229_v10 = vadd.f32 %v9033_v3, %v16223_v36 }
0x1445   : > { %v9037_v49 = vpop.f32.mrf.mxu1 }
0x1446   : > { %17549 = vst [vmem:[#allocation62_spill] sm:$0xff] %v16229_v10  ;;  %v16232_v40 = vadd.f32 %v9037_v49, %v16220_v0 }
0x1447   : > { %v9039_v6 = vpop.f32.mrf.mxu1 }
0x1448   : > { %17550 = vst [vmem:[#allocation61_spill] sm:$0xff] %v16232_v40  ;;  %v11185_v13 = vpop.permute.xlu0 %11184  ;;  %v16235_v59 = vadd.f32 %v9039_v6, %v16223_v36 }
0x1449   : > { %v11187_v35 = vunpack.i.h.bf16 %v11185_v13  ;;  %v11186_v37 = vunpack.i.l.bf16 %v11185_v13  ;;  %v9041_v22 = vpop.f32.mrf.mxu1 }
0x144a   : > { %17551 = vst [vmem:[#allocation54_spill] sm:$0xff] %v16235_v59  ;;  %v16238_v11 = vadd.f32 %v9041_v22, %v16220_v0  ;;  %v17556_v22 = vld [vmem:[#allocation37_spill] sm:$0xff] }
0x144b   : > { %v8115_v29 = vsel %vm17553_vm13, %v15698_v20, %v11186_v37  ;;  %v8116_v3 = vsel %vm17554_vm12, %v15702_v19, %v11187_v35  ;;  %v9043_v10 = vpop.f32.mrf.mxu1  ;;  %vm17584_vm13 = vmmov %vm17473_vm0 }
0x144c   : > { %17552 = vst [vmem:[#allocation58_spill] sm:$0xff] %v16238_v11  ;;  %v11190_v49 = vpop.permute.xlu0 %11189  ;;  %v16244_v40 = vpack.c.bf16 %v8116_v3, %v8115_v29  ;;  %v16247_v14 = vadd.f32 %v9043_v10, %v16223_v36  ;;  %vm17586_vm12 = vmmov %vm17473_vm0 }
0x144d   : > { %v11192_v6 = vunpack.i.h.bf16 %v11190_v49  ;;  %v11191_v59 = vunpack.i.l.bf16 %v11190_v49  ;;  %v9047_v13 = vpop.f32.mrf.mxu1 }
0x144e   : > { %17555 = vst [vmem:[#allocation57_spill] sm:$0xff] %v16247_v14  ;;  %9098 = vmatprep.mubr.bf16.mxu0 %v16244_v40  ;;  %v16255_v19 = vadd.f32 %v9047_v13, %v16220_v0 }
0x144f   : > { %v8100_v11 = vsel %vm17557_vm15, %v17556_v22, %v11192_v6  ;;  %v8099_v20 = vsel %vm17559_vm9, %v17558_v15, %v11191_v59  ;;  %v9049_v35 = vpop.f32.mrf.mxu1  ;;  %vm17587_vm15 = vmmov %vm17473_vm0 }
0x1450   : > { %v16257_v37 = vpack.c.bf16 %v8100_v11, %v8099_v20  ;;  %v11200_v29 = vpop.permute.xlu0 %11199  ;;  %v16260_v10 = vadd.f32 %v9049_v35, %v16223_v36  ;;  %vm17588_vm9 = vmmov %vm17473_vm0 }
0x1451   : > { %v11202_v3 = vunpack.i.h.bf16 %v11200_v29  ;;  %v11201_v49 = vunpack.i.l.bf16 %v11200_v29  ;;  %v9051_v14 = vpop.f32.mrf.mxu1 }
0x1452   : > { %9099 = vmatmul.mubr.bf16.vlgmr.msra.gmra.mxu0 %v16257_v37  ;;  %v16264_v6 = vadd.f32 %v9051_v14, %v16220_v0 }
0x1453   : > { %v8117_v15 = vsel %vm17560_vm14, %v15696_v54, %v11201_v49  ;;  %v8118_v11 = vsel %vm17561_vm10, %v15700_v55, %v11202_v3  ;;  %9293 = vmatpush1.bf16.msra.mxu0 %v16051_v48  ;;  %v9053_v59 = vpop.f32.mrf.mxu1  ;;  %v17563_v54 = vld [vmem:[#allocation35_spill] sm:$0xff]  ;;  %vm17590_vm14 = vmmov %vm17473_vm0 }
0x1454   : > { %v11210_v13 = vpop.permute.xlu0 %11209  ;;  %v16271_v22 = vpack.c.bf16 %v8118_v11, %v8117_v15  ;;  %9294 = vmatprep.subr.bf16.mxu0 %v16055_v52  ;;  %v16275_v20 = vadd.f32 %v9053_v59, %v16223_v36  ;;  %v17565_v55 = vld [vmem:[#allocation31_spill] sm:$0xff]  ;;  %vm17591_vm10 = vmmov %vm17473_vm0 }
0x1455   : > { %v11212_v35 = vunpack.i.h.bf16 %v11210_v13  ;;  %v11211_v14 = vunpack.i.l.bf16 %v11210_v13  ;;  %v9057_v29 = vpop.f32.mrf.mxu1 }
0x1456   : > { %17562 = vst [vmem:[#allocation24_spill] sm:$0xff] %v16275_v20  ;;  %9108 = vmatprep.mubr.bf16.mxu0 %v16271_v22  ;;  %v16283_v3 = vadd.f32 %v9057_v29, %v16220_v0 }
0x1457   : > { %v8102_v49 = vsel %vm17564_vm11, %v17563_v54, %v11212_v35  ;;  %v8101_v48 = vsel %vm17566_vm8, %v17565_v55, %v11211_v14  ;;  %9295 = vmatpush1.bf16.msra.mxu0 %v16057_v30  ;;  %v9059_v15 = vpop.f32.mrf.mxu1  ;;  %vm17593_vm11 = vmmov %vm17473_vm0 }
0x1458   : > { %v16286_v52 = vpack.c.bf16 %v8102_v49, %v8101_v48  ;;  %v11225_v11 = vpop.permute.xlu0 %11224  ;;  %9296 = vmatprep.subr.bf16.mxu0 %v16062_v41  ;;  %v16290_v59 = vadd.f32 %v9059_v15, %v16223_v36  ;;  %vm17595_vm8 = vmmov %vm17473_vm0 }
0x1459   : > { %v11227_v13 = vunpack.i.h.bf16 %v11225_v11  ;;  %v11226_v20 = vunpack.i.l.bf16 %v11225_v11  ;;  %v9061_v35 = vpop.f32.mrf.mxu1 }
0x145a   : > { %9109 = vmatmul.mubr.bf16.gmra.mxu0 %v16286_v52  ;;  %v16294_v14 = vadd.f32 %v9061_v35, %v16220_v0 }
0x145b   : > { %v8119_v30 = vsel %vm17567_vm1, %v15706_v38, %v11226_v20  ;;  %v8120_v29 = vsel %vm17568_vm2, %v15710_v63, %v11227_v13  ;;  %9297 = vmatpush1.bf16.msra.mxu0 %v16064_v8  ;;  %v9063_v41 = vpop.f32.mrf.mxu1  ;;  %v17569_v38 = vld [vmem:[#allocation88_spill] sm:$0xff]  ;;  %v17571_v20 = vld [vmem:[#allocation90_spill] sm:$0xff]  ;;  %vm17597_vm1 = vmmov %vm17473_vm0 }
0x145c   : > { %v11230_v54 = vpop.permute.xlu0 %11229  ;;  %v16301_v49 = vpack.c.bf16 %v8120_v29, %v8119_v30  ;;  %9298 = vmatprep.subr.bf16.mxu0 %v16072_v62  ;;  %v16305_v55 = vadd.f32 %v9063_v41, %v16223_v36  ;;  %vm17599_vm2 = vmmov %vm17473_vm0 }
0x145d   : > { %v11232_v48 = vunpack.i.h.bf16 %v11230_v54  ;;  %v11231_v15 = vunpack.i.l.bf16 %v11230_v54  ;;  %v16307_v11 = vpop.f32.mrf.mxu1 }
0x145e   : > { %9118 = vmatprep.mubr.bf16.mxu0 %v16301_v49 }
0x145f   : > { %v8104_v63 = vsel %vm17570_vm3, %v17569_v38, %v11232_v48  ;;  %v8103_v8 = vsel %vm17572_vm4, %v17571_v20, %v11231_v15  ;;  %9299 = vmatpush1.bf16.msra.mxu0 %v16074_v21  ;;  %v16317_v62 = vpop.f32.mrf.mxu1  ;;  %vm17600_vm3 = vmmov %vm17473_vm0 }
0x1460   : > { %v16315_v13 = vpack.c.bf16 %v8104_v63, %v8103_v8  ;;  %v11240_v35 = vpop.permute.xlu0 %11239  ;;  %9300 = vmatprep.subr.bf16.mxu0 %v16079_v46  ;;  %v17575_v8 = vld [vmem:[#allocation123_spill] sm:$0xff]  ;;  %vm17601_vm4 = vmmov %vm17473_vm0 }
0x1461   : > { %v11242_v30 = vunpack.i.h.bf16 %v11240_v35  ;;  %v11241_v29 = vunpack.i.l.bf16 %v11240_v35  ;;  %v16320_v41 = vpop.f32.mrf.mxu1  ;;  %v17576_v35 = vld [vmem:[#allocation126_spill] sm:$0xff] }
0x1462   : > { %9119 = vmatmul.mubr.bf16.gmra.mxu0 %v16315_v13 }
0x1463   : > { %v8121_v54 = vsel %vm17573_vm5, %v15704_v23, %v11241_v29  ;;  %v8122_v48 = vsel %vm17574_vm7, %v15708_v61, %v11242_v30  ;;  %9301 = vmatpush1.bf16.msra.mxu0 %v16083_v1  ;;  %v16328_v21 = vpop.f32.mrf.mxu1  ;;  %vm17602_vm5 = vmmov %vm17473_vm0 }
0x1464   : > { %v11250_v15 = vpop.permute.xlu0 %11249  ;;  %v16330_v38 = vpack.c.bf16 %v8122_v48, %v8121_v54  ;;  %9302 = vmatprep.subr.bf16.mxu0 %v16088_v12  ;;  %vm17604_vm7 = vmmov %vm17473_vm0 }
0x1465   : > { %v11252_v46 = vunpack.i.h.bf16 %v11250_v15  ;;  %v11251_v63 = vunpack.i.l.bf16 %v11250_v15  ;;  %v16333_v20 = vpop.f32.mrf.mxu1 }
0x1466   : > { %9128 = vmatprep.mubr.bf16.mxu0 %v16330_v38 }
0x1467   : > { %v8106_v23 = vsel %vm17473_vm0, %v17575_v8, %v11252_v46  ;;  %v8105_v61 = vsel %vm17577_vm6, %v17576_v35, %v11251_v63  ;;  %9303 = vmatpush1.bf16.msra.mxu0 %v16090_v58  ;;  %v16343_v30 = vpop.f32.mrf.mxu1  ;;  %vm17607_vm6 = vmmov %vm17473_vm0 }
0x1468   : > { %v16341_v1 = vpack.c.bf16 %v8106_v23, %v8105_v61  ;;  %9304 = vmatprep.subr.bf16.mxu0 %v16095_v39 }
0x1469   : > { %v16346_v12 = vpop.f32.mrf.mxu1 }
0x146a   : > { %9129 = vmatmul.mubr.bf16.gmra.mxu0 %v16341_v1 }
0x146b   : > { %9305 = vmatpush1.bf16.msra.mxu0 %v16097_v60  ;;  %v16350_v29 = vpop.f32.mrf.mxu1 }
0x146c   : > { %9306 = vmatprep.subr.bf16.mxu0 %v16105_v34 }
0x146d   : > { %v16353_v54 = vpop.f32.mrf.mxu1 }
0x146f   : > { %9307 = vmatpush1.bf16.msra.mxu0 %v16107_v16  ;;  %v16356_v58 = vpop.f32.mrf.mxu1 }
0x1470   : > { %9308 = vmatprep.subr.bf16.mxu0 %v16115_v17 }
0x1471   : > { %v16359_v48 = vpop.f32.mrf.mxu1 }
0x1473   : > { %9309 = vmatpush2.bf16.msra.mxu0 %v16117_v42  ;;  %v16362_v39 = vpop.f32.mrf.mxu1 }
0x1474   : > { %9310 = vmatprep.subr.bf16.mxu0 %v16125_v26  ;;  %v11260_v26 = vpop.permute.xlu0 %11259 }
0x1475   : > { %v16365_v60 = vpop.f32.mrf.mxu1  ;;  %v11261_v46 = vunpack.i.l.bf16 %v11260_v26 }
0x1477   : > { %9311 = vmatpush2.bf16.msra.mxu0 %v16127_v9  ;;  %v16368_v34 = vpop.f32.mrf.mxu1 }
0x1478   : > { %9312 = vmatprep.subr.bf16.mxu0 %v16135_v25  ;;  %v11270_v63 = vpop.permute.xlu0 %11269 }
0x1479   : > { %v16371_v16 = vpop.f32.mrf.mxu1 }
0x147b   : > { %9313 = vmatpush2.bf16.msra.mxu0 %v16137_v53  ;;  %v16374_v17 = vpop.f32.mrf.mxu1  ;;  %v8303_v53 = vsub.s32 2, %v17545_v28 }
0x147c   : > { %9314 = vmatprep.subr.bf16.mxu0 %v16145_v33  ;;  %v11262_v33 = vunpack.i.h.bf16 %v11260_v26 }
0x147d   : > { %v16377_v42 = vpop.f32.mrf.mxu1 }
0x147f   : > { %9315 = vmatpush2.bf16.msra.mxu0 %v16147_v4  ;;  %v16380_v15 = vpop.f32.mrf.mxu1  ;;  %v8307_v4 = vsub.s32 3, %v17545_v28 }
0x1480   : > { %17578 = vst [vmem:[#allocation26_spill] sm:$0xff] %v16380_v15  ;;  %9316 = vmatprep.subr.bf16.mxu0 %v16151_v7 }
0x1481   : > { %v16383_v9 = vpop.f32.mrf.mxu1 }
0x1482   : > { %17579 = vst [vmem:[#allocation28_spill] sm:$0xff] %v16383_v9 }
0x1483   : > { %9317 = vmatpush2.bf16.msra.mxu0 %v16153_v50  ;;  %v16386_v25 = vpop.f32.mrf.mxu1  ;;  %v16398_v50 = vrot.slane %v16212_v5, %v8303_v53 }
0x1484   : > { %17580 = vst [vmem:[#allocation30_spill] sm:$0xff] %v16386_v25  ;;  %9318 = vmatprep.subr.bf16.mxu0 %v16157_v18  ;;  %v17583_v18 = vld [vmem:[#allocation108_spill] sm:$0xff]  ;;  %v17585_v25 = vld [vmem:[#allocation121_spill] sm:$0xff] }
0x1485   : > { %v16390_v8 = vpop.f32.mrf.mxu1  ;;  %v8108_v26 = vsel %vm17584_vm13, %v17583_v18, %v11262_v33  ;;  %v11280_v18 = vpop.permute.xlu0 %11279 }
0x1486   : > { %17581 = vst [vmem:[#allocation32_spill] sm:$0xff] %v16390_v8  ;;  %v11255_v23 = vpop.permute.xlu1 %11254  ;;  %v8107_v8 = vsel %vm17586_vm12, %v17585_v25, %v11261_v46 }
0x1487   : > { %9319 = vmatpush2.bf16.msra.mxu0 %v16159_v51  ;;  %v11257_v7 = vunpack.i.h.bf16 %v11255_v23  ;;  %v11256_v35 = vunpack.i.l.bf16 %v11255_v23  ;;  %v16394_v61 = vpop.f32.mrf.mxu1  ;;  %v16409_v23 = vrot.slane %v16212_v5, %v8307_v4  ;;  %v8149_v33 = vpack.c.bf16 %v8108_v26, %v8107_v8 }
0x1488   : > { %17582 = vst [vmem:[#allocation34_spill] sm:$0xff] %v16394_v61  ;;  %9320 = vmatprep.subr.bf16.mxu0 %v16163_v27  ;;  %v11281_v8 = vunpack.i.l.bf16 %v11280_v18 }
0x1489   : > { %v9267_v9 = vpop.f32.mrf.mxu1  ;;  %v8123_v28 = vsel %vm17587_vm15, %v15714_v24, %v11256_v35  ;;  %v8124_v51 = vsel %vm17588_vm9, %v15718_v31, %v11257_v7  ;;  %v11272_v24 = vunpack.i.h.bf16 %v11270_v63  ;;  %v11271_v35 = vunpack.i.l.bf16 %v11270_v63  ;;  %v17592_v7 = vld [vmem:[#allocation124_spill] sm:$0xff]  ;;  %v17594_v63 = vld [vmem:[#allocation113_spill] sm:$0xff] }
0x148a   : > { %v16412_v27 = vadd.f32 %v9267_v9, %v16398_v50  ;;  %v11265_v53 = vpop.permute.xlu1 %11264  ;;  %v8150_v61 = vpack.c.bf16 %v8124_v51, %v8123_v28  ;;  %v11282_v9 = vunpack.i.h.bf16 %v11280_v18 }
0x148b   : > { %9321 = vmatpush2.bf16.msra.mxu0 %v16165_v2  ;;  %v11267_v25 = vunpack.i.h.bf16 %v11265_v53  ;;  %v11266_v46 = vunpack.i.l.bf16 %v11265_v53  ;;  %v9269_v15 = vpop.f32.mrf.mxu1  ;;  %v17596_v53 = vld [vmem:[#allocation111_spill] sm:$0xff] }
0x148c   : > { %9322 = vmatprep.subr.bf16.mxu0 %v16169_v57  ;;  %v16417_v31 = vadd.f32 %v9269_v15, %v16409_v23  ;;  %9138 = vmatprep.mubr.bf16.mxu0 %v8150_v61  ;;  %v8110_v57 = vsel %vm17593_vm11, %v17592_v7, %v11272_v24  ;;  %v8109_v15 = vsel %vm17595_vm8, %v17594_v63, %v11271_v35 }
0x148d   : > { %9139 = vmatmul.mubr.bf16.gmra.mxu0 %v8149_v33  ;;  %v8125_v5 = vsel %vm17590_vm14, %v15712_v47, %v11266_v46  ;;  %v8126_v2 = vsel %vm17591_vm10, %v15716_v32, %v11267_v25  ;;  %v8112_v47 = vsel %vm17597_vm1, %v17596_v53, %v11282_v9  ;;  %v17598_v46 = vld [vmem:[#allocation119_spill] sm:$0xff]  ;;  %v8153_v18 = vpack.c.bf16 %v8110_v57, %v8109_v15  ;;  %v11290_v25 = vpop.permute.xlu0 %11289  ;;  %v17605_v15 = vld [vmem:[#allocation104_spill] sm:$0xff] }
0x148e   : > { %17589 = vst [vmem:[#allocation36_spill] sm:$0xff] %v16417_v31  ;;  %v8154_v4 = vpack.c.bf16 %v8126_v2, %v8125_v5  ;;  %v8111_v32 = vsel %vm17599_vm2, %v17598_v46, %v11281_v8  ;;  %v11291_v31 = vunpack.i.l.bf16 %v11290_v25  ;;  %v17603_v8 = vld [vmem:[#allocation103_spill] sm:$0xff] }
0x148f   : > { %9323 = vmatpush2.bf16.msra.mxu0 %v16171_v44  ;;  %v8157_v2 = vpack.c.bf16 %v8112_v47, %v8111_v32  ;;  %v17612_v32 = vld [vmem:[#allocation82_spill] sm:$0xff] }
0x1490   : > { %v11275_v26 = vpop.permute.xlu1 %11274  ;;  %9148 = vmatprep.mubr.bf16.mxu0 %v8154_v4 }
0x1491   : > { %v11277_v28 = vunpack.i.h.bf16 %v11275_v26  ;;  %v11276_v51 = vunpack.i.l.bf16 %v11275_v26  ;;  %v11292_v26 = vunpack.i.h.bf16 %v11290_v25 }
0x1493   : > { %v8127_v44 = vsel %vm17600_vm3, %v15722_v43, %v11276_v51  ;;  %v8128_v24 = vsel %vm17601_vm4, %v15726_v56, %v11277_v28  ;;  %v8114_v56 = vsel %vm17473_vm0, %v17605_v15, %v11292_v26  ;;  %v17606_v28 = vld [vmem:[#allocation116_spill] sm:$0xff] }
0x1494   : > { %v11285_v5 = vpop.permute.xlu1 %11284  ;;  %v8158_v35 = vpack.c.bf16 %v8128_v24, %v8127_v44  ;;  %v8113_v51 = vsel %vm17607_vm6, %v17606_v28, %v11291_v31  ;;  %v17613_v24 = vld [vmem:[#allocation81_spill] sm:$0xff] }
0x1495   : > { %v11287_v7 = vunpack.i.h.bf16 %v11285_v5  ;;  %v11286_v63 = vunpack.i.l.bf16 %v11285_v5  ;;  %9149 = vmatmul.mubr.bf16.gmra.mxu0 %v8153_v18  ;;  %v8161_v53 = vpack.c.bf16 %v8114_v56, %v8113_v51  ;;  %v9000_v5 = vadd.f32 %v17613_v24, %v16223_v36  ;;  %v17616_v56 = vld [vmem:[#allocation77_spill] sm:$0xff] }
0x1496   : > { %9158 = vmatprep.mubr.bf16.mxu0 %v8158_v35  ;;  %9384 = vmatprep.mubr.bf16.mxu1 %v8158_v35  ;;  %v9008_v28 = vadd.f32 %v17616_v56, %v16220_v0 }
0x1497   : > { %9385 = vmatmul.mubr.bf16.vlgmr.msra.gmra.mxu1 %v8157_v2  ;;  %v8129_v9 = vsel %vm17602_vm5, %v15720_v45, %v11286_v63  ;;  %v8130_v43 = vsel %vm17604_vm7, %v17603_v8, %v11287_v7  ;;  %v17608_v45 = vld [vmem:[#allocation80_spill] sm:$0xff]  ;;  %v17615_v8 = vld [vmem:[#allocation78_spill] sm:$0xff] }
0x1498   : > { %v8162_v57 = vpack.c.bf16 %v8130_v43, %v8129_v9  ;;  %v17614_v7 = vld [vmem:[#allocation72_spill] sm:$0xff]  ;;  %v9004_v43 = vadd.f32 %v17615_v8, %v16223_v36 }
0x1499   : > { %v9002_v63 = vadd.f32 %v17614_v7, %v16220_v0 }
0x149a   : > { %9394 = vmatprep.mubr.bf16.mxu1 %v8162_v57 }
0x149d   : > { %9159 = vmatmul.mubr.bf16.gmra.mxu0 %v8157_v2 }
0x149e   : > { %9168 = vmatprep.mubr.bf16.mxu0 %v8162_v57 }
0x149f   : > { %9395 = vmatmul.mubr.bf16.gmra.mxu1 %v8161_v53 }
0x14a5   : > { %9169 = vmatmul.mubr.bf16.gmra.mxu0 %v8161_v53 }
0x14a6   : > { %9324 = vmatprep.mubr.bf16.mxu0 %v16244_v40  ;;  %v8988_v40 = vadd.f32 %v17608_v45, %v16220_v0  ;;  %v17617_v45 = vld [vmem:[#allocation68_spill] sm:$0xff] }
0x14ad   : > { %9325 = vmatmul.mubr.bf16.vlgmr.msra.gmra.mxu0 %v16257_v37 }
0x14ae   : > { %9334 = vmatprep.mubr.bf16.mxu0 %v16271_v22  ;;  %v17609_v22 = vld [vmem:[#allocation86_spill] sm:$0xff] }
0x14af   : > { %v8990_v31 = vadd.f32 %v17609_v22, %v16223_v36 }
0x14b5   : > { %9335 = vmatmul.mubr.bf16.gmra.mxu0 %v16286_v52 }
0x14b6   : > { %9344 = vmatprep.mubr.bf16.mxu0 %v16301_v49  ;;  %v17610_v49 = vld [vmem:[#allocation85_spill] sm:$0xff] }
0x14bd   : > { %9345 = vmatmul.mubr.bf16.gmra.mxu0 %v16315_v13  ;;  %v8992_v13 = vadd.f32 %v17610_v49, %v16220_v0 }
0x14be   : > { %9354 = vmatprep.mubr.bf16.mxu0 %v16330_v38 }
0x14c5   : > { %9355 = vmatmul.mubr.bf16.gmra.mxu0 %v16341_v1 }
0x14c6   : > { %9364 = vmatprep.mubr.bf16.mxu0 %v8150_v61  ;;  %v17611_v61 = vld [vmem:[#allocation76_spill] sm:$0xff] }
0x14cd   : > { %9365 = vmatmul.mubr.bf16.gmra.mxu0 %v8149_v33  ;;  %v8994_v33 = vadd.f32 %v17611_v61, %v16223_v36 }
0x14ce   : > { %9374 = vmatprep.mubr.bf16.mxu0 %v8154_v4 }
0x14d5   : > { %9375 = vmatmul.mubr.bf16.gmra.mxu0 %v8153_v18  ;;  %v8998_v18 = vadd.f32 %v17612_v32, %v16220_v0 }
0x1512   : > { %v9100_v37 = vpop.f32.mrf.mxu0 }
0x1513   : > { %v9101_v52 = vadd.f32 %v9100_v37, %v8988_v40  ;;  %v9010_v40 = vadd.f32 %v17617_v45, %v16223_v36 }
0x1514   : > { %v9102_v47 = vpop.f32.mrf.mxu0 }
0x1515   : > { %9405 = vst [vmem:[%s16460_s23] sm:$0xff] %v9101_v52  ;;  %v9103_v38 = vadd.f32 %v9102_v47, %v8990_v31  ;;  %v17618_v31 = vld [vmem:[#allocation74_spill] sm:$0xff] }
0x1516   : > { %v9104_v1 = vpop.f32.mrf.mxu0  ;;  %v9012_v52 = vadd.f32 %v17618_v31, %v16220_v0 }
0x1517   : > { %9406 = vst [vmem:[%s16460_s23 + $0x8] sm:$0xff] %v9103_v38  ;;  %v9105_v4 = vadd.f32 %v9104_v1, %v8992_v13  ;;  %v17619_v13 = vld [vmem:[#allocation73_spill] sm:$0xff] }
0x1518   : > { %v9106_v46 = vpop.f32.mrf.mxu0  ;;  %v9014_v38 = vadd.f32 %v17619_v13, %v16223_v36 }
0x1519   : > { %9409 = vst [vmem:[%s16460_s23 + $0x20] sm:$0xff] %v9105_v4  ;;  %v9107_v25 = vadd.f32 %v9106_v46, %v8994_v33  ;;  %v17620_v33 = vld [vmem:[#allocation64_spill] sm:$0xff] }
0x151a   : > { %v9110_v44 = vpop.f32.mrf.mxu0  ;;  %v9018_v4 = vadd.f32 %v17620_v33, %v16220_v0 }
0x151b   : > { %9410 = vst [vmem:[%s16460_s23 + $0x28] sm:$0xff] %v9107_v25  ;;  %v9111_v35 = vadd.f32 %v9110_v44, %v8998_v18  ;;  %v17621_v18 = vld [vmem:[#allocation70_spill] sm:$0xff] }
0x151c   : > { %v9112_v2 = vpop.f32.mrf.mxu0  ;;  %v9020_v25 = vadd.f32 %v17621_v18, %v16223_v36  ;;  %v17628_v18 = vld [vmem:[#allocation61_spill] sm:$0xff] }
0x151d   : > { %9413 = vst [vmem:[%s16460_s23 + $0x40] sm:$0xff] %v9111_v35  ;;  %v9113_v26 = vadd.f32 %v9112_v2, %v9000_v5  ;;  %v17622_v5 = vld [vmem:[#allocation69_spill] sm:$0xff] }
0x151e   : > { %v9114_v9 = vpop.f32.mrf.mxu0  ;;  %v9022_v35 = vadd.f32 %v17622_v5, %v16220_v0 }
0x151f   : > { %9414 = vst [vmem:[%s16460_s23 + $0x48] sm:$0xff] %v9113_v26  ;;  %v9115_v57 = vadd.f32 %v9114_v9, %v9002_v63  ;;  %v17623_v63 = vld [vmem:[#allocation60_spill] sm:$0xff] }
0x1520   : > { %v9116_v15 = vpop.f32.mrf.mxu0  ;;  %v9024_v26 = vadd.f32 %v17623_v63, %v16223_v36 }
0x1521   : > { %9417 = vst [vmem:[%s16460_s23 + $0x60] sm:$0xff] %v9115_v57  ;;  %v9117_v51 = vadd.f32 %v9116_v15, %v9004_v43  ;;  %v9273_v57 = vpop.f32.mrf.mxu1 }
0x1522   : > { %v9120_v53 = vpop.f32.mrf.mxu0 }
0x1523   : > { %9418 = vst [vmem:[%s16460_s23 + $0x68] sm:$0xff] %v9117_v51  ;;  %v9121_v37 = vadd.f32 %v9120_v53, %v9008_v28  ;;  %v9275_v15 = vpop.f32.mrf.mxu1  ;;  %v17624_v53 = vld [vmem:[#allocation66_spill] sm:$0xff] }
0x1524   : > { %v9122_v22 = vpop.f32.mrf.mxu0  ;;  %v9028_v45 = vadd.f32 %v17624_v53, %v16220_v0  ;;  %v9276_v5 = vadd.f32 %v9275_v15, %v16409_v23 }
0x1525   : > { %9421 = vst [vmem:[%s16460_s23 + $0x80] sm:$0xff] %v9121_v37  ;;  %v9123_v47 = vadd.f32 %v9122_v22, %v9010_v40  ;;  %v9277_v56 = vpop.f32.mrf.mxu1  ;;  %v17625_v22 = vld [vmem:[#allocation65_spill] sm:$0xff] }
0x1526   : > { %v9124_v49 = vpop.f32.mrf.mxu0  ;;  %v9030_v31 = vadd.f32 %v17625_v22, %v16223_v36  ;;  %v9274_v36 = vadd.f32 %v9273_v57, %v16398_v50 }
0x1527   : > { %9422 = vst [vmem:[%s16460_s23 + $0x88] sm:$0xff] %v9123_v47  ;;  %v9125_v1 = vadd.f32 %v9124_v49, %v9012_v52  ;;  %v9279_v28 = vpop.f32.mrf.mxu1 }
0x1528   : > { %v9126_v61 = vpop.f32.mrf.mxu0  ;;  %v9280_v15 = vadd.f32 %v9279_v28, %v16409_v23 }
0x1529   : > { %9425 = vst [vmem:[%s16460_s23 + $0xa0] sm:$0xff] %v9125_v1  ;;  %v9127_v46 = vadd.f32 %v9126_v61, %v9014_v38  ;;  %v9283_v51 = vpop.f32.mrf.mxu1  ;;  %v17626_v1 = vld [vmem:[#allocation56_spill] sm:$0xff] }
0x152a   : > { %v9130_v32 = vpop.f32.mrf.mxu0 }
0x152b   : > { %9426 = vst [vmem:[%s16460_s23 + $0xa8] sm:$0xff] %v9127_v46  ;;  %v9131_v44 = vadd.f32 %v9130_v32, %v9018_v4  ;;  %v9285_v40 = vpop.f32.mrf.mxu1  ;;  %v17627_v4 = vld [vmem:[#allocation62_spill] sm:$0xff] }
0x152c   : > { %v9132_v24 = vpop.f32.mrf.mxu0  ;;  %v9286_v28 = vadd.f32 %v9285_v40, %v16409_v23 }
0x152d   : > { %9429 = vst [vmem:[%s16460_s23 + $0xc0] sm:$0xff] %v9131_v44  ;;  %v9133_v2 = vadd.f32 %v9132_v24, %v9020_v25  ;;  %v9287_v13 = vpop.f32.mrf.mxu1 }
0x152e   : > { %v9134_v7 = vpop.f32.mrf.mxu0 }
0x152f   : > { %9430 = vst [vmem:[%s16460_s23 + $0xc8] sm:$0xff] %v9133_v2  ;;  %v9135_v9 = vadd.f32 %v9134_v7, %v9022_v35  ;;  %v9289_v46 = vpop.f32.mrf.mxu1  ;;  %v17629_v35 = vld [vmem:[#allocation54_spill] sm:$0xff] }
0x1530   : > { %v9136_v8 = vpop.f32.mrf.mxu0 }
0x1531   : > { %9433 = vst [vmem:[%s16460_s23 + $0xe0] sm:$0xff] %v9135_v9  ;;  %v9137_v43 = vadd.f32 %v9136_v8, %v9024_v26  ;;  %v9278_v9 = vadd.f32 %v9277_v56, %v16398_v50  ;;  %v17630_v8 = vld [vmem:[#allocation58_spill] sm:$0xff]  ;;  %v9284_v56 = vadd.f32 %v9283_v51, %v16398_v50 }
0x1533   : > { %9434 = vst [vmem:[%s16460_s23 + $0xe8] sm:$0xff] %v9137_v43 }
0x154d   : > { %v9140_v37 = vpop.f32.mrf.mxu0 }
0x154e   : > { %v9141_v52 = vadd.f32 %v9140_v37, %v9028_v45  ;;  %v17631_v37 = vld [vmem:[#allocation57_spill] sm:$0xff] }
0x154f   : > { %v9142_v47 = vpop.f32.mrf.mxu0 }
0x1550   : > { %9437 = vst [vmem:[%s16460_s23 + $0x100] sm:$0xff] %v9141_v52  ;;  %v9143_v49 = vadd.f32 %v9142_v47, %v9030_v31 }
0x1551   : > { %v9144_v38 = vpop.f32.mrf.mxu0 }
0x1552   : > { %9438 = vst [vmem:[%s16460_s23 + $0x108] sm:$0xff] %v9143_v49  ;;  %v9145_v61 = vadd.f32 %v9144_v38, %v17626_v1 }
0x1553   : > { %v9146_v33 = vpop.f32.mrf.mxu0 }
0x1554   : > { %9441 = vst [vmem:[%s16460_s23 + $0x120] sm:$0xff] %v9145_v61  ;;  %v9147_v0 = vadd.f32 %v9146_v33, %v17627_v4 }
0x1555   : > { %v9150_v32 = vpop.f32.mrf.mxu0 }
0x1556   : > { %9442 = vst [vmem:[%s16460_s23 + $0x128] sm:$0xff] %v9147_v0  ;;  %v9151_v25 = vadd.f32 %v9150_v32, %v17628_v18  ;;  %v9288_v32 = vadd.f32 %v9287_v13, %v16398_v50 }
0x1557   : > { %v9152_v44 = vpop.f32.mrf.mxu0  ;;  %v9386_v24 = vpop.f32.mrf.mxu1 }
0x1558   : > { %9445 = vst [vmem:[%s16460_s23 + $0x140] sm:$0xff] %v9151_v25  ;;  %v9153_v2 = vadd.f32 %v9152_v44, %v17629_v35  ;;  %v9387_v7 = vadd.f32 %v9386_v24, %v9274_v36  ;;  %v9290_v25 = vadd.f32 %v9289_v46, %v16409_v23 }
0x1559   : > { %v9154_v63 = vpop.f32.mrf.mxu0  ;;  %v9388_v26 = vpop.f32.mrf.mxu1 }
0x155a   : > { %9446 = vst [vmem:[%s16460_s23 + $0x148] sm:$0xff] %v9153_v2  ;;  %9455 = vst [vmem:[%s16460_s23 + $0x190] sm:$0xff] %v9387_v7  ;;  %v9155_v43 = vadd.f32 %v9154_v63, %v17630_v8  ;;  %v9389_v57 = vadd.f32 %v9388_v26, %v9276_v5 }
0x155b   : > { %v9156_v53 = vpop.f32.mrf.mxu0  ;;  %v9390_v45 = vpop.f32.mrf.mxu1 }
0x155c   : > { %9449 = vst [vmem:[%s16460_s23 + $0x160] sm:$0xff] %v9155_v43  ;;  %9456 = vst [vmem:[%s16460_s23 + $0x198] sm:$0xff] %v9389_v57  ;;  %v9157_v22 = vadd.f32 %v9156_v53, %v17631_v37  ;;  %v9391_v31 = vadd.f32 %v9390_v45, %v9278_v9  ;;  %v9214_v9 = vadd.f32 %v16307_v11, %v16398_v50 }
0x155d   : > { %v9160_v52 = vpop.f32.mrf.mxu0  ;;  %v9392_v47 = vpop.f32.mrf.mxu1  ;;  %v9216_v43 = vadd.f32 %v16317_v62, %v16409_v23  ;;  %v9218_v53 = vadd.f32 %v16320_v41, %v16398_v50  ;;  %v9220_v11 = vadd.f32 %v16328_v21, %v16409_v23  ;;  %v9224_v62 = vadd.f32 %v16333_v20, %v16398_v50 }
0x155e   : > { %9450 = vst [vmem:[%s16460_s23 + $0x168] sm:$0xff] %v9157_v22  ;;  %9459 = vst [vmem:[%s16460_s23 + $0x1b0] sm:$0xff] %v9391_v31  ;;  %v9161_v49 = vadd.f32 %v9160_v52, %v16255_v19  ;;  %v9393_v38 = vadd.f32 %v9392_v47, %v9280_v15  ;;  %v9226_v41 = vadd.f32 %v16343_v30, %v16409_v23 }
0x155f   : > { %v9162_v1 = vpop.f32.mrf.mxu0  ;;  %v9396_v61 = vpop.f32.mrf.mxu1  ;;  %v9228_v21 = vadd.f32 %v16346_v12, %v16398_v50  ;;  %v9230_v20 = vadd.f32 %v16350_v29, %v16409_v23  ;;  %v9234_v30 = vadd.f32 %v16353_v54, %v16398_v50  ;;  %v9236_v12 = vadd.f32 %v16356_v58, %v16409_v23 }
0x1560   : > { %9453 = vst [vmem:[%s16460_s23 + $0x180] sm:$0xff] %v9161_v49  ;;  %9460 = vst [vmem:[%s16460_s23 + $0x1b8] sm:$0xff] %v9393_v38  ;;  %v9163_v33 = vadd.f32 %v9162_v1, %v16260_v10  ;;  %v9397_v4 = vadd.f32 %v9396_v61, %v9284_v56  ;;  %v17632_v10 = vld [vmem:[#allocation24_spill] sm:$0xff]  ;;  %v9238_v29 = vadd.f32 %v16359_v48, %v16398_v50 }
0x1561   : > { %v9164_v0 = vpop.f32.mrf.mxu0  ;;  %v9398_v51 = vpop.f32.mrf.mxu1  ;;  %v9240_v54 = vadd.f32 %v16362_v39, %v16409_v23  ;;  %v9244_v58 = vadd.f32 %v16365_v60, %v16398_v50  ;;  %v9246_v48 = vadd.f32 %v16368_v34, %v16409_v23  ;;  %v9248_v39 = vadd.f32 %v16371_v16, %v16398_v50  ;;  %v17633_v16 = vld [vmem:[#allocation26_spill] sm:$0xff] }
0x1562   : > { %9454 = vst [vmem:[%s16460_s23 + $0x188] sm:$0xff] %v9163_v33  ;;  %9463 = vst [vmem:[%s16460_s23 + $0x1d0] sm:$0xff] %v9397_v4  ;;  %v9165_v19 = vadd.f32 %v9164_v0, %v16264_v6  ;;  %v9399_v36 = vadd.f32 %v9398_v51, %v9286_v28  ;;  %v9250_v60 = vadd.f32 %v16374_v17, %v16409_v23  ;;  %v17634_v17 = vld [vmem:[#allocation28_spill] sm:$0xff] }
0x1563   : > { %v9166_v40 = vpop.f32.mrf.mxu0  ;;  %v9400_v18 = vpop.f32.mrf.mxu1  ;;  %v9254_v34 = vadd.f32 %v16377_v42, %v16398_v50  ;;  %v17635_v42 = vld [vmem:[#allocation30_spill] sm:$0xff] }
0x1564   : > { %9457 = vst [vmem:[%s16460_s23 + $0x1a0] sm:$0xff] %v9165_v19  ;;  %9464 = vst [vmem:[%s16460_s23 + $0x1d8] sm:$0xff] %v9399_v36  ;;  %v9167_v44 = vadd.f32 %v9166_v40, %v17632_v10  ;;  %v9401_v24 = vadd.f32 %v9400_v18, %v9288_v32 }
0x1565   : > { %v9170_v5 = vpop.f32.mrf.mxu0  ;;  %v9402_v13 = vpop.f32.mrf.mxu1 }
0x1566   : > { %9458 = vst [vmem:[%s16460_s23 + $0x1a8] sm:$0xff] %v9167_v44  ;;  %9467 = vst [vmem:[%s16460_s23 + $0x1f0] sm:$0xff] %v9401_v24  ;;  %v9171_v6 = vadd.f32 %v9170_v5, %v16283_v3  ;;  %v9403_v35 = vadd.f32 %v9402_v13, %v9290_v25 }
0x1567   : > { %v9172_v2 = vpop.f32.mrf.mxu0 }
0x1568   : > { %9461 = vst [vmem:[%s16460_s23 + $0x1c0] sm:$0xff] %v9171_v6  ;;  %9468 = vst [vmem:[%s16460_s23 + $0x1f8] sm:$0xff] %v9403_v35  ;;  %v9173_v46 = vadd.f32 %v9172_v2, %v16290_v59  ;;  %v9256_v6 = vadd.f32 %v17633_v16, %v16409_v23 }
0x1569   : > { %v9174_v7 = vpop.f32.mrf.mxu0 }
0x156a   : > { %9462 = vst [vmem:[%s16460_s23 + $0x1c8] sm:$0xff] %v9173_v46  ;;  %v9175_v63 = vadd.f32 %v9174_v7, %v16294_v14  ;;  %v9258_v46 = vadd.f32 %v17634_v17, %v16398_v50 }
0x156b   : > { %v9176_v26 = vpop.f32.mrf.mxu0 }
0x156c   : > { %9465 = vst [vmem:[%s16460_s23 + $0x1e0] sm:$0xff] %v9175_v63  ;;  %v9177_v3 = vadd.f32 %v9176_v26, %v16305_v55  ;;  %v9260_v26 = vadd.f32 %v17635_v42, %v16409_v23 }
0x156d   : > { %v9326_v8 = vpop.f32.mrf.mxu0 }
0x156e   : > { %9466 = vst [vmem:[%s16460_s23 + $0x1e8] sm:$0xff] %v9177_v3  ;;  %v9327_v59 = vadd.f32 %v9326_v8, %v9214_v9  ;;  %v17636_v8 = vld [vmem:[#allocation32_spill] sm:$0xff] }
0x156f   : > { %v9328_v57 = vpop.f32.mrf.mxu0 }
0x1570   : > { %9407 = vst [vmem:[%s16460_s23 + $0x10] sm:$0xff] %v9327_v59  ;;  %v9329_v14 = vadd.f32 %v9328_v57, %v9216_v43  ;;  %v9264_v43 = vadd.f32 %v17636_v8, %v16398_v50 }
0x1571   : > { %v9330_v45 = vpop.f32.mrf.mxu0 }
0x1572   : > { %9408 = vst [vmem:[%s16460_s23 + $0x18] sm:$0xff] %v9329_v14  ;;  %v9331_v55 = vadd.f32 %v9330_v45, %v9218_v53  ;;  %v17637_v53 = vld [vmem:[#allocation34_spill] sm:$0xff] }
0x1573   : > { %v9332_v15 = vpop.f32.mrf.mxu0  ;;  %v9266_v14 = vadd.f32 %v17637_v53, %v16409_v23  ;;  %v17638_v23 = vld [vmem:[#allocation36_spill] sm:$0xff] }
0x1574   : > { %9411 = vst [vmem:[%s16460_s23 + $0x30] sm:$0xff] %v9331_v55  ;;  %v9333_v37 = vadd.f32 %v9332_v15, %v9220_v11 }
0x1575   : > { %v9336_v22 = vpop.f32.mrf.mxu0 }
0x1576   : > { %9412 = vst [vmem:[%s16460_s23 + $0x38] sm:$0xff] %v9333_v37  ;;  %v9337_v31 = vadd.f32 %v9336_v22, %v9224_v62 }
0x1577   : > { %v9338_v52 = vpop.f32.mrf.mxu0 }
0x1578   : > { %9415 = vst [vmem:[%s16460_s23 + $0x50] sm:$0xff] %v9337_v31  ;;  %v9339_v47 = vadd.f32 %v9338_v52, %v9226_v41 }
0x1579   : > { %v9340_v56 = vpop.f32.mrf.mxu0 }
0x157a   : > { %9416 = vst [vmem:[%s16460_s23 + $0x58] sm:$0xff] %v9339_v47  ;;  %v9341_v49 = vadd.f32 %v9340_v56, %v9228_v21 }
0x157b   : > { %v9342_v38 = vpop.f32.mrf.mxu0 }
0x157c   : > { %9419 = vst [vmem:[%s16460_s23 + $0x70] sm:$0xff] %v9341_v49  ;;  %v9343_v1 = vadd.f32 %v9342_v38, %v9230_v20 }
0x157d   : > { %v9346_v61 = vpop.f32.mrf.mxu0 }
0x157e   : > { %9420 = vst [vmem:[%s16460_s23 + $0x78] sm:$0xff] %v9343_v1  ;;  %v9347_v28 = vadd.f32 %v9346_v61, %v9234_v30 }
0x157f   : > { %v9348_v33 = vpop.f32.mrf.mxu0 }
0x1580   : > { %9423 = vst [vmem:[%s16460_s23 + $0x90] sm:$0xff] %v9347_v28  ;;  %v9349_v4 = vadd.f32 %v9348_v33, %v9236_v12 }
0x1581   : > { %v9350_v0 = vpop.f32.mrf.mxu0 }
0x1582   : > { %9424 = vst [vmem:[%s16460_s23 + $0x98] sm:$0xff] %v9349_v4  ;;  %v9351_v51 = vadd.f32 %v9350_v0, %v9238_v29 }
0x1583   : > { %v9352_v32 = vpop.f32.mrf.mxu0 }
0x1584   : > { %9427 = vst [vmem:[%s16460_s23 + $0xb0] sm:$0xff] %v9351_v51  ;;  %v9353_v19 = vadd.f32 %v9352_v32, %v9240_v54 }
0x1585   : > { %v9356_v36 = vpop.f32.mrf.mxu0 }
0x1586   : > { %9428 = vst [vmem:[%s16460_s23 + $0xb8] sm:$0xff] %v9353_v19  ;;  %v9357_v40 = vadd.f32 %v9356_v36, %v9244_v58 }
0x1587   : > { %v9358_v18 = vpop.f32.mrf.mxu0 }
0x1588   : > { %9431 = vst [vmem:[%s16460_s23 + $0xd0] sm:$0xff] %v9357_v40  ;;  %v9359_v25 = vadd.f32 %v9358_v18, %v9246_v48 }
0x1589   : > { %v9360_v10 = vpop.f32.mrf.mxu0 }
0x158a   : > { %9432 = vst [vmem:[%s16460_s23 + $0xd8] sm:$0xff] %v9359_v25  ;;  %v9361_v44 = vadd.f32 %v9360_v10, %v9248_v39 }
0x158b   : > { %v9362_v24 = vpop.f32.mrf.mxu0 }
0x158c   : > { %9435 = vst [vmem:[%s16460_s23 + $0xf0] sm:$0xff] %v9361_v44  ;;  %v9363_v5 = vadd.f32 %v9362_v24, %v9250_v60 }
0x158d   : > { %v9366_v13 = vpop.f32.mrf.mxu0 }
0x158e   : > { %9436 = vst [vmem:[%s16460_s23 + $0xf8] sm:$0xff] %v9363_v5  ;;  %v9367_v35 = vadd.f32 %v9366_v13, %v9254_v34 }
0x158f   : > { %v9368_v2 = vpop.f32.mrf.mxu0 }
0x1590   : > { %9439 = vst [vmem:[%s16460_s23 + $0x110] sm:$0xff] %v9367_v35  ;;  %v9369_v7 = vadd.f32 %v9368_v2, %v9256_v6 }
0x1591   : > { %v9370_v63 = vpop.f32.mrf.mxu0 }
0x1592   : > { %9440 = vst [vmem:[%s16460_s23 + $0x118] sm:$0xff] %v9369_v7  ;;  %v9371_v9 = vadd.f32 %v9370_v63, %v9258_v46 }
0x1593   : > { %v9372_v3 = vpop.f32.mrf.mxu0 }
0x1594   : > { %9443 = vst [vmem:[%s16460_s23 + $0x130] sm:$0xff] %v9371_v9  ;;  %v9373_v59 = vadd.f32 %v9372_v3, %v9260_v26 }
0x1595   : > { %v9376_v57 = vpop.f32.mrf.mxu0 }
0x1596   : > { %9444 = vst [vmem:[%s16460_s23 + $0x138] sm:$0xff] %v9373_v59  ;;  %v9377_v45 = vadd.f32 %v9376_v57, %v9264_v43 }
0x1597   : > { %v9378_v11 = vpop.f32.mrf.mxu0 }
0x1598   : > { %9447 = vst [vmem:[%s16460_s23 + $0x150] sm:$0xff] %v9377_v45  ;;  %v9379_v55 = vadd.f32 %v9378_v11, %v9266_v14 }
0x1599   : > { %v9380_v15 = vpop.f32.mrf.mxu0 }
0x159a   : > { %9448 = vst [vmem:[%s16460_s23 + $0x158] sm:$0xff] %v9379_v55  ;;  %v9381_v50 = vadd.f32 %v9380_v15, %v16412_v27 }
0x159b   : > { %v9382_v62 = vpop.f32.mrf.mxu0 }
0x159c   : > { %9451 = vst [vmem:[%s16460_s23 + $0x170] sm:$0xff] %v9381_v50  ;;  %v9383_v37 = vadd.f32 %v9382_v62, %v17638_v23 }
0x159e   : > { %9452 = vst [vmem:[%s16460_s23 + $0x178] sm:$0xff] %v9383_v37 }
0x159f   : > { %12692 = shalt.err (!%p12689_p9)
}
0x15a0   : > { %s12693_s11 = scalar_lea.hbm %s16626_s6, 8192  ;;  %s12697_s28 = scalar_lea.hbm %s16678_s4, 16384 }
0x15a1   : > { %p12694_p7 = scmp.ne.s32.totalorder %s16626_s6, %s12693_s11  ;;  %p12698_p6 = scmp.lt.s32.totalorder %s16626_s6, %s16678_s4 }
0x15a2   : > { %p12699_p11 = scmp.lt.s32.totalorder %s12697_s28, %s12693_s11 }
0x15a3   : > { %p12695_p4 = pnand %p12694_p7, %p17639_p0 }
0x15a4   : > { %p12700_p13 = por %p12699_p11, %p12698_p6 }
0x15a5   : > { %p12696_p8 = pneg %p12695_p4 }
0x15a7   : > { %p12701_p12 = pnand %p12700_p13, %p12696_p8 }
0x15a9   : > { %12704 = shalt.err (!%p12701_p12)
}
0x15aa   : > { %s12765_s23 = smov 512   ;;  %s12766_s10 = smov 32  }
0x15ab   : > { %11061 = dma.vmem_to_hbm [thread:$0]  (%p17639_p0), %s16628_s12, 8192, %s16626_s6, %s9470_s19, %s12765_s23, %s12765_s23, %s12766_s10  }
0x15ac PF: > { %s9498_s13 = sand.u32 1, %s12739_s15   ;;  %p17640_p5 = scmp.ne.s32.totalorder %s16824_s22, 0 }
0x15ad   : > { %p17641_p10 = scmp.ge.s32.totalorder %s12751_s18, 2  ;;  %s9499_s14 = scalar_lea.sflag [#allocation4], %s9498_s13 }
0x15af   : > { %p11078_p1 = pnand %p17641_p10, %p17640_p5 }
0x15b1   : > { %p11079_p2 = pneg %p11078_p1 }
0x15b3   : > { %12734 = dma.done.wait (%p11079_p2), %s9499_s14, 8192  }
0x15b4   : > { %12736 = vsyncadd (%p11079_p2), %s9499_s14, 4294959104  ;;  %p19_p3 = scmp.ge.s32.totalorder %s12864_s20, 4   ;;  %s17642_s15 = smov %s12743_s16 }
0x15b5   : > { %s17643_s16 = smov %s12747_s17  ;;  %s17644_s17 = smov %s12882_s26 }
0x15b6   : > { %s17645_s18 = smov %s12864_s20  ;;  %21 = sbr.rel (!%p19_p3) target bundleno = 7 (0x7), region = 93 }
0x15bb   :  { %9504 = vsyncpa [#allocation3], 1 }
0x15bc   :  { %9506 = vsyncpa [#allocation3 + $0x1], 1 }
0x15bd   :  { %9507 = vsyncpa [#allocation6], 1 }
0x15be   :  { %9508 = vsyncpa [#allocation9], 1 }
0x15bf   :  { %9509 = vsyncpa [#allocation4], 1 }
0x15c0   :  { %9511 = vsyncpa [#allocation4 + $0x1], 1 }

</bundles_post_ra>
